<compile_context>
chip_gen: v7x
topology: tpu7x:2x2x1
jax: 0.10.0
libtpu: 0.0.40
codegen_flags: <defaults>
</compile_context>

<pallas_src>
import functools
from math import ceil

import jax
import jax.numpy as jnp
from jax.experimental import pallas as pl
from jax.experimental.pallas import tpu as pltpu

_CPAD = 128          # uniform padded channel width (1 vreg lane row)
_NUM_CONV_LAYERS = 15  # 5 GNN modules x 3 DenseGraphConv layers


def _full_block(shape):
    rank = len(shape)
    return pl.BlockSpec(shape, lambda i, _r=rank: (0,) * _r)


# ---------------------------------------------------------------------------
# The single fused kernel: entire Net.forward
# ---------------------------------------------------------------------------
def _net_kernel(x_ref, adj_ref, w_ref, v_ref, logp_ref, loss_ref, *, k1, k2):
    f32 = jnp.float32

    def conv_layer(h, adj_m, li, agg=None):
        # DenseGraphConv(aggr='add') + ReLU + BatchNorm1d(eval) + GraphNorm.
        b, n, c = h.shape
        if agg is None:
            agg = jnp.einsum('bnm,bmc->bnc', adj_m, h,
                             preferred_element_type=f32)          # adj @ x
        wrel = w_ref[2 * li]                                      # (C, C)
        wroot = w_ref[2 * li + 1]                                 # (C, C)
        vecs = v_ref[li]                                          # (8, C)
        if n % 8 == 0:
            # Flatten the batch: one (B*N, C) x (C, C) matmul per weight,
            # no per-batch weight broadcast.
            o = (jnp.dot(agg.reshape(b * n, c), wrel, preferred_element_type=f32)
                 + jnp.dot(h.reshape(b * n, c), wroot, preferred_element_type=f32))
            o = o.reshape(b, n, c)
        else:
            # Sub-tile node count (K2 = 4): keep the batched einsum to avoid an
            # unaligned sublane reshape.
            o = (jnp.einsum('bnk,bkc->bnc', agg,
                            jnp.broadcast_to(wrel[None], (b, c, c)),
                            preferred_element_type=f32)
                 + jnp.einsum('bnk,bkc->bnc', h,
                              jnp.broadcast_to(wroot[None], (b, c, c)),
                              preferred_element_type=f32))
        o = o + vecs[0:1, :]                                      # brel
        o = jnp.maximum(o, 0.0)                                   # ReLU
        o = o * vecs[1:2, :] + vecs[2:3, :]                       # BatchNorm (eval)
        # GraphNorm on a dense (B, N, C) tensor with batch=None: PyG scatters
        # with batch=zeros(B) -> statistics over dim 0 only.
        mean = jnp.mean(o, axis=0, keepdims=True)
        ctr = o - mean * vecs[5:6, :]
        var = jnp.mean(ctr * ctr, axis=0, keepdims=True)
        return vecs[3:4, :] * ctr * jax.lax.rsqrt(var + 1e-5) + vecs[4:5, :]
        # Dropout = identity (eval)

    def gnn(h, adj_m, base, agg0=None):
        h = conv_layer(h, adj_m, base, agg0)
        h = conv_layer(h, adj_m, base + 1)
        h = conv_layer(h, adj_m, base + 2)
        return h

    def diff_pool(h, adj_m, s_full, k):
        # s_full has padded cluster columns that are exactly zero -> slice.
        s = s_full[:, :, :k]
        s = s - jnp.max(s, axis=-1, keepdims=True)
        e = jnp.exp(s)
        p = e / jnp.sum(e, axis=-1, keepdims=True)                # exact softmax
        pt = jnp.swapaxes(p, 1, 2)                                # (B, K, N)
        ap = jnp.einsum('bnm,bmk->bnk', adj_m, p,
                        preferred_element_type=f32)               # A s
        out = jnp.einsum('bkn,bnc->bkc', pt, h,
                         preferred_element_type=f32)              # s^T x
        oadj = jnp.einsum('bkn,bnj->bkj', pt, ap,
                          preferred_element_type=f32)             # s^T A s
        gram = jnp.einsum('bkn,bnl->bkl', pt, p,
                          preferred_element_type=f32)             # s^T s
        # ||A - s s^T||_F^2 = ||A||^2 - 2 <A, s s^T> + ||s^T s||^2,
        # with <A, s s^T> = sum((A s) * s).
        link_sq = (jnp.sum(adj_m * adj_m) - 2.0 * jnp.sum(ap * p)
                   + jnp.sum(gram * gram))
        link_sq = jnp.maximum(link_sq, 0.0)
        ent = jnp.sum(-p * jnp.log(p + 1e-15))
        return out, oadj, link_sq, ent

    x = x_ref[...]                                                # (B, N, C)
    adj = adj_ref[...]                                            # (B, N, N)

    # Stage 1: adj@x is shared between gnn1_pool and gnn1_embed layer 0.
    agg0 = jnp.einsum('bnm,bmc->bnc', adj, x, preferred_element_type=f32)
    s = gnn(x, adj, 0, agg0)                                      # gnn1_pool
    xe = gnn(x, adj, 3, agg0)                                     # gnn1_embed
    x1, adj1, lk1, en1 = diff_pool(xe, adj, s, k1)

    # Stage 2: adj1@x1 shared between gnn2_pool and gnn2_embed layer 0.
    agg1 = jnp.einsum('bnm,bmc->bnc', adj1, x1, preferred_element_type=f32)
    s = gnn(x1, adj1, 6, agg1)                                    # gnn2_pool
    xe = gnn(x1, adj1, 9, agg1)                                   # gnn2_embed
    x2, adj2, lk2, en2 = diff_pool(xe, adj1, s, k2)

    x3 = gnn(x2, adj2, 12)                                        # gnn3_embed

    # Readout head (all 128-lane padded; pad logits carry a -1e9 bias).
    hv = v_ref[15]                                                # (8, C) biases
    xm = jnp.mean(x3, axis=1)                                     # (B, C)
    h = jnp.maximum(
        jnp.dot(xm, w_ref[30], preferred_element_type=f32) + hv[0:1, :], 0.0)
    h = jnp.maximum(
        jnp.dot(h, w_ref[31], preferred_element_type=f32) + hv[1:2, :], 0.0)
    logits = jnp.dot(h, w_ref[32], preferred_element_type=f32) + hv[2:3, :]
    logits = logits - jnp.max(logits, axis=-1, keepdims=True)
    logp = logits - jnp.log(jnp.sum(jnp.exp(logits), axis=-1, keepdims=True))
    logp_ref[...] = logp.astype(logp_ref.dtype)

    # Scalar loss partials -> SMEM (sqrt / normalization done in the wrapper).
    loss_ref[0, 0] = lk1
    loss_ref[0, 1] = en1
    loss_ref[0, 2] = lk2
    loss_ref[0, 3] = en2


# ---------------------------------------------------------------------------
# Advisory cost estimate for XLA scheduling around the fused call
# ---------------------------------------------------------------------------
def _estimate_cost(B, N, K1, K2, C, in_bytes):
    flops = 0
    # adj@x shared inside each pool/embed pair -> 5 + 5 + 3 adjacency matmuls.
    for n, n_agg, n_layers in ((N, 5, 6), (K1, 5, 6), (K2, 3, 3)):
        flops += 2 * B * n * n * C * n_agg
        flops += 2 * 2 * B * n * C * C * n_layers       # Wrel + Wroot matmuls
    for n, k in ((N, K1), (K1, K2)):                    # diff_pool matmuls
        flops += 2 * B * (n * n * k + k * n * C + 2 * k * n * k)
    flops += 3 * 2 * B * C * C                          # readout MLP
    transc = 2 * B * (N * K1 + K1 * K2) + 2 * _NUM_CONV_LAYERS * C + 2 * B * C
    bytes_accessed = in_bytes + (B * C + 4) * 4
    return pl.CostEstimate(flops=int(flops), transcendentals=int(transc),
                           bytes_accessed=int(bytes_accessed))


# ---------------------------------------------------------------------------
# Forward pass: one pallas_call for the whole network (4 packed inputs)
# ---------------------------------------------------------------------------
def net_forward(params, x, adj, *, num_classes):
    B, N, F = x.shape
    C = _CPAD
    K1 = ceil(0.5 * N)       # clusters after pool 1
    K2 = ceil(0.5 * K1)      # clusters after pool 2
    wslab, vslab = params['wslab'], params['vslab']

    # Lane-pad the node features to the uniform 128-channel width (single XLA pad).
    xp = jnp.zeros((B, N, C), jnp.float32).at[:, :, :F].set(x.astype(jnp.float32))

    inputs = (xp, adj.astype(jnp.float32), wslab, vslab)
    in_bytes = sum(int(a.size) * a.dtype.itemsize for a in inputs)

    kernel = functools.partial(_net_kernel, k1=K1, k2=K2)

    # Single grid step: GraphNorm statistics couple the whole batch, so the
    # forward is not sharded across TensorCores (see TODO at top of file).
    logp_pad, raw = pl.pallas_call(
        kernel,
        out_shape=(jax.ShapeDtypeStruct((B, C), jnp.float32),
                   jax.ShapeDtypeStruct((1, 4), jnp.float32)),
        grid=(1,),
        in_specs=[_full_block(a.shape) for a in inputs],
        out_specs=(pl.BlockSpec((B, C), lambda i: (0, 0)),
                   pl.BlockSpec(memory_space=pltpu.MemorySpace.SMEM)),
        compiler_params=pltpu.CompilerParams(dimension_semantics=("arbitrary",)),
        cost_estimate=_estimate_cost(B, N, K1, K2, C, in_bytes),
    )(*inputs)

    link1 = jnp.sqrt(raw[0, 0]) / (B * N * N)       # norm(adj - s s^T) / adj.numel()
    ent1 = raw[0, 1] / (B * N)                      # (-s log s).sum(-1).mean()
    link2 = jnp.sqrt(raw[0, 2]) / (B * K1 * K1)
    ent2 = raw[0, 3] / (B * K1)
    return logp_pad[:, :num_classes], link1 + link2, ent1 + ent2


# ---------------------------------------------------------------------------
# Parameter initialization (deterministic, synthetic), packed into two slabs:
#   wslab (33, 128, 128): [Wrel_0, Wroot_0, ..., Wrel_14, Wroot_14, W1, W2, W3]
#   vslab (16, 8, 128):   conv layer vecs [brel, bn_scale, bn_shift, gn_w, gn_b,
#                         gn_mean_scale, 0, 0]; entry 15 = head biases
#                         [b1, b2, b3(-1e9 pad), 0, ...]
# Zero-padding keeps padded channels exactly zero through every layer.
# ---------------------------------------------------------------------------
def _uniform(key, shape, lo, hi):
    return jax.random.uniform(key, shape, jnp.float32, lo, hi)


def _pad2d(w, rows, cols):
    return jnp.zeros((rows, cols), jnp.float32).at[:w.shape[0], :w.shape[1]].set(w)


def _init_conv_layer(key, cin, cout, cpad):
    ks = jax.random.split(key, 9)
    wrel = _uniform(ks[0], (cin, cout), -0.2, 0.2)
    brel = _uniform(ks[1], (cout,), -0.2, 0.2)
    wroot = _uniform(ks[2], (cin, cout), -0.2, 0.2)
    # BatchNorm1d (eval) folded into a per-channel affine
    bn_w = _uniform(ks[3], (cout,), 0.8, 1.2)
    bn_b = _uniform(ks[4], (cout,), -0.1, 0.1)
    rm = _uniform(ks[5], (cout,), -0.1, 0.1)
    rv = _uniform(ks[6], (cout,), 0.5, 1.5)
    bn_scale = bn_w / jnp.sqrt(rv + 1e-5)
    bn_shift = bn_b - rm * bn_scale
    # GraphNorm parameters (mean_scale initialized to 1, PyG default)
    gn_w = _uniform(ks[7], (cout,), 0.8, 1.2)
    gn_b = _uniform(ks[8], (cout,), -0.1, 0.1)
    gn_ms = jnp.ones((cout,), jnp.float32)
    vec = jnp.zeros((8, cpad), jnp.float32)
    for r, v in enumerate((brel, bn_scale, bn_shift, gn_w, gn_b, gn_ms)):
        vec = vec.at[r, :cout].set(v)
    return _pad2d(wrel, cpad, cpad), _pad2d(wroot, cpad, cpad), vec


def init_net(key, max_nodes, features, classes, cpad=_CPAD):
    n1 = ceil(0.5 * max_nodes)
    n2 = ceil(0.5 * n1)
    plan = [
        (features, 16), (16, 32), (32, n1),      # gnn1_pool
        (features, 16), (16, 32), (32, 64),      # gnn1_embed
        (64, 64), (64, 64), (64, n2),            # gnn2_pool
        (64, 64), (64, 64), (64, 64),            # gnn2_embed
        (64, 64), (64, 64), (64, 64),            # gnn3_embed
    ]
    ks = jax.random.split(key, len(plan) + 3)
    wmats, vecs = [], []
    for (cin, cout), k in zip(plan, ks[:len(plan)]):
        wrel, wroot, vec = _init_conv_layer(k, cin, cout, cpad)
        wmats += [wrel, wroot]
        vecs.append(vec)
    # Readout head: lin1 (64->32), lin2 (32->16), lin3 (16->classes).
    head_dims = [(64, 32), (32, 16), (16, classes)]
    head_vec = jnp.zeros((8, cpad), jnp.float32)
    for r, ((cin, cout), k) in enumerate(zip(head_dims, ks[len(plan):])):
        kw, kb = jax.random.split(k)
        w = _uniform(kw, (cin, cout), -0.2, 0.2)
        b = _uniform(kb, (cout,), -0.2, 0.2)
        wmats.append(_pad2d(w, cpad, cpad))
        if r == 2:
            # -1e9 bias on pad classes -> exp() underflows to 0 in log_softmax
            head_vec = head_vec.at[r, :].set(jnp.full((cpad,), -1e9, jnp.float32))
        head_vec = head_vec.at[r, :cout].set(b)
    vecs.append(head_vec)
    return dict(wslab=jnp.stack(wmats, axis=0),      # (33, cpad, cpad)
                vslab=jnp.stack(vecs, axis=0))       # (16, 8, cpad)


# ---------------------------------------------------------------------------
if __name__ == "__main__":
    MAX_NODES, FEATURES, CLASSES, BATCH = 16, 8, 6, 2

    key = jax.random.PRNGKey(0)
    k_params, k_x, k_adj = jax.random.split(key, 3)

    params = init_net(k_params, MAX_NODES, FEATURES, CLASSES)

    x = jax.random.normal(k_x, (BATCH, MAX_NODES, FEATURES), jnp.float32)
    a = jax.random.uniform(k_adj, (BATCH, MAX_NODES, MAX_NODES), jnp.float32)
    adj = 0.5 * (a + jnp.swapaxes(a, 1, 2))          # symmetric dense adjacency

    fwd = jax.jit(functools.partial(net_forward, num_classes=CLASSES))
    logp, link_loss, ent_loss = fwd(params, x, adj)
    jax.block_until_ready((logp, link_loss, ent_loss))

    assert logp.shape == (BATCH, CLASSES)
    assert jnp.all(jnp.isfinite(logp))
    assert jnp.isfinite(link_loss) and jnp.isfinite(ent_loss)
    print("KERNEL_OK")
</pallas_src>

<mosaic_0001>
module attributes {stable_mosaic.version = 11 : i64} {
  func.func @_net_kernel(%arg0: i32, %arg1: memref<2x16x128xf32, #tpu.memory_space<vmem>>, %arg2: memref<2x16x16xf32, #tpu.memory_space<vmem>>, %arg3: memref<33x128x128xf32, #tpu.memory_space<vmem>>, %arg4: memref<16x8x128xf32, #tpu.memory_space<vmem>>, %arg5: memref<2x128xf32, #tpu.memory_space<vmem>>, %arg6: memref<1x4xf32, #tpu.memory_space<smem>>) attributes {dimension_semantics = [#tpu.dimension_semantics<arbitrary>], iteration_bounds = array<i64: 1>, scalar_prefetch = 0 : i64, scratch_operands = 0 : i64, tpu.core_type = #tpu.core_type<tc>, window_params = [{pipeline_mode = #tpu.pipeline_mode<synchronous>, transform_indices = @transform_0, window_bounds = array<i64: 2, 16, 128>}, {pipeline_mode = #tpu.pipeline_mode<synchronous>, transform_indices = @transform_1, window_bounds = array<i64: 2, 16, 16>}, {pipeline_mode = #tpu.pipeline_mode<synchronous>, transform_indices = @transform_2, window_bounds = array<i64: 33, 128, 128>}, {pipeline_mode = #tpu.pipeline_mode<synchronous>, transform_indices = @transform_3, window_bounds = array<i64: 16, 8, 128>}, {pipeline_mode = #tpu.pipeline_mode<synchronous>, transform_indices = @transform_4, window_bounds = array<i64: 2, 128>}, {transform_indices = @transform_5, window_bounds = array<i64: 1, 4>}]} {
    %c0 = arith.constant 0 : index
    %c0_0 = arith.constant 0 : index
    %c0_1 = arith.constant 0 : index
    %0 = vector.load %arg1[%c0, %c0_0, %c0_1] : memref<2x16x128xf32, #tpu.memory_space<vmem>>, vector<2x16x128xf32>
    %c0_2 = arith.constant 0 : index
    %c0_3 = arith.constant 0 : index
    %c0_4 = arith.constant 0 : index
    %1 = vector.load %arg2[%c0_2, %c0_3, %c0_4] : memref<2x16x16xf32, #tpu.memory_space<vmem>>, vector<2x16x16xf32>
    "tpu.trace_start"() <{level = 10 : i32, message = "bnm,bmc->bnc"}> : () -> ()
    %cst = arith.constant dense<0.000000e+00> : vector<2x16x128xf32>
    %2 = tpu.matmul %1, %0, %cst {dimension_numbers = #tpu.dot_dimension_numbers<[2], [1], [1], [2], [0, 0, 0, 1, 1, 2], [0], [0]>} : vector<2x16x16xf32>, vector<2x16x128xf32>, vector<2x16x128xf32> -> vector<2x16x128xf32>
    "tpu.trace_stop"() : () -> ()
    %c0_5 = arith.constant 0 : index
    %c0_6 = arith.constant 0 : index
    %c0_7 = arith.constant 0 : index
    %3 = vector.load %arg3[%c0_5, %c0_6, %c0_7] : memref<33x128x128xf32, #tpu.memory_space<vmem>>, vector<1x128x128xf32>
    %4 = vector.shape_cast %3 : vector<1x128x128xf32> to vector<128x128xf32>
    %c1 = arith.constant 1 : index
    %c0_8 = arith.constant 0 : index
    %c0_9 = arith.constant 0 : index
    %5 = vector.load %arg3[%c1, %c0_8, %c0_9] : memref<33x128x128xf32, #tpu.memory_space<vmem>>, vector<1x128x128xf32>
    %6 = vector.shape_cast %5 : vector<1x128x128xf32> to vector<128x128xf32>
    %c0_10 = arith.constant 0 : index
    %c0_11 = arith.constant 0 : index
    %c0_12 = arith.constant 0 : index
    %7 = vector.load %arg4[%c0_10, %c0_11, %c0_12] : memref<16x8x128xf32, #tpu.memory_space<vmem>>, vector<1x8x128xf32>
    %8 = vector.shape_cast %7 : vector<1x8x128xf32> to vector<8x128xf32>
    %9 = vector.shape_cast %2 : vector<2x16x128xf32> to vector<32x128xf32>
    %cst_13 = arith.constant dense<0.000000e+00> : vector<32x128xf32>
    %10 = tpu.matmul %9, %4, %cst_13 {dimension_numbers = #tpu.dot_dimension_numbers<[1], [0], [0], [1], [0, 0, 1, 1], [], []>} : vector<32x128xf32>, vector<128x128xf32>, vector<32x128xf32> -> vector<32x128xf32>
    %11 = vector.shape_cast %0 : vector<2x16x128xf32> to vector<32x128xf32>
    %cst_14 = arith.constant dense<0.000000e+00> : vector<32x128xf32>
    %12 = tpu.matmul %11, %6, %cst_14 {dimension_numbers = #tpu.dot_dimension_numbers<[1], [0], [0], [1], [0, 0, 1, 1], [], []>} : vector<32x128xf32>, vector<128x128xf32>, vector<32x128xf32> -> vector<32x128xf32>
    %13 = arith.addf %10, %12 : vector<32x128xf32>
    %14 = vector.shape_cast %13 : vector<32x128xf32> to vector<2x16x128xf32>
    %15 = vector.extract_strided_slice %8 {offsets = [0, 0], sizes = [1, 128], strides = [1, 1]} : vector<8x128xf32> to vector<1x128xf32>
    %16 = vector.shape_cast %15 : vector<1x128xf32> to vector<1x1x128xf32>
    %17 = vector.broadcast %16 : vector<1x1x128xf32> to vector<2x16x128xf32>
    %18 = arith.addf %14, %17 : vector<2x16x128xf32>
    %cst_15 = arith.constant 0.000000e+00 : f32
    %19 = vector.broadcast %cst_15 : f32 to vector<2x16x128xf32>
    %20 = arith.maximumf %18, %19 : vector<2x16x128xf32>
    %21 = vector.extract_strided_slice %8 {offsets = [1, 0], sizes = [1, 128], strides = [1, 1]} : vector<8x128xf32> to vector<1x128xf32>
    %22 = vector.shape_cast %21 : vector<1x128xf32> to vector<1x1x128xf32>
    %23 = vector.broadcast %22 : vector<1x1x128xf32> to vector<2x16x128xf32>
    %24 = arith.mulf %20, %23 : vector<2x16x128xf32>
    %25 = vector.extract_strided_slice %8 {offsets = [2, 0], sizes = [1, 128], strides = [1, 1]} : vector<8x128xf32> to vector<1x128xf32>
    %26 = vector.shape_cast %25 : vector<1x128xf32> to vector<1x1x128xf32>
    %27 = vector.broadcast %26 : vector<1x1x128xf32> to vector<2x16x128xf32>
    %28 = arith.addf %24, %27 : vector<2x16x128xf32>
    %cst_16 = arith.constant dense<0.000000e+00> : vector<16x128xf32>
    %29 = vector.multi_reduction <add>, %28, %cst_16 [0] : vector<2x16x128xf32> to vector<16x128xf32>
    %30 = vector.shape_cast %29 : vector<16x128xf32> to vector<1x16x128xf32>
    %cst_17 = arith.constant 2.000000e+00 : f32
    %31 = vector.broadcast %cst_17 : f32 to vector<1x16x128xf32>
    %32 = arith.divf %30, %31 : vector<1x16x128xf32>
    %33 = vector.extract_strided_slice %8 {offsets = [5, 0], sizes = [1, 128], strides = [1, 1]} : vector<8x128xf32> to vector<1x128xf32>
    %34 = vector.shape_cast %33 : vector<1x128xf32> to vector<1x1x128xf32>
    %35 = vector.broadcast %34 : vector<1x1x128xf32> to vector<1x16x128xf32>
    %36 = arith.mulf %32, %35 : vector<1x16x128xf32>
    %37 = vector.broadcast %36 : vector<1x16x128xf32> to vector<2x16x128xf32>
    %38 = arith.subf %28, %37 : vector<2x16x128xf32>
    %39 = arith.mulf %38, %38 : vector<2x16x128xf32>
    %cst_18 = arith.constant dense<0.000000e+00> : vector<16x128xf32>
    %40 = vector.multi_reduction <add>, %39, %cst_18 [0] : vector<2x16x128xf32> to vector<16x128xf32>
    %41 = vector.shape_cast %40 : vector<16x128xf32> to vector<1x16x128xf32>
    %cst_19 = arith.constant 2.000000e+00 : f32
    %42 = vector.broadcast %cst_19 : f32 to vector<1x16x128xf32>
    %43 = arith.divf %41, %42 : vector<1x16x128xf32>
    %44 = vector.extract_strided_slice %8 {offsets = [3, 0], sizes = [1, 128], strides = [1, 1]} : vector<8x128xf32> to vector<1x128xf32>
    %45 = vector.shape_cast %44 : vector<1x128xf32> to vector<1x1x128xf32>
    %46 = vector.broadcast %45 : vector<1x1x128xf32> to vector<2x16x128xf32>
    %47 = arith.mulf %46, %38 : vector<2x16x128xf32>
    %cst_20 = arith.constant 9.99999974E-6 : f32
    %48 = vector.broadcast %cst_20 : f32 to vector<1x16x128xf32>
    %49 = arith.addf %43, %48 : vector<1x16x128xf32>
    %50 = math.rsqrt %49 : vector<1x16x128xf32>
    %51 = vector.broadcast %50 : vector<1x16x128xf32> to vector<2x16x128xf32>
    %52 = arith.mulf %47, %51 : vector<2x16x128xf32>
    %53 = vector.extract_strided_slice %8 {offsets = [4, 0], sizes = [1, 128], strides = [1, 1]} : vector<8x128xf32> to vector<1x128xf32>
    %54 = vector.shape_cast %53 : vector<1x128xf32> to vector<1x1x128xf32>
    %55 = vector.broadcast %54 : vector<1x1x128xf32> to vector<2x16x128xf32>
    %56 = arith.addf %52, %55 : vector<2x16x128xf32>
    "tpu.trace_start"() <{level = 10 : i32, message = "bnm,bmc->bnc"}> : () -> ()
    %cst_21 = arith.constant dense<0.000000e+00> : vector<2x16x128xf32>
    %57 = tpu.matmul %1, %56, %cst_21 {dimension_numbers = #tpu.dot_dimension_numbers<[2], [1], [1], [2], [0, 0, 0, 1, 1, 2], [0], [0]>} : vector<2x16x16xf32>, vector<2x16x128xf32>, vector<2x16x128xf32> -> vector<2x16x128xf32>
    "tpu.trace_stop"() : () -> ()
    %c2 = arith.constant 2 : index
    %c0_22 = arith.constant 0 : index
    %c0_23 = arith.constant 0 : index
    %58 = vector.load %arg3[%c2, %c0_22, %c0_23] : memref<33x128x128xf32, #tpu.memory_space<vmem>>, vector<1x128x128xf32>
    %59 = vector.shape_cast %58 : vector<1x128x128xf32> to vector<128x128xf32>
    %c3 = arith.constant 3 : index
    %c0_24 = arith.constant 0 : index
    %c0_25 = arith.constant 0 : index
    %60 = vector.load %arg3[%c3, %c0_24, %c0_25] : memref<33x128x128xf32, #tpu.memory_space<vmem>>, vector<1x128x128xf32>
    %61 = vector.shape_cast %60 : vector<1x128x128xf32> to vector<128x128xf32>
    %c1_26 = arith.constant 1 : index
    %c0_27 = arith.constant 0 : index
    %c0_28 = arith.constant 0 : index
    %62 = vector.load %arg4[%c1_26, %c0_27, %c0_28] : memref<16x8x128xf32, #tpu.memory_space<vmem>>, vector<1x8x128xf32>
    %63 = vector.shape_cast %62 : vector<1x8x128xf32> to vector<8x128xf32>
    %64 = vector.shape_cast %57 : vector<2x16x128xf32> to vector<32x128xf32>
    %cst_29 = arith.constant dense<0.000000e+00> : vector<32x128xf32>
    %65 = tpu.matmul %64, %59, %cst_29 {dimension_numbers = #tpu.dot_dimension_numbers<[1], [0], [0], [1], [0, 0, 1, 1], [], []>} : vector<32x128xf32>, vector<128x128xf32>, vector<32x128xf32> -> vector<32x128xf32>
    %66 = vector.shape_cast %56 : vector<2x16x128xf32> to vector<32x128xf32>
    %cst_30 = arith.constant dense<0.000000e+00> : vector<32x128xf32>
    %67 = tpu.matmul %66, %61, %cst_30 {dimension_numbers = #tpu.dot_dimension_numbers<[1], [0], [0], [1], [0, 0, 1, 1], [], []>} : vector<32x128xf32>, vector<128x128xf32>, vector<32x128xf32> -> vector<32x128xf32>
    %68 = arith.addf %65, %67 : vector<32x128xf32>
    %69 = vector.shape_cast %68 : vector<32x128xf32> to vector<2x16x128xf32>
    %70 = vector.extract_strided_slice %63 {offsets = [0, 0], sizes = [1, 128], strides = [1, 1]} : vector<8x128xf32> to vector<1x128xf32>
    %71 = vector.shape_cast %70 : vector<1x128xf32> to vector<1x1x128xf32>
    %72 = vector.broadcast %71 : vector<1x1x128xf32> to vector<2x16x128xf32>
    %73 = arith.addf %69, %72 : vector<2x16x128xf32>
    %cst_31 = arith.constant 0.000000e+00 : f32
    %74 = vector.broadcast %cst_31 : f32 to vector<2x16x128xf32>
    %75 = arith.maximumf %73, %74 : vector<2x16x128xf32>
    %76 = vector.extract_strided_slice %63 {offsets = [1, 0], sizes = [1, 128], strides = [1, 1]} : vector<8x128xf32> to vector<1x128xf32>
    %77 = vector.shape_cast %76 : vector<1x128xf32> to vector<1x1x128xf32>
    %78 = vector.broadcast %77 : vector<1x1x128xf32> to vector<2x16x128xf32>
    %79 = arith.mulf %75, %78 : vector<2x16x128xf32>
    %80 = vector.extract_strided_slice %63 {offsets = [2, 0], sizes = [1, 128], strides = [1, 1]} : vector<8x128xf32> to vector<1x128xf32>
    %81 = vector.shape_cast %80 : vector<1x128xf32> to vector<1x1x128xf32>
    %82 = vector.broadcast %81 : vector<1x1x128xf32> to vector<2x16x128xf32>
    %83 = arith.addf %79, %82 : vector<2x16x128xf32>
    %cst_32 = arith.constant dense<0.000000e+00> : vector<16x128xf32>
    %84 = vector.multi_reduction <add>, %83, %cst_32 [0] : vector<2x16x128xf32> to vector<16x128xf32>
    %85 = vector.shape_cast %84 : vector<16x128xf32> to vector<1x16x128xf32>
    %cst_33 = arith.constant 2.000000e+00 : f32
    %86 = vector.broadcast %cst_33 : f32 to vector<1x16x128xf32>
    %87 = arith.divf %85, %86 : vector<1x16x128xf32>
    %88 = vector.extract_strided_slice %63 {offsets = [5, 0], sizes = [1, 128], strides = [1, 1]} : vector<8x128xf32> to vector<1x128xf32>
    %89 = vector.shape_cast %88 : vector<1x128xf32> to vector<1x1x128xf32>
    %90 = vector.broadcast %89 : vector<1x1x128xf32> to vector<1x16x128xf32>
    %91 = arith.mulf %87, %90 : vector<1x16x128xf32>
    %92 = vector.broadcast %91 : vector<1x16x128xf32> to vector<2x16x128xf32>
    %93 = arith.subf %83, %92 : vector<2x16x128xf32>
    %94 = arith.mulf %93, %93 : vector<2x16x128xf32>
    %cst_34 = arith.constant dense<0.000000e+00> : vector<16x128xf32>
    %95 = vector.multi_reduction <add>, %94, %cst_34 [0] : vector<2x16x128xf32> to vector<16x128xf32>
    %96 = vector.shape_cast %95 : vector<16x128xf32> to vector<1x16x128xf32>
    %cst_35 = arith.constant 2.000000e+00 : f32
    %97 = vector.broadcast %cst_35 : f32 to vector<1x16x128xf32>
    %98 = arith.divf %96, %97 : vector<1x16x128xf32>
    %99 = vector.extract_strided_slice %63 {offsets = [3, 0], sizes = [1, 128], strides = [1, 1]} : vector<8x128xf32> to vector<1x128xf32>
    %100 = vector.shape_cast %99 : vector<1x128xf32> to vector<1x1x128xf32>
    %101 = vector.broadcast %100 : vector<1x1x128xf32> to vector<2x16x128xf32>
    %102 = arith.mulf %101, %93 : vector<2x16x128xf32>
    %cst_36 = arith.constant 9.99999974E-6 : f32
    %103 = vector.broadcast %cst_36 : f32 to vector<1x16x128xf32>
    %104 = arith.addf %98, %103 : vector<1x16x128xf32>
    %105 = math.rsqrt %104 : vector<1x16x128xf32>
    %106 = vector.broadcast %105 : vector<1x16x128xf32> to vector<2x16x128xf32>
    %107 = arith.mulf %102, %106 : vector<2x16x128xf32>
    %108 = vector.extract_strided_slice %63 {offsets = [4, 0], sizes = [1, 128], strides = [1, 1]} : vector<8x128xf32> to vector<1x128xf32>
    %109 = vector.shape_cast %108 : vector<1x128xf32> to vector<1x1x128xf32>
    %110 = vector.broadcast %109 : vector<1x1x128xf32> to vector<2x16x128xf32>
    %111 = arith.addf %107, %110 : vector<2x16x128xf32>
    "tpu.trace_start"() <{level = 10 : i32, message = "bnm,bmc->bnc"}> : () -> ()
    %cst_37 = arith.constant dense<0.000000e+00> : vector<2x16x128xf32>
    %112 = tpu.matmul %1, %111, %cst_37 {dimension_numbers = #tpu.dot_dimension_numbers<[2], [1], [1], [2], [0, 0, 0, 1, 1, 2], [0], [0]>} : vector<2x16x16xf32>, vector<2x16x128xf32>, vector<2x16x128xf32> -> vector<2x16x128xf32>
    "tpu.trace_stop"() : () -> ()
    %c4 = arith.constant 4 : index
    %c0_38 = arith.constant 0 : index
    %c0_39 = arith.constant 0 : index
    %113 = vector.load %arg3[%c4, %c0_38, %c0_39] : memref<33x128x128xf32, #tpu.memory_space<vmem>>, vector<1x128x128xf32>
    %114 = vector.shape_cast %113 : vector<1x128x128xf32> to vector<128x128xf32>
    %c5 = arith.constant 5 : index
    %c0_40 = arith.constant 0 : index
    %c0_41 = arith.constant 0 : index
    %115 = vector.load %arg3[%c5, %c0_40, %c0_41] : memref<33x128x128xf32, #tpu.memory_space<vmem>>, vector<1x128x128xf32>
    %116 = vector.shape_cast %115 : vector<1x128x128xf32> to vector<128x128xf32>
    %c2_42 = arith.constant 2 : index
    %c0_43 = arith.constant 0 : index
    %c0_44 = arith.constant 0 : index
    %117 = vector.load %arg4[%c2_42, %c0_43, %c0_44] : memref<16x8x128xf32, #tpu.memory_space<vmem>>, vector<1x8x128xf32>
    %118 = vector.shape_cast %117 : vector<1x8x128xf32> to vector<8x128xf32>
    %119 = vector.shape_cast %112 : vector<2x16x128xf32> to vector<32x128xf32>
    %cst_45 = arith.constant dense<0.000000e+00> : vector<32x128xf32>
    %120 = tpu.matmul %119, %114, %cst_45 {dimension_numbers = #tpu.dot_dimension_numbers<[1], [0], [0], [1], [0, 0, 1, 1], [], []>} : vector<32x128xf32>, vector<128x128xf32>, vector<32x128xf32> -> vector<32x128xf32>
    %121 = vector.shape_cast %111 : vector<2x16x128xf32> to vector<32x128xf32>
    %cst_46 = arith.constant dense<0.000000e+00> : vector<32x128xf32>
    %122 = tpu.matmul %121, %116, %cst_46 {dimension_numbers = #tpu.dot_dimension_numbers<[1], [0], [0], [1], [0, 0, 1, 1], [], []>} : vector<32x128xf32>, vector<128x128xf32>, vector<32x128xf32> -> vector<32x128xf32>
    %123 = arith.addf %120, %122 : vector<32x128xf32>
    %124 = vector.shape_cast %123 : vector<32x128xf32> to vector<2x16x128xf32>
    %125 = vector.extract_strided_slice %118 {offsets = [0, 0], sizes = [1, 128], strides = [1, 1]} : vector<8x128xf32> to vector<1x128xf32>
    %126 = vector.shape_cast %125 : vector<1x128xf32> to vector<1x1x128xf32>
    %127 = vector.broadcast %126 : vector<1x1x128xf32> to vector<2x16x128xf32>
    %128 = arith.addf %124, %127 : vector<2x16x128xf32>
    %cst_47 = arith.constant 0.000000e+00 : f32
    %129 = vector.broadcast %cst_47 : f32 to vector<2x16x128xf32>
    %130 = arith.maximumf %128, %129 : vector<2x16x128xf32>
    %131 = vector.extract_strided_slice %118 {offsets = [1, 0], sizes = [1, 128], strides = [1, 1]} : vector<8x128xf32> to vector<1x128xf32>
    %132 = vector.shape_cast %131 : vector<1x128xf32> to vector<1x1x128xf32>
    %133 = vector.broadcast %132 : vector<1x1x128xf32> to vector<2x16x128xf32>
    %134 = arith.mulf %130, %133 : vector<2x16x128xf32>
    %135 = vector.extract_strided_slice %118 {offsets = [2, 0], sizes = [1, 128], strides = [1, 1]} : vector<8x128xf32> to vector<1x128xf32>
    %136 = vector.shape_cast %135 : vector<1x128xf32> to vector<1x1x128xf32>
    %137 = vector.broadcast %136 : vector<1x1x128xf32> to vector<2x16x128xf32>
    %138 = arith.addf %134, %137 : vector<2x16x128xf32>
    %cst_48 = arith.constant dense<0.000000e+00> : vector<16x128xf32>
    %139 = vector.multi_reduction <add>, %138, %cst_48 [0] : vector<2x16x128xf32> to vector<16x128xf32>
    %140 = vector.shape_cast %139 : vector<16x128xf32> to vector<1x16x128xf32>
    %cst_49 = arith.constant 2.000000e+00 : f32
    %141 = vector.broadcast %cst_49 : f32 to vector<1x16x128xf32>
    %142 = arith.divf %140, %141 : vector<1x16x128xf32>
    %143 = vector.extract_strided_slice %118 {offsets = [5, 0], sizes = [1, 128], strides = [1, 1]} : vector<8x128xf32> to vector<1x128xf32>
    %144 = vector.shape_cast %143 : vector<1x128xf32> to vector<1x1x128xf32>
    %145 = vector.broadcast %144 : vector<1x1x128xf32> to vector<1x16x128xf32>
    %146 = arith.mulf %142, %145 : vector<1x16x128xf32>
    %147 = vector.broadcast %146 : vector<1x16x128xf32> to vector<2x16x128xf32>
    %148 = arith.subf %138, %147 : vector<2x16x128xf32>
    %149 = arith.mulf %148, %148 : vector<2x16x128xf32>
    %cst_50 = arith.constant dense<0.000000e+00> : vector<16x128xf32>
    %150 = vector.multi_reduction <add>, %149, %cst_50 [0] : vector<2x16x128xf32> to vector<16x128xf32>
    %151 = vector.shape_cast %150 : vector<16x128xf32> to vector<1x16x128xf32>
    %cst_51 = arith.constant 2.000000e+00 : f32
    %152 = vector.broadcast %cst_51 : f32 to vector<1x16x128xf32>
    %153 = arith.divf %151, %152 : vector<1x16x128xf32>
    %154 = vector.extract_strided_slice %118 {offsets = [3, 0], sizes = [1, 128], strides = [1, 1]} : vector<8x128xf32> to vector<1x128xf32>
    %155 = vector.shape_cast %154 : vector<1x128xf32> to vector<1x1x128xf32>
    %156 = vector.broadcast %155 : vector<1x1x128xf32> to vector<2x16x128xf32>
    %157 = arith.mulf %156, %148 : vector<2x16x128xf32>
    %cst_52 = arith.constant 9.99999974E-6 : f32
    %158 = vector.broadcast %cst_52 : f32 to vector<1x16x128xf32>
    %159 = arith.addf %153, %158 : vector<1x16x128xf32>
    %160 = math.rsqrt %159 : vector<1x16x128xf32>
    %161 = vector.broadcast %160 : vector<1x16x128xf32> to vector<2x16x128xf32>
    %162 = arith.mulf %157, %161 : vector<2x16x128xf32>
    %163 = vector.extract_strided_slice %118 {offsets = [4, 0], sizes = [1, 128], strides = [1, 1]} : vector<8x128xf32> to vector<1x128xf32>
    %164 = vector.shape_cast %163 : vector<1x128xf32> to vector<1x1x128xf32>
    %165 = vector.broadcast %164 : vector<1x1x128xf32> to vector<2x16x128xf32>
    %166 = arith.addf %162, %165 : vector<2x16x128xf32>
    %c6 = arith.constant 6 : index
    %c0_53 = arith.constant 0 : index
    %c0_54 = arith.constant 0 : index
    %167 = vector.load %arg3[%c6, %c0_53, %c0_54] : memref<33x128x128xf32, #tpu.memory_space<vmem>>, vector<1x128x128xf32>
    %168 = vector.shape_cast %167 : vector<1x128x128xf32> to vector<128x128xf32>
    %c7 = arith.constant 7 : index
    %c0_55 = arith.constant 0 : index
    %c0_56 = arith.constant 0 : index
    %169 = vector.load %arg3[%c7, %c0_55, %c0_56] : memref<33x128x128xf32, #tpu.memory_space<vmem>>, vector<1x128x128xf32>
    %170 = vector.shape_cast %169 : vector<1x128x128xf32> to vector<128x128xf32>
    %c3_57 = arith.constant 3 : index
    %c0_58 = arith.constant 0 : index
    %c0_59 = arith.constant 0 : index
    %171 = vector.load %arg4[%c3_57, %c0_58, %c0_59] : memref<16x8x128xf32, #tpu.memory_space<vmem>>, vector<1x8x128xf32>
    %172 = vector.shape_cast %171 : vector<1x8x128xf32> to vector<8x128xf32>
    %173 = vector.shape_cast %2 : vector<2x16x128xf32> to vector<32x128xf32>
    %cst_60 = arith.constant dense<0.000000e+00> : vector<32x128xf32>
    %174 = tpu.matmul %173, %168, %cst_60 {dimension_numbers = #tpu.dot_dimension_numbers<[1], [0], [0], [1], [0, 0, 1, 1], [], []>} : vector<32x128xf32>, vector<128x128xf32>, vector<32x128xf32> -> vector<32x128xf32>
    %175 = vector.shape_cast %0 : vector<2x16x128xf32> to vector<32x128xf32>
    %cst_61 = arith.constant dense<0.000000e+00> : vector<32x128xf32>
    %176 = tpu.matmul %175, %170, %cst_61 {dimension_numbers = #tpu.dot_dimension_numbers<[1], [0], [0], [1], [0, 0, 1, 1], [], []>} : vector<32x128xf32>, vector<128x128xf32>, vector<32x128xf32> -> vector<32x128xf32>
    %177 = arith.addf %174, %176 : vector<32x128xf32>
    %178 = vector.shape_cast %177 : vector<32x128xf32> to vector<2x16x128xf32>
    %179 = vector.extract_strided_slice %172 {offsets = [0, 0], sizes = [1, 128], strides = [1, 1]} : vector<8x128xf32> to vector<1x128xf32>
    %180 = vector.shape_cast %179 : vector<1x128xf32> to vector<1x1x128xf32>
    %181 = vector.broadcast %180 : vector<1x1x128xf32> to vector<2x16x128xf32>
    %182 = arith.addf %178, %181 : vector<2x16x128xf32>
    %cst_62 = arith.constant 0.000000e+00 : f32
    %183 = vector.broadcast %cst_62 : f32 to vector<2x16x128xf32>
    %184 = arith.maximumf %182, %183 : vector<2x16x128xf32>
    %185 = vector.extract_strided_slice %172 {offsets = [1, 0], sizes = [1, 128], strides = [1, 1]} : vector<8x128xf32> to vector<1x128xf32>
    %186 = vector.shape_cast %185 : vector<1x128xf32> to vector<1x1x128xf32>
    %187 = vector.broadcast %186 : vector<1x1x128xf32> to vector<2x16x128xf32>
    %188 = arith.mulf %184, %187 : vector<2x16x128xf32>
    %189 = vector.extract_strided_slice %172 {offsets = [2, 0], sizes = [1, 128], strides = [1, 1]} : vector<8x128xf32> to vector<1x128xf32>
    %190 = vector.shape_cast %189 : vector<1x128xf32> to vector<1x1x128xf32>
    %191 = vector.broadcast %190 : vector<1x1x128xf32> to vector<2x16x128xf32>
    %192 = arith.addf %188, %191 : vector<2x16x128xf32>
    %cst_63 = arith.constant dense<0.000000e+00> : vector<16x128xf32>
    %193 = vector.multi_reduction <add>, %192, %cst_63 [0] : vector<2x16x128xf32> to vector<16x128xf32>
    %194 = vector.shape_cast %193 : vector<16x128xf32> to vector<1x16x128xf32>
    %cst_64 = arith.constant 2.000000e+00 : f32
    %195 = vector.broadcast %cst_64 : f32 to vector<1x16x128xf32>
    %196 = arith.divf %194, %195 : vector<1x16x128xf32>
    %197 = vector.extract_strided_slice %172 {offsets = [5, 0], sizes = [1, 128], strides = [1, 1]} : vector<8x128xf32> to vector<1x128xf32>
    %198 = vector.shape_cast %197 : vector<1x128xf32> to vector<1x1x128xf32>
    %199 = vector.broadcast %198 : vector<1x1x128xf32> to vector<1x16x128xf32>
    %200 = arith.mulf %196, %199 : vector<1x16x128xf32>
    %201 = vector.broadcast %200 : vector<1x16x128xf32> to vector<2x16x128xf32>
    %202 = arith.subf %192, %201 : vector<2x16x128xf32>
    %203 = arith.mulf %202, %202 : vector<2x16x128xf32>
    %cst_65 = arith.constant dense<0.000000e+00> : vector<16x128xf32>
    %204 = vector.multi_reduction <add>, %203, %cst_65 [0] : vector<2x16x128xf32> to vector<16x128xf32>
    %205 = vector.shape_cast %204 : vector<16x128xf32> to vector<1x16x128xf32>
    %cst_66 = arith.constant 2.000000e+00 : f32
    %206 = vector.broadcast %cst_66 : f32 to vector<1x16x128xf32>
    %207 = arith.divf %205, %206 : vector<1x16x128xf32>
    %208 = vector.extract_strided_slice %172 {offsets = [3, 0], sizes = [1, 128], strides = [1, 1]} : vector<8x128xf32> to vector<1x128xf32>
    %209 = vector.shape_cast %208 : vector<1x128xf32> to vector<1x1x128xf32>
    %210 = vector.broadcast %209 : vector<1x1x128xf32> to vector<2x16x128xf32>
    %211 = arith.mulf %210, %202 : vector<2x16x128xf32>
    %cst_67 = arith.constant 9.99999974E-6 : f32
    %212 = vector.broadcast %cst_67 : f32 to vector<1x16x128xf32>
    %213 = arith.addf %207, %212 : vector<1x16x128xf32>
    %214 = math.rsqrt %213 : vector<1x16x128xf32>
    %215 = vector.broadcast %214 : vector<1x16x128xf32> to vector<2x16x128xf32>
    %216 = arith.mulf %211, %215 : vector<2x16x128xf32>
    %217 = vector.extract_strided_slice %172 {offsets = [4, 0], sizes = [1, 128], strides = [1, 1]} : vector<8x128xf32> to vector<1x128xf32>
    %218 = vector.shape_cast %217 : vector<1x128xf32> to vector<1x1x128xf32>
    %219 = vector.broadcast %218 : vector<1x1x128xf32> to vector<2x16x128xf32>
    %220 = arith.addf %216, %219 : vector<2x16x128xf32>
    "tpu.trace_start"() <{level = 10 : i32, message = "bnm,bmc->bnc"}> : () -> ()
    %cst_68 = arith.constant dense<0.000000e+00> : vector<2x16x128xf32>
    %221 = tpu.matmul %1, %220, %cst_68 {dimension_numbers = #tpu.dot_dimension_numbers<[2], [1], [1], [2], [0, 0, 0, 1, 1, 2], [0], [0]>} : vector<2x16x16xf32>, vector<2x16x128xf32>, vector<2x16x128xf32> -> vector<2x16x128xf32>
    "tpu.trace_stop"() : () -> ()
    %c8 = arith.constant 8 : index
    %c0_69 = arith.constant 0 : index
    %c0_70 = arith.constant 0 : index
    %222 = vector.load %arg3[%c8, %c0_69, %c0_70] : memref<33x128x128xf32, #tpu.memory_space<vmem>>, vector<1x128x128xf32>
    %223 = vector.shape_cast %222 : vector<1x128x128xf32> to vector<128x128xf32>
    %c9 = arith.constant 9 : index
    %c0_71 = arith.constant 0 : index
    %c0_72 = arith.constant 0 : index
    %224 = vector.load %arg3[%c9, %c0_71, %c0_72] : memref<33x128x128xf32, #tpu.memory_space<vmem>>, vector<1x128x128xf32>
    %225 = vector.shape_cast %224 : vector<1x128x128xf32> to vector<128x128xf32>
    %c4_73 = arith.constant 4 : index
    %c0_74 = arith.constant 0 : index
    %c0_75 = arith.constant 0 : index
    %226 = vector.load %arg4[%c4_73, %c0_74, %c0_75] : memref<16x8x128xf32, #tpu.memory_space<vmem>>, vector<1x8x128xf32>
    %227 = vector.shape_cast %226 : vector<1x8x128xf32> to vector<8x128xf32>
    %228 = vector.shape_cast %221 : vector<2x16x128xf32> to vector<32x128xf32>
    %cst_76 = arith.constant dense<0.000000e+00> : vector<32x128xf32>
    %229 = tpu.matmul %228, %223, %cst_76 {dimension_numbers = #tpu.dot_dimension_numbers<[1], [0], [0], [1], [0, 0, 1, 1], [], []>} : vector<32x128xf32>, vector<128x128xf32>, vector<32x128xf32> -> vector<32x128xf32>
    %230 = vector.shape_cast %220 : vector<2x16x128xf32> to vector<32x128xf32>
    %cst_77 = arith.constant dense<0.000000e+00> : vector<32x128xf32>
    %231 = tpu.matmul %230, %225, %cst_77 {dimension_numbers = #tpu.dot_dimension_numbers<[1], [0], [0], [1], [0, 0, 1, 1], [], []>} : vector<32x128xf32>, vector<128x128xf32>, vector<32x128xf32> -> vector<32x128xf32>
    %232 = arith.addf %229, %231 : vector<32x128xf32>
    %233 = vector.shape_cast %232 : vector<32x128xf32> to vector<2x16x128xf32>
    %234 = vector.extract_strided_slice %227 {offsets = [0, 0], sizes = [1, 128], strides = [1, 1]} : vector<8x128xf32> to vector<1x128xf32>
    %235 = vector.shape_cast %234 : vector<1x128xf32> to vector<1x1x128xf32>
    %236 = vector.broadcast %235 : vector<1x1x128xf32> to vector<2x16x128xf32>
    %237 = arith.addf %233, %236 : vector<2x16x128xf32>
    %cst_78 = arith.constant 0.000000e+00 : f32
    %238 = vector.broadcast %cst_78 : f32 to vector<2x16x128xf32>
    %239 = arith.maximumf %237, %238 : vector<2x16x128xf32>
    %240 = vector.extract_strided_slice %227 {offsets = [1, 0], sizes = [1, 128], strides = [1, 1]} : vector<8x128xf32> to vector<1x128xf32>
    %241 = vector.shape_cast %240 : vector<1x128xf32> to vector<1x1x128xf32>
    %242 = vector.broadcast %241 : vector<1x1x128xf32> to vector<2x16x128xf32>
    %243 = arith.mulf %239, %242 : vector<2x16x128xf32>
    %244 = vector.extract_strided_slice %227 {offsets = [2, 0], sizes = [1, 128], strides = [1, 1]} : vector<8x128xf32> to vector<1x128xf32>
    %245 = vector.shape_cast %244 : vector<1x128xf32> to vector<1x1x128xf32>
    %246 = vector.broadcast %245 : vector<1x1x128xf32> to vector<2x16x128xf32>
    %247 = arith.addf %243, %246 : vector<2x16x128xf32>
    %cst_79 = arith.constant dense<0.000000e+00> : vector<16x128xf32>
    %248 = vector.multi_reduction <add>, %247, %cst_79 [0] : vector<2x16x128xf32> to vector<16x128xf32>
    %249 = vector.shape_cast %248 : vector<16x128xf32> to vector<1x16x128xf32>
    %cst_80 = arith.constant 2.000000e+00 : f32
    %250 = vector.broadcast %cst_80 : f32 to vector<1x16x128xf32>
    %251 = arith.divf %249, %250 : vector<1x16x128xf32>
    %252 = vector.extract_strided_slice %227 {offsets = [5, 0], sizes = [1, 128], strides = [1, 1]} : vector<8x128xf32> to vector<1x128xf32>
    %253 = vector.shape_cast %252 : vector<1x128xf32> to vector<1x1x128xf32>
    %254 = vector.broadcast %253 : vector<1x1x128xf32> to vector<1x16x128xf32>
    %255 = arith.mulf %251, %254 : vector<1x16x128xf32>
    %256 = vector.broadcast %255 : vector<1x16x128xf32> to vector<2x16x128xf32>
    %257 = arith.subf %247, %256 : vector<2x16x128xf32>
    %258 = arith.mulf %257, %257 : vector<2x16x128xf32>
    %cst_81 = arith.constant dense<0.000000e+00> : vector<16x128xf32>
    %259 = vector.multi_reduction <add>, %258, %cst_81 [0] : vector<2x16x128xf32> to vector<16x128xf32>
    %260 = vector.shape_cast %259 : vector<16x128xf32> to vector<1x16x128xf32>
    %cst_82 = arith.constant 2.000000e+00 : f32
    %261 = vector.broadcast %cst_82 : f32 to vector<1x16x128xf32>
    %262 = arith.divf %260, %261 : vector<1x16x128xf32>
    %263 = vector.extract_strided_slice %227 {offsets = [3, 0], sizes = [1, 128], strides = [1, 1]} : vector<8x128xf32> to vector<1x128xf32>
    %264 = vector.shape_cast %263 : vector<1x128xf32> to vector<1x1x128xf32>
    %265 = vector.broadcast %264 : vector<1x1x128xf32> to vector<2x16x128xf32>
    %266 = arith.mulf %265, %257 : vector<2x16x128xf32>
    %cst_83 = arith.constant 9.99999974E-6 : f32
    %267 = vector.broadcast %cst_83 : f32 to vector<1x16x128xf32>
    %268 = arith.addf %262, %267 : vector<1x16x128xf32>
    %269 = math.rsqrt %268 : vector<1x16x128xf32>
    %270 = vector.broadcast %269 : vector<1x16x128xf32> to vector<2x16x128xf32>
    %271 = arith.mulf %266, %270 : vector<2x16x128xf32>
    %272 = vector.extract_strided_slice %227 {offsets = [4, 0], sizes = [1, 128], strides = [1, 1]} : vector<8x128xf32> to vector<1x128xf32>
    %273 = vector.shape_cast %272 : vector<1x128xf32> to vector<1x1x128xf32>
    %274 = vector.broadcast %273 : vector<1x1x128xf32> to vector<2x16x128xf32>
    %275 = arith.addf %271, %274 : vector<2x16x128xf32>
    "tpu.trace_start"() <{level = 10 : i32, message = "bnm,bmc->bnc"}> : () -> ()
    %cst_84 = arith.constant dense<0.000000e+00> : vector<2x16x128xf32>
    %276 = tpu.matmul %1, %275, %cst_84 {dimension_numbers = #tpu.dot_dimension_numbers<[2], [1], [1], [2], [0, 0, 0, 1, 1, 2], [0], [0]>} : vector<2x16x16xf32>, vector<2x16x128xf32>, vector<2x16x128xf32> -> vector<2x16x128xf32>
    "tpu.trace_stop"() : () -> ()
    %c10 = arith.constant 10 : index
    %c0_85 = arith.constant 0 : index
    %c0_86 = arith.constant 0 : index
    %277 = vector.load %arg3[%c10, %c0_85, %c0_86] : memref<33x128x128xf32, #tpu.memory_space<vmem>>, vector<1x128x128xf32>
    %278 = vector.shape_cast %277 : vector<1x128x128xf32> to vector<128x128xf32>
    %c11 = arith.constant 11 : index
    %c0_87 = arith.constant 0 : index
    %c0_88 = arith.constant 0 : index
    %279 = vector.load %arg3[%c11, %c0_87, %c0_88] : memref<33x128x128xf32, #tpu.memory_space<vmem>>, vector<1x128x128xf32>
    %280 = vector.shape_cast %279 : vector<1x128x128xf32> to vector<128x128xf32>
    %c5_89 = arith.constant 5 : index
    %c0_90 = arith.constant 0 : index
    %c0_91 = arith.constant 0 : index
    %281 = vector.load %arg4[%c5_89, %c0_90, %c0_91] : memref<16x8x128xf32, #tpu.memory_space<vmem>>, vector<1x8x128xf32>
    %282 = vector.shape_cast %281 : vector<1x8x128xf32> to vector<8x128xf32>
    %283 = vector.shape_cast %276 : vector<2x16x128xf32> to vector<32x128xf32>
    %cst_92 = arith.constant dense<0.000000e+00> : vector<32x128xf32>
    %284 = tpu.matmul %283, %278, %cst_92 {dimension_numbers = #tpu.dot_dimension_numbers<[1], [0], [0], [1], [0, 0, 1, 1], [], []>} : vector<32x128xf32>, vector<128x128xf32>, vector<32x128xf32> -> vector<32x128xf32>
    %285 = vector.shape_cast %275 : vector<2x16x128xf32> to vector<32x128xf32>
    %cst_93 = arith.constant dense<0.000000e+00> : vector<32x128xf32>
    %286 = tpu.matmul %285, %280, %cst_93 {dimension_numbers = #tpu.dot_dimension_numbers<[1], [0], [0], [1], [0, 0, 1, 1], [], []>} : vector<32x128xf32>, vector<128x128xf32>, vector<32x128xf32> -> vector<32x128xf32>
    %287 = arith.addf %284, %286 : vector<32x128xf32>
    %288 = vector.shape_cast %287 : vector<32x128xf32> to vector<2x16x128xf32>
    %289 = vector.extract_strided_slice %282 {offsets = [0, 0], sizes = [1, 128], strides = [1, 1]} : vector<8x128xf32> to vector<1x128xf32>
    %290 = vector.shape_cast %289 : vector<1x128xf32> to vector<1x1x128xf32>
    %291 = vector.broadcast %290 : vector<1x1x128xf32> to vector<2x16x128xf32>
    %292 = arith.addf %288, %291 : vector<2x16x128xf32>
    %cst_94 = arith.constant 0.000000e+00 : f32
    %293 = vector.broadcast %cst_94 : f32 to vector<2x16x128xf32>
    %294 = arith.maximumf %292, %293 : vector<2x16x128xf32>
    %295 = vector.extract_strided_slice %282 {offsets = [1, 0], sizes = [1, 128], strides = [1, 1]} : vector<8x128xf32> to vector<1x128xf32>
    %296 = vector.shape_cast %295 : vector<1x128xf32> to vector<1x1x128xf32>
    %297 = vector.broadcast %296 : vector<1x1x128xf32> to vector<2x16x128xf32>
    %298 = arith.mulf %294, %297 : vector<2x16x128xf32>
    %299 = vector.extract_strided_slice %282 {offsets = [2, 0], sizes = [1, 128], strides = [1, 1]} : vector<8x128xf32> to vector<1x128xf32>
    %300 = vector.shape_cast %299 : vector<1x128xf32> to vector<1x1x128xf32>
    %301 = vector.broadcast %300 : vector<1x1x128xf32> to vector<2x16x128xf32>
    %302 = arith.addf %298, %301 : vector<2x16x128xf32>
    %cst_95 = arith.constant dense<0.000000e+00> : vector<16x128xf32>
    %303 = vector.multi_reduction <add>, %302, %cst_95 [0] : vector<2x16x128xf32> to vector<16x128xf32>
    %304 = vector.shape_cast %303 : vector<16x128xf32> to vector<1x16x128xf32>
    %cst_96 = arith.constant 2.000000e+00 : f32
    %305 = vector.broadcast %cst_96 : f32 to vector<1x16x128xf32>
    %306 = arith.divf %304, %305 : vector<1x16x128xf32>
    %307 = vector.extract_strided_slice %282 {offsets = [5, 0], sizes = [1, 128], strides = [1, 1]} : vector<8x128xf32> to vector<1x128xf32>
    %308 = vector.shape_cast %307 : vector<1x128xf32> to vector<1x1x128xf32>
    %309 = vector.broadcast %308 : vector<1x1x128xf32> to vector<1x16x128xf32>
    %310 = arith.mulf %306, %309 : vector<1x16x128xf32>
    %311 = vector.broadcast %310 : vector<1x16x128xf32> to vector<2x16x128xf32>
    %312 = arith.subf %302, %311 : vector<2x16x128xf32>
    %313 = arith.mulf %312, %312 : vector<2x16x128xf32>
    %cst_97 = arith.constant dense<0.000000e+00> : vector<16x128xf32>
    %314 = vector.multi_reduction <add>, %313, %cst_97 [0] : vector<2x16x128xf32> to vector<16x128xf32>
    %315 = vector.shape_cast %314 : vector<16x128xf32> to vector<1x16x128xf32>
    %cst_98 = arith.constant 2.000000e+00 : f32
    %316 = vector.broadcast %cst_98 : f32 to vector<1x16x128xf32>
    %317 = arith.divf %315, %316 : vector<1x16x128xf32>
    %318 = vector.extract_strided_slice %282 {offsets = [3, 0], sizes = [1, 128], strides = [1, 1]} : vector<8x128xf32> to vector<1x128xf32>
    %319 = vector.shape_cast %318 : vector<1x128xf32> to vector<1x1x128xf32>
    %320 = vector.broadcast %319 : vector<1x1x128xf32> to vector<2x16x128xf32>
    %321 = arith.mulf %320, %312 : vector<2x16x128xf32>
    %cst_99 = arith.constant 9.99999974E-6 : f32
    %322 = vector.broadcast %cst_99 : f32 to vector<1x16x128xf32>
    %323 = arith.addf %317, %322 : vector<1x16x128xf32>
    %324 = math.rsqrt %323 : vector<1x16x128xf32>
    %325 = vector.broadcast %324 : vector<1x16x128xf32> to vector<2x16x128xf32>
    %326 = arith.mulf %321, %325 : vector<2x16x128xf32>
    %327 = vector.extract_strided_slice %282 {offsets = [4, 0], sizes = [1, 128], strides = [1, 1]} : vector<8x128xf32> to vector<1x128xf32>
    %328 = vector.shape_cast %327 : vector<1x128xf32> to vector<1x1x128xf32>
    %329 = vector.broadcast %328 : vector<1x1x128xf32> to vector<2x16x128xf32>
    %330 = arith.addf %326, %329 : vector<2x16x128xf32>
    %331 = vector.extract_strided_slice %166 {offsets = [0, 0, 0], sizes = [2, 16, 8], strides = [1, 1, 1]} : vector<2x16x128xf32> to vector<2x16x8xf32>
    %cst_100 = arith.constant dense<0xFF800000> : vector<2x16xf32>
    %332 = vector.multi_reduction <maximumf>, %331, %cst_100 [2] : vector<2x16x8xf32> to vector<2x16xf32>
    %333 = vector.shape_cast %332 : vector<2x16xf32> to vector<2x16x1xf32>
    %334 = vector.broadcast %333 : vector<2x16x1xf32> to vector<2x16x8xf32>
    %335 = arith.subf %331, %334 : vector<2x16x8xf32>
    %336 = math.exp %335 : vector<2x16x8xf32>
    %cst_101 = arith.constant dense<0.000000e+00> : vector<2x16xf32>
    %337 = vector.multi_reduction <add>, %336, %cst_101 [2] : vector<2x16x8xf32> to vector<2x16xf32>
    %338 = vector.shape_cast %337 : vector<2x16xf32> to vector<2x16x1xf32>
    %339 = vector.broadcast %338 : vector<2x16x1xf32> to vector<2x16x8xf32>
    %340 = arith.divf %336, %339 : vector<2x16x8xf32>
    %341 = tpu.transpose %340, [0, 2, 1] : vector<2x16x8xf32> -> vector<2x8x16xf32>
    "tpu.trace_start"() <{level = 10 : i32, message = "bnm,bmk->bnk"}> : () -> ()
    %cst_102 = arith.constant dense<0.000000e+00> : vector<2x16x8xf32>
    %342 = tpu.matmul %1, %340, %cst_102 {dimension_numbers = #tpu.dot_dimension_numbers<[2], [1], [1], [2], [0, 0, 0, 1, 1, 2], [0], [0]>} : vector<2x16x16xf32>, vector<2x16x8xf32>, vector<2x16x8xf32> -> vector<2x16x8xf32>
    "tpu.trace_stop"() : () -> ()
    "tpu.trace_start"() <{level = 10 : i32, message = "bkn,bnc->bkc"}> : () -> ()
    %cst_103 = arith.constant dense<0.000000e+00> : vector<2x8x128xf32>
    %343 = tpu.matmul %341, %330, %cst_103 {dimension_numbers = #tpu.dot_dimension_numbers<[2], [1], [1], [2], [0, 0, 0, 1, 1, 2], [0], [0]>} : vector<2x8x16xf32>, vector<2x16x128xf32>, vector<2x8x128xf32> -> vector<2x8x128xf32>
    "tpu.trace_stop"() : () -> ()
    "tpu.trace_start"() <{level = 10 : i32, message = "bkn,bnj->bkj"}> : () -> ()
    %cst_104 = arith.constant dense<0.000000e+00> : vector<2x8x8xf32>
    %344 = tpu.matmul %341, %342, %cst_104 {dimension_numbers = #tpu.dot_dimension_numbers<[2], [1], [1], [2], [0, 0, 0, 1, 1, 2], [0], [0]>} : vector<2x8x16xf32>, vector<2x16x8xf32>, vector<2x8x8xf32> -> vector<2x8x8xf32>
    "tpu.trace_stop"() : () -> ()
    "tpu.trace_start"() <{level = 10 : i32, message = "bkn,bnl->bkl"}> : () -> ()
    %cst_105 = arith.constant dense<0.000000e+00> : vector<2x8x8xf32>
    %345 = tpu.matmul %341, %340, %cst_105 {dimension_numbers = #tpu.dot_dimension_numbers<[2], [1], [1], [2], [0, 0, 0, 1, 1, 2], [0], [0]>} : vector<2x8x16xf32>, vector<2x16x8xf32>, vector<2x8x8xf32> -> vector<2x8x8xf32>
    "tpu.trace_stop"() : () -> ()
    %346 = arith.mulf %1, %1 : vector<2x16x16xf32>
    %347 = vector.shape_cast %346 : vector<2x16x16xf32> to vector<1x2x16x16xf32>
    %cst_106 = arith.constant dense<0.000000e+00> : vector<1xf32>
    %348 = vector.multi_reduction <add>, %347, %cst_106 [1, 2, 3] : vector<1x2x16x16xf32> to vector<1xf32>
    %349 = vector.shape_cast %348 : vector<1xf32> to vector<1x1x1x1xf32>
    %350 = vector.extract %349[0, 0, 0, 0] : f32 from vector<1x1x1x1xf32>
    %351 = arith.mulf %342, %340 : vector<2x16x8xf32>
    %352 = vector.shape_cast %351 : vector<2x16x8xf32> to vector<1x2x16x8xf32>
    %cst_107 = arith.constant dense<0.000000e+00> : vector<1xf32>
    %353 = vector.multi_reduction <add>, %352, %cst_107 [1, 2, 3] : vector<1x2x16x8xf32> to vector<1xf32>
    %354 = vector.shape_cast %353 : vector<1xf32> to vector<1x1x1x1xf32>
    %355 = vector.extract %354[0, 0, 0, 0] : f32 from vector<1x1x1x1xf32>
    %cst_108 = arith.constant 2.000000e+00 : f32
    %356 = arith.mulf %cst_108, %355 : f32
    %357 = arith.subf %350, %356 : f32
    %358 = arith.mulf %345, %345 : vector<2x8x8xf32>
    %359 = vector.shape_cast %358 : vector<2x8x8xf32> to vector<1x2x8x8xf32>
    %cst_109 = arith.constant dense<0.000000e+00> : vector<1xf32>
    %360 = vector.multi_reduction <add>, %359, %cst_109 [1, 2, 3] : vector<1x2x8x8xf32> to vector<1xf32>
    %361 = vector.shape_cast %360 : vector<1xf32> to vector<1x1x1x1xf32>
    %362 = vector.extract %361[0, 0, 0, 0] : f32 from vector<1x1x1x1xf32>
    %363 = arith.addf %357, %362 : f32
    %cst_110 = arith.constant 0.000000e+00 : f32
    %364 = arith.maximumf %363, %cst_110 : f32
    %cst_111 = arith.constant 0.000000e+00 : f32
    %365 = vector.broadcast %cst_111 : f32 to vector<2x16x8xf32>
    %366 = arith.subf %365, %340 : vector<2x16x8xf32>
    %cst_112 = arith.constant 1.000000e-15 : f32
    %367 = vector.broadcast %cst_112 : f32 to vector<2x16x8xf32>
    %368 = arith.addf %340, %367 : vector<2x16x8xf32>
    %369 = math.log %368 : vector<2x16x8xf32>
    %370 = arith.mulf %366, %369 : vector<2x16x8xf32>
    %371 = vector.shape_cast %370 : vector<2x16x8xf32> to vector<1x2x16x8xf32>
    %cst_113 = arith.constant dense<0.000000e+00> : vector<1xf32>
    %372 = vector.multi_reduction <add>, %371, %cst_113 [1, 2, 3] : vector<1x2x16x8xf32> to vector<1xf32>
    %373 = vector.shape_cast %372 : vector<1xf32> to vector<1x1x1x1xf32>
    %374 = vector.extract %373[0, 0, 0, 0] : f32 from vector<1x1x1x1xf32>
    "tpu.trace_start"() <{level = 10 : i32, message = "bnm,bmc->bnc"}> : () -> ()
    %cst_114 = arith.constant dense<0.000000e+00> : vector<2x8x128xf32>
    %375 = tpu.matmul %344, %343, %cst_114 {dimension_numbers = #tpu.dot_dimension_numbers<[2], [1], [1], [2], [0, 0, 0, 1, 1, 2], [0], [0]>} : vector<2x8x8xf32>, vector<2x8x128xf32>, vector<2x8x128xf32> -> vector<2x8x128xf32>
    "tpu.trace_stop"() : () -> ()
    %c12 = arith.constant 12 : index
    %c0_115 = arith.constant 0 : index
    %c0_116 = arith.constant 0 : index
    %376 = vector.load %arg3[%c12, %c0_115, %c0_116] : memref<33x128x128xf32, #tpu.memory_space<vmem>>, vector<1x128x128xf32>
    %377 = vector.shape_cast %376 : vector<1x128x128xf32> to vector<128x128xf32>
    %c13 = arith.constant 13 : index
    %c0_117 = arith.constant 0 : index
    %c0_118 = arith.constant 0 : index
    %378 = vector.load %arg3[%c13, %c0_117, %c0_118] : memref<33x128x128xf32, #tpu.memory_space<vmem>>, vector<1x128x128xf32>
    %379 = vector.shape_cast %378 : vector<1x128x128xf32> to vector<128x128xf32>
    %c6_119 = arith.constant 6 : index
    %c0_120 = arith.constant 0 : index
    %c0_121 = arith.constant 0 : index
    %380 = vector.load %arg4[%c6_119, %c0_120, %c0_121] : memref<16x8x128xf32, #tpu.memory_space<vmem>>, vector<1x8x128xf32>
    %381 = vector.shape_cast %380 : vector<1x8x128xf32> to vector<8x128xf32>
    %382 = vector.shape_cast %375 : vector<2x8x128xf32> to vector<16x128xf32>
    %cst_122 = arith.constant dense<0.000000e+00> : vector<16x128xf32>
    %383 = tpu.matmul %382, %377, %cst_122 {dimension_numbers = #tpu.dot_dimension_numbers<[1], [0], [0], [1], [0, 0, 1, 1], [], []>} : vector<16x128xf32>, vector<128x128xf32>, vector<16x128xf32> -> vector<16x128xf32>
    %384 = vector.shape_cast %343 : vector<2x8x128xf32> to vector<16x128xf32>
    %cst_123 = arith.constant dense<0.000000e+00> : vector<16x128xf32>
    %385 = tpu.matmul %384, %379, %cst_123 {dimension_numbers = #tpu.dot_dimension_numbers<[1], [0], [0], [1], [0, 0, 1, 1], [], []>} : vector<16x128xf32>, vector<128x128xf32>, vector<16x128xf32> -> vector<16x128xf32>
    %386 = arith.addf %383, %385 : vector<16x128xf32>
    %387 = vector.shape_cast %386 : vector<16x128xf32> to vector<2x8x128xf32>
    %388 = vector.extract_strided_slice %381 {offsets = [0, 0], sizes = [1, 128], strides = [1, 1]} : vector<8x128xf32> to vector<1x128xf32>
    %389 = vector.shape_cast %388 : vector<1x128xf32> to vector<1x1x128xf32>
    %390 = vector.broadcast %389 : vector<1x1x128xf32> to vector<2x8x128xf32>
    %391 = arith.addf %387, %390 : vector<2x8x128xf32>
    %cst_124 = arith.constant 0.000000e+00 : f32
    %392 = vector.broadcast %cst_124 : f32 to vector<2x8x128xf32>
    %393 = arith.maximumf %391, %392 : vector<2x8x128xf32>
    %394 = vector.extract_strided_slice %381 {offsets = [1, 0], sizes = [1, 128], strides = [1, 1]} : vector<8x128xf32> to vector<1x128xf32>
    %395 = vector.shape_cast %394 : vector<1x128xf32> to vector<1x1x128xf32>
    %396 = vector.broadcast %395 : vector<1x1x128xf32> to vector<2x8x128xf32>
    %397 = arith.mulf %393, %396 : vector<2x8x128xf32>
    %398 = vector.extract_strided_slice %381 {offsets = [2, 0], sizes = [1, 128], strides = [1, 1]} : vector<8x128xf32> to vector<1x128xf32>
    %399 = vector.shape_cast %398 : vector<1x128xf32> to vector<1x1x128xf32>
    %400 = vector.broadcast %399 : vector<1x1x128xf32> to vector<2x8x128xf32>
    %401 = arith.addf %397, %400 : vector<2x8x128xf32>
    %cst_125 = arith.constant dense<0.000000e+00> : vector<8x128xf32>
    %402 = vector.multi_reduction <add>, %401, %cst_125 [0] : vector<2x8x128xf32> to vector<8x128xf32>
    %403 = vector.shape_cast %402 : vector<8x128xf32> to vector<1x8x128xf32>
    %cst_126 = arith.constant 2.000000e+00 : f32
    %404 = vector.broadcast %cst_126 : f32 to vector<1x8x128xf32>
    %405 = arith.divf %403, %404 : vector<1x8x128xf32>
    %406 = vector.extract_strided_slice %381 {offsets = [5, 0], sizes = [1, 128], strides = [1, 1]} : vector<8x128xf32> to vector<1x128xf32>
    %407 = vector.shape_cast %406 : vector<1x128xf32> to vector<1x1x128xf32>
    %408 = vector.broadcast %407 : vector<1x1x128xf32> to vector<1x8x128xf32>
    %409 = arith.mulf %405, %408 : vector<1x8x128xf32>
    %410 = vector.broadcast %409 : vector<1x8x128xf32> to vector<2x8x128xf32>
    %411 = arith.subf %401, %410 : vector<2x8x128xf32>
    %412 = arith.mulf %411, %411 : vector<2x8x128xf32>
    %cst_127 = arith.constant dense<0.000000e+00> : vector<8x128xf32>
    %413 = vector.multi_reduction <add>, %412, %cst_127 [0] : vector<2x8x128xf32> to vector<8x128xf32>
    %414 = vector.shape_cast %413 : vector<8x128xf32> to vector<1x8x128xf32>
    %cst_128 = arith.constant 2.000000e+00 : f32
    %415 = vector.broadcast %cst_128 : f32 to vector<1x8x128xf32>
    %416 = arith.divf %414, %415 : vector<1x8x128xf32>
    %417 = vector.extract_strided_slice %381 {offsets = [3, 0], sizes = [1, 128], strides = [1, 1]} : vector<8x128xf32> to vector<1x128xf32>
    %418 = vector.shape_cast %417 : vector<1x128xf32> to vector<1x1x128xf32>
    %419 = vector.broadcast %418 : vector<1x1x128xf32> to vector<2x8x128xf32>
    %420 = arith.mulf %419, %411 : vector<2x8x128xf32>
    %cst_129 = arith.constant 9.99999974E-6 : f32
    %421 = vector.broadcast %cst_129 : f32 to vector<1x8x128xf32>
    %422 = arith.addf %416, %421 : vector<1x8x128xf32>
    %423 = math.rsqrt %422 : vector<1x8x128xf32>
    %424 = vector.broadcast %423 : vector<1x8x128xf32> to vector<2x8x128xf32>
    %425 = arith.mulf %420, %424 : vector<2x8x128xf32>
    %426 = vector.extract_strided_slice %381 {offsets = [4, 0], sizes = [1, 128], strides = [1, 1]} : vector<8x128xf32> to vector<1x128xf32>
    %427 = vector.shape_cast %426 : vector<1x128xf32> to vector<1x1x128xf32>
    %428 = vector.broadcast %427 : vector<1x1x128xf32> to vector<2x8x128xf32>
    %429 = arith.addf %425, %428 : vector<2x8x128xf32>
    "tpu.trace_start"() <{level = 10 : i32, message = "bnm,bmc->bnc"}> : () -> ()
    %cst_130 = arith.constant dense<0.000000e+00> : vector<2x8x128xf32>
    %430 = tpu.matmul %344, %429, %cst_130 {dimension_numbers = #tpu.dot_dimension_numbers<[2], [1], [1], [2], [0, 0, 0, 1, 1, 2], [0], [0]>} : vector<2x8x8xf32>, vector<2x8x128xf32>, vector<2x8x128xf32> -> vector<2x8x128xf32>
    "tpu.trace_stop"() : () -> ()
    %c14 = arith.constant 14 : index
    %c0_131 = arith.constant 0 : index
    %c0_132 = arith.constant 0 : index
    %431 = vector.load %arg3[%c14, %c0_131, %c0_132] : memref<33x128x128xf32, #tpu.memory_space<vmem>>, vector<1x128x128xf32>
    %432 = vector.shape_cast %431 : vector<1x128x128xf32> to vector<128x128xf32>
    %c15 = arith.constant 15 : index
    %c0_133 = arith.constant 0 : index
    %c0_134 = arith.constant 0 : index
    %433 = vector.load %arg3[%c15, %c0_133, %c0_134] : memref<33x128x128xf32, #tpu.memory_space<vmem>>, vector<1x128x128xf32>
    %434 = vector.shape_cast %433 : vector<1x128x128xf32> to vector<128x128xf32>
    %c7_135 = arith.constant 7 : index
    %c0_136 = arith.constant 0 : index
    %c0_137 = arith.constant 0 : index
    %435 = vector.load %arg4[%c7_135, %c0_136, %c0_137] : memref<16x8x128xf32, #tpu.memory_space<vmem>>, vector<1x8x128xf32>
    %436 = vector.shape_cast %435 : vector<1x8x128xf32> to vector<8x128xf32>
    %437 = vector.shape_cast %430 : vector<2x8x128xf32> to vector<16x128xf32>
    %cst_138 = arith.constant dense<0.000000e+00> : vector<16x128xf32>
    %438 = tpu.matmul %437, %432, %cst_138 {dimension_numbers = #tpu.dot_dimension_numbers<[1], [0], [0], [1], [0, 0, 1, 1], [], []>} : vector<16x128xf32>, vector<128x128xf32>, vector<16x128xf32> -> vector<16x128xf32>
    %439 = vector.shape_cast %429 : vector<2x8x128xf32> to vector<16x128xf32>
    %cst_139 = arith.constant dense<0.000000e+00> : vector<16x128xf32>
    %440 = tpu.matmul %439, %434, %cst_139 {dimension_numbers = #tpu.dot_dimension_numbers<[1], [0], [0], [1], [0, 0, 1, 1], [], []>} : vector<16x128xf32>, vector<128x128xf32>, vector<16x128xf32> -> vector<16x128xf32>
    %441 = arith.addf %438, %440 : vector<16x128xf32>
    %442 = vector.shape_cast %441 : vector<16x128xf32> to vector<2x8x128xf32>
    %443 = vector.extract_strided_slice %436 {offsets = [0, 0], sizes = [1, 128], strides = [1, 1]} : vector<8x128xf32> to vector<1x128xf32>
    %444 = vector.shape_cast %443 : vector<1x128xf32> to vector<1x1x128xf32>
    %445 = vector.broadcast %444 : vector<1x1x128xf32> to vector<2x8x128xf32>
    %446 = arith.addf %442, %445 : vector<2x8x128xf32>
    %cst_140 = arith.constant 0.000000e+00 : f32
    %447 = vector.broadcast %cst_140 : f32 to vector<2x8x128xf32>
    %448 = arith.maximumf %446, %447 : vector<2x8x128xf32>
    %449 = vector.extract_strided_slice %436 {offsets = [1, 0], sizes = [1, 128], strides = [1, 1]} : vector<8x128xf32> to vector<1x128xf32>
    %450 = vector.shape_cast %449 : vector<1x128xf32> to vector<1x1x128xf32>
    %451 = vector.broadcast %450 : vector<1x1x128xf32> to vector<2x8x128xf32>
    %452 = arith.mulf %448, %451 : vector<2x8x128xf32>
    %453 = vector.extract_strided_slice %436 {offsets = [2, 0], sizes = [1, 128], strides = [1, 1]} : vector<8x128xf32> to vector<1x128xf32>
    %454 = vector.shape_cast %453 : vector<1x128xf32> to vector<1x1x128xf32>
    %455 = vector.broadcast %454 : vector<1x1x128xf32> to vector<2x8x128xf32>
    %456 = arith.addf %452, %455 : vector<2x8x128xf32>
    %cst_141 = arith.constant dense<0.000000e+00> : vector<8x128xf32>
    %457 = vector.multi_reduction <add>, %456, %cst_141 [0] : vector<2x8x128xf32> to vector<8x128xf32>
    %458 = vector.shape_cast %457 : vector<8x128xf32> to vector<1x8x128xf32>
    %cst_142 = arith.constant 2.000000e+00 : f32
    %459 = vector.broadcast %cst_142 : f32 to vector<1x8x128xf32>
    %460 = arith.divf %458, %459 : vector<1x8x128xf32>
    %461 = vector.extract_strided_slice %436 {offsets = [5, 0], sizes = [1, 128], strides = [1, 1]} : vector<8x128xf32> to vector<1x128xf32>
    %462 = vector.shape_cast %461 : vector<1x128xf32> to vector<1x1x128xf32>
    %463 = vector.broadcast %462 : vector<1x1x128xf32> to vector<1x8x128xf32>
    %464 = arith.mulf %460, %463 : vector<1x8x128xf32>
    %465 = vector.broadcast %464 : vector<1x8x128xf32> to vector<2x8x128xf32>
    %466 = arith.subf %456, %465 : vector<2x8x128xf32>
    %467 = arith.mulf %466, %466 : vector<2x8x128xf32>
    %cst_143 = arith.constant dense<0.000000e+00> : vector<8x128xf32>
    %468 = vector.multi_reduction <add>, %467, %cst_143 [0] : vector<2x8x128xf32> to vector<8x128xf32>
    %469 = vector.shape_cast %468 : vector<8x128xf32> to vector<1x8x128xf32>
    %cst_144 = arith.constant 2.000000e+00 : f32
    %470 = vector.broadcast %cst_144 : f32 to vector<1x8x128xf32>
    %471 = arith.divf %469, %470 : vector<1x8x128xf32>
    %472 = vector.extract_strided_slice %436 {offsets = [3, 0], sizes = [1, 128], strides = [1, 1]} : vector<8x128xf32> to vector<1x128xf32>
    %473 = vector.shape_cast %472 : vector<1x128xf32> to vector<1x1x128xf32>
    %474 = vector.broadcast %473 : vector<1x1x128xf32> to vector<2x8x128xf32>
    %475 = arith.mulf %474, %466 : vector<2x8x128xf32>
    %cst_145 = arith.constant 9.99999974E-6 : f32
    %476 = vector.broadcast %cst_145 : f32 to vector<1x8x128xf32>
    %477 = arith.addf %471, %476 : vector<1x8x128xf32>
    %478 = math.rsqrt %477 : vector<1x8x128xf32>
    %479 = vector.broadcast %478 : vector<1x8x128xf32> to vector<2x8x128xf32>
    %480 = arith.mulf %475, %479 : vector<2x8x128xf32>
    %481 = vector.extract_strided_slice %436 {offsets = [4, 0], sizes = [1, 128], strides = [1, 1]} : vector<8x128xf32> to vector<1x128xf32>
    %482 = vector.shape_cast %481 : vector<1x128xf32> to vector<1x1x128xf32>
    %483 = vector.broadcast %482 : vector<1x1x128xf32> to vector<2x8x128xf32>
    %484 = arith.addf %480, %483 : vector<2x8x128xf32>
    "tpu.trace_start"() <{level = 10 : i32, message = "bnm,bmc->bnc"}> : () -> ()
    %cst_146 = arith.constant dense<0.000000e+00> : vector<2x8x128xf32>
    %485 = tpu.matmul %344, %484, %cst_146 {dimension_numbers = #tpu.dot_dimension_numbers<[2], [1], [1], [2], [0, 0, 0, 1, 1, 2], [0], [0]>} : vector<2x8x8xf32>, vector<2x8x128xf32>, vector<2x8x128xf32> -> vector<2x8x128xf32>
    "tpu.trace_stop"() : () -> ()
    %c16 = arith.constant 16 : index
    %c0_147 = arith.constant 0 : index
    %c0_148 = arith.constant 0 : index
    %486 = vector.load %arg3[%c16, %c0_147, %c0_148] : memref<33x128x128xf32, #tpu.memory_space<vmem>>, vector<1x128x128xf32>
    %487 = vector.shape_cast %486 : vector<1x128x128xf32> to vector<128x128xf32>
    %c17 = arith.constant 17 : index
    %c0_149 = arith.constant 0 : index
    %c0_150 = arith.constant 0 : index
    %488 = vector.load %arg3[%c17, %c0_149, %c0_150] : memref<33x128x128xf32, #tpu.memory_space<vmem>>, vector<1x128x128xf32>
    %489 = vector.shape_cast %488 : vector<1x128x128xf32> to vector<128x128xf32>
    %c8_151 = arith.constant 8 : index
    %c0_152 = arith.constant 0 : index
    %c0_153 = arith.constant 0 : index
    %490 = vector.load %arg4[%c8_151, %c0_152, %c0_153] : memref<16x8x128xf32, #tpu.memory_space<vmem>>, vector<1x8x128xf32>
    %491 = vector.shape_cast %490 : vector<1x8x128xf32> to vector<8x128xf32>
    %492 = vector.shape_cast %485 : vector<2x8x128xf32> to vector<16x128xf32>
    %cst_154 = arith.constant dense<0.000000e+00> : vector<16x128xf32>
    %493 = tpu.matmul %492, %487, %cst_154 {dimension_numbers = #tpu.dot_dimension_numbers<[1], [0], [0], [1], [0, 0, 1, 1], [], []>} : vector<16x128xf32>, vector<128x128xf32>, vector<16x128xf32> -> vector<16x128xf32>
    %494 = vector.shape_cast %484 : vector<2x8x128xf32> to vector<16x128xf32>
    %cst_155 = arith.constant dense<0.000000e+00> : vector<16x128xf32>
    %495 = tpu.matmul %494, %489, %cst_155 {dimension_numbers = #tpu.dot_dimension_numbers<[1], [0], [0], [1], [0, 0, 1, 1], [], []>} : vector<16x128xf32>, vector<128x128xf32>, vector<16x128xf32> -> vector<16x128xf32>
    %496 = arith.addf %493, %495 : vector<16x128xf32>
    %497 = vector.shape_cast %496 : vector<16x128xf32> to vector<2x8x128xf32>
    %498 = vector.extract_strided_slice %491 {offsets = [0, 0], sizes = [1, 128], strides = [1, 1]} : vector<8x128xf32> to vector<1x128xf32>
    %499 = vector.shape_cast %498 : vector<1x128xf32> to vector<1x1x128xf32>
    %500 = vector.broadcast %499 : vector<1x1x128xf32> to vector<2x8x128xf32>
    %501 = arith.addf %497, %500 : vector<2x8x128xf32>
    %cst_156 = arith.constant 0.000000e+00 : f32
    %502 = vector.broadcast %cst_156 : f32 to vector<2x8x128xf32>
    %503 = arith.maximumf %501, %502 : vector<2x8x128xf32>
    %504 = vector.extract_strided_slice %491 {offsets = [1, 0], sizes = [1, 128], strides = [1, 1]} : vector<8x128xf32> to vector<1x128xf32>
    %505 = vector.shape_cast %504 : vector<1x128xf32> to vector<1x1x128xf32>
    %506 = vector.broadcast %505 : vector<1x1x128xf32> to vector<2x8x128xf32>
    %507 = arith.mulf %503, %506 : vector<2x8x128xf32>
    %508 = vector.extract_strided_slice %491 {offsets = [2, 0], sizes = [1, 128], strides = [1, 1]} : vector<8x128xf32> to vector<1x128xf32>
    %509 = vector.shape_cast %508 : vector<1x128xf32> to vector<1x1x128xf32>
    %510 = vector.broadcast %509 : vector<1x1x128xf32> to vector<2x8x128xf32>
    %511 = arith.addf %507, %510 : vector<2x8x128xf32>
    %cst_157 = arith.constant dense<0.000000e+00> : vector<8x128xf32>
    %512 = vector.multi_reduction <add>, %511, %cst_157 [0] : vector<2x8x128xf32> to vector<8x128xf32>
    %513 = vector.shape_cast %512 : vector<8x128xf32> to vector<1x8x128xf32>
    %cst_158 = arith.constant 2.000000e+00 : f32
    %514 = vector.broadcast %cst_158 : f32 to vector<1x8x128xf32>
    %515 = arith.divf %513, %514 : vector<1x8x128xf32>
    %516 = vector.extract_strided_slice %491 {offsets = [5, 0], sizes = [1, 128], strides = [1, 1]} : vector<8x128xf32> to vector<1x128xf32>
    %517 = vector.shape_cast %516 : vector<1x128xf32> to vector<1x1x128xf32>
    %518 = vector.broadcast %517 : vector<1x1x128xf32> to vector<1x8x128xf32>
    %519 = arith.mulf %515, %518 : vector<1x8x128xf32>
    %520 = vector.broadcast %519 : vector<1x8x128xf32> to vector<2x8x128xf32>
    %521 = arith.subf %511, %520 : vector<2x8x128xf32>
    %522 = arith.mulf %521, %521 : vector<2x8x128xf32>
    %cst_159 = arith.constant dense<0.000000e+00> : vector<8x128xf32>
    %523 = vector.multi_reduction <add>, %522, %cst_159 [0] : vector<2x8x128xf32> to vector<8x128xf32>
    %524 = vector.shape_cast %523 : vector<8x128xf32> to vector<1x8x128xf32>
    %cst_160 = arith.constant 2.000000e+00 : f32
    %525 = vector.broadcast %cst_160 : f32 to vector<1x8x128xf32>
    %526 = arith.divf %524, %525 : vector<1x8x128xf32>
    %527 = vector.extract_strided_slice %491 {offsets = [3, 0], sizes = [1, 128], strides = [1, 1]} : vector<8x128xf32> to vector<1x128xf32>
    %528 = vector.shape_cast %527 : vector<1x128xf32> to vector<1x1x128xf32>
    %529 = vector.broadcast %528 : vector<1x1x128xf32> to vector<2x8x128xf32>
    %530 = arith.mulf %529, %521 : vector<2x8x128xf32>
    %cst_161 = arith.constant 9.99999974E-6 : f32
    %531 = vector.broadcast %cst_161 : f32 to vector<1x8x128xf32>
    %532 = arith.addf %526, %531 : vector<1x8x128xf32>
    %533 = math.rsqrt %532 : vector<1x8x128xf32>
    %534 = vector.broadcast %533 : vector<1x8x128xf32> to vector<2x8x128xf32>
    %535 = arith.mulf %530, %534 : vector<2x8x128xf32>
    %536 = vector.extract_strided_slice %491 {offsets = [4, 0], sizes = [1, 128], strides = [1, 1]} : vector<8x128xf32> to vector<1x128xf32>
    %537 = vector.shape_cast %536 : vector<1x128xf32> to vector<1x1x128xf32>
    %538 = vector.broadcast %537 : vector<1x1x128xf32> to vector<2x8x128xf32>
    %539 = arith.addf %535, %538 : vector<2x8x128xf32>
    %c18 = arith.constant 18 : index
    %c0_162 = arith.constant 0 : index
    %c0_163 = arith.constant 0 : index
    %540 = vector.load %arg3[%c18, %c0_162, %c0_163] : memref<33x128x128xf32, #tpu.memory_space<vmem>>, vector<1x128x128xf32>
    %541 = vector.shape_cast %540 : vector<1x128x128xf32> to vector<128x128xf32>
    %c19 = arith.constant 19 : index
    %c0_164 = arith.constant 0 : index
    %c0_165 = arith.constant 0 : index
    %542 = vector.load %arg3[%c19, %c0_164, %c0_165] : memref<33x128x128xf32, #tpu.memory_space<vmem>>, vector<1x128x128xf32>
    %543 = vector.shape_cast %542 : vector<1x128x128xf32> to vector<128x128xf32>
    %c9_166 = arith.constant 9 : index
    %c0_167 = arith.constant 0 : index
    %c0_168 = arith.constant 0 : index
    %544 = vector.load %arg4[%c9_166, %c0_167, %c0_168] : memref<16x8x128xf32, #tpu.memory_space<vmem>>, vector<1x8x128xf32>
    %545 = vector.shape_cast %544 : vector<1x8x128xf32> to vector<8x128xf32>
    %546 = vector.shape_cast %375 : vector<2x8x128xf32> to vector<16x128xf32>
    %cst_169 = arith.constant dense<0.000000e+00> : vector<16x128xf32>
    %547 = tpu.matmul %546, %541, %cst_169 {dimension_numbers = #tpu.dot_dimension_numbers<[1], [0], [0], [1], [0, 0, 1, 1], [], []>} : vector<16x128xf32>, vector<128x128xf32>, vector<16x128xf32> -> vector<16x128xf32>
    %548 = vector.shape_cast %343 : vector<2x8x128xf32> to vector<16x128xf32>
    %cst_170 = arith.constant dense<0.000000e+00> : vector<16x128xf32>
    %549 = tpu.matmul %548, %543, %cst_170 {dimension_numbers = #tpu.dot_dimension_numbers<[1], [0], [0], [1], [0, 0, 1, 1], [], []>} : vector<16x128xf32>, vector<128x128xf32>, vector<16x128xf32> -> vector<16x128xf32>
    %550 = arith.addf %547, %549 : vector<16x128xf32>
    %551 = vector.shape_cast %550 : vector<16x128xf32> to vector<2x8x128xf32>
    %552 = vector.extract_strided_slice %545 {offsets = [0, 0], sizes = [1, 128], strides = [1, 1]} : vector<8x128xf32> to vector<1x128xf32>
    %553 = vector.shape_cast %552 : vector<1x128xf32> to vector<1x1x128xf32>
    %554 = vector.broadcast %553 : vector<1x1x128xf32> to vector<2x8x128xf32>
    %555 = arith.addf %551, %554 : vector<2x8x128xf32>
    %cst_171 = arith.constant 0.000000e+00 : f32
    %556 = vector.broadcast %cst_171 : f32 to vector<2x8x128xf32>
    %557 = arith.maximumf %555, %556 : vector<2x8x128xf32>
    %558 = vector.extract_strided_slice %545 {offsets = [1, 0], sizes = [1, 128], strides = [1, 1]} : vector<8x128xf32> to vector<1x128xf32>
    %559 = vector.shape_cast %558 : vector<1x128xf32> to vector<1x1x128xf32>
    %560 = vector.broadcast %559 : vector<1x1x128xf32> to vector<2x8x128xf32>
    %561 = arith.mulf %557, %560 : vector<2x8x128xf32>
    %562 = vector.extract_strided_slice %545 {offsets = [2, 0], sizes = [1, 128], strides = [1, 1]} : vector<8x128xf32> to vector<1x128xf32>
    %563 = vector.shape_cast %562 : vector<1x128xf32> to vector<1x1x128xf32>
    %564 = vector.broadcast %563 : vector<1x1x128xf32> to vector<2x8x128xf32>
    %565 = arith.addf %561, %564 : vector<2x8x128xf32>
    %cst_172 = arith.constant dense<0.000000e+00> : vector<8x128xf32>
    %566 = vector.multi_reduction <add>, %565, %cst_172 [0] : vector<2x8x128xf32> to vector<8x128xf32>
    %567 = vector.shape_cast %566 : vector<8x128xf32> to vector<1x8x128xf32>
    %cst_173 = arith.constant 2.000000e+00 : f32
    %568 = vector.broadcast %cst_173 : f32 to vector<1x8x128xf32>
    %569 = arith.divf %567, %568 : vector<1x8x128xf32>
    %570 = vector.extract_strided_slice %545 {offsets = [5, 0], sizes = [1, 128], strides = [1, 1]} : vector<8x128xf32> to vector<1x128xf32>
    %571 = vector.shape_cast %570 : vector<1x128xf32> to vector<1x1x128xf32>
    %572 = vector.broadcast %571 : vector<1x1x128xf32> to vector<1x8x128xf32>
    %573 = arith.mulf %569, %572 : vector<1x8x128xf32>
    %574 = vector.broadcast %573 : vector<1x8x128xf32> to vector<2x8x128xf32>
    %575 = arith.subf %565, %574 : vector<2x8x128xf32>
    %576 = arith.mulf %575, %575 : vector<2x8x128xf32>
    %cst_174 = arith.constant dense<0.000000e+00> : vector<8x128xf32>
    %577 = vector.multi_reduction <add>, %576, %cst_174 [0] : vector<2x8x128xf32> to vector<8x128xf32>
    %578 = vector.shape_cast %577 : vector<8x128xf32> to vector<1x8x128xf32>
    %cst_175 = arith.constant 2.000000e+00 : f32
    %579 = vector.broadcast %cst_175 : f32 to vector<1x8x128xf32>
    %580 = arith.divf %578, %579 : vector<1x8x128xf32>
    %581 = vector.extract_strided_slice %545 {offsets = [3, 0], sizes = [1, 128], strides = [1, 1]} : vector<8x128xf32> to vector<1x128xf32>
    %582 = vector.shape_cast %581 : vector<1x128xf32> to vector<1x1x128xf32>
    %583 = vector.broadcast %582 : vector<1x1x128xf32> to vector<2x8x128xf32>
    %584 = arith.mulf %583, %575 : vector<2x8x128xf32>
    %cst_176 = arith.constant 9.99999974E-6 : f32
    %585 = vector.broadcast %cst_176 : f32 to vector<1x8x128xf32>
    %586 = arith.addf %580, %585 : vector<1x8x128xf32>
    %587 = math.rsqrt %586 : vector<1x8x128xf32>
    %588 = vector.broadcast %587 : vector<1x8x128xf32> to vector<2x8x128xf32>
    %589 = arith.mulf %584, %588 : vector<2x8x128xf32>
    %590 = vector.extract_strided_slice %545 {offsets = [4, 0], sizes = [1, 128], strides = [1, 1]} : vector<8x128xf32> to vector<1x128xf32>
    %591 = vector.shape_cast %590 : vector<1x128xf32> to vector<1x1x128xf32>
    %592 = vector.broadcast %591 : vector<1x1x128xf32> to vector<2x8x128xf32>
    %593 = arith.addf %589, %592 : vector<2x8x128xf32>
    "tpu.trace_start"() <{level = 10 : i32, message = "bnm,bmc->bnc"}> : () -> ()
    %cst_177 = arith.constant dense<0.000000e+00> : vector<2x8x128xf32>
    %594 = tpu.matmul %344, %593, %cst_177 {dimension_numbers = #tpu.dot_dimension_numbers<[2], [1], [1], [2], [0, 0, 0, 1, 1, 2], [0], [0]>} : vector<2x8x8xf32>, vector<2x8x128xf32>, vector<2x8x128xf32> -> vector<2x8x128xf32>
    "tpu.trace_stop"() : () -> ()
    %c20 = arith.constant 20 : index
    %c0_178 = arith.constant 0 : index
    %c0_179 = arith.constant 0 : index
    %595 = vector.load %arg3[%c20, %c0_178, %c0_179] : memref<33x128x128xf32, #tpu.memory_space<vmem>>, vector<1x128x128xf32>
    %596 = vector.shape_cast %595 : vector<1x128x128xf32> to vector<128x128xf32>
    %c21 = arith.constant 21 : index
    %c0_180 = arith.constant 0 : index
    %c0_181 = arith.constant 0 : index
    %597 = vector.load %arg3[%c21, %c0_180, %c0_181] : memref<33x128x128xf32, #tpu.memory_space<vmem>>, vector<1x128x128xf32>
    %598 = vector.shape_cast %597 : vector<1x128x128xf32> to vector<128x128xf32>
    %c10_182 = arith.constant 10 : index
    %c0_183 = arith.constant 0 : index
    %c0_184 = arith.constant 0 : index
    %599 = vector.load %arg4[%c10_182, %c0_183, %c0_184] : memref<16x8x128xf32, #tpu.memory_space<vmem>>, vector<1x8x128xf32>
    %600 = vector.shape_cast %599 : vector<1x8x128xf32> to vector<8x128xf32>
    %601 = vector.shape_cast %594 : vector<2x8x128xf32> to vector<16x128xf32>
    %cst_185 = arith.constant dense<0.000000e+00> : vector<16x128xf32>
    %602 = tpu.matmul %601, %596, %cst_185 {dimension_numbers = #tpu.dot_dimension_numbers<[1], [0], [0], [1], [0, 0, 1, 1], [], []>} : vector<16x128xf32>, vector<128x128xf32>, vector<16x128xf32> -> vector<16x128xf32>
    %603 = vector.shape_cast %593 : vector<2x8x128xf32> to vector<16x128xf32>
    %cst_186 = arith.constant dense<0.000000e+00> : vector<16x128xf32>
    %604 = tpu.matmul %603, %598, %cst_186 {dimension_numbers = #tpu.dot_dimension_numbers<[1], [0], [0], [1], [0, 0, 1, 1], [], []>} : vector<16x128xf32>, vector<128x128xf32>, vector<16x128xf32> -> vector<16x128xf32>
    %605 = arith.addf %602, %604 : vector<16x128xf32>
    %606 = vector.shape_cast %605 : vector<16x128xf32> to vector<2x8x128xf32>
    %607 = vector.extract_strided_slice %600 {offsets = [0, 0], sizes = [1, 128], strides = [1, 1]} : vector<8x128xf32> to vector<1x128xf32>
    %608 = vector.shape_cast %607 : vector<1x128xf32> to vector<1x1x128xf32>
    %609 = vector.broadcast %608 : vector<1x1x128xf32> to vector<2x8x128xf32>
    %610 = arith.addf %606, %609 : vector<2x8x128xf32>
    %cst_187 = arith.constant 0.000000e+00 : f32
    %611 = vector.broadcast %cst_187 : f32 to vector<2x8x128xf32>
    %612 = arith.maximumf %610, %611 : vector<2x8x128xf32>
    %613 = vector.extract_strided_slice %600 {offsets = [1, 0], sizes = [1, 128], strides = [1, 1]} : vector<8x128xf32> to vector<1x128xf32>
    %614 = vector.shape_cast %613 : vector<1x128xf32> to vector<1x1x128xf32>
    %615 = vector.broadcast %614 : vector<1x1x128xf32> to vector<2x8x128xf32>
    %616 = arith.mulf %612, %615 : vector<2x8x128xf32>
    %617 = vector.extract_strided_slice %600 {offsets = [2, 0], sizes = [1, 128], strides = [1, 1]} : vector<8x128xf32> to vector<1x128xf32>
    %618 = vector.shape_cast %617 : vector<1x128xf32> to vector<1x1x128xf32>
    %619 = vector.broadcast %618 : vector<1x1x128xf32> to vector<2x8x128xf32>
    %620 = arith.addf %616, %619 : vector<2x8x128xf32>
    %cst_188 = arith.constant dense<0.000000e+00> : vector<8x128xf32>
    %621 = vector.multi_reduction <add>, %620, %cst_188 [0] : vector<2x8x128xf32> to vector<8x128xf32>
    %622 = vector.shape_cast %621 : vector<8x128xf32> to vector<1x8x128xf32>
    %cst_189 = arith.constant 2.000000e+00 : f32
    %623 = vector.broadcast %cst_189 : f32 to vector<1x8x128xf32>
    %624 = arith.divf %622, %623 : vector<1x8x128xf32>
    %625 = vector.extract_strided_slice %600 {offsets = [5, 0], sizes = [1, 128], strides = [1, 1]} : vector<8x128xf32> to vector<1x128xf32>
    %626 = vector.shape_cast %625 : vector<1x128xf32> to vector<1x1x128xf32>
    %627 = vector.broadcast %626 : vector<1x1x128xf32> to vector<1x8x128xf32>
    %628 = arith.mulf %624, %627 : vector<1x8x128xf32>
    %629 = vector.broadcast %628 : vector<1x8x128xf32> to vector<2x8x128xf32>
    %630 = arith.subf %620, %629 : vector<2x8x128xf32>
    %631 = arith.mulf %630, %630 : vector<2x8x128xf32>
    %cst_190 = arith.constant dense<0.000000e+00> : vector<8x128xf32>
    %632 = vector.multi_reduction <add>, %631, %cst_190 [0] : vector<2x8x128xf32> to vector<8x128xf32>
    %633 = vector.shape_cast %632 : vector<8x128xf32> to vector<1x8x128xf32>
    %cst_191 = arith.constant 2.000000e+00 : f32
    %634 = vector.broadcast %cst_191 : f32 to vector<1x8x128xf32>
    %635 = arith.divf %633, %634 : vector<1x8x128xf32>
    %636 = vector.extract_strided_slice %600 {offsets = [3, 0], sizes = [1, 128], strides = [1, 1]} : vector<8x128xf32> to vector<1x128xf32>
    %637 = vector.shape_cast %636 : vector<1x128xf32> to vector<1x1x128xf32>
    %638 = vector.broadcast %637 : vector<1x1x128xf32> to vector<2x8x128xf32>
    %639 = arith.mulf %638, %630 : vector<2x8x128xf32>
    %cst_192 = arith.constant 9.99999974E-6 : f32
    %640 = vector.broadcast %cst_192 : f32 to vector<1x8x128xf32>
    %641 = arith.addf %635, %640 : vector<1x8x128xf32>
    %642 = math.rsqrt %641 : vector<1x8x128xf32>
    %643 = vector.broadcast %642 : vector<1x8x128xf32> to vector<2x8x128xf32>
    %644 = arith.mulf %639, %643 : vector<2x8x128xf32>
    %645 = vector.extract_strided_slice %600 {offsets = [4, 0], sizes = [1, 128], strides = [1, 1]} : vector<8x128xf32> to vector<1x128xf32>
    %646 = vector.shape_cast %645 : vector<1x128xf32> to vector<1x1x128xf32>
    %647 = vector.broadcast %646 : vector<1x1x128xf32> to vector<2x8x128xf32>
    %648 = arith.addf %644, %647 : vector<2x8x128xf32>
    "tpu.trace_start"() <{level = 10 : i32, message = "bnm,bmc->bnc"}> : () -> ()
    %cst_193 = arith.constant dense<0.000000e+00> : vector<2x8x128xf32>
    %649 = tpu.matmul %344, %648, %cst_193 {dimension_numbers = #tpu.dot_dimension_numbers<[2], [1], [1], [2], [0, 0, 0, 1, 1, 2], [0], [0]>} : vector<2x8x8xf32>, vector<2x8x128xf32>, vector<2x8x128xf32> -> vector<2x8x128xf32>
    "tpu.trace_stop"() : () -> ()
    %c22 = arith.constant 22 : index
    %c0_194 = arith.constant 0 : index
    %c0_195 = arith.constant 0 : index
    %650 = vector.load %arg3[%c22, %c0_194, %c0_195] : memref<33x128x128xf32, #tpu.memory_space<vmem>>, vector<1x128x128xf32>
    %651 = vector.shape_cast %650 : vector<1x128x128xf32> to vector<128x128xf32>
    %c23 = arith.constant 23 : index
    %c0_196 = arith.constant 0 : index
    %c0_197 = arith.constant 0 : index
    %652 = vector.load %arg3[%c23, %c0_196, %c0_197] : memref<33x128x128xf32, #tpu.memory_space<vmem>>, vector<1x128x128xf32>
    %653 = vector.shape_cast %652 : vector<1x128x128xf32> to vector<128x128xf32>
    %c11_198 = arith.constant 11 : index
    %c0_199 = arith.constant 0 : index
    %c0_200 = arith.constant 0 : index
    %654 = vector.load %arg4[%c11_198, %c0_199, %c0_200] : memref<16x8x128xf32, #tpu.memory_space<vmem>>, vector<1x8x128xf32>
    %655 = vector.shape_cast %654 : vector<1x8x128xf32> to vector<8x128xf32>
    %656 = vector.shape_cast %649 : vector<2x8x128xf32> to vector<16x128xf32>
    %cst_201 = arith.constant dense<0.000000e+00> : vector<16x128xf32>
    %657 = tpu.matmul %656, %651, %cst_201 {dimension_numbers = #tpu.dot_dimension_numbers<[1], [0], [0], [1], [0, 0, 1, 1], [], []>} : vector<16x128xf32>, vector<128x128xf32>, vector<16x128xf32> -> vector<16x128xf32>
    %658 = vector.shape_cast %648 : vector<2x8x128xf32> to vector<16x128xf32>
    %cst_202 = arith.constant dense<0.000000e+00> : vector<16x128xf32>
    %659 = tpu.matmul %658, %653, %cst_202 {dimension_numbers = #tpu.dot_dimension_numbers<[1], [0], [0], [1], [0, 0, 1, 1], [], []>} : vector<16x128xf32>, vector<128x128xf32>, vector<16x128xf32> -> vector<16x128xf32>
    %660 = arith.addf %657, %659 : vector<16x128xf32>
    %661 = vector.shape_cast %660 : vector<16x128xf32> to vector<2x8x128xf32>
    %662 = vector.extract_strided_slice %655 {offsets = [0, 0], sizes = [1, 128], strides = [1, 1]} : vector<8x128xf32> to vector<1x128xf32>
    %663 = vector.shape_cast %662 : vector<1x128xf32> to vector<1x1x128xf32>
    %664 = vector.broadcast %663 : vector<1x1x128xf32> to vector<2x8x128xf32>
    %665 = arith.addf %661, %664 : vector<2x8x128xf32>
    %cst_203 = arith.constant 0.000000e+00 : f32
    %666 = vector.broadcast %cst_203 : f32 to vector<2x8x128xf32>
    %667 = arith.maximumf %665, %666 : vector<2x8x128xf32>
    %668 = vector.extract_strided_slice %655 {offsets = [1, 0], sizes = [1, 128], strides = [1, 1]} : vector<8x128xf32> to vector<1x128xf32>
    %669 = vector.shape_cast %668 : vector<1x128xf32> to vector<1x1x128xf32>
    %670 = vector.broadcast %669 : vector<1x1x128xf32> to vector<2x8x128xf32>
    %671 = arith.mulf %667, %670 : vector<2x8x128xf32>
    %672 = vector.extract_strided_slice %655 {offsets = [2, 0], sizes = [1, 128], strides = [1, 1]} : vector<8x128xf32> to vector<1x128xf32>
    %673 = vector.shape_cast %672 : vector<1x128xf32> to vector<1x1x128xf32>
    %674 = vector.broadcast %673 : vector<1x1x128xf32> to vector<2x8x128xf32>
    %675 = arith.addf %671, %674 : vector<2x8x128xf32>
    %cst_204 = arith.constant dense<0.000000e+00> : vector<8x128xf32>
    %676 = vector.multi_reduction <add>, %675, %cst_204 [0] : vector<2x8x128xf32> to vector<8x128xf32>
    %677 = vector.shape_cast %676 : vector<8x128xf32> to vector<1x8x128xf32>
    %cst_205 = arith.constant 2.000000e+00 : f32
    %678 = vector.broadcast %cst_205 : f32 to vector<1x8x128xf32>
    %679 = arith.divf %677, %678 : vector<1x8x128xf32>
    %680 = vector.extract_strided_slice %655 {offsets = [5, 0], sizes = [1, 128], strides = [1, 1]} : vector<8x128xf32> to vector<1x128xf32>
    %681 = vector.shape_cast %680 : vector<1x128xf32> to vector<1x1x128xf32>
    %682 = vector.broadcast %681 : vector<1x1x128xf32> to vector<1x8x128xf32>
    %683 = arith.mulf %679, %682 : vector<1x8x128xf32>
    %684 = vector.broadcast %683 : vector<1x8x128xf32> to vector<2x8x128xf32>
    %685 = arith.subf %675, %684 : vector<2x8x128xf32>
    %686 = arith.mulf %685, %685 : vector<2x8x128xf32>
    %cst_206 = arith.constant dense<0.000000e+00> : vector<8x128xf32>
    %687 = vector.multi_reduction <add>, %686, %cst_206 [0] : vector<2x8x128xf32> to vector<8x128xf32>
    %688 = vector.shape_cast %687 : vector<8x128xf32> to vector<1x8x128xf32>
    %cst_207 = arith.constant 2.000000e+00 : f32
    %689 = vector.broadcast %cst_207 : f32 to vector<1x8x128xf32>
    %690 = arith.divf %688, %689 : vector<1x8x128xf32>
    %691 = vector.extract_strided_slice %655 {offsets = [3, 0], sizes = [1, 128], strides = [1, 1]} : vector<8x128xf32> to vector<1x128xf32>
    %692 = vector.shape_cast %691 : vector<1x128xf32> to vector<1x1x128xf32>
    %693 = vector.broadcast %692 : vector<1x1x128xf32> to vector<2x8x128xf32>
    %694 = arith.mulf %693, %685 : vector<2x8x128xf32>
    %cst_208 = arith.constant 9.99999974E-6 : f32
    %695 = vector.broadcast %cst_208 : f32 to vector<1x8x128xf32>
    %696 = arith.addf %690, %695 : vector<1x8x128xf32>
    %697 = math.rsqrt %696 : vector<1x8x128xf32>
    %698 = vector.broadcast %697 : vector<1x8x128xf32> to vector<2x8x128xf32>
    %699 = arith.mulf %694, %698 : vector<2x8x128xf32>
    %700 = vector.extract_strided_slice %655 {offsets = [4, 0], sizes = [1, 128], strides = [1, 1]} : vector<8x128xf32> to vector<1x128xf32>
    %701 = vector.shape_cast %700 : vector<1x128xf32> to vector<1x1x128xf32>
    %702 = vector.broadcast %701 : vector<1x1x128xf32> to vector<2x8x128xf32>
    %703 = arith.addf %699, %702 : vector<2x8x128xf32>
    %704 = vector.extract_strided_slice %539 {offsets = [0, 0, 0], sizes = [2, 8, 4], strides = [1, 1, 1]} : vector<2x8x128xf32> to vector<2x8x4xf32>
    %cst_209 = arith.constant dense<0xFF800000> : vector<2x8xf32>
    %705 = vector.multi_reduction <maximumf>, %704, %cst_209 [2] : vector<2x8x4xf32> to vector<2x8xf32>
    %706 = vector.shape_cast %705 : vector<2x8xf32> to vector<2x8x1xf32>
    %707 = vector.broadcast %706 : vector<2x8x1xf32> to vector<2x8x4xf32>
    %708 = arith.subf %704, %707 : vector<2x8x4xf32>
    %709 = math.exp %708 : vector<2x8x4xf32>
    %cst_210 = arith.constant dense<0.000000e+00> : vector<2x8xf32>
    %710 = vector.multi_reduction <add>, %709, %cst_210 [2] : vector<2x8x4xf32> to vector<2x8xf32>
    %711 = vector.shape_cast %710 : vector<2x8xf32> to vector<2x8x1xf32>
    %712 = vector.broadcast %711 : vector<2x8x1xf32> to vector<2x8x4xf32>
    %713 = arith.divf %709, %712 : vector<2x8x4xf32>
    %714 = tpu.transpose %713, [0, 2, 1] : vector<2x8x4xf32> -> vector<2x4x8xf32>
    "tpu.trace_start"() <{level = 10 : i32, message = "bnm,bmk->bnk"}> : () -> ()
    %cst_211 = arith.constant dense<0.000000e+00> : vector<2x8x4xf32>
    %715 = tpu.matmul %344, %713, %cst_211 {dimension_numbers = #tpu.dot_dimension_numbers<[2], [1], [1], [2], [0, 0, 0, 1, 1, 2], [0], [0]>} : vector<2x8x8xf32>, vector<2x8x4xf32>, vector<2x8x4xf32> -> vector<2x8x4xf32>
    "tpu.trace_stop"() : () -> ()
    "tpu.trace_start"() <{level = 10 : i32, message = "bkn,bnc->bkc"}> : () -> ()
    %cst_212 = arith.constant dense<0.000000e+00> : vector<2x4x128xf32>
    %716 = tpu.matmul %714, %703, %cst_212 {dimension_numbers = #tpu.dot_dimension_numbers<[2], [1], [1], [2], [0, 0, 0, 1, 1, 2], [0], [0]>} : vector<2x4x8xf32>, vector<2x8x128xf32>, vector<2x4x128xf32> -> vector<2x4x128xf32>
    "tpu.trace_stop"() : () -> ()
    "tpu.trace_start"() <{level = 10 : i32, message = "bkn,bnj->bkj"}> : () -> ()
    %cst_213 = arith.constant dense<0.000000e+00> : vector<2x4x4xf32>
    %717 = tpu.matmul %714, %715, %cst_213 {dimension_numbers = #tpu.dot_dimension_numbers<[2], [1], [1], [2], [0, 0, 0, 1, 1, 2], [0], [0]>} : vector<2x4x8xf32>, vector<2x8x4xf32>, vector<2x4x4xf32> -> vector<2x4x4xf32>
    "tpu.trace_stop"() : () -> ()
    "tpu.trace_start"() <{level = 10 : i32, message = "bkn,bnl->bkl"}> : () -> ()
    %cst_214 = arith.constant dense<0.000000e+00> : vector<2x4x4xf32>
    %718 = tpu.matmul %714, %713, %cst_214 {dimension_numbers = #tpu.dot_dimension_numbers<[2], [1], [1], [2], [0, 0, 0, 1, 1, 2], [0], [0]>} : vector<2x4x8xf32>, vector<2x8x4xf32>, vector<2x4x4xf32> -> vector<2x4x4xf32>
    "tpu.trace_stop"() : () -> ()
    %719 = arith.mulf %344, %344 : vector<2x8x8xf32>
    %720 = vector.shape_cast %719 : vector<2x8x8xf32> to vector<1x2x8x8xf32>
    %cst_215 = arith.constant dense<0.000000e+00> : vector<1xf32>
    %721 = vector.multi_reduction <add>, %720, %cst_215 [1, 2, 3] : vector<1x2x8x8xf32> to vector<1xf32>
    %722 = vector.shape_cast %721 : vector<1xf32> to vector<1x1x1x1xf32>
    %723 = vector.extract %722[0, 0, 0, 0] : f32 from vector<1x1x1x1xf32>
    %724 = arith.mulf %715, %713 : vector<2x8x4xf32>
    %725 = vector.shape_cast %724 : vector<2x8x4xf32> to vector<1x2x8x4xf32>
    %cst_216 = arith.constant dense<0.000000e+00> : vector<1xf32>
    %726 = vector.multi_reduction <add>, %725, %cst_216 [1, 2, 3] : vector<1x2x8x4xf32> to vector<1xf32>
    %727 = vector.shape_cast %726 : vector<1xf32> to vector<1x1x1x1xf32>
    %728 = vector.extract %727[0, 0, 0, 0] : f32 from vector<1x1x1x1xf32>
    %cst_217 = arith.constant 2.000000e+00 : f32
    %729 = arith.mulf %cst_217, %728 : f32
    %730 = arith.subf %723, %729 : f32
    %731 = arith.mulf %718, %718 : vector<2x4x4xf32>
    %732 = vector.shape_cast %731 : vector<2x4x4xf32> to vector<1x2x4x4xf32>
    %cst_218 = arith.constant dense<0.000000e+00> : vector<1xf32>
    %733 = vector.multi_reduction <add>, %732, %cst_218 [1, 2, 3] : vector<1x2x4x4xf32> to vector<1xf32>
    %734 = vector.shape_cast %733 : vector<1xf32> to vector<1x1x1x1xf32>
    %735 = vector.extract %734[0, 0, 0, 0] : f32 from vector<1x1x1x1xf32>
    %736 = arith.addf %730, %735 : f32
    %cst_219 = arith.constant 0.000000e+00 : f32
    %737 = arith.maximumf %736, %cst_219 : f32
    %cst_220 = arith.constant 0.000000e+00 : f32
    %738 = vector.broadcast %cst_220 : f32 to vector<2x8x4xf32>
    %739 = arith.subf %738, %713 : vector<2x8x4xf32>
    %cst_221 = arith.constant 1.000000e-15 : f32
    %740 = vector.broadcast %cst_221 : f32 to vector<2x8x4xf32>
    %741 = arith.addf %713, %740 : vector<2x8x4xf32>
    %742 = math.log %741 : vector<2x8x4xf32>
    %743 = arith.mulf %739, %742 : vector<2x8x4xf32>
    %744 = vector.shape_cast %743 : vector<2x8x4xf32> to vector<1x2x8x4xf32>
    %cst_222 = arith.constant dense<0.000000e+00> : vector<1xf32>
    %745 = vector.multi_reduction <add>, %744, %cst_222 [1, 2, 3] : vector<1x2x8x4xf32> to vector<1xf32>
    %746 = vector.shape_cast %745 : vector<1xf32> to vector<1x1x1x1xf32>
    %747 = vector.extract %746[0, 0, 0, 0] : f32 from vector<1x1x1x1xf32>
    "tpu.trace_start"() <{level = 10 : i32, message = "bnm,bmc->bnc"}> : () -> ()
    %cst_223 = arith.constant dense<0.000000e+00> : vector<2x4x128xf32>
    %748 = tpu.matmul %717, %716, %cst_223 {dimension_numbers = #tpu.dot_dimension_numbers<[2], [1], [1], [2], [0, 0, 0, 1, 1, 2], [0], [0]>} : vector<2x4x4xf32>, vector<2x4x128xf32>, vector<2x4x128xf32> -> vector<2x4x128xf32>
    "tpu.trace_stop"() : () -> ()
    %c24 = arith.constant 24 : index
    %c0_224 = arith.constant 0 : index
    %c0_225 = arith.constant 0 : index
    %749 = vector.load %arg3[%c24, %c0_224, %c0_225] : memref<33x128x128xf32, #tpu.memory_space<vmem>>, vector<1x128x128xf32>
    %750 = vector.shape_cast %749 : vector<1x128x128xf32> to vector<128x128xf32>
    %c25 = arith.constant 25 : index
    %c0_226 = arith.constant 0 : index
    %c0_227 = arith.constant 0 : index
    %751 = vector.load %arg3[%c25, %c0_226, %c0_227] : memref<33x128x128xf32, #tpu.memory_space<vmem>>, vector<1x128x128xf32>
    %752 = vector.shape_cast %751 : vector<1x128x128xf32> to vector<128x128xf32>
    %c12_228 = arith.constant 12 : index
    %c0_229 = arith.constant 0 : index
    %c0_230 = arith.constant 0 : index
    %753 = vector.load %arg4[%c12_228, %c0_229, %c0_230] : memref<16x8x128xf32, #tpu.memory_space<vmem>>, vector<1x8x128xf32>
    %754 = vector.shape_cast %753 : vector<1x8x128xf32> to vector<8x128xf32>
    %755 = vector.shape_cast %750 : vector<128x128xf32> to vector<1x128x128xf32>
    %756 = vector.shape_cast %755 : vector<1x128x128xf32> to vector<1x128x128xf32>
    %757 = vector.broadcast %756 : vector<1x128x128xf32> to vector<2x128x128xf32>
    "tpu.trace_start"() <{level = 10 : i32, message = "bnk,bkc->bnc"}> : () -> ()
    %cst_231 = arith.constant dense<0.000000e+00> : vector<2x4x128xf32>
    %758 = tpu.matmul %748, %757, %cst_231 {dimension_numbers = #tpu.dot_dimension_numbers<[2], [1], [1], [2], [0, 0, 0, 1, 1, 2], [0], [0]>} : vector<2x4x128xf32>, vector<2x128x128xf32>, vector<2x4x128xf32> -> vector<2x4x128xf32>
    "tpu.trace_stop"() : () -> ()
    %759 = vector.shape_cast %752 : vector<128x128xf32> to vector<1x128x128xf32>
    %760 = vector.shape_cast %759 : vector<1x128x128xf32> to vector<1x128x128xf32>
    %761 = vector.broadcast %760 : vector<1x128x128xf32> to vector<2x128x128xf32>
    "tpu.trace_start"() <{level = 10 : i32, message = "bnk,bkc->bnc"}> : () -> ()
    %cst_232 = arith.constant dense<0.000000e+00> : vector<2x4x128xf32>
    %762 = tpu.matmul %716, %761, %cst_232 {dimension_numbers = #tpu.dot_dimension_numbers<[2], [1], [1], [2], [0, 0, 0, 1, 1, 2], [0], [0]>} : vector<2x4x128xf32>, vector<2x128x128xf32>, vector<2x4x128xf32> -> vector<2x4x128xf32>
    "tpu.trace_stop"() : () -> ()
    %763 = arith.addf %758, %762 : vector<2x4x128xf32>
    %764 = vector.extract_strided_slice %754 {offsets = [0, 0], sizes = [1, 128], strides = [1, 1]} : vector<8x128xf32> to vector<1x128xf32>
    %765 = vector.shape_cast %764 : vector<1x128xf32> to vector<1x1x128xf32>
    %766 = vector.broadcast %765 : vector<1x1x128xf32> to vector<2x4x128xf32>
    %767 = arith.addf %763, %766 : vector<2x4x128xf32>
    %cst_233 = arith.constant 0.000000e+00 : f32
    %768 = vector.broadcast %cst_233 : f32 to vector<2x4x128xf32>
    %769 = arith.maximumf %767, %768 : vector<2x4x128xf32>
    %770 = vector.extract_strided_slice %754 {offsets = [1, 0], sizes = [1, 128], strides = [1, 1]} : vector<8x128xf32> to vector<1x128xf32>
    %771 = vector.shape_cast %770 : vector<1x128xf32> to vector<1x1x128xf32>
    %772 = vector.broadcast %771 : vector<1x1x128xf32> to vector<2x4x128xf32>
    %773 = arith.mulf %769, %772 : vector<2x4x128xf32>
    %774 = vector.extract_strided_slice %754 {offsets = [2, 0], sizes = [1, 128], strides = [1, 1]} : vector<8x128xf32> to vector<1x128xf32>
    %775 = vector.shape_cast %774 : vector<1x128xf32> to vector<1x1x128xf32>
    %776 = vector.broadcast %775 : vector<1x1x128xf32> to vector<2x4x128xf32>
    %777 = arith.addf %773, %776 : vector<2x4x128xf32>
    %cst_234 = arith.constant dense<0.000000e+00> : vector<4x128xf32>
    %778 = vector.multi_reduction <add>, %777, %cst_234 [0] : vector<2x4x128xf32> to vector<4x128xf32>
    %779 = vector.shape_cast %778 : vector<4x128xf32> to vector<1x4x128xf32>
    %cst_235 = arith.constant 2.000000e+00 : f32
    %780 = vector.broadcast %cst_235 : f32 to vector<1x4x128xf32>
    %781 = arith.divf %779, %780 : vector<1x4x128xf32>
    %782 = vector.extract_strided_slice %754 {offsets = [5, 0], sizes = [1, 128], strides = [1, 1]} : vector<8x128xf32> to vector<1x128xf32>
    %783 = vector.shape_cast %782 : vector<1x128xf32> to vector<1x1x128xf32>
    %784 = vector.broadcast %783 : vector<1x1x128xf32> to vector<1x4x128xf32>
    %785 = arith.mulf %781, %784 : vector<1x4x128xf32>
    %786 = vector.broadcast %785 : vector<1x4x128xf32> to vector<2x4x128xf32>
    %787 = arith.subf %777, %786 : vector<2x4x128xf32>
    %788 = arith.mulf %787, %787 : vector<2x4x128xf32>
    %cst_236 = arith.constant dense<0.000000e+00> : vector<4x128xf32>
    %789 = vector.multi_reduction <add>, %788, %cst_236 [0] : vector<2x4x128xf32> to vector<4x128xf32>
    %790 = vector.shape_cast %789 : vector<4x128xf32> to vector<1x4x128xf32>
    %cst_237 = arith.constant 2.000000e+00 : f32
    %791 = vector.broadcast %cst_237 : f32 to vector<1x4x128xf32>
    %792 = arith.divf %790, %791 : vector<1x4x128xf32>
    %793 = vector.extract_strided_slice %754 {offsets = [3, 0], sizes = [1, 128], strides = [1, 1]} : vector<8x128xf32> to vector<1x128xf32>
    %794 = vector.shape_cast %793 : vector<1x128xf32> to vector<1x1x128xf32>
    %795 = vector.broadcast %794 : vector<1x1x128xf32> to vector<2x4x128xf32>
    %796 = arith.mulf %795, %787 : vector<2x4x128xf32>
    %cst_238 = arith.constant 9.99999974E-6 : f32
    %797 = vector.broadcast %cst_238 : f32 to vector<1x4x128xf32>
    %798 = arith.addf %792, %797 : vector<1x4x128xf32>
    %799 = math.rsqrt %798 : vector<1x4x128xf32>
    %800 = vector.broadcast %799 : vector<1x4x128xf32> to vector<2x4x128xf32>
    %801 = arith.mulf %796, %800 : vector<2x4x128xf32>
    %802 = vector.extract_strided_slice %754 {offsets = [4, 0], sizes = [1, 128], strides = [1, 1]} : vector<8x128xf32> to vector<1x128xf32>
    %803 = vector.shape_cast %802 : vector<1x128xf32> to vector<1x1x128xf32>
    %804 = vector.broadcast %803 : vector<1x1x128xf32> to vector<2x4x128xf32>
    %805 = arith.addf %801, %804 : vector<2x4x128xf32>
    "tpu.trace_start"() <{level = 10 : i32, message = "bnm,bmc->bnc"}> : () -> ()
    %cst_239 = arith.constant dense<0.000000e+00> : vector<2x4x128xf32>
    %806 = tpu.matmul %717, %805, %cst_239 {dimension_numbers = #tpu.dot_dimension_numbers<[2], [1], [1], [2], [0, 0, 0, 1, 1, 2], [0], [0]>} : vector<2x4x4xf32>, vector<2x4x128xf32>, vector<2x4x128xf32> -> vector<2x4x128xf32>
    "tpu.trace_stop"() : () -> ()
    %c26 = arith.constant 26 : index
    %c0_240 = arith.constant 0 : index
    %c0_241 = arith.constant 0 : index
    %807 = vector.load %arg3[%c26, %c0_240, %c0_241] : memref<33x128x128xf32, #tpu.memory_space<vmem>>, vector<1x128x128xf32>
    %808 = vector.shape_cast %807 : vector<1x128x128xf32> to vector<128x128xf32>
    %c27 = arith.constant 27 : index
    %c0_242 = arith.constant 0 : index
    %c0_243 = arith.constant 0 : index
    %809 = vector.load %arg3[%c27, %c0_242, %c0_243] : memref<33x128x128xf32, #tpu.memory_space<vmem>>, vector<1x128x128xf32>
    %810 = vector.shape_cast %809 : vector<1x128x128xf32> to vector<128x128xf32>
    %c13_244 = arith.constant 13 : index
    %c0_245 = arith.constant 0 : index
    %c0_246 = arith.constant 0 : index
    %811 = vector.load %arg4[%c13_244, %c0_245, %c0_246] : memref<16x8x128xf32, #tpu.memory_space<vmem>>, vector<1x8x128xf32>
    %812 = vector.shape_cast %811 : vector<1x8x128xf32> to vector<8x128xf32>
    %813 = vector.shape_cast %808 : vector<128x128xf32> to vector<1x128x128xf32>
    %814 = vector.shape_cast %813 : vector<1x128x128xf32> to vector<1x128x128xf32>
    %815 = vector.broadcast %814 : vector<1x128x128xf32> to vector<2x128x128xf32>
    "tpu.trace_start"() <{level = 10 : i32, message = "bnk,bkc->bnc"}> : () -> ()
    %cst_247 = arith.constant dense<0.000000e+00> : vector<2x4x128xf32>
    %816 = tpu.matmul %806, %815, %cst_247 {dimension_numbers = #tpu.dot_dimension_numbers<[2], [1], [1], [2], [0, 0, 0, 1, 1, 2], [0], [0]>} : vector<2x4x128xf32>, vector<2x128x128xf32>, vector<2x4x128xf32> -> vector<2x4x128xf32>
    "tpu.trace_stop"() : () -> ()
    %817 = vector.shape_cast %810 : vector<128x128xf32> to vector<1x128x128xf32>
    %818 = vector.shape_cast %817 : vector<1x128x128xf32> to vector<1x128x128xf32>
    %819 = vector.broadcast %818 : vector<1x128x128xf32> to vector<2x128x128xf32>
    "tpu.trace_start"() <{level = 10 : i32, message = "bnk,bkc->bnc"}> : () -> ()
    %cst_248 = arith.constant dense<0.000000e+00> : vector<2x4x128xf32>
    %820 = tpu.matmul %805, %819, %cst_248 {dimension_numbers = #tpu.dot_dimension_numbers<[2], [1], [1], [2], [0, 0, 0, 1, 1, 2], [0], [0]>} : vector<2x4x128xf32>, vector<2x128x128xf32>, vector<2x4x128xf32> -> vector<2x4x128xf32>
    "tpu.trace_stop"() : () -> ()
    %821 = arith.addf %816, %820 : vector<2x4x128xf32>
    %822 = vector.extract_strided_slice %812 {offsets = [0, 0], sizes = [1, 128], strides = [1, 1]} : vector<8x128xf32> to vector<1x128xf32>
    %823 = vector.shape_cast %822 : vector<1x128xf32> to vector<1x1x128xf32>
    %824 = vector.broadcast %823 : vector<1x1x128xf32> to vector<2x4x128xf32>
    %825 = arith.addf %821, %824 : vector<2x4x128xf32>
    %cst_249 = arith.constant 0.000000e+00 : f32
    %826 = vector.broadcast %cst_249 : f32 to vector<2x4x128xf32>
    %827 = arith.maximumf %825, %826 : vector<2x4x128xf32>
    %828 = vector.extract_strided_slice %812 {offsets = [1, 0], sizes = [1, 128], strides = [1, 1]} : vector<8x128xf32> to vector<1x128xf32>
    %829 = vector.shape_cast %828 : vector<1x128xf32> to vector<1x1x128xf32>
    %830 = vector.broadcast %829 : vector<1x1x128xf32> to vector<2x4x128xf32>
    %831 = arith.mulf %827, %830 : vector<2x4x128xf32>
    %832 = vector.extract_strided_slice %812 {offsets = [2, 0], sizes = [1, 128], strides = [1, 1]} : vector<8x128xf32> to vector<1x128xf32>
    %833 = vector.shape_cast %832 : vector<1x128xf32> to vector<1x1x128xf32>
    %834 = vector.broadcast %833 : vector<1x1x128xf32> to vector<2x4x128xf32>
    %835 = arith.addf %831, %834 : vector<2x4x128xf32>
    %cst_250 = arith.constant dense<0.000000e+00> : vector<4x128xf32>
    %836 = vector.multi_reduction <add>, %835, %cst_250 [0] : vector<2x4x128xf32> to vector<4x128xf32>
    %837 = vector.shape_cast %836 : vector<4x128xf32> to vector<1x4x128xf32>
    %cst_251 = arith.constant 2.000000e+00 : f32
    %838 = vector.broadcast %cst_251 : f32 to vector<1x4x128xf32>
    %839 = arith.divf %837, %838 : vector<1x4x128xf32>
    %840 = vector.extract_strided_slice %812 {offsets = [5, 0], sizes = [1, 128], strides = [1, 1]} : vector<8x128xf32> to vector<1x128xf32>
    %841 = vector.shape_cast %840 : vector<1x128xf32> to vector<1x1x128xf32>
    %842 = vector.broadcast %841 : vector<1x1x128xf32> to vector<1x4x128xf32>
    %843 = arith.mulf %839, %842 : vector<1x4x128xf32>
    %844 = vector.broadcast %843 : vector<1x4x128xf32> to vector<2x4x128xf32>
    %845 = arith.subf %835, %844 : vector<2x4x128xf32>
    %846 = arith.mulf %845, %845 : vector<2x4x128xf32>
    %cst_252 = arith.constant dense<0.000000e+00> : vector<4x128xf32>
    %847 = vector.multi_reduction <add>, %846, %cst_252 [0] : vector<2x4x128xf32> to vector<4x128xf32>
    %848 = vector.shape_cast %847 : vector<4x128xf32> to vector<1x4x128xf32>
    %cst_253 = arith.constant 2.000000e+00 : f32
    %849 = vector.broadcast %cst_253 : f32 to vector<1x4x128xf32>
    %850 = arith.divf %848, %849 : vector<1x4x128xf32>
    %851 = vector.extract_strided_slice %812 {offsets = [3, 0], sizes = [1, 128], strides = [1, 1]} : vector<8x128xf32> to vector<1x128xf32>
    %852 = vector.shape_cast %851 : vector<1x128xf32> to vector<1x1x128xf32>
    %853 = vector.broadcast %852 : vector<1x1x128xf32> to vector<2x4x128xf32>
    %854 = arith.mulf %853, %845 : vector<2x4x128xf32>
    %cst_254 = arith.constant 9.99999974E-6 : f32
    %855 = vector.broadcast %cst_254 : f32 to vector<1x4x128xf32>
    %856 = arith.addf %850, %855 : vector<1x4x128xf32>
    %857 = math.rsqrt %856 : vector<1x4x128xf32>
    %858 = vector.broadcast %857 : vector<1x4x128xf32> to vector<2x4x128xf32>
    %859 = arith.mulf %854, %858 : vector<2x4x128xf32>
    %860 = vector.extract_strided_slice %812 {offsets = [4, 0], sizes = [1, 128], strides = [1, 1]} : vector<8x128xf32> to vector<1x128xf32>
    %861 = vector.shape_cast %860 : vector<1x128xf32> to vector<1x1x128xf32>
    %862 = vector.broadcast %861 : vector<1x1x128xf32> to vector<2x4x128xf32>
    %863 = arith.addf %859, %862 : vector<2x4x128xf32>
    "tpu.trace_start"() <{level = 10 : i32, message = "bnm,bmc->bnc"}> : () -> ()
    %cst_255 = arith.constant dense<0.000000e+00> : vector<2x4x128xf32>
    %864 = tpu.matmul %717, %863, %cst_255 {dimension_numbers = #tpu.dot_dimension_numbers<[2], [1], [1], [2], [0, 0, 0, 1, 1, 2], [0], [0]>} : vector<2x4x4xf32>, vector<2x4x128xf32>, vector<2x4x128xf32> -> vector<2x4x128xf32>
    "tpu.trace_stop"() : () -> ()
    %c28 = arith.constant 28 : index
    %c0_256 = arith.constant 0 : index
    %c0_257 = arith.constant 0 : index
    %865 = vector.load %arg3[%c28, %c0_256, %c0_257] : memref<33x128x128xf32, #tpu.memory_space<vmem>>, vector<1x128x128xf32>
    %866 = vector.shape_cast %865 : vector<1x128x128xf32> to vector<128x128xf32>
    %c29 = arith.constant 29 : index
    %c0_258 = arith.constant 0 : index
    %c0_259 = arith.constant 0 : index
    %867 = vector.load %arg3[%c29, %c0_258, %c0_259] : memref<33x128x128xf32, #tpu.memory_space<vmem>>, vector<1x128x128xf32>
    %868 = vector.shape_cast %867 : vector<1x128x128xf32> to vector<128x128xf32>
    %c14_260 = arith.constant 14 : index
    %c0_261 = arith.constant 0 : index
    %c0_262 = arith.constant 0 : index
    %869 = vector.load %arg4[%c14_260, %c0_261, %c0_262] : memref<16x8x128xf32, #tpu.memory_space<vmem>>, vector<1x8x128xf32>
    %870 = vector.shape_cast %869 : vector<1x8x128xf32> to vector<8x128xf32>
    %871 = vector.shape_cast %866 : vector<128x128xf32> to vector<1x128x128xf32>
    %872 = vector.shape_cast %871 : vector<1x128x128xf32> to vector<1x128x128xf32>
    %873 = vector.broadcast %872 : vector<1x128x128xf32> to vector<2x128x128xf32>
    "tpu.trace_start"() <{level = 10 : i32, message = "bnk,bkc->bnc"}> : () -> ()
    %cst_263 = arith.constant dense<0.000000e+00> : vector<2x4x128xf32>
    %874 = tpu.matmul %864, %873, %cst_263 {dimension_numbers = #tpu.dot_dimension_numbers<[2], [1], [1], [2], [0, 0, 0, 1, 1, 2], [0], [0]>} : vector<2x4x128xf32>, vector<2x128x128xf32>, vector<2x4x128xf32> -> vector<2x4x128xf32>
    "tpu.trace_stop"() : () -> ()
    %875 = vector.shape_cast %868 : vector<128x128xf32> to vector<1x128x128xf32>
    %876 = vector.shape_cast %875 : vector<1x128x128xf32> to vector<1x128x128xf32>
    %877 = vector.broadcast %876 : vector<1x128x128xf32> to vector<2x128x128xf32>
    "tpu.trace_start"() <{level = 10 : i32, message = "bnk,bkc->bnc"}> : () -> ()
    %cst_264 = arith.constant dense<0.000000e+00> : vector<2x4x128xf32>
    %878 = tpu.matmul %863, %877, %cst_264 {dimension_numbers = #tpu.dot_dimension_numbers<[2], [1], [1], [2], [0, 0, 0, 1, 1, 2], [0], [0]>} : vector<2x4x128xf32>, vector<2x128x128xf32>, vector<2x4x128xf32> -> vector<2x4x128xf32>
    "tpu.trace_stop"() : () -> ()
    %879 = arith.addf %874, %878 : vector<2x4x128xf32>
    %880 = vector.extract_strided_slice %870 {offsets = [0, 0], sizes = [1, 128], strides = [1, 1]} : vector<8x128xf32> to vector<1x128xf32>
    %881 = vector.shape_cast %880 : vector<1x128xf32> to vector<1x1x128xf32>
    %882 = vector.broadcast %881 : vector<1x1x128xf32> to vector<2x4x128xf32>
    %883 = arith.addf %879, %882 : vector<2x4x128xf32>
    %cst_265 = arith.constant 0.000000e+00 : f32
    %884 = vector.broadcast %cst_265 : f32 to vector<2x4x128xf32>
    %885 = arith.maximumf %883, %884 : vector<2x4x128xf32>
    %886 = vector.extract_strided_slice %870 {offsets = [1, 0], sizes = [1, 128], strides = [1, 1]} : vector<8x128xf32> to vector<1x128xf32>
    %887 = vector.shape_cast %886 : vector<1x128xf32> to vector<1x1x128xf32>
    %888 = vector.broadcast %887 : vector<1x1x128xf32> to vector<2x4x128xf32>
    %889 = arith.mulf %885, %888 : vector<2x4x128xf32>
    %890 = vector.extract_strided_slice %870 {offsets = [2, 0], sizes = [1, 128], strides = [1, 1]} : vector<8x128xf32> to vector<1x128xf32>
    %891 = vector.shape_cast %890 : vector<1x128xf32> to vector<1x1x128xf32>
    %892 = vector.broadcast %891 : vector<1x1x128xf32> to vector<2x4x128xf32>
    %893 = arith.addf %889, %892 : vector<2x4x128xf32>
    %cst_266 = arith.constant dense<0.000000e+00> : vector<4x128xf32>
    %894 = vector.multi_reduction <add>, %893, %cst_266 [0] : vector<2x4x128xf32> to vector<4x128xf32>
    %895 = vector.shape_cast %894 : vector<4x128xf32> to vector<1x4x128xf32>
    %cst_267 = arith.constant 2.000000e+00 : f32
    %896 = vector.broadcast %cst_267 : f32 to vector<1x4x128xf32>
    %897 = arith.divf %895, %896 : vector<1x4x128xf32>
    %898 = vector.extract_strided_slice %870 {offsets = [5, 0], sizes = [1, 128], strides = [1, 1]} : vector<8x128xf32> to vector<1x128xf32>
    %899 = vector.shape_cast %898 : vector<1x128xf32> to vector<1x1x128xf32>
    %900 = vector.broadcast %899 : vector<1x1x128xf32> to vector<1x4x128xf32>
    %901 = arith.mulf %897, %900 : vector<1x4x128xf32>
    %902 = vector.broadcast %901 : vector<1x4x128xf32> to vector<2x4x128xf32>
    %903 = arith.subf %893, %902 : vector<2x4x128xf32>
    %904 = arith.mulf %903, %903 : vector<2x4x128xf32>
    %cst_268 = arith.constant dense<0.000000e+00> : vector<4x128xf32>
    %905 = vector.multi_reduction <add>, %904, %cst_268 [0] : vector<2x4x128xf32> to vector<4x128xf32>
    %906 = vector.shape_cast %905 : vector<4x128xf32> to vector<1x4x128xf32>
    %cst_269 = arith.constant 2.000000e+00 : f32
    %907 = vector.broadcast %cst_269 : f32 to vector<1x4x128xf32>
    %908 = arith.divf %906, %907 : vector<1x4x128xf32>
    %909 = vector.extract_strided_slice %870 {offsets = [3, 0], sizes = [1, 128], strides = [1, 1]} : vector<8x128xf32> to vector<1x128xf32>
    %910 = vector.shape_cast %909 : vector<1x128xf32> to vector<1x1x128xf32>
    %911 = vector.broadcast %910 : vector<1x1x128xf32> to vector<2x4x128xf32>
    %912 = arith.mulf %911, %903 : vector<2x4x128xf32>
    %cst_270 = arith.constant 9.99999974E-6 : f32
    %913 = vector.broadcast %cst_270 : f32 to vector<1x4x128xf32>
    %914 = arith.addf %908, %913 : vector<1x4x128xf32>
    %915 = math.rsqrt %914 : vector<1x4x128xf32>
    %916 = vector.broadcast %915 : vector<1x4x128xf32> to vector<2x4x128xf32>
    %917 = arith.mulf %912, %916 : vector<2x4x128xf32>
    %918 = vector.extract_strided_slice %870 {offsets = [4, 0], sizes = [1, 128], strides = [1, 1]} : vector<8x128xf32> to vector<1x128xf32>
    %919 = vector.shape_cast %918 : vector<1x128xf32> to vector<1x1x128xf32>
    %920 = vector.broadcast %919 : vector<1x1x128xf32> to vector<2x4x128xf32>
    %921 = arith.addf %917, %920 : vector<2x4x128xf32>
    %c15_271 = arith.constant 15 : index
    %c0_272 = arith.constant 0 : index
    %c0_273 = arith.constant 0 : index
    %922 = vector.load %arg4[%c15_271, %c0_272, %c0_273] : memref<16x8x128xf32, #tpu.memory_space<vmem>>, vector<1x8x128xf32>
    %923 = vector.shape_cast %922 : vector<1x8x128xf32> to vector<8x128xf32>
    %cst_274 = arith.constant dense<0.000000e+00> : vector<2x128xf32>
    %924 = vector.multi_reduction <add>, %921, %cst_274 [1] : vector<2x4x128xf32> to vector<2x128xf32>
    %cst_275 = arith.constant 4.000000e+00 : f32
    %925 = vector.broadcast %cst_275 : f32 to vector<2x128xf32>
    %926 = arith.divf %924, %925 : vector<2x128xf32>
    %c30 = arith.constant 30 : index
    %c0_276 = arith.constant 0 : index
    %c0_277 = arith.constant 0 : index
    %927 = vector.load %arg3[%c30, %c0_276, %c0_277] : memref<33x128x128xf32, #tpu.memory_space<vmem>>, vector<1x128x128xf32>
    %928 = vector.shape_cast %927 : vector<1x128x128xf32> to vector<128x128xf32>
    %cst_278 = arith.constant dense<0.000000e+00> : vector<2x128xf32>
    %929 = tpu.matmul %926, %928, %cst_278 {dimension_numbers = #tpu.dot_dimension_numbers<[1], [0], [0], [1], [0, 0, 1, 1], [], []>} : vector<2x128xf32>, vector<128x128xf32>, vector<2x128xf32> -> vector<2x128xf32>
    %930 = vector.extract_strided_slice %923 {offsets = [0, 0], sizes = [1, 128], strides = [1, 1]} : vector<8x128xf32> to vector<1x128xf32>
    %931 = vector.broadcast %930 : vector<1x128xf32> to vector<2x128xf32>
    %932 = arith.addf %929, %931 : vector<2x128xf32>
    %cst_279 = arith.constant 0.000000e+00 : f32
    %933 = vector.broadcast %cst_279 : f32 to vector<2x128xf32>
    %934 = arith.maximumf %932, %933 : vector<2x128xf32>
    %c31 = arith.constant 31 : index
    %c0_280 = arith.constant 0 : index
    %c0_281 = arith.constant 0 : index
    %935 = vector.load %arg3[%c31, %c0_280, %c0_281] : memref<33x128x128xf32, #tpu.memory_space<vmem>>, vector<1x128x128xf32>
    %936 = vector.shape_cast %935 : vector<1x128x128xf32> to vector<128x128xf32>
    %cst_282 = arith.constant dense<0.000000e+00> : vector<2x128xf32>
    %937 = tpu.matmul %934, %936, %cst_282 {dimension_numbers = #tpu.dot_dimension_numbers<[1], [0], [0], [1], [0, 0, 1, 1], [], []>} : vector<2x128xf32>, vector<128x128xf32>, vector<2x128xf32> -> vector<2x128xf32>
    %938 = vector.extract_strided_slice %923 {offsets = [1, 0], sizes = [1, 128], strides = [1, 1]} : vector<8x128xf32> to vector<1x128xf32>
    %939 = vector.broadcast %938 : vector<1x128xf32> to vector<2x128xf32>
    %940 = arith.addf %937, %939 : vector<2x128xf32>
    %cst_283 = arith.constant 0.000000e+00 : f32
    %941 = vector.broadcast %cst_283 : f32 to vector<2x128xf32>
    %942 = arith.maximumf %940, %941 : vector<2x128xf32>
    %c32 = arith.constant 32 : index
    %c0_284 = arith.constant 0 : index
    %c0_285 = arith.constant 0 : index
    %943 = vector.load %arg3[%c32, %c0_284, %c0_285] : memref<33x128x128xf32, #tpu.memory_space<vmem>>, vector<1x128x128xf32>
    %944 = vector.shape_cast %943 : vector<1x128x128xf32> to vector<128x128xf32>
    %cst_286 = arith.constant dense<0.000000e+00> : vector<2x128xf32>
    %945 = tpu.matmul %942, %944, %cst_286 {dimension_numbers = #tpu.dot_dimension_numbers<[1], [0], [0], [1], [0, 0, 1, 1], [], []>} : vector<2x128xf32>, vector<128x128xf32>, vector<2x128xf32> -> vector<2x128xf32>
    %946 = vector.extract_strided_slice %923 {offsets = [2, 0], sizes = [1, 128], strides = [1, 1]} : vector<8x128xf32> to vector<1x128xf32>
    %947 = vector.broadcast %946 : vector<1x128xf32> to vector<2x128xf32>
    %948 = arith.addf %945, %947 : vector<2x128xf32>
    %cst_287 = arith.constant dense<0xFF800000> : vector<2xf32>
    %949 = vector.multi_reduction <maximumf>, %948, %cst_287 [1] : vector<2x128xf32> to vector<2xf32>
    %950 = vector.shape_cast %949 : vector<2xf32> to vector<2x1xf32>
    %951 = vector.broadcast %950 : vector<2x1xf32> to vector<2x128xf32>
    %952 = arith.subf %948, %951 : vector<2x128xf32>
    %953 = math.exp %952 : vector<2x128xf32>
    %cst_288 = arith.constant dense<0.000000e+00> : vector<2xf32>
    %954 = vector.multi_reduction <add>, %953, %cst_288 [1] : vector<2x128xf32> to vector<2xf32>
    %955 = vector.shape_cast %954 : vector<2xf32> to vector<2x1xf32>
    %956 = math.log %955 : vector<2x1xf32>
    %957 = vector.broadcast %956 : vector<2x1xf32> to vector<2x128xf32>
    %958 = arith.subf %952, %957 : vector<2x128xf32>
    %c0_289 = arith.constant 0 : index
    %c0_290 = arith.constant 0 : index
    %959 = vector.load %arg5[%c0_289, %c0_290] : memref<2x128xf32, #tpu.memory_space<vmem>>, vector<2x128xf32>
    tpu.vector_store %arg5[%c0_289, %c0_290], %958 {strides = array<i32>} : memref<2x128xf32, #tpu.memory_space<vmem>>, vector<2x128xf32>,
    %c0_291 = arith.constant 0 : index
    %c0_292 = arith.constant 0 : index
    %960 = memref.load %arg6[%c0_291, %c0_292] : memref<1x4xf32, #tpu.memory_space<smem>>
    memref.store %364, %arg6[%c0_291, %c0_292] : memref<1x4xf32, #tpu.memory_space<smem>>
    %c0_293 = arith.constant 0 : index
    %c1_294 = arith.constant 1 : index
    %961 = memref.load %arg6[%c0_293, %c1_294] : memref<1x4xf32, #tpu.memory_space<smem>>
    memref.store %374, %arg6[%c0_293, %c1_294] : memref<1x4xf32, #tpu.memory_space<smem>>
    %c0_295 = arith.constant 0 : index
    %c2_296 = arith.constant 2 : index
    %962 = memref.load %arg6[%c0_295, %c2_296] : memref<1x4xf32, #tpu.memory_space<smem>>
    memref.store %737, %arg6[%c0_295, %c2_296] : memref<1x4xf32, #tpu.memory_space<smem>>
    %c0_297 = arith.constant 0 : index
    %c3_298 = arith.constant 3 : index
    %963 = memref.load %arg6[%c0_297, %c3_298] : memref<1x4xf32, #tpu.memory_space<smem>>
    memref.store %747, %arg6[%c0_297, %c3_298] : memref<1x4xf32, #tpu.memory_space<smem>>
    return
  }
  func.func @transform_0(%arg0: i32) -> (i32, i32, i32) {
    %c0_i32 = arith.constant 0 : i32
    %c0_i32_0 = arith.constant 0 : i32
    %c0_i32_1 = arith.constant 0 : i32
    %c0_i32_2 = arith.constant 0 : i32
    return %c0_i32, %c0_i32_0, %c0_i32_1 : i32, i32, i32
  }
  func.func @transform_1(%arg0: i32) -> (i32, i32, i32) {
    %c0_i32 = arith.constant 0 : i32
    %c0_i32_0 = arith.constant 0 : i32
    %c0_i32_1 = arith.constant 0 : i32
    %c0_i32_2 = arith.constant 0 : i32
    return %c0_i32, %c0_i32_0, %c0_i32_1 : i32, i32, i32
  }
  func.func @transform_2(%arg0: i32) -> (i32, i32, i32) {
    %c0_i32 = arith.constant 0 : i32
    %c0_i32_0 = arith.constant 0 : i32
    %c0_i32_1 = arith.constant 0 : i32
    %c0_i32_2 = arith.constant 0 : i32
    return %c0_i32, %c0_i32_0, %c0_i32_1 : i32, i32, i32
  }
  func.func @transform_3(%arg0: i32) -> (i32, i32, i32) {
    %c0_i32 = arith.constant 0 : i32
    %c0_i32_0 = arith.constant 0 : i32
    %c0_i32_1 = arith.constant 0 : i32
    %c0_i32_2 = arith.constant 0 : i32
    return %c0_i32, %c0_i32_0, %c0_i32_1 : i32, i32, i32
  }
  func.func @transform_4(%arg0: i32) -> (i32, i32) {
    %c0_i32 = arith.constant 0 : i32
    %c0_i32_0 = arith.constant 0 : i32
    %c0_i32_1 = arith.constant 0 : i32
    return %c0_i32, %c0_i32_0 : i32, i32
  }
  func.func @transform_5(%arg0: i32) -> (i32, i32) {
    %c0_i32 = arith.constant 0 : i32
    %c0_i32_0 = arith.constant 0 : i32
    %c0_i32_1 = arith.constant 0 : i32
    return %c0_i32, %c0_i32_0 : i32, i32
  }
}

</mosaic_0001>

<bundles_post_ra>
// kernel: net_forward.1
= control target key start
LH: loop header
LB: loop body
LE: loop exit
PB: predicated region body
PF: predicated region fallthrough
CT: control target
= control target key end

     0   :  { %11 = vsyncpa [#allocation3], 0  ;;  %s12903_s0 = inlined_call_operand.vmem [shape: f32[2,16,128], index: 0, kind: input, shape index: {}]   ;;  %s12904_s1 = inlined_call_operand.hbm [shape: f32[2,16,16], index: 1, kind: input, shape index: {}]   ;;  %s12905_s2 = inlined_call_operand.hbm [shape: f32[33,128,128], index: 2, kind: input, shape index: {}]   ;;  %s12906_s3 = inlined_call_operand.hbm [shape: f32[16,8,128], index: 3, kind: input, shape index: {}]   ;;  %s12907_s4 = inlined_call_operand.hbm [shape: f32[2,128], index: 4, kind: output, shape index: {0}]   ;;  %s12908_s5 = inlined_call_operand.vmem [shape: f32[1,4], index: 5, kind: output, shape index: {1}]  }
   0x1   :  { %12 = vsyncpa [#allocation7], 0 }
   0x2   :  { %13 = vsyncpa [#allocation4], 0 }
   0x3   :  { %14 = vsyncpa [#allocation5], 0  ;;  %s12020_s18 = smov [#allocation6]   ;;  %s12021_s20 = smov [#allocation2]  }
   0x4   :  { %s34_s19 = sshll.u32 %s12020_s18, 4  ;;  %s22_s21 = sshll.u32 %s12021_s20, 4  ;;  %s35_s19 = int_to_ptr.vmem [resolvable:$true] %s34_s19  ;;  %s12061_s21 = int_to_ptr.vmem [resolvable:$true] %s22_s21 }
   0x5   :  { %s11912_s24 = scalar_lea.hbm %s12905_s2, 67584 }
   0x6   :  { %p11913_p0 = scmp.ne.s32.totalorder %s12905_s2, %s11912_s24  ;;  %p11916_p1 = scmp.lt.u32.totalorder %s11912_s24, %s12905_s2 }
   0x8   :  { %p11918_p2 = pnand %p11916_p1, %p11913_p0 }
   0xa   :  { %11921 = shalt.err (!%p11918_p2)
}
   0xb   :  { %s11922_s29 = scalar_lea.vmem %s35_s19, 67584  ;;  %p11927_p4 = scmp.lt.s32.totalorder %s35_s19, %s35_s19 }
   0xc   :  { %p11923_p3 = scmp.ne.s32.totalorder %s35_s19, %s11922_s29  ;;  %p11928_p5 = scmp.lt.s32.totalorder %s11922_s29, %s11922_s29 }
   0xe   :  { %p11929_p6 = por %p11928_p5, %p11927_p4 }
  0x10   :  { %p11930_p7 = pnand %p11929_p6, %p11923_p3 }
  0x12   :  { %11933 = shalt.err (!%p11930_p7)
}
  0x13   :  { %s12022_s30 = smov 128   ;;  %s12023_s6 = smov 8  }
  0x14   :  { %40 = dma.hbm_to_vmem [thread:$0]  %s12905_s2, 67584, %s35_s19, [#allocation7], %s12022_s30, %s12022_s30, %s12023_s6  }
  0x15   :  { %s11934_s11 = scalar_lea.hbm %s12904_s1, 512 }
  0x16   :  { %p11935_p8 = scmp.ne.s32.totalorder %s12904_s1, %s11934_s11  ;;  %p11938_p9 = scmp.lt.u32.totalorder %s11934_s11, %s12904_s1 }
  0x18   :  { %p11940_p10 = pnand %p11938_p9, %p11935_p8 }
  0x1a   :  { %11943 = shalt.err (!%p11940_p10)
}
  0x1b   :  { %s11944_s16 = scalar_lea.vmem %s12061_s21, 512  ;;  %p11949_p12 = scmp.lt.s32.totalorder %s12061_s21, %s12061_s21 }
  0x1c   :  { %p11945_p11 = scmp.ne.s32.totalorder %s12061_s21, %s11944_s16  ;;  %p11950_p13 = scmp.lt.s32.totalorder %s11944_s16, %s11944_s16 }
  0x1e   :  { %p11951_p0 = por %p11950_p13, %p11949_p12 }
  0x20   :  { %p11952_p1 = pnand %p11951_p0, %p11945_p11 }
  0x22   :  { %11955 = shalt.err (!%p11952_p1)
}
  0x23   :  { %28 = dma.hbm_to_vmem [thread:$0]  %s12904_s1, 512, %s12061_s21, [#allocation3], %s12022_s30, %s12022_s30, %s12023_s6  }
  0x24   :  { %s12024_s18 = smov [#allocation8]   ;;  %s11956_s23 = scalar_lea.hbm %s12906_s3, 2048 }
  0x25   :  { %s46_s19 = sshll.u32 %s12024_s18, 4  ;;  %p11957_p2 = scmp.ne.s32.totalorder %s12906_s3, %s11956_s23  ;;  %s47_s19 = int_to_ptr.vmem [resolvable:$true] %s46_s19 }
  0x26   :  { %p11960_p3 = scmp.lt.u32.totalorder %s11956_s23, %s12906_s3 }
  0x28   :  { %p11962_p4 = pnand %p11960_p3, %p11957_p2 }
  0x2a   :  { %11965 = shalt.err (!%p11962_p4)
}
  0x2b   :  { %s11966_s28 = scalar_lea.vmem %s47_s19, 2048  ;;  %p11971_p6 = scmp.lt.s32.totalorder %s47_s19, %s47_s19 }
  0x2c   :  { %p11967_p5 = scmp.ne.s32.totalorder %s47_s19, %s11966_s28  ;;  %p11972_p7 = scmp.lt.s32.totalorder %s11966_s28, %s11966_s28 }
  0x2e   :  { %p11973_p8 = por %p11972_p7, %p11971_p6 }
  0x30   :  { %p11974_p9 = pnand %p11973_p8, %p11967_p5 }
  0x32   :  { %11977 = shalt.err (!%p11974_p9)
}
  0x33   :  { %52 = dma.hbm_to_vmem [thread:$0]  %s12906_s3, 2048, %s47_s19, [#allocation7], %s12022_s30, %s12022_s30, %s12023_s6  }
  0x34   :  { %12012 = dma.done.wait [#allocation3], 512  }
  0x35   :  { %12013 = vsyncadd [#allocation3], 4294966784 }
  0x36   :  { %12014 = dma.done.wait [#allocation7], 69632  }
  0x37   :  { %12015 = vsyncadd [#allocation7], 4294897664  ;;  %vm70_vm0 = vcmask 130048   ;;  %v12116_v0 = vld [vmem:[%s12903_s0] sm:$0xff]  ;;  %v12121_v1 = vld [vmem:[%s12903_s0 + $0x8] sm:$0xff]  ;;  %v437_v62 = vlaneseq  ;;  %vm2512_vm1 = vcmask 64512  }
  0x38   :  { %v12123_v2 = vld [vmem:[#allocation2] sm:$0xff]  ;;  %v10565_v3 = vpack.c.bf16 %v12121_v1, %v12116_v0  ;;  %v12132_v4 = vld [vmem:[%s12903_s0 + $0x10] sm:$0xff]  ;;  %v12137_v5 = vld [vmem:[%s12903_s0 + $0x18] sm:$0xff]  ;;  %vm12026_vm2 = vmmov 0   ;;  %vm5407_vm3 = vcmask 31744   ;;  %vm6132_vm4 = vcmask 1043456  }
  0x39   :  { %8922 = vmatprep.mubr.msk.f32.mxu0 %vm70_vm0, %v12123_v2  ;;  %v10569_v6 = vpack.c.bf16 %v12137_v5, %v12132_v4  ;;  %v12141_v7 = vld [vmem:[#allocation2 + $0x10] sm:$0xff]  ;;  %v250_v8 = vld [vmem:[#allocation6 + $0x80] sm:$0xff]  ;;  %v251_v9 = vld [vmem:[#allocation6 + $0x88] sm:$0xff]  ;;  %v438_v63 = vshrl.u32 %v437_v62, 7  ;;  %vm6092_vm5 = vcmask 27648   ;;  %vm7723_vm6 = vcmask 1041409  }
  0x3a   :  { %10566 = vmatprep.subr.bf16.mxu0 %v10565_v3  ;;  %9019 = vmatprep.mubr.msk.f32.mxu1 %vm70_vm0, %v12141_v7  ;;  %v12145_v10 = vld [vmem:[#allocation2 + $0x8] sm:$0xff]  ;;  %v10573_v11 = vpack.c.bf16 %v251_v9, %v250_v8  ;;  %v252_v12 = vld [vmem:[#allocation6 + $0x90] sm:$0xff]  ;;  %v253_v13 = vld [vmem:[#allocation6 + $0x98] sm:$0xff]  ;;  %vm7980_vm7 = vcmask 1041408   ;;  %s12028_s2 = smov 0.0   ;;  %s8018_s24 = sshll.u32 %s12908_s5, 4  ;;  %s8019_s24 = int_to_ptr.vmem [resolvable:$true] %s8018_s24 }
  0x3b   :  { %10568 = vmatpush3.bf16.msra.mxu0 %v10565_v3  ;;  %v12151_v14 = vld [vmem:[#allocation2 + $0x18] sm:$0xff]  ;;  %v10577_v15 = vpack.c.bf16 %v253_v13, %v252_v12  ;;  %v254_v16 = vld [vmem:[#allocation6 + $0xa0] sm:$0xff]  ;;  %v255_v17 = vld [vmem:[#allocation6 + $0xa8] sm:$0xff]  ;;  %v12173_v3 = vsub.s32 0, %v438_v63  ;;  %v12176_v9 = vsub.s32 1, %v438_v63  ;;  %s11978_s21 = scalar_lea.vmem %s8019_s24, 16  ;;  %p11983_p11 = scmp.lt.s32.totalorder %s8019_s24, %s8019_s24 }
  0x3c   :  { %10570 = vmatprep.subr.bf16.mxu0 %v10569_v6  ;;  %v10581_v18 = vpack.c.bf16 %v255_v17, %v254_v16  ;;  %v256_v19 = vld [vmem:[#allocation6 + $0xb0] sm:$0xff]  ;;  %v257_v20 = vld [vmem:[#allocation6 + $0xb8] sm:$0xff]  ;;  %v258_v22 = vld [vmem:[#allocation6 + $0xc0] sm:$0xff]  ;;  %p11979_p10 = scmp.ne.s32.totalorder %s8019_s24, %s11978_s21  ;;  %p11984_p12 = scmp.lt.s32.totalorder %s11978_s21, %s11978_s21 }
  0x3d   :  { %v10585_v21 = vpack.c.bf16 %v257_v20, %v256_v19  ;;  %v259_v23 = vld [vmem:[#allocation6 + $0xc8] sm:$0xff]  ;;  %v260_v25 = vld [vmem:[#allocation6 + $0xd0] sm:$0xff]  ;;  %v261_v26 = vld [vmem:[#allocation6 + $0xd8] sm:$0xff] }
  0x3e   :  { %8923 = vmatmul.mubr.msk.f32.vlgmr.msra.gmra.mrb[0].mxu0 %vm70_vm0, %v12145_v10  ;;  %v10589_v24 = vpack.c.bf16 %v259_v23, %v258_v22  ;;  %v10593_v27 = vpack.c.bf16 %v261_v26, %v260_v25  ;;  %v262_v28 = vld [vmem:[#allocation6 + $0xe0] sm:$0xff]  ;;  %v263_v29 = vld [vmem:[#allocation6 + $0xe8] sm:$0xff]  ;;  %v264_v31 = vld [vmem:[#allocation6 + $0xf0] sm:$0xff]  ;;  %p11985_p13 = por %p11984_p12, %p11983_p11 }
  0x3f   :  { %10572 = vmatpush3.bf16.msra.mxu0 %v10569_v6  ;;  %8929 = vmatprep.mubr.msk.f32.mxu0 %vm70_vm0, %v12141_v7  ;;  %v10597_v30 = vpack.c.bf16 %v263_v29, %v262_v28  ;;  %v265_v32 = vld [vmem:[#allocation6 + $0xf8] sm:$0xff]  ;;  %v233_v34 = vld [vmem:[#allocation6] sm:$0xff]  ;;  %v234_v35 = vld [vmem:[#allocation6 + $0x8] sm:$0xff] }
  0x40   :  { %10574 = vmatprep.subr.bf16.mxu0 %v10573_v11  ;;  %v10601_v33 = vpack.c.bf16 %v265_v32, %v264_v31  ;;  %v10605_v36 = vpack.c.bf16 %v234_v35, %v233_v34  ;;  %v235_v37 = vld [vmem:[#allocation6 + $0x10] sm:$0xff]  ;;  %v236_v38 = vld [vmem:[#allocation6 + $0x18] sm:$0xff]  ;;  %v237_v40 = vld [vmem:[#allocation6 + $0x20] sm:$0xff]  ;;  %p11986_p0 = pnand %p11985_p13, %p11979_p10 }
  0x41   :  { %v10609_v39 = vpack.c.bf16 %v236_v38, %v235_v37  ;;  %v238_v41 = vld [vmem:[#allocation6 + $0x28] sm:$0xff]  ;;  %v239_v43 = vld [vmem:[#allocation6 + $0x30] sm:$0xff]  ;;  %v240_v44 = vld [vmem:[#allocation6 + $0x38] sm:$0xff] }
  0x42   :  { %8930 = vmatmul.mubr.msk.f32.vlgmr.msra.gmra.mrb[2].mxu0 %vm70_vm0, %v12151_v14  ;;  %v10613_v42 = vpack.c.bf16 %v238_v41, %v237_v40  ;;  %v10617_v45 = vpack.c.bf16 %v240_v44, %v239_v43  ;;  %v241_v46 = vld [vmem:[#allocation6 + $0x40] sm:$0xff]  ;;  %v242_v47 = vld [vmem:[#allocation6 + $0x48] sm:$0xff]  ;;  %v243_v49 = vld [vmem:[#allocation6 + $0x50] sm:$0xff] }
  0x43   :  { %10576 = vmatpush3.bf16.msra.mxu0 %v10573_v11  ;;  %8964 = vmatprep.mubr.f32.mxu0 %v12116_v0  ;;  %v10621_v48 = vpack.c.bf16 %v242_v47, %v241_v46  ;;  %v244_v50 = vld [vmem:[#allocation6 + $0x58] sm:$0xff]  ;;  %v245_v52 = vld [vmem:[#allocation6 + $0x60] sm:$0xff]  ;;  %v246_v53 = vld [vmem:[#allocation6 + $0x68] sm:$0xff] }
  0x44   :  { %10578 = vmatprep.subr.bf16.mxu0 %v10577_v15  ;;  %v10625_v51 = vpack.c.bf16 %v244_v50, %v243_v49  ;;  %v10629_v54 = vpack.c.bf16 %v246_v53, %v245_v52  ;;  %v247_v55 = vld [vmem:[#allocation6 + $0x70] sm:$0xff]  ;;  %v248_v56 = vld [vmem:[#allocation6 + $0x78] sm:$0xff]  ;;  %v266_v6 = vld [vmem:[#allocation8] sm:$0xff] }
  0x45   :  { %v10633_v57 = vpack.c.bf16 %v248_v56, %v247_v55  ;;  %v440_v8 = vrot.slane %v266_v6, %v12173_v3  ;;  %v452_v17 = vrot.slane %v266_v6, %v12176_v9 }
  0x47   :  { %10580 = vmatpush3.bf16.msra.mxu0 %v10577_v15 }
  0x48   :  { %10582 = vmatprep.subr.bf16.mxu0 %v10581_v18 }
  0x4b   :  { %10584 = vmatpush3.bf16.msra.mxu0 %v10581_v18  ;;  %v12179_v18 = vsub.s32 2, %v438_v63 }
  0x4c   :  { %10586 = vmatprep.subr.bf16.mxu0 %v10585_v21 }
  0x4d   :  { %v460_v25 = vrot.slane %v266_v6, %v12179_v18 }
  0x4f   :  { %10588 = vmatpush3.bf16.msra.mxu0 %v10585_v21 }
  0x50   :  { %10590 = vmatprep.subr.bf16.mxu0 %v10589_v24 }
  0x53   :  { %10592 = vmatpush3.bf16.msra.mxu0 %v10589_v24 }
  0x54   :  { %10594 = vmatprep.subr.bf16.mxu0 %v10593_v27 }
  0x57   :  { %10596 = vmatpush3.bf16.msra.mxu0 %v10593_v27 }
  0x58   :  { %10598 = vmatprep.subr.bf16.mxu0 %v10597_v30 }
  0x5b   :  { %10600 = vmatpush3.bf16.msra.mxu0 %v10597_v30  ;;  %v12182_v30 = vsub.s32 5, %v438_v63 }
  0x5c   :  { %10602 = vmatprep.subr.bf16.mxu0 %v10601_v33 }
  0x5d   :  { %v473_v37 = vrot.slane %v266_v6, %v12182_v30 }
  0x5f   :  { %10604 = vmatpush3.bf16.msra.mxu0 %v10601_v33 }
  0x60   :  { %10606 = vmatprep.subr.bf16.mxu0 %v10605_v36 }
  0x62   :  { %8965 = vmatmul.mubr.f32.vlgmr.msra.gmra.mrb[4].mxu0 %v12121_v1 }
  0x63   :  { %10608 = vmatpush3.bf16.msra.mxu0 %v10605_v36  ;;  %8967 = vmatprep.mubr.f32.mxu0 %v12132_v4 }
  0x64   :  { %10610 = vmatprep.subr.bf16.mxu0 %v10609_v39 }
  0x66   :  { %8968 = vmatmul.mubr.f32.gmra.mrb[6].mxu0 %v12137_v5 }
  0x67   :  { %10612 = vmatpush3.bf16.msra.mxu0 %v10609_v39 }
  0x68   :  { %10614 = vmatprep.subr.bf16.mxu0 %v10613_v42 }
  0x6b   :  { %10616 = vmatpush3.bf16.msra.mxu0 %v10613_v42 }
  0x6c   :  { %10618 = vmatprep.subr.bf16.mxu0 %v10617_v45 }
  0x6f   :  { %10620 = vmatpush3.bf16.msra.mxu0 %v10617_v45 }
  0x70   :  { %10622 = vmatprep.subr.bf16.mxu0 %v10621_v48 }
  0x73   :  { %10624 = vmatpush3.bf16.msra.mxu0 %v10621_v48 }
  0x74   :  { %10626 = vmatprep.subr.bf16.mxu0 %v10625_v51 }
  0x77   :  { %10628 = vmatpush3.bf16.msra.mxu0 %v10625_v51 }
  0x78   :  { %10630 = vmatprep.subr.bf16.mxu0 %v10629_v54 }
  0x7b   :  { %10632 = vmatpush3.bf16.msra.mxu0 %v10629_v54 }
  0x7c   :  { %10634 = vmatprep.subr.bf16.mxu0 %v10633_v57 }
  0x7f   :  { %10636 = vmatpush3.bf16.msra.mxu0 %v10633_v57  ;;  %v12185_v57 = vsub.s32 3, %v438_v63 }
  0x81   :  { %v491_v62 = vrot.slane %v266_v6, %v12185_v57 }
 0x111   :  { %v12159_v58 = vpop.f32.mrb[0].mxu0 }
 0x112   :  { %v12161_v59 = vpop.f32.mrb[1].mxu0 }
 0x113   :  { %9002 = vmatprep.mubr.f32.mxu0 %v12161_v59 }
 0x114   :  { %9003 = vmatmul.mubr.f32.vlgmr.msra.gmra.mrb[4].mxu0 %v12159_v58 }
 0x115   :  { %v12165_v60 = vpop.f32.mrb[2].mxu0 }
 0x116   :  { %v12167_v61 = vpop.f32.mrb[3].mxu0 }
 0x117   :  { %9005 = vmatprep.mubr.f32.mxu0 %v12167_v61 }
 0x118   :  { %9006 = vmatmul.mubr.f32.gmra.mrb[6].mxu0 %v12165_v60 }
 0x119   :  { %9012 = vmatprep.mubr.msk.f32.mxu0 %vm70_vm0, %v12123_v2 }
 0x1e7   :  { %v9004_v11 = vpop.f32.mrb[4].mxu0 }
 0x1e8   :  { %v442_v12 = vadd.f32 %v9004_v11, %v440_v8  ;;  %v418_v13 = vpop.f32.mrb[5].mxu0 }
 0x1e9   :  { %v441_v15 = vadd.f32 %v440_v8, %v418_v13 }
 0x1ea   :  { %v446_v16 = vmax.f32 %v442_v12, 0.0 }
 0x1eb   :  { %v445_v19 = vmax.f32 %v441_v15, 0.0  ;;  %v9007_v20 = vpop.f32.mrb[6].mxu0 }
 0x1ec   :  { %v444_v21 = vadd.f32 %v9007_v20, %v440_v8  ;;  %v428_v22 = vpop.f32.mrb[7].mxu0  ;;  %v454_v24 = vmul.f32 %v452_v17, %v446_v16 }
 0x1ed   :  { %v443_v23 = vadd.f32 %v440_v8, %v428_v22  ;;  %v453_v27 = vmul.f32 %v452_v17, %v445_v19  ;;  %v12188_v8 = vsub.s32 4, %v438_v63 }
 0x1ee   :  { %v448_v26 = vmax.f32 %v444_v21, 0.0  ;;  %v462_v32 = vadd.f32 %v460_v25, %v454_v24 }
 0x1ef   :  { %v447_v28 = vmax.f32 %v443_v23, 0.0  ;;  %v461_v34 = vadd.f32 %v460_v25, %v453_v27  ;;  %v507_v12 = vrot.slane %v266_v6, %v12188_v8  ;;  %v681_v27 = vld [vmem:[#allocation6 + $0x188] sm:$0xff] }
 0x1f0   :  { %v456_v29 = vmul.f32 %v452_v17, %v448_v26  ;;  %v680_v26 = vld [vmem:[#allocation6 + $0x180] sm:$0xff] }
 0x1f1   :  { %v455_v31 = vmul.f32 %v452_v17, %v447_v28  ;;  %v10645_v6 = vpack.c.bf16 %v681_v27, %v680_v26  ;;  %v675_v26 = vld [vmem:[#allocation6 + $0x160] sm:$0xff]  ;;  %v676_v27 = vld [vmem:[#allocation6 + $0x168] sm:$0xff] }
 0x1f2   :  { %v464_v33 = vadd.f32 %v460_v25, %v456_v29 }
 0x1f3   :  { %v463_v35 = vadd.f32 %v460_v25, %v455_v31 }
 0x1f4   :  { %v466_v36 = vadd.f32 %v464_v33, %v462_v32 }
 0x1f5   :  { %v465_v38 = vadd.f32 %v463_v35, %v461_v34 }
 0x1f6   :  { %v469_v39 = vmul.f32 0.5, %v466_v36  ;;  %v685_v36 = vld [vmem:[#allocation6 + $0x1a8] sm:$0xff] }
 0x1f7   :  { %v468_v40 = vmul.f32 0.5, %v465_v38  ;;  %v686_v38 = vld [vmem:[#allocation6 + $0x1b0] sm:$0xff] }
 0x1f8   :  { %v475_v41 = vmul.f32 %v473_v37, %v469_v39  ;;  %v687_v39 = vld [vmem:[#allocation6 + $0x1b8] sm:$0xff] }
 0x1f9   :  { %v474_v42 = vmul.f32 %v473_v37, %v468_v40  ;;  %v10657_v40 = vpack.c.bf16 %v687_v39, %v686_v38  ;;  %v1113_v38 = vld [vmem:[#allocation6 + $0x298] sm:$0xff] }
 0x1fa   :  { %v477_v43 = vsub.f32 %v462_v32, %v475_v41  ;;  %v479_v44 = vsub.f32 %v464_v33, %v475_v41  ;;  %v682_v32 = vld [vmem:[#allocation6 + $0x190] sm:$0xff]  ;;  %v683_v33 = vld [vmem:[#allocation6 + $0x198] sm:$0xff]  ;;  %v688_v41 = vld [vmem:[#allocation6 + $0x1c0] sm:$0xff] }
 0x1fb   :  { %v476_v45 = vsub.f32 %v461_v34, %v474_v42  ;;  %v478_v46 = vsub.f32 %v463_v35, %v474_v42  ;;  %v10649_v34 = vpack.c.bf16 %v683_v33, %v682_v32  ;;  %v684_v35 = vld [vmem:[#allocation6 + $0x1a0] sm:$0xff]  ;;  %v689_v42 = vld [vmem:[#allocation6 + $0x1c8] sm:$0xff] }
 0x1fc   :  { %v481_v47 = vmul.f32 %v477_v43, %v477_v43  ;;  %v483_v48 = vmul.f32 %v479_v44, %v479_v44  ;;  %v493_v11 = vmul.f32 %v491_v62, %v477_v43  ;;  %v495_v13 = vmul.f32 %v491_v62, %v479_v44  ;;  %v690_v44 = vld [vmem:[#allocation6 + $0x1d0] sm:$0xff] }
 0x1fd   :  { %v480_v49 = vmul.f32 %v476_v45, %v476_v45  ;;  %v482_v50 = vmul.f32 %v478_v46, %v478_v46  ;;  %v492_v16 = vmul.f32 %v491_v62, %v476_v45  ;;  %v494_v17 = vmul.f32 %v491_v62, %v478_v46  ;;  %v691_v45 = vld [vmem:[#allocation6 + $0x1d8] sm:$0xff] }
 0x1fe   :  { %v485_v51 = vadd.f32 %v483_v48, %v481_v47  ;;  %v10653_v37 = vpack.c.bf16 %v685_v36, %v684_v35  ;;  %v10661_v43 = vpack.c.bf16 %v689_v42, %v688_v41  ;;  %v10665_v46 = vpack.c.bf16 %v691_v45, %v690_v44  ;;  %v692_v47 = vld [vmem:[#allocation6 + $0x1e0] sm:$0xff]  ;;  %v693_v48 = vld [vmem:[#allocation6 + $0x1e8] sm:$0xff]  ;;  %v1117_v44 = vld [vmem:[#allocation6 + $0x2b8] sm:$0xff] }
 0x1ff   :  { %v484_v52 = vadd.f32 %v482_v50, %v480_v49  ;;  %v694_v49 = vld [vmem:[#allocation6 + $0x1f0] sm:$0xff]  ;;  %v695_v50 = vld [vmem:[#allocation6 + $0x1f8] sm:$0xff]  ;;  %v1111_v35 = vld [vmem:[#allocation6 + $0x288] sm:$0xff] }
 0x200   :  { %v487_v53 = vmul.f32 0.5, %v485_v51  ;;  %v10673_v51 = vpack.c.bf16 %v695_v50, %v694_v49  ;;  %v1115_v41 = vld [vmem:[#allocation6 + $0x2a8] sm:$0xff]  ;;  %v1121_v49 = vld [vmem:[#allocation6 + $0x2d8] sm:$0xff]  ;;  %v1122_v50 = vld [vmem:[#allocation6 + $0x2e0] sm:$0xff] }
 0x201   :  { %v486_v54 = vmul.f32 0.5, %v484_v52  ;;  %v663_v52 = vld [vmem:[#allocation6 + $0x100] sm:$0xff] }
 0x202   :  { %v497_v55 = vadd.f32 1e-05, %v487_v53  ;;  %v664_v53 = vld [vmem:[#allocation6 + $0x108] sm:$0xff] }
 0x203   :  { %v496_v56 = vadd.f32 1e-05, %v486_v54  ;;  %v10677_v54 = vpack.c.bf16 %v664_v53, %v663_v52  ;;  %v1123_v52 = vld [vmem:[#allocation6 + $0x2e8] sm:$0xff] }
 0x204   :  { %11822 = vrsqrt.f32 %v497_v55  ;;  %v665_v55 = vld [vmem:[#allocation6 + $0x110] sm:$0xff]  ;;  %v10741_v53 = vpack.c.bf16 %v1123_v52, %v1122_v50 }
 0x205   :  { %11824 = vrsqrt.f32 %v496_v56  ;;  %v666_v56 = vld [vmem:[#allocation6 + $0x118] sm:$0xff] }
 0x206   :  { %v10681_v62 = vpack.c.bf16 %v666_v56, %v665_v55  ;;  %v1125_v55 = vld [vmem:[#allocation6 + $0x2f8] sm:$0xff] }
 0x20e   :  { %v11823_v15 = vpop.eup %11822 }
 0x20f   :  { %v11825_v19 = vpop.eup %11824  ;;  %v501_v20 = vmul.f32 %v11823_v15, %v493_v11  ;;  %v503_v21 = vmul.f32 %v11823_v15, %v495_v13  ;;  %v667_v11 = vld [vmem:[#allocation6 + $0x120] sm:$0xff]  ;;  %v669_v15 = vld [vmem:[#allocation6 + $0x130] sm:$0xff] }
 0x210   :  { %v500_v22 = vmul.f32 %v11825_v19, %v492_v16  ;;  %v502_v23 = vmul.f32 %v11825_v19, %v494_v17  ;;  %v670_v16 = vld [vmem:[#allocation6 + $0x138] sm:$0xff]  ;;  %v671_v19 = vld [vmem:[#allocation6 + $0x140] sm:$0xff] }
 0x211   :  { %v509_v24 = vadd.f32 %v507_v12, %v501_v20  ;;  %v12191_v25 = vadd.f32 %v507_v12, %v503_v21  ;;  %v10689_v17 = vpack.c.bf16 %v670_v16, %v669_v15  ;;  %v672_v20 = vld [vmem:[#allocation6 + $0x148] sm:$0xff] }
 0x212   :  { %v508_v28 = vadd.f32 %v507_v12, %v500_v22  ;;  %v510_v63 = vadd.f32 %v507_v12, %v502_v23  ;;  %v668_v12 = vld [vmem:[#allocation6 + $0x128] sm:$0xff]  ;;  %v10693_v21 = vpack.c.bf16 %v672_v20, %v671_v19  ;;  %v673_v22 = vld [vmem:[#allocation6 + $0x150] sm:$0xff]  ;;  %v674_v23 = vld [vmem:[#allocation6 + $0x158] sm:$0xff] }
 0x213   :  { %v10685_v13 = vpack.c.bf16 %v668_v12, %v667_v11  ;;  %v1093_v11 = vld [vmem:[#allocation6 + $0x200] sm:$0xff]  ;;  %v1094_v12 = vld [vmem:[#allocation6 + $0x208] sm:$0xff] }
 0x214   :  { %v10637_v29 = vpack.c.bf16 %v509_v24, %v508_v28  ;;  %v10641_v31 = vpack.c.bf16 %v12191_v25, %v510_v63 }
 0x216   :  { %10638 = vmatprep.subr.bf16.mxu0 %v10637_v29  ;;  %10642 = vmatprep.subr.bf16.mxu1 %v10641_v31 }
 0x217   :  { %10640 = vmatpush3.bf16.msra.mxu0 %v10637_v29  ;;  %10644 = vmatpush3.bf16.msra.mxu1 %v10641_v31 }
 0x218   :  { %10646 = vmatprep.subr.bf16.mxu1 %v10645_v6 }
 0x21a   :  { %9013 = vmatmul.mubr.msk.f32.vlgmr.msra.gmra.mrb[8].mxu0 %vm70_vm0, %v12145_v10  ;;  %9020 = vmatmul.mubr.msk.f32.vlgmr.msra.gmra.mrb[0].mxu1 %vm70_vm0, %v12151_v14 }
 0x21b   :  { %10648 = vmatpush3.bf16.msra.mxu1 %v10645_v6  ;;  %9054 = vmatprep.mubr.f32.mxu1 %v508_v28  ;;  %v10701_v28 = vpack.c.bf16 %v676_v27, %v675_v26 }
 0x21c   :  { %10650 = vmatprep.subr.bf16.mxu1 %v10649_v34  ;;  %9102 = vmatprep.mubr.msk.f32.mxu0 %vm70_vm0, %v12123_v2  ;;  %v10669_v2 = vpack.c.bf16 %v693_v48, %v692_v47  ;;  %v1119_v47 = vld [vmem:[#allocation6 + $0x2c8] sm:$0xff] }
 0x21f   :  { %10652 = vmatpush3.bf16.msra.mxu1 %v10649_v34  ;;  %v1110_v34 = vld [vmem:[#allocation6 + $0x280] sm:$0xff] }
 0x220   :  { %10654 = vmatprep.subr.bf16.mxu1 %v10653_v37  ;;  %v10717_v36 = vpack.c.bf16 %v1111_v35, %v1110_v34 }
 0x223   :  { %10656 = vmatpush3.bf16.msra.mxu1 %v10653_v37  ;;  %v1112_v37 = vld [vmem:[#allocation6 + $0x290] sm:$0xff] }
 0x224   :  { %10658 = vmatprep.subr.bf16.mxu1 %v10657_v40  ;;  %v10721_v39 = vpack.c.bf16 %v1113_v38, %v1112_v37 }
 0x227   :  { %10660 = vmatpush3.bf16.msra.mxu1 %v10657_v40  ;;  %v1114_v40 = vld [vmem:[#allocation6 + $0x2a0] sm:$0xff] }
 0x228   :  { %10662 = vmatprep.subr.bf16.mxu1 %v10661_v43  ;;  %v10725_v42 = vpack.c.bf16 %v1115_v41, %v1114_v40 }
 0x22b   :  { %10664 = vmatpush3.bf16.msra.mxu1 %v10661_v43  ;;  %v1116_v43 = vld [vmem:[#allocation6 + $0x2b0] sm:$0xff] }
 0x22c   :  { %10666 = vmatprep.subr.bf16.mxu1 %v10665_v46  ;;  %v10729_v45 = vpack.c.bf16 %v1117_v44, %v1116_v43 }
 0x22f   :  { %10668 = vmatpush3.bf16.msra.mxu1 %v10665_v46  ;;  %v1118_v46 = vld [vmem:[#allocation6 + $0x2c0] sm:$0xff] }
 0x230   :  { %10670 = vmatprep.subr.bf16.mxu1 %v10669_v2  ;;  %v10733_v48 = vpack.c.bf16 %v1119_v47, %v1118_v46 }
 0x233   :  { %10672 = vmatpush3.bf16.msra.mxu1 %v10669_v2  ;;  %v1120_v2 = vld [vmem:[#allocation6 + $0x2d0] sm:$0xff] }
 0x234   :  { %10674 = vmatprep.subr.bf16.mxu1 %v10673_v51 }
 0x237   :  { %10676 = vmatpush3.bf16.msra.mxu1 %v10673_v51  ;;  %v10737_v51 = vpack.c.bf16 %v1121_v49, %v1120_v2 }
 0x238   :  { %10678 = vmatprep.subr.bf16.mxu1 %v10677_v54 }
 0x23a   :  { %9055 = vmatmul.mubr.f32.vlgmr.msra.gmra.mrb[2].mxu1 %v509_v24  ;;  %v10697_v24 = vpack.c.bf16 %v674_v23, %v673_v22 }
 0x23b   :  { %9057 = vmatprep.mubr.f32.mxu1 %v510_v63  ;;  %10680 = vmatpush3.bf16.msra.mxu1 %v10677_v54  ;;  %v677_v63 = vld [vmem:[#allocation6 + $0x170] sm:$0xff] }
 0x23c   :  { %10682 = vmatprep.subr.bf16.mxu1 %v10681_v62  ;;  %v1124_v54 = vld [vmem:[#allocation6 + $0x2f0] sm:$0xff] }
 0x23d   :  { %v10745_v56 = vpack.c.bf16 %v1125_v55, %v1124_v54 }
 0x23e   :  { %9058 = vmatmul.mubr.f32.gmra.mrb[4].mxu1 %v12191_v25  ;;  %v678_v25 = vld [vmem:[#allocation6 + $0x178] sm:$0xff] }
 0x23f   :  { %10684 = vmatpush3.bf16.msra.mxu1 %v10681_v62  ;;  %v10705_v29 = vpack.c.bf16 %v678_v25, %v677_v63  ;;  %v697_v62 = vld [vmem:[#allocation8 + $0x8] sm:$0xff] }
 0x240   :  { %10686 = vmatprep.subr.bf16.mxu1 %v10685_v13  ;;  %v871_v15 = vrot.slane %v697_v62, %v12173_v3  ;;  %v883_v22 = vrot.slane %v697_v62, %v12176_v9  ;;  %v891_v25 = vrot.slane %v697_v62, %v12179_v18 }
 0x243   :  { %10688 = vmatpush3.bf16.msra.mxu1 %v10685_v13  ;;  %v12201_v13 = vpack.c.bf16 %v1094_v12, %v1093_v11  ;;  %v921_v12 = vrot.slane %v697_v62, %v12185_v57 }
 0x244   :  { %10690 = vmatprep.subr.bf16.mxu1 %v10689_v17 }
 0x247   :  { %10692 = vmatpush3.bf16.msra.mxu1 %v10689_v17 }
 0x248   :  { %10694 = vmatprep.subr.bf16.mxu1 %v10693_v21 }
 0x24b   :  { %10696 = vmatpush3.bf16.msra.mxu1 %v10693_v21 }
 0x24c   :  { %10698 = vmatprep.subr.bf16.mxu1 %v10697_v24 }
 0x24f   :  { %10700 = vmatpush3.bf16.msra.mxu1 %v10697_v24 }
 0x250   :  { %10702 = vmatprep.subr.bf16.mxu1 %v10701_v28 }
 0x253   :  { %10704 = vmatpush3.bf16.msra.mxu1 %v10701_v28 }
 0x254   :  { %10706 = vmatprep.subr.bf16.mxu1 %v10705_v29 }
 0x257   :  { %10708 = vmatpush3.bf16.msra.mxu1 %v10705_v29 }
 0x258   :  { %10718 = vmatprep.subr.bf16.mxu1 %v10717_v36 }
 0x2ed   :  { %v9014_v31 = vpop.f32.mrb[8].mxu0  ;;  %v9021_v6 = vpop.f32.mrb[0].mxu1 }
 0x2ee   :  { %v578_v32 = vpop.f32.mrb[9].mxu0  ;;  %v653_v33 = vpop.f32.mrb[1].mxu1 }
 0x2ef   :  { %9092 = vmatprep.mubr.f32.mxu1 %v578_v32 }
 0x2f0   :  { %9093 = vmatmul.mubr.f32.vlgmr.msra.gmra.mrb[2].mxu1 %v9014_v31 }
 0x2f1   :  { %9095 = vmatprep.mubr.f32.mxu1 %v653_v33  ;;  %10720 = vmatpush3.bf16.msra.mxu1 %v10717_v36 }
 0x2f2   :  { %10722 = vmatprep.subr.bf16.mxu1 %v10721_v39 }
 0x2f4   :  { %9096 = vmatmul.mubr.f32.gmra.mrb[4].mxu1 %v9021_v6 }
 0x2f5   :  { %10724 = vmatpush3.bf16.msra.mxu1 %v10721_v39  ;;  %v903_v39 = vrot.slane %v697_v62, %v12182_v30 }
 0x2f6   :  { %10726 = vmatprep.subr.bf16.mxu1 %v10725_v42 }
 0x2f9   :  { %10728 = vmatpush3.bf16.msra.mxu1 %v10725_v42 }
 0x2fa   :  { %10730 = vmatprep.subr.bf16.mxu1 %v10729_v45 }
 0x2fd   :  { %10732 = vmatpush3.bf16.msra.mxu1 %v10729_v45 }
 0x2fe   :  { %10734 = vmatprep.subr.bf16.mxu1 %v10733_v48 }
 0x301   :  { %10736 = vmatpush3.bf16.msra.mxu1 %v10733_v48 }
 0x302   :  { %10738 = vmatprep.subr.bf16.mxu1 %v10737_v51 }
 0x305   :  { %10740 = vmatpush3.bf16.msra.mxu1 %v10737_v51 }
 0x306   :  { %10742 = vmatprep.subr.bf16.mxu1 %v10741_v53 }
 0x309   :  { %10744 = vmatpush3.bf16.msra.mxu1 %v10741_v53 }
 0x30a   :  { %10746 = vmatprep.subr.bf16.mxu1 %v10745_v56 }
 0x30d   :  { %10748 = vmatpush3.bf16.msra.mxu1 %v10745_v56 }
 0x30e   :  { %10750 = vmatprep.subr.bf16.mxu1 %v12201_v13 }
 0x3c3   :  { %v9094_v16 = vpop.f32.mrb[2].mxu1 }
 0x3c4   :  { %v873_v17 = vadd.f32 %v9094_v16, %v871_v15  ;;  %v849_v19 = vpop.f32.mrb[3].mxu1 }
 0x3c5   :  { %v872_v20 = vadd.f32 %v871_v15, %v849_v19 }
 0x3c6   :  { %v877_v21 = vmax.f32 %v873_v17, 0.0  ;;  %v937_v17 = vrot.slane %v697_v62, %v12188_v8  ;;  %v1390_v62 = vld [vmem:[#allocation6 + $0x380] sm:$0xff] }
 0x3c7   :  { %v876_v23 = vmax.f32 %v872_v20, 0.0  ;;  %v9097_v24 = vpop.f32.mrb[4].mxu1 }
 0x3c8   :  { %v875_v26 = vadd.f32 %v9097_v24, %v871_v15  ;;  %v859_v27 = vpop.f32.mrb[5].mxu1  ;;  %v885_v63 = vmul.f32 %v883_v22, %v877_v21 }
 0x3c9   :  { %v874_v28 = vadd.f32 %v871_v15, %v859_v27  ;;  %v884_v31 = vmul.f32 %v883_v22, %v876_v23 }
 0x3ca   :  { %v879_v29 = vmax.f32 %v875_v26, 0.0  ;;  %v893_v34 = vadd.f32 %v891_v25, %v885_v63 }
 0x3cb   :  { %v878_v6 = vmax.f32 %v874_v28, 0.0  ;;  %v892_v36 = vadd.f32 %v891_v25, %v884_v31 }
 0x3cc   :  { %v887_v32 = vmul.f32 %v883_v22, %v879_v29  ;;  %v1096_v29 = vld [vmem:[#allocation6 + $0x218] sm:$0xff] }
 0x3cd   :  { %v886_v33 = vmul.f32 %v883_v22, %v878_v6 }
 0x3ce   :  { %v895_v35 = vadd.f32 %v891_v25, %v887_v32 }
 0x3cf   :  { %v894_v37 = vadd.f32 %v891_v25, %v886_v33  ;;  %v1095_v25 = vld [vmem:[#allocation6 + $0x210] sm:$0xff] }
 0x3d0   :  { %v897_v38 = vadd.f32 %v895_v35, %v893_v34 }
 0x3d1   :  { %v896_v40 = vadd.f32 %v894_v37, %v892_v36 }
 0x3d2   :  { %v899_v41 = vmul.f32 0.5, %v897_v38 }
 0x3d3   :  { %v898_v42 = vmul.f32 0.5, %v896_v40  ;;  %v1393_v40 = vld [vmem:[#allocation6 + $0x398] sm:$0xff] }
 0x3d4   :  { %v905_v43 = vmul.f32 %v903_v39, %v899_v41 }
 0x3d5   :  { %v904_v44 = vmul.f32 %v903_v39, %v898_v42  ;;  %v1392_v39 = vld [vmem:[#allocation6 + $0x390] sm:$0xff] }
 0x3d6   :  { %v907_v45 = vsub.f32 %v893_v34, %v905_v43  ;;  %v909_v46 = vsub.f32 %v895_v35, %v905_v43  ;;  %v10753_v34 = vpack.c.bf16 %v1096_v29, %v1095_v25  ;;  %v1391_v35 = vld [vmem:[#allocation6 + $0x388] sm:$0xff]  ;;  %v1099_v42 = vld [vmem:[#allocation6 + $0x230] sm:$0xff]  ;;  %v1100_v43 = vld [vmem:[#allocation6 + $0x238] sm:$0xff] }
 0x3d7   :  { %v908_v47 = vsub.f32 %v894_v37, %v904_v44  ;;  %v906_v48 = vsub.f32 %v892_v36, %v904_v44  ;;  %v1097_v36 = vld [vmem:[#allocation6 + $0x220] sm:$0xff]  ;;  %v1098_v37 = vld [vmem:[#allocation6 + $0x228] sm:$0xff]  ;;  %v10781_v38 = vpack.c.bf16 %v1391_v35, %v1390_v62  ;;  %v10785_v44 = vpack.c.bf16 %v1393_v40, %v1392_v39  ;;  %v1375_v29 = vld [vmem:[#allocation6 + $0x310] sm:$0xff] }
 0x3d8   :  { %v911_v2 = vmul.f32 %v907_v45, %v907_v45  ;;  %v913_v49 = vmul.f32 %v909_v46, %v909_v46  ;;  %v923_v15 = vmul.f32 %v921_v12, %v907_v45  ;;  %v925_v16 = vmul.f32 %v921_v12, %v909_v46  ;;  %v1395_v45 = vld [vmem:[#allocation6 + $0x3a8] sm:$0xff]  ;;  %v1379_v62 = vld [vmem:[#allocation6 + $0x330] sm:$0xff]  ;;  %v1380_v35 = vld [vmem:[#allocation6 + $0x338] sm:$0xff] }
 0x3d9   :  { %v912_v50 = vmul.f32 %v908_v47, %v908_v47  ;;  %v910_v51 = vmul.f32 %v906_v48, %v906_v48  ;;  %v922_v20 = vmul.f32 %v921_v12, %v906_v48  ;;  %v924_v21 = vmul.f32 %v921_v12, %v908_v47  ;;  %v1101_v47 = vld [vmem:[#allocation6 + $0x240] sm:$0xff]  ;;  %v1102_v48 = vld [vmem:[#allocation6 + $0x248] sm:$0xff]  ;;  %v1401_v12 = vld [vmem:[#allocation6 + $0x3d8] sm:$0xff] }
 0x3da   :  { %v915_v52 = vadd.f32 %v913_v49, %v911_v2  ;;  %v10757_v41 = vpack.c.bf16 %v1098_v37, %v1097_v36  ;;  %v10761_v46 = vpack.c.bf16 %v1100_v43, %v1099_v42  ;;  %v1396_v2 = vld [vmem:[#allocation6 + $0x3b0] sm:$0xff]  ;;  %v10765_v49 = vpack.c.bf16 %v1102_v48, %v1101_v47  ;;  %v1381_v37 = vld [vmem:[#allocation6 + $0x340] sm:$0xff]  ;;  %v1384_v40 = vld [vmem:[#allocation6 + $0x358] sm:$0xff] }
 0x3db   :  { %v914_v53 = vadd.f32 %v912_v50, %v910_v51  ;;  %v1103_v50 = vld [vmem:[#allocation6 + $0x250] sm:$0xff]  ;;  %v1104_v51 = vld [vmem:[#allocation6 + $0x258] sm:$0xff]  ;;  %v10825_v36 = vpack.c.bf16 %v1380_v35, %v1379_v62  ;;  %v1386_v42 = vld [vmem:[#allocation6 + $0x368] sm:$0xff] }
 0x3dc   :  { %v917_v54 = vmul.f32 0.5, %v915_v52  ;;  %v1387_v43 = vld [vmem:[#allocation6 + $0x370] sm:$0xff] }
 0x3dd   :  { %v916_v55 = vmul.f32 0.5, %v914_v53  ;;  %v1398_v53 = vld [vmem:[#allocation6 + $0x3c0] sm:$0xff]  ;;  %v1822_v48 = vld [vmem:[#allocation6 + $0x490] sm:$0xff] }
 0x3de   :  { %v927_v56 = vadd.f32 1e-05, %v917_v54  ;;  %v10769_v54 = vpack.c.bf16 %v1104_v51, %v1103_v50  ;;  %v1825_v50 = vld [vmem:[#allocation6 + $0x4a8] sm:$0xff] }
 0x3df   :  { %v926_v11 = vadd.f32 1e-05, %v916_v55  ;;  %v1105_v55 = vld [vmem:[#allocation6 + $0x260] sm:$0xff] }
 0x3e0   :  { %11826 = vrsqrt.f32 %v927_v56  ;;  %v1106_v56 = vld [vmem:[#allocation6 + $0x268] sm:$0xff] }
 0x3e1   :  { %11828 = vrsqrt.f32 %v926_v11  ;;  %v1400_v11 = vld [vmem:[#allocation6 + $0x3d0] sm:$0xff] }
 0x3ea   :  { %v11827_v19 = vpop.eup %11826 }
 0x3eb   :  { %v11829_v22 = vpop.eup %11828  ;;  %v931_v23 = vmul.f32 %v11827_v19, %v923_v15  ;;  %v933_v24 = vmul.f32 %v11827_v19, %v925_v16  ;;  %v10773_v15 = vpack.c.bf16 %v1106_v56, %v1105_v55  ;;  %v1107_v16 = vld [vmem:[#allocation6 + $0x270] sm:$0xff]  ;;  %v10801_v19 = vpack.c.bf16 %v1401_v12, %v1400_v11  ;;  %v1829_v55 = vld [vmem:[#allocation6 + $0x4c8] sm:$0xff]  ;;  %v1831_v11 = vld [vmem:[#allocation6 + $0x4d8] sm:$0xff] }
 0x3ec   :  { %v930_v26 = vmul.f32 %v11829_v22, %v922_v20  ;;  %v932_v27 = vmul.f32 %v11829_v22, %v924_v21  ;;  %v1402_v20 = vld [vmem:[#allocation6 + $0x3e0] sm:$0xff]  ;;  %v1403_v21 = vld [vmem:[#allocation6 + $0x3e8] sm:$0xff] }
 0x3ed   :  { %v939_v28 = vadd.f32 %v937_v17, %v931_v23  ;;  %v941_v63 = vadd.f32 %v937_v17, %v933_v24  ;;  %v10805_v23 = vpack.c.bf16 %v1403_v21, %v1402_v20  ;;  %v1404_v24 = vld [vmem:[#allocation6 + $0x3f0] sm:$0xff]  ;;  %v1835_v20 = vld [vmem:[#allocation6 + $0x4f8] sm:$0xff] }
 0x3ee   :  { %v938_v31 = vadd.f32 %v937_v17, %v930_v26  ;;  %v940_v6 = vadd.f32 %v937_v17, %v932_v27  ;;  %v1108_v17 = vld [vmem:[#allocation6 + $0x278] sm:$0xff] }
 0x3ef   :  { %v10777_v22 = vpack.c.bf16 %v1108_v17, %v1107_v16  ;;  %v1405_v26 = vld [vmem:[#allocation6 + $0x3f8] sm:$0xff]  ;;  %v1833_v16 = vld [vmem:[#allocation6 + $0x4e8] sm:$0xff] }
 0x3f0   :  { %9144 = vmatprep.mubr.f32.mxu1 %v938_v31  ;;  %v10709_v32 = vpack.c.bf16 %v939_v28, %v938_v31  ;;  %v10713_v33 = vpack.c.bf16 %v941_v63, %v940_v6  ;;  %v10809_v27 = vpack.c.bf16 %v1405_v26, %v1404_v24  ;;  %v1376_v31 = vld [vmem:[#allocation6 + $0x318] sm:$0xff] }
 0x3f1   :  { %9145 = vmatmul.mubr.f32.vlgmr.msra.gmra.mrb[6].mxu1 %v939_v28  ;;  %v1373_v28 = vld [vmem:[#allocation6 + $0x300] sm:$0xff] }
 0x3f2   :  { %10710 = vmatprep.subr.bf16.mxu0 %v10709_v32  ;;  %9147 = vmatprep.mubr.f32.mxu1 %v940_v6  ;;  %v10817_v6 = vpack.c.bf16 %v1376_v31, %v1375_v29 }
 0x3f3   :  { %10712 = vmatpush3.bf16.msra.mxu0 %v10709_v32  ;;  %10752 = vmatpush3.bf16.msra.mxu1 %v12201_v13  ;;  %v1394_v13 = vld [vmem:[#allocation6 + $0x3a0] sm:$0xff] }
 0x3f4   :  { %10714 = vmatprep.subr.bf16.mxu0 %v10713_v33  ;;  %10754 = vmatprep.subr.bf16.mxu1 %v10753_v34  ;;  %v1377_v32 = vld [vmem:[#allocation6 + $0x320] sm:$0xff] }
 0x3f5   :  { %9148 = vmatmul.mubr.f32.gmra.mrb[8].mxu1 %v941_v63  ;;  %v1374_v63 = vld [vmem:[#allocation6 + $0x308] sm:$0xff] }
 0x3f6   :  { %9103 = vmatmul.mubr.msk.f32.vlgmr.msra.gmra.mrb[10].mxu0 %vm70_vm0, %v12145_v10  ;;  %v10789_v10 = vpack.c.bf16 %v1395_v45, %v1394_v13  ;;  %v10813_v25 = vpack.c.bf16 %v1374_v63, %v1373_v28  ;;  %v12225_v13 = vld [vmem:[#allocation2] sm:$0xff] }
 0x3f7   :  { %10716 = vmatpush3.bf16.msra.mxu0 %v10713_v33  ;;  %9109 = vmatprep.mubr.msk.f32.mxu0 %vm70_vm0, %v12141_v7  ;;  %v1397_v7 = vld [vmem:[#allocation6 + $0x3b8] sm:$0xff]  ;;  %v1378_v33 = vld [vmem:[#allocation6 + $0x328] sm:$0xff]  ;;  %v1820_v45 = vld [vmem:[#allocation6 + $0x480] sm:$0xff] }
 0x3f8   :  { %10782 = vmatprep.subr.bf16.mxu0 %v10781_v38  ;;  %10756 = vmatpush3.bf16.msra.mxu1 %v10753_v34  ;;  %v10793_v52 = vpack.c.bf16 %v1397_v7, %v1396_v2  ;;  %v10821_v34 = vpack.c.bf16 %v1378_v33, %v1377_v32 }
 0x3f9   :  { %10758 = vmatprep.subr.bf16.mxu1 %v10757_v41 }
 0x3fa   :  { %9110 = vmatmul.mubr.msk.f32.vlgmr.msra.gmra.mrb[12].mxu0 %vm70_vm0, %v12151_v14  ;;  %v1399_v14 = vld [vmem:[#allocation6 + $0x3c8] sm:$0xff] }
 0x3fb   :  { %10784 = vmatpush3.bf16.msra.mxu0 %v10781_v38  ;;  %9220 = vmatprep.mubr.f32.mxu0 %v12116_v0  ;;  %v10797_v0 = vpack.c.bf16 %v1399_v14, %v1398_v53  ;;  %v1382_v38 = vld [vmem:[#allocation6 + $0x348] sm:$0xff]  ;;  %v1827_v53 = vld [vmem:[#allocation6 + $0x4b8] sm:$0xff] }
 0x3fc   :  { %10786 = vmatprep.subr.bf16.mxu0 %v10785_v44  ;;  %10760 = vmatpush3.bf16.msra.mxu1 %v10757_v41  ;;  %v10829_v39 = vpack.c.bf16 %v1382_v38, %v1381_v37  ;;  %v1385_v41 = vld [vmem:[#allocation6 + $0x360] sm:$0xff] }
 0x3fd   :  { %10762 = vmatprep.subr.bf16.mxu1 %v10761_v46 }
 0x3ff   :  { %10788 = vmatpush3.bf16.msra.mxu0 %v10785_v44  ;;  %v1388_v44 = vld [vmem:[#allocation6 + $0x378] sm:$0xff] }
 0x400   :  { %10790 = vmatprep.subr.bf16.mxu0 %v10789_v10  ;;  %10764 = vmatpush3.bf16.msra.mxu1 %v10761_v46  ;;  %v1821_v46 = vld [vmem:[#allocation6 + $0x488] sm:$0xff] }
 0x401   :  { %10766 = vmatprep.subr.bf16.mxu1 %v10765_v49  ;;  %v10853_v47 = vpack.c.bf16 %v1821_v46, %v1820_v45 }
 0x403   :  { %10792 = vmatpush3.bf16.msra.mxu0 %v10789_v10  ;;  %v1823_v10 = vld [vmem:[#allocation6 + $0x498] sm:$0xff] }
 0x404   :  { %10794 = vmatprep.subr.bf16.mxu0 %v10793_v52  ;;  %10768 = vmatpush3.bf16.msra.mxu1 %v10765_v49  ;;  %v10857_v49 = vpack.c.bf16 %v1823_v10, %v1822_v48 }
 0x405   :  { %10770 = vmatprep.subr.bf16.mxu1 %v10769_v54 }
 0x407   :  { %10796 = vmatpush3.bf16.msra.mxu0 %v10793_v52  ;;  %v1826_v52 = vld [vmem:[#allocation6 + $0x4b0] sm:$0xff] }
 0x408   :  { %10798 = vmatprep.subr.bf16.mxu0 %v10797_v0  ;;  %10772 = vmatpush3.bf16.msra.mxu1 %v10769_v54  ;;  %v10865_v14 = vpack.c.bf16 %v1827_v53, %v1826_v52  ;;  %v1828_v54 = vld [vmem:[#allocation6 + $0x4c0] sm:$0xff] }
 0x409   :  { %10774 = vmatprep.subr.bf16.mxu1 %v10773_v15  ;;  %v10869_v56 = vpack.c.bf16 %v1829_v55, %v1828_v54 }
 0x40b   :  { %10800 = vmatpush3.bf16.msra.mxu0 %v10797_v0  ;;  %v1830_v0 = vld [vmem:[#allocation6 + $0x4d0] sm:$0xff] }
 0x40c   :  { %10802 = vmatprep.subr.bf16.mxu0 %v10801_v19  ;;  %10776 = vmatpush3.bf16.msra.mxu1 %v10773_v15  ;;  %v10873_v12 = vpack.c.bf16 %v1831_v11, %v1830_v0  ;;  %v1832_v15 = vld [vmem:[#allocation6 + $0x4e0] sm:$0xff] }
 0x40d   :  { %10778 = vmatprep.subr.bf16.mxu1 %v10777_v22  ;;  %v10877_v17 = vpack.c.bf16 %v1833_v16, %v1832_v15 }
 0x40f   :  { %10804 = vmatpush3.bf16.msra.mxu0 %v10801_v19  ;;  %v1834_v19 = vld [vmem:[#allocation6 + $0x4f0] sm:$0xff] }
 0x410   :  { %10806 = vmatprep.subr.bf16.mxu0 %v10805_v23  ;;  %10780 = vmatpush3.bf16.msra.mxu1 %v10777_v22  ;;  %v10881_v21 = vpack.c.bf16 %v1835_v20, %v1834_v19  ;;  %v1407_v22 = vld [vmem:[#allocation8 + $0x18] sm:$0xff] }
 0x411   :  { %10854 = vmatprep.subr.bf16.mxu1 %v10853_v47  ;;  %v1601_v62 = vrot.slane %v1407_v22, %v12179_v18  ;;  %v1631_v54 = vrot.slane %v1407_v22, %v12185_v57  ;;  %v1647_v0 = vrot.slane %v1407_v22, %v12188_v8 }
 0x413   :  { %10808 = vmatpush3.bf16.msra.mxu0 %v10805_v23  ;;  %v1581_v23 = vrot.slane %v1407_v22, %v12173_v3 }
 0x414   :  { %10810 = vmatprep.subr.bf16.mxu0 %v10809_v27 }
 0x417   :  { %10812 = vmatpush3.bf16.msra.mxu0 %v10809_v27 }
 0x418   :  { %10814 = vmatprep.subr.bf16.mxu0 %v10813_v25 }
 0x41a   :  { %9221 = vmatmul.mubr.f32.vlgmr.msra.gmra.mrb[14].mxu0 %v12121_v1  ;;  %v1383_v1 = vld [vmem:[#allocation6 + $0x350] sm:$0xff] }
 0x41b   :  { %10816 = vmatpush3.bf16.msra.mxu0 %v10813_v25  ;;  %9223 = vmatprep.mubr.f32.mxu0 %v12132_v4  ;;  %v10833_v4 = vpack.c.bf16 %v1384_v40, %v1383_v1  ;;  %v1593_v25 = vrot.slane %v1407_v22, %v12176_v9 }
 0x41c   :  { %10818 = vmatprep.subr.bf16.mxu0 %v10817_v6 }
 0x41e   :  { %9224 = vmatmul.mubr.f32.gmra.mrb[16].mxu0 %v12137_v5  ;;  %v10837_v5 = vpack.c.bf16 %v1386_v42, %v1385_v41 }
 0x41f   :  { %10820 = vmatpush3.bf16.msra.mxu0 %v10817_v6  ;;  %9258 = vmatprep.mubr.f32.mxu0 %v12161_v59  ;;  %v10841_v59 = vpack.c.bf16 %v1388_v44, %v1387_v43 }
 0x420   :  { %10822 = vmatprep.subr.bf16.mxu0 %v10821_v34 }
 0x423   :  { %10824 = vmatpush3.bf16.msra.mxu0 %v10821_v34 }
 0x424   :  { %10826 = vmatprep.subr.bf16.mxu0 %v10825_v36 }
 0x427   :  { %10828 = vmatpush3.bf16.msra.mxu0 %v10825_v36 }
 0x428   :  { %10830 = vmatprep.subr.bf16.mxu0 %v10829_v39 }
 0x42b   :  { %10832 = vmatpush3.bf16.msra.mxu0 %v10829_v39 }
 0x42c   :  { %10834 = vmatprep.subr.bf16.mxu0 %v10833_v4 }
 0x42f   :  { %10836 = vmatpush3.bf16.msra.mxu0 %v10833_v4 }
 0x430   :  { %10838 = vmatprep.subr.bf16.mxu0 %v10837_v5 }
 0x433   :  { %10840 = vmatpush3.bf16.msra.mxu0 %v10837_v5  ;;  %v1613_v5 = vrot.slane %v1407_v22, %v12182_v30  ;;  %v12235_v22 = vld [vmem:[#allocation2 + $0x8] sm:$0xff] }
 0x434   :  { %10842 = vmatprep.subr.bf16.mxu0 %v10841_v59 }
 0x437   :  { %10844 = vmatpush3.bf16.msra.mxu0 %v10841_v59 }
 0x43a   :  { %9259 = vmatmul.mubr.f32.vlgmr.msra.gmra.mrb[14].mxu0 %v12159_v58  ;;  %v1824_v58 = vld [vmem:[#allocation6 + $0x4a0] sm:$0xff] }
 0x43b   :  { %9261 = vmatprep.mubr.f32.mxu0 %v12167_v61  ;;  %v10861_v51 = vpack.c.bf16 %v1825_v50, %v1824_v58 }
 0x43e   :  { %9262 = vmatmul.mubr.f32.gmra.mrb[16].mxu0 %v12165_v60 }
 0x43f   :  { %9268 = vmatprep.mubr.msk.f32.mxu0 %vm70_vm0, %v12225_v13 }
 0x4c9   :  { %v9104_v2 = vpop.f32.mrb[10].mxu0 }
 0x4ca   :  { %v1008_v7 = vpop.f32.mrb[11].mxu0 }
 0x4cb   :  { %9182 = vmatprep.mubr.f32.mxu1 %v1008_v7 }
 0x4cc   :  { %9183 = vmatmul.mubr.f32.vlgmr.msra.gmra.mrb[6].mxu1 %v9104_v2 }
 0x4cd   :  { %v9111_v61 = vpop.f32.mrb[12].mxu0  ;;  %10856 = vmatpush3.bf16.msra.mxu1 %v10853_v47 }
 0x4ce   :  { %v1083_v60 = vpop.f32.mrb[13].mxu0  ;;  %10858 = vmatprep.subr.bf16.mxu1 %v10857_v49 }
 0x4cf   :  { %9185 = vmatprep.mubr.f32.mxu1 %v1083_v60 }
 0x4d0   :  { %9186 = vmatmul.mubr.f32.gmra.mrb[8].mxu1 %v9111_v61 }
 0x4d1   :  { %10860 = vmatpush3.bf16.msra.mxu1 %v10857_v49 }
 0x4d2   :  { %10862 = vmatprep.subr.bf16.mxu1 %v10861_v51 }
 0x4d5   :  { %10864 = vmatpush3.bf16.msra.mxu1 %v10861_v51 }
 0x4d6   :  { %10866 = vmatprep.subr.bf16.mxu1 %v10865_v14 }
 0x4d9   :  { %10868 = vmatpush3.bf16.msra.mxu1 %v10865_v14 }
 0x4da   :  { %10870 = vmatprep.subr.bf16.mxu1 %v10869_v56 }
 0x4dd   :  { %10872 = vmatpush3.bf16.msra.mxu1 %v10869_v56 }
 0x4de   :  { %10874 = vmatprep.subr.bf16.mxu1 %v10873_v12 }
 0x4e1   :  { %10876 = vmatpush3.bf16.msra.mxu1 %v10873_v12 }
 0x4e2   :  { %10878 = vmatprep.subr.bf16.mxu1 %v10877_v17 }
 0x4e5   :  { %10880 = vmatpush3.bf16.msra.mxu1 %v10877_v17 }
 0x4e6   :  { %10882 = vmatprep.subr.bf16.mxu1 %v10881_v21 }
 0x4e9   :  { %10884 = vmatpush3.bf16.msra.mxu1 %v10881_v21 }
 0x50d   :  { %v9260_v24 = vpop.f32.mrb[14].mxu0 }
 0x50e   :  { %v1583_v26 = vadd.f32 %v9260_v24, %v1581_v23  ;;  %v1559_v27 = vpop.f32.mrb[15].mxu0 }
 0x50f   :  { %v1582_v28 = vadd.f32 %v1581_v23, %v1559_v27 }
 0x510   :  { %v1587_v63 = vmax.f32 %v1583_v26, 0.0 }
 0x511   :  { %v1586_v29 = vmax.f32 %v1582_v28, 0.0  ;;  %v9263_v31 = vpop.f32.mrb[16].mxu0 }
 0x512   :  { %v1585_v6 = vadd.f32 %v9263_v31, %v1581_v23  ;;  %v1569_v32 = vpop.f32.mrb[17].mxu0  ;;  %v1595_v34 = vmul.f32 %v1593_v25, %v1587_v63  ;;  %v1803_v31 = vld [vmem:[#allocation6 + $0x400] sm:$0xff] }
 0x513   :  { %v1584_v33 = vadd.f32 %v1581_v23, %v1569_v32  ;;  %v1594_v36 = vmul.f32 %v1593_v25, %v1586_v29  ;;  %v12243_v29 = vld [vmem:[#allocation2 + $0x18] sm:$0xff]  ;;  %v1805_v32 = vld [vmem:[#allocation6 + $0x410] sm:$0xff] }
 0x514   :  { %v1589_v35 = vmax.f32 %v1585_v6, 0.0  ;;  %v1603_v1 = vadd.f32 %v1601_v62, %v1595_v34  ;;  %v1804_v6 = vld [vmem:[#allocation6 + $0x408] sm:$0xff]  ;;  %v1806_v34 = vld [vmem:[#allocation6 + $0x418] sm:$0xff] }
 0x515   :  { %v1588_v37 = vmax.f32 %v1584_v33, 0.0  ;;  %v1602_v4 = vadd.f32 %v1601_v62, %v1594_v36  ;;  %v10885_v33 = vpack.c.bf16 %v1804_v6, %v1803_v31  ;;  %v1808_v36 = vld [vmem:[#allocation6 + $0x428] sm:$0xff] }
 0x516   :  { %v1597_v38 = vmul.f32 %v1593_v25, %v1589_v35  ;;  %v1807_v35 = vld [vmem:[#allocation6 + $0x420] sm:$0xff] }
 0x517   :  { %v1596_v39 = vmul.f32 %v1593_v25, %v1588_v37  ;;  %v12239_v25 = vld [vmem:[#allocation2 + $0x10] sm:$0xff]  ;;  %10886 = vmatprep.subr.bf16.mxu1 %v10885_v33  ;;  %v10893_v37 = vpack.c.bf16 %v1808_v36, %v1807_v35 }
 0x518   :  { %v1605_v40 = vadd.f32 %v1601_v62, %v1597_v38  ;;  %v1809_v38 = vld [vmem:[#allocation6 + $0x430] sm:$0xff] }
 0x519   :  { %v1604_v41 = vadd.f32 %v1601_v62, %v1596_v39  ;;  %v10889_v62 = vpack.c.bf16 %v1806_v34, %v1805_v32  ;;  %v1810_v39 = vld [vmem:[#allocation6 + $0x438] sm:$0xff] }
 0x51a   :  { %v1607_v42 = vadd.f32 %v1605_v40, %v1603_v1 }
 0x51b   :  { %v1606_v43 = vadd.f32 %v1604_v41, %v1602_v4 }
 0x51c   :  { %v1609_v44 = vmul.f32 0.5, %v1607_v42  ;;  %v1813_v42 = vld [vmem:[#allocation6 + $0x450] sm:$0xff] }
 0x51d   :  { %v1608_v59 = vmul.f32 0.5, %v1606_v43 }
 0x51e   :  { %v1615_v45 = vmul.f32 %v1613_v5, %v1609_v44  ;;  %v1815_v44 = vld [vmem:[#allocation6 + $0x460] sm:$0xff] }
 0x51f   :  { %v1614_v46 = vmul.f32 %v1613_v5, %v1608_v59  ;;  %v1814_v5 = vld [vmem:[#allocation6 + $0x458] sm:$0xff]  ;;  %v1816_v59 = vld [vmem:[#allocation6 + $0x468] sm:$0xff] }
 0x520   :  { %v1617_v47 = vsub.f32 %v1603_v1, %v1615_v45  ;;  %v1619_v48 = vsub.f32 %v1605_v40, %v1615_v45  ;;  %v10897_v1 = vpack.c.bf16 %v1810_v39, %v1809_v38  ;;  %v1811_v40 = vld [vmem:[#allocation6 + $0x440] sm:$0xff]  ;;  %v10905_v43 = vpack.c.bf16 %v1814_v5, %v1813_v42 }
 0x521   :  { %v1618_v10 = vsub.f32 %v1604_v41, %v1614_v46  ;;  %v1616_v2 = vsub.f32 %v1602_v4, %v1614_v46  ;;  %v1812_v4 = vld [vmem:[#allocation6 + $0x448] sm:$0xff]  ;;  %v10909_v45 = vpack.c.bf16 %v1816_v59, %v1815_v44  ;;  %v1817_v46 = vld [vmem:[#allocation6 + $0x470] sm:$0xff] }
 0x522   :  { %v1621_v7 = vmul.f32 %v1617_v47, %v1617_v47  ;;  %v1623_v49 = vmul.f32 %v1619_v48, %v1619_v48  ;;  %v1633_v55 = vmul.f32 %v1631_v54, %v1617_v47  ;;  %v1635_v56 = vmul.f32 %v1631_v54, %v1619_v48  ;;  %v1818_v47 = vld [vmem:[#allocation6 + $0x478] sm:$0xff] }
 0x523   :  { %v1622_v58 = vmul.f32 %v1618_v10, %v1618_v10  ;;  %v1620_v50 = vmul.f32 %v1616_v2, %v1616_v2  ;;  %v1632_v12 = vmul.f32 %v1631_v54, %v1616_v2  ;;  %v1634_v15 = vmul.f32 %v1631_v54, %v1618_v10  ;;  %v1127_v10 = vld [vmem:[#allocation8 + $0x10] sm:$0xff] }
 0x524   :  { %v1625_v61 = vadd.f32 %v1623_v49, %v1621_v7  ;;  %v10901_v41 = vpack.c.bf16 %v1812_v4, %v1811_v40  ;;  %v10913_v48 = vpack.c.bf16 %v1818_v47, %v1817_v46  ;;  %v1301_v2 = vrot.slane %v1127_v10, %v12173_v3 }
 0x525   :  { %v1624_v60 = vadd.f32 %v1622_v58, %v1620_v50  ;;  %v1351_v42 = vrot.slane %v1127_v10, %v12185_v57 }
 0x526   :  { %v1627_v51 = vmul.f32 0.5, %v1625_v61 }
 0x527   :  { %v1626_v52 = vmul.f32 0.5, %v1624_v60  ;;  %v1313_v60 = vrot.slane %v1127_v10, %v12176_v9 }
 0x528   :  { %v1637_v53 = vadd.f32 1e-05, %v1627_v51 }
 0x529   :  { %v1636_v14 = vadd.f32 1e-05, %v1626_v52 }
 0x52a   :  { %11830 = vrsqrt.f32 %v1637_v53 }
 0x52b   :  { %11832 = vrsqrt.f32 %v1636_v14 }
 0x534   :  { %v11831_v11 = vpop.eup %11830 }
 0x535   :  { %v11833_v16 = vpop.eup %11832  ;;  %v1641_v17 = vmul.f32 %v11831_v11, %v1633_v55  ;;  %v1643_v19 = vmul.f32 %v11831_v11, %v1635_v56  ;;  %v1321_v56 = vrot.slane %v1127_v10, %v12179_v18 }
 0x536   :  { %v1640_v20 = vmul.f32 %v11833_v16, %v1632_v12  ;;  %v1642_v21 = vmul.f32 %v11833_v16, %v1634_v15 }
 0x537   :  { %v1649_v23 = vadd.f32 %v1647_v0, %v1641_v17  ;;  %v1651_v24 = vadd.f32 %v1647_v0, %v1643_v19 }
 0x538   :  { %v1648_v26 = vadd.f32 %v1647_v0, %v1640_v20  ;;  %v1650_v27 = vadd.f32 %v1647_v0, %v1642_v21 }
 0x53a   :  { %9310 = vmatprep.mubr.f32.mxu1 %v1648_v26  ;;  %v10845_v28 = vpack.c.bf16 %v1649_v23, %v1648_v26  ;;  %v10849_v63 = vpack.c.bf16 %v1651_v24, %v1650_v27 }
 0x53b   :  { %9311 = vmatmul.mubr.f32.vlgmr.msra.gmra.mrb[10].mxu1 %v1649_v23 }
 0x53c   :  { %10846 = vmatprep.subr.bf16.mxu0 %v10845_v28  ;;  %9313 = vmatprep.mubr.f32.mxu1 %v1650_v27 }
 0x53d   :  { %10848 = vmatpush3.bf16.msra.mxu0 %v10845_v28  ;;  %10888 = vmatpush3.bf16.msra.mxu1 %v10885_v33 }
 0x53e   :  { %10850 = vmatprep.subr.bf16.mxu0 %v10849_v63  ;;  %10890 = vmatprep.subr.bf16.mxu1 %v10889_v62 }
 0x53f   :  { %9314 = vmatmul.mubr.f32.gmra.mrb[12].mxu1 %v1651_v24  ;;  %v1333_v24 = vrot.slane %v1127_v10, %v12182_v30 }
 0x540   :  { %9269 = vmatmul.mubr.msk.f32.vlgmr.msra.gmra.mrb[18].mxu0 %vm70_vm0, %v12235_v22 }
 0x541   :  { %10852 = vmatpush3.bf16.msra.mxu0 %v10849_v63  ;;  %9275 = vmatprep.mubr.msk.f32.mxu0 %vm70_vm0, %v12239_v25 }
 0x542   :  { %10892 = vmatpush3.bf16.msra.mxu1 %v10889_v62 }
 0x543   :  { %10894 = vmatprep.subr.bf16.mxu1 %v10893_v37 }
 0x544   :  { %9276 = vmatmul.mubr.msk.f32.vlgmr.msra.gmra.mrb[20].mxu0 %vm70_vm0, %v12243_v29 }
 0x545   :  { %9358 = vmatprep.mubr.msk.f32.mxu0 %vm70_vm0, %v12225_v13 }
 0x546   :  { %10896 = vmatpush3.bf16.msra.mxu1 %v10893_v37 }
 0x547   :  { %10898 = vmatprep.subr.bf16.mxu1 %v10897_v1 }
 0x54a   :  { %10900 = vmatpush3.bf16.msra.mxu1 %v10897_v1 }
 0x54b   :  { %10902 = vmatprep.subr.bf16.mxu1 %v10901_v41 }
 0x54e   :  { %10904 = vmatpush3.bf16.msra.mxu1 %v10901_v41 }
 0x54f   :  { %10906 = vmatprep.subr.bf16.mxu1 %v10905_v43 }
 0x552   :  { %10908 = vmatpush3.bf16.msra.mxu1 %v10905_v43 }
 0x553   :  { %10910 = vmatprep.subr.bf16.mxu1 %v10909_v45 }
 0x556   :  { %10912 = vmatpush3.bf16.msra.mxu1 %v10909_v45  ;;  %v1367_v45 = vrot.slane %v1127_v10, %v12188_v8 }
 0x557   :  { %10914 = vmatprep.subr.bf16.mxu1 %v10913_v48 }
 0x55a   :  { %10916 = vmatpush3.bf16.msra.mxu1 %v10913_v48 }
 0x59f   :  { %v9184_v7 = vpop.f32.mrb[6].mxu1 }
 0x5a0   :  { %v1303_v49 = vadd.f32 %v9184_v7, %v1301_v2  ;;  %v1279_v58 = vpop.f32.mrb[7].mxu1 }
 0x5a1   :  { %v1302_v50 = vadd.f32 %v1301_v2, %v1279_v58 }
 0x5a2   :  { %v1307_v61 = vmax.f32 %v1303_v49, 0.0 }
 0x5a3   :  { %v1306_v51 = vmax.f32 %v1302_v50, 0.0  ;;  %v9187_v52 = vpop.f32.mrb[8].mxu1 }
 0x5a4   :  { %v1305_v53 = vadd.f32 %v9187_v52, %v1301_v2  ;;  %v1289_v14 = vpop.f32.mrb[9].mxu1  ;;  %v1315_v55 = vmul.f32 %v1313_v60, %v1307_v61 }
 0x5a5   :  { %v1304_v54 = vadd.f32 %v1301_v2, %v1289_v14  ;;  %v1314_v11 = vmul.f32 %v1313_v60, %v1306_v51 }
 0x5a6   :  { %v1309_v0 = vmax.f32 %v1305_v53, 0.0  ;;  %v1323_v17 = vadd.f32 %v1321_v56, %v1315_v55 }
 0x5a7   :  { %v1308_v12 = vmax.f32 %v1304_v54, 0.0  ;;  %v1322_v20 = vadd.f32 %v1321_v56, %v1314_v11 }
 0x5a8   :  { %v1317_v15 = vmul.f32 %v1313_v60, %v1309_v0 }
 0x5a9   :  { %v1316_v16 = vmul.f32 %v1313_v60, %v1308_v12 }
 0x5aa   :  { %v1325_v19 = vadd.f32 %v1321_v56, %v1317_v15 }
 0x5ab   :  { %v1324_v21 = vadd.f32 %v1321_v56, %v1316_v16 }
 0x5ac   :  { %v1327_v23 = vadd.f32 %v1325_v19, %v1323_v17 }
 0x5ad   :  { %v1326_v26 = vadd.f32 %v1324_v21, %v1322_v20 }
 0x5ae   :  { %v1329_v27 = vmul.f32 0.5, %v1327_v23 }
 0x5af   :  { %v1328_v28 = vmul.f32 0.5, %v1326_v26 }
 0x5b0   :  { %v1335_v63 = vmul.f32 %v1333_v24, %v1329_v27 }
 0x5b1   :  { %v1334_v31 = vmul.f32 %v1333_v24, %v1328_v28 }
 0x5b2   :  { %v1337_v6 = vsub.f32 %v1323_v17, %v1335_v63  ;;  %v1339_v32 = vsub.f32 %v1325_v19, %v1335_v63 }
 0x5b3   :  { %v1336_v33 = vsub.f32 %v1322_v20, %v1334_v31  ;;  %v1338_v34 = vsub.f32 %v1324_v21, %v1334_v31 }
 0x5b4   :  { %v1341_v62 = vmul.f32 %v1337_v6, %v1337_v6  ;;  %v1343_v35 = vmul.f32 %v1339_v32, %v1339_v32  ;;  %v1355_v5 = vmul.f32 %v1351_v42, %v1339_v32  ;;  %v1353_v43 = vmul.f32 %v1351_v42, %v1337_v6 }
 0x5b5   :  { %v1340_v36 = vmul.f32 %v1336_v33, %v1336_v33  ;;  %v1342_v37 = vmul.f32 %v1338_v34, %v1338_v34  ;;  %v1354_v59 = vmul.f32 %v1351_v42, %v1338_v34  ;;  %v1352_v46 = vmul.f32 %v1351_v42, %v1336_v33  ;;  %v12277_v34 = vld [vmem:[#allocation8 + $0x20] sm:$0xff] }
 0x5b6   :  { %v1345_v38 = vadd.f32 %v1343_v35, %v1341_v62  ;;  %v2011_v62 = vrot.slane %v12277_v34, %v12173_v3 }
 0x5b7   :  { %v1344_v39 = vadd.f32 %v1342_v37, %v1340_v36 }
 0x5b8   :  { %v1347_v1 = vmul.f32 0.5, %v1345_v38 }
 0x5b9   :  { %v1346_v40 = vmul.f32 0.5, %v1344_v39 }
 0x5ba   :  { %v1357_v4 = vadd.f32 1e-05, %v1347_v1  ;;  %v2023_v1 = vrot.slane %v12277_v34, %v12176_v9 }
 0x5bb   :  { %v1356_v41 = vadd.f32 1e-05, %v1346_v40 }
 0x5bc   :  { %11834 = vrsqrt.f32 %v1357_v4 }
 0x5bd   :  { %11836 = vrsqrt.f32 %v1356_v41 }
 0x5c6   :  { %v11835_v44 = vpop.eup %11834 }
 0x5c7   :  { %v11837_v47 = vpop.eup %11836  ;;  %v1363_v48 = vmul.f32 %v11835_v44, %v1355_v5  ;;  %v1361_v2 = vmul.f32 %v11835_v44, %v1353_v43  ;;  %v2031_v44 = vrot.slane %v12277_v34, %v12179_v18 }
 0x5c8   :  { %v1362_v7 = vmul.f32 %v11837_v47, %v1354_v59  ;;  %v1360_v49 = vmul.f32 %v11837_v47, %v1352_v46 }
 0x5c9   :  { %v1371_v51 = vadd.f32 %v1367_v45, %v1363_v48  ;;  %v1369_v52 = vadd.f32 %v1367_v45, %v1361_v2 }
 0x5ca   :  { %v1370_v58 = vadd.f32 %v1367_v45, %v1362_v7  ;;  %v1368_v50 = vadd.f32 %v1367_v45, %v1360_v49 }
 0x5cb   :  { %v2522_v53 = vsel %vm2512_vm1, %v1371_v51, -inf  ;;  %v2516_v10 = vsel %vm2512_vm1, %v1369_v52, -inf }
 0x5cc   :  { %v2519_v61 = vsel %vm2512_vm1, %v1370_v58, -inf  ;;  %v2513_v60 = vsel %vm2512_vm1, %v1368_v50, -inf }
 0x5cd   :  { %2520 = vmax.xlane.f32.xlu1 %v2519_v61  ;;  %2514 = vmax.xlane.f32.xlu0 %v2513_v60  ;;  %v2043_v61 = vrot.slane %v12277_v34, %v12182_v30 }
 0x5d1   :  { %2523 = vmax.xlane.f32.xlu1 %v2522_v53  ;;  %2517 = vmax.xlane.f32.xlu0 %v2516_v10 }
 0x613   :  { %v9270_v14 = vpop.f32.mrb[18].mxu0 }
 0x614   :  { %v1718_v54 = vpop.f32.mrb[19].mxu0 }
 0x615   :  { %9348 = vmatprep.mubr.f32.mxu1 %v1718_v54 }
 0x616   :  { %9349 = vmatmul.mubr.f32.vlgmr.msra.gmra.mrb[10].mxu1 %v9270_v14 }
 0x617   :  { %v9277_v55 = vpop.f32.mrb[20].mxu0 }
 0x618   :  { %v1793_v56 = vpop.f32.mrb[21].mxu0 }
 0x619   :  { %9351 = vmatprep.mubr.f32.mxu1 %v1793_v56 }
 0x61a   :  { %9352 = vmatmul.mubr.f32.gmra.mrb[12].mxu1 %v9277_v55 }
 0x61b   :  { %9448 = vmatprep.mubr.msk.f32.mxu1 %vm70_vm0, %v12225_v13 }
 0x65a   :  { %v2521_v0 = vpop.xlane.xlu1 %2520  ;;  %v2515_v11 = vpop.xlane.xlu0 %2514 }
 0x65b   :  { %v2527_v12 = vsub.f32 %v1370_v58, %v2521_v0  ;;  %v2525_v15 = vsub.f32 %v1368_v50, %v2515_v11 }
 0x65d   :  { %v2529_v16 = vmul.f32 1.442695, %v2525_v15  ;;  %v2533_v17 = vmul.f32 1.442695, %v2527_v12 }
 0x65e   :  { %v2524_v19 = vpop.xlane.xlu1 %2523  ;;  %v2518_v20 = vpop.xlane.xlu0 %2517 }
 0x65f   :  { %v2528_v21 = vsub.f32 %v1371_v51, %v2524_v19  ;;  %v2526_v23 = vsub.f32 %v1369_v52, %v2518_v20  ;;  %11838 = vpow2.f32 %v2529_v16 }
 0x660   :  { %11840 = vpow2.f32 %v2533_v17 }
 0x661   :  { %v2531_v24 = vmul.f32 1.442695, %v2526_v23  ;;  %v2535_v26 = vmul.f32 1.442695, %v2528_v21 }
 0x663   :  { %11842 = vpow2.f32 %v2531_v24 }
 0x664   :  { %11844 = vpow2.f32 %v2535_v26 }
 0x669   :  { %v12261_v27 = vpop.eup %11838 }
 0x66a   :  { %v2537_v13 = vsel %vm2512_vm1, %v12261_v27, 0.0  ;;  %v12265_v28 = vpop.eup %11840 }
 0x66b   :  { %2538 = vadd.xlane.f32.xlu0 %v2537_v13  ;;  %v2543_v31 = vsel %vm2512_vm1, %v12265_v28, 0.0 }
 0x66d   :  { %v12267_v63 = vpop.eup %11842 }
 0x66e   :  { %v2540_v6 = vsel %vm2512_vm1, %v12267_v63, 0.0  ;;  %v12273_v32 = vpop.eup %11844 }
 0x66f   :  { %2544 = vadd.xlane.f32.xlu0 %v2543_v31  ;;  %2541 = vadd.xlane.f32.xlu1 %v2540_v6  ;;  %v2546_v33 = vsel %vm2512_vm1, %v12273_v32, 0.0 }
 0x673   :  { %2547 = vadd.xlane.f32.xlu1 %v2546_v33 }
 0x6e9   :  { %v9350_v35 = vpop.f32.mrb[10].mxu1 }
 0x6ea   :  { %v2013_v36 = vadd.f32 %v9350_v35, %v2011_v62  ;;  %v1989_v37 = vpop.f32.mrb[11].mxu1 }
 0x6eb   :  { %v2012_v38 = vadd.f32 %v2011_v62, %v1989_v37 }
 0x6ec   :  { %v2017_v39 = vmax.f32 %v2013_v36, 0.0 }
 0x6ed   :  { %v2016_v40 = vmax.f32 %v2012_v38, 0.0  ;;  %v9353_v4 = vpop.f32.mrb[12].mxu1  ;;  %v2061_v38 = vrot.slane %v12277_v34, %v12185_v57 }
 0x6ee   :  { %v2015_v41 = vadd.f32 %v9353_v4, %v2011_v62  ;;  %v1999_v42 = vpop.f32.mrb[13].mxu1  ;;  %v2025_v43 = vmul.f32 %v2023_v1, %v2017_v39  ;;  %v2077_v4 = vrot.slane %v12277_v34, %v12188_v8 }
 0x6ef   :  { %v2014_v5 = vadd.f32 %v2011_v62, %v1999_v42  ;;  %v2024_v45 = vmul.f32 %v2023_v1, %v2016_v40 }
 0x6f0   :  { %v2019_v59 = vmax.f32 %v2015_v41, 0.0  ;;  %v2033_v2 = vadd.f32 %v2031_v44, %v2025_v43 }
 0x6f1   :  { %v2018_v46 = vmax.f32 %v2014_v5, 0.0  ;;  %v2032_v49 = vadd.f32 %v2031_v44, %v2024_v45 }
 0x6f2   :  { %v2027_v47 = vmul.f32 %v2023_v1, %v2019_v59 }
 0x6f3   :  { %v2026_v48 = vmul.f32 %v2023_v1, %v2018_v46 }
 0x6f4   :  { %v2035_v7 = vadd.f32 %v2031_v44, %v2027_v47 }
 0x6f5   :  { %v2034_v58 = vadd.f32 %v2031_v44, %v2026_v48 }
 0x6f6   :  { %v2037_v50 = vadd.f32 %v2035_v7, %v2033_v2 }
 0x6f7   :  { %v2036_v60 = vadd.f32 %v2034_v58, %v2032_v49 }
 0x6f8   :  { %v2039_v51 = vmul.f32 0.5, %v2037_v50  ;;  %v2539_v53 = vpop.xlane.xlu0 %2538 }
 0x6f9   :  { %v2038_v52 = vmul.f32 0.5, %v2036_v60  ;;  %11846 = vrcp.f32 %v2539_v53  ;;  %v2253_v60 = vld [vmem:[#allocation6 + $0x598] sm:$0xff]  ;;  %v2255_v53 = vld [vmem:[#allocation6 + $0x5a8] sm:$0xff] }
 0x6fa   :  { %v2045_v10 = vmul.f32 %v2043_v61, %v2039_v51 }
 0x6fb   :  { %v2044_v14 = vmul.f32 %v2043_v61, %v2038_v52  ;;  %v2252_v61 = vld [vmem:[#allocation6 + $0x590] sm:$0xff]  ;;  %v2254_v52 = vld [vmem:[#allocation6 + $0x5a0] sm:$0xff] }
 0x6fc   :  { %v2047_v54 = vsub.f32 %v2033_v2, %v2045_v10  ;;  %v2049_v55 = vsub.f32 %v2035_v7, %v2045_v10  ;;  %v2542_v11 = vpop.xlane.xlu1 %2541  ;;  %v2545_v12 = vpop.xlane.xlu0 %2544  ;;  %v10929_v51 = vpack.c.bf16 %v2253_v60, %v2252_v61  ;;  %v10933_v10 = vpack.c.bf16 %v2255_v53, %v2254_v52 }
 0x6fd   :  { %v2046_v56 = vsub.f32 %v2032_v49, %v2044_v14  ;;  %v2048_v0 = vsub.f32 %v2034_v58, %v2044_v14  ;;  %11848 = vrcp.f32 %v2542_v11  ;;  %v2250_v49 = vld [vmem:[#allocation6 + $0x580] sm:$0xff]  ;;  %v2251_v58 = vld [vmem:[#allocation6 + $0x588] sm:$0xff]  ;;  %v2256_v14 = vld [vmem:[#allocation6 + $0x5b0] sm:$0xff] }
 0x6fe   :  { %v2051_v15 = vmul.f32 %v2047_v54, %v2047_v54  ;;  %v2053_v16 = vmul.f32 %v2049_v55, %v2049_v55  ;;  %11850 = vrcp.f32 %v2545_v12  ;;  %v2063_v40 = vmul.f32 %v2061_v38, %v2047_v54  ;;  %v2257_v54 = vld [vmem:[#allocation6 + $0x5b8] sm:$0xff] }
 0x6ff   :  { %v2050_v17 = vmul.f32 %v2046_v56, %v2046_v56  ;;  %v2052_v19 = vmul.f32 %v2048_v0, %v2048_v0  ;;  %v2064_v42 = vmul.f32 %v2061_v38, %v2048_v0  ;;  %v2062_v5 = vmul.f32 %v2061_v38, %v2046_v56  ;;  %v2259_v56 = vld [vmem:[#allocation6 + $0x5c8] sm:$0xff]  ;;  %v2260_v0 = vld [vmem:[#allocation6 + $0x5d0] sm:$0xff]  ;;  %v2261_v11 = vld [vmem:[#allocation6 + $0x5d8] sm:$0xff] }
 0x700   :  { %v2055_v20 = vadd.f32 %v2053_v16, %v2051_v15  ;;  %v2548_v23 = vpop.xlane.xlu1 %2547  ;;  %v10925_v50 = vpack.c.bf16 %v2251_v58, %v2250_v49  ;;  %v10945_v12 = vpack.c.bf16 %v2261_v11, %v2260_v0  ;;  %v2263_v15 = vld [vmem:[#allocation6 + $0x5e8] sm:$0xff] }
 0x701   :  { %v2054_v21 = vadd.f32 %v2052_v19, %v2050_v17  ;;  %11852 = vrcp.f32 %v2548_v23  ;;  %v2264_v17 = vld [vmem:[#allocation6 + $0x5f0] sm:$0xff]  ;;  %v2265_v19 = vld [vmem:[#allocation6 + $0x5f8] sm:$0xff]  ;;  %v2234_v23 = vld [vmem:[#allocation6 + $0x508] sm:$0xff] }
 0x702   :  { %v2057_v24 = vmul.f32 0.5, %v2055_v20  ;;  %v10953_v20 = vpack.c.bf16 %v2265_v19, %v2264_v17 }
 0x703   :  { %v2056_v26 = vmul.f32 0.5, %v2054_v21  ;;  %v11847_v13 = vpop.eup %11846  ;;  %v2233_v21 = vld [vmem:[#allocation6 + $0x500] sm:$0xff] }
 0x704   :  { %v2067_v31 = vadd.f32 1e-05, %v2057_v24  ;;  %v12288_v33 = vmul.f32 %v11847_v13, %v12261_v27  ;;  %v10957_v24 = vpack.c.bf16 %v2234_v23, %v2233_v21  ;;  %v2236_v13 = vld [vmem:[#allocation6 + $0x518] sm:$0xff] }
 0x705   :  { %v2066_v6 = vadd.f32 1e-05, %v2056_v26  ;;  %v2235_v26 = vld [vmem:[#allocation6 + $0x510] sm:$0xff] }
 0x706   :  { %11854 = vrsqrt.f32 %v2067_v31  ;;  %2557 = vxpose.xlu0.b32.start [1/2] (short) (narrow) %v12288_v33, 8  ;;  %v10961_v31 = vpack.c.bf16 %v2236_v13, %v2235_v26 }
 0x707   :  { %11856 = vrsqrt.f32 %v2066_v6  ;;  %v11849_v62 = vpop.eup %11848  ;;  %v2237_v6 = vld [vmem:[#allocation6 + $0x520] sm:$0xff] }
 0x708   :  { %v11851_v35 = vpop.eup %11850  ;;  %v12292_v36 = vmul.f32 %v11849_v62, %v12267_v63  ;;  %v2238_v62 = vld [vmem:[#allocation6 + $0x528] sm:$0xff] }
 0x709   :  { %v12295_v37 = vmul.f32 %v11851_v35, %v12265_v28  ;;  %v2065_v28 = vmul.f32 %v2061_v38, %v2049_v55  ;;  %v2258_v55 = vld [vmem:[#allocation6 + $0x5c0] sm:$0xff]  ;;  %v10965_v35 = vpack.c.bf16 %v2238_v62, %v2237_v6  ;;  %v2239_v38 = vld [vmem:[#allocation6 + $0x530] sm:$0xff] }
 0x70a   :  { %2558 = vxpose.xlu0.b32.end [2/2] (short) (narrow) %v12292_v36, 8  ;;  %v12302_v27 = vpack.c.bf16 %v12292_v36, %v12288_v33 }
 0x70b   :  { %v11853_v39 = vpop.eup %11852  ;;  %2589 = vxpose.xlu1.b32.start [1/2] (short) (narrow) %v12295_v37, 8 }
 0x70c   :  { %v12306_v1 = vmul.f32 %v11853_v39, %v12273_v32  ;;  %10990 = vmatprep.subr.bf16.mxu1 %v12302_v27  ;;  %v2240_v39 = vld [vmem:[#allocation6 + $0x538] sm:$0xff] }
 0x70d   :  { %10992 = vmatpush3.bf16.msra.mxu1 %v12302_v27 }
 0x70e   :  { %v12312_v63 = vpack.c.bf16 %v12306_v1, %v12295_v37 }
 0x70f   :  { %2590 = vxpose.xlu1.b32.end [2/2] (short) (narrow) %v12306_v1, 8 }
 0x710   :  { %v11855_v41 = vpop.eup %11854  ;;  %9449 = vmatmul.mubr.msk.f32.vlgmr.msra.gmra.mrb[14].mxu1 %vm70_vm0, %v12235_v22  ;;  %10994 = vmatprep.subr.bf16.mxu1 %v12312_v63 }
 0x711   :  { %v11857_v32 = vpop.eup %11856  ;;  %v2071_v43 = vmul.f32 %v11855_v41, %v2063_v40  ;;  %v2073_v44 = vmul.f32 %v11855_v41, %v2065_v28  ;;  %10996 = vmatpush3.bf16.msra.mxu1 %v12312_v63  ;;  %9455 = vmatprep.mubr.msk.f32.mxu1 %vm70_vm0, %v12239_v25  ;;  %v10969_v28 = vpack.c.bf16 %v2240_v39, %v2239_v38  ;;  %v2241_v40 = vld [vmem:[#allocation6 + $0x540] sm:$0xff] }
 0x712   :  { %v2070_v59 = vmul.f32 %v11857_v32, %v2062_v5  ;;  %v2072_v34 = vmul.f32 %v11857_v32, %v2064_v42  ;;  %v2243_v42 = vld [vmem:[#allocation6 + $0x550] sm:$0xff]  ;;  %v2244_v5 = vld [vmem:[#allocation6 + $0x558] sm:$0xff] }
 0x713   :  { %v12323_v45 = vadd.f32 %v2077_v4, %v2071_v43  ;;  %v12325_v46 = vadd.f32 %v2077_v4, %v2073_v44  ;;  %v10977_v32 = vpack.c.bf16 %v2244_v5, %v2243_v42  ;;  %v2245_v43 = vld [vmem:[#allocation6 + $0x560] sm:$0xff]  ;;  %v2246_v44 = vld [vmem:[#allocation6 + $0x568] sm:$0xff] }
 0x714   :  { %v2078_v47 = vadd.f32 %v2077_v4, %v2070_v59  ;;  %v2080_v48 = vadd.f32 %v2077_v4, %v2072_v34  ;;  %9456 = vmatmul.mubr.msk.f32.vlgmr.msra.gmra.mrb[16].mxu1 %vm70_vm0, %v12243_v29  ;;  %v2242_v4 = vld [vmem:[#allocation6 + $0x548] sm:$0xff]  ;;  %v10981_v59 = vpack.c.bf16 %v2246_v44, %v2245_v43  ;;  %v2247_v34 = vld [vmem:[#allocation6 + $0x570] sm:$0xff] }
 0x715   :  { %v10973_v41 = vpack.c.bf16 %v2242_v4, %v2241_v40 }
 0x716   :  { %v10917_v2 = vpack.c.bf16 %v12323_v45, %v2078_v47  ;;  %v10921_v7 = vpack.c.bf16 %v12325_v46, %v2080_v48 }
 0x718   :  { %10918 = vmatprep.subr.bf16.mxu0 %v10917_v2 }
 0x719   :  { %10920 = vmatpush3.bf16.msra.mxu0 %v10917_v2 }
 0x71a   :  { %10922 = vmatprep.subr.bf16.mxu0 %v10921_v7 }
 0x71c   :  { %9359 = vmatmul.mubr.msk.f32.vlgmr.msra.gmra.mrb[22].mxu0 %vm70_vm0, %v12235_v22  ;;  %v10937_v22 = vpack.c.bf16 %v2257_v54, %v2256_v14 }
 0x71d   :  { %10924 = vmatpush3.bf16.msra.mxu0 %v10921_v7  ;;  %9365 = vmatprep.mubr.msk.f32.mxu0 %vm70_vm0, %v12239_v25  ;;  %v10941_v25 = vpack.c.bf16 %v2259_v56, %v2258_v55 }
 0x71e   :  { %10926 = vmatprep.subr.bf16.mxu0 %v10925_v50 }
 0x720   :  { %9366 = vmatmul.mubr.msk.f32.vlgmr.msra.gmra.mrb[24].mxu0 %vm70_vm0, %v12243_v29  ;;  %v2262_v29 = vld [vmem:[#allocation6 + $0x5e0] sm:$0xff] }
 0x721   :  { %10928 = vmatpush3.bf16.msra.mxu0 %v10925_v50  ;;  %9400 = vmatprep.mubr.f32.mxu0 %v2078_v47  ;;  %v10949_v16 = vpack.c.bf16 %v2263_v15, %v2262_v29  ;;  %v12027_v29 = vmov 0.0   ;;  %v2267_v15 = vld [vmem:[#allocation8 + $0x28] sm:$0xff] }
 0x722   :  { %10930 = vmatprep.subr.bf16.mxu0 %v10929_v51  ;;  %9462 = vmatprep.mubr.msk.f32.mxu1 %vm12026_vm2, %v12027_v29  ;;  %v2461_v38 = vrot.slane %v2267_v15, %v12179_v18 }
 0x725   :  { %10932 = vmatpush3.bf16.msra.mxu0 %v10929_v51 }
 0x726   :  { %10934 = vmatprep.subr.bf16.mxu0 %v10933_v10 }
 0x729   :  { %10936 = vmatpush3.bf16.msra.mxu0 %v10933_v10 }
 0x72a   :  { %10938 = vmatprep.subr.bf16.mxu0 %v10937_v22 }
 0x72d   :  { %10940 = vmatpush3.bf16.msra.mxu0 %v10937_v22 }
 0x72e   :  { %10942 = vmatprep.subr.bf16.mxu0 %v10941_v25 }
 0x731   :  { %10944 = vmatpush3.bf16.msra.mxu0 %v10941_v25 }
 0x732   :  { %10946 = vmatprep.subr.bf16.mxu0 %v10945_v12 }
 0x735   :  { %10948 = vmatpush3.bf16.msra.mxu0 %v10945_v12  ;;  %v12025_v12 = vmov 0.0|0.0  }
 0x736   :  { %10950 = vmatprep.subr.bf16.mxu0 %v10949_v16  ;;  %10997 = vmatprep.subr.bf16.mxu1 %v12025_v12 }
 0x739   :  { %10952 = vmatpush3.bf16.msra.mxu0 %v10949_v16  ;;  %v2441_v16 = vrot.slane %v2267_v15, %v12173_v3 }
 0x73a   :  { %10954 = vmatprep.subr.bf16.mxu0 %v10953_v20 }
 0x73d   :  { %10956 = vmatpush3.bf16.msra.mxu0 %v10953_v20 }
 0x73e   :  { %10958 = vmatprep.subr.bf16.mxu0 %v10957_v24 }
 0x740   :  { %9401 = vmatmul.mubr.f32.vlgmr.msra.gmra.mrb[26].mxu0 %v12323_v45  ;;  %v2248_v45 = vld [vmem:[#allocation6 + $0x578] sm:$0xff] }
 0x741   :  { %9403 = vmatprep.mubr.f32.mxu0 %v2080_v48  ;;  %10960 = vmatpush3.bf16.msra.mxu0 %v10957_v24  ;;  %v2453_v24 = vrot.slane %v2267_v15, %v12176_v9 }
 0x742   :  { %10962 = vmatprep.subr.bf16.mxu0 %v10961_v31 }
 0x744   :  { %9404 = vmatmul.mubr.f32.gmra.mrb[28].mxu0 %v12325_v46  ;;  %v10985_v46 = vpack.c.bf16 %v2248_v45, %v2247_v34 }
 0x745   :  { %10964 = vmatpush3.bf16.msra.mxu0 %v10961_v31 }
 0x746   :  { %10966 = vmatprep.subr.bf16.mxu0 %v10965_v35 }
 0x749   :  { %10968 = vmatpush3.bf16.msra.mxu0 %v10965_v35 }
 0x74a   :  { %10970 = vmatprep.subr.bf16.mxu0 %v10969_v28 }
 0x74d   :  { %10972 = vmatpush3.bf16.msra.mxu0 %v10969_v28 }
 0x74e   :  { %10974 = vmatprep.subr.bf16.mxu0 %v10973_v41 }
 0x751   :  { %10976 = vmatpush3.bf16.msra.mxu0 %v10973_v41 }
 0x752   :  { %10978 = vmatprep.subr.bf16.mxu0 %v10977_v32 }
 0x755   :  { %10980 = vmatpush3.bf16.msra.mxu0 %v10977_v32 }
 0x756   :  { %10982 = vmatprep.subr.bf16.mxu0 %v10981_v59 }
 0x759   :  { %10984 = vmatpush3.bf16.msra.mxu0 %v10981_v59  ;;  %v2473_v59 = vrot.slane %v2267_v15, %v12182_v30 }
 0x75a   :  { %10986 = vmatprep.subr.bf16.mxu0 %v10985_v46 }
 0x75d   :  { %10988 = vmatpush3.bf16.msra.mxu0 %v10985_v46 }
 0x75e   :  { %11000 = vmatprep.subr.bf16.mxu0 %v12025_v12 }
 0x7e3   :  { %v12339_v47 = vpop.f32.mrb[14].mxu1 }
 0x7e4   :  { %v3218_v48 = vmul.f32 %v12339_v47, %v12292_v36  ;;  %v12343_v2 = vpop.f32.mrb[15].mxu1 }
 0x7e5   :  { %v11004_v7 = vpack.c.bf16 %v12339_v47, %v12343_v2  ;;  %v3217_v49 = vmul.f32 %v12343_v2, %v12288_v33 }
 0x7e6   :  { %v3222_v58 = vsel %vm2512_vm1, %v3218_v48, 0.0 }
 0x7e7   :  { %v3221_v50 = vsel %vm2512_vm1, %v3217_v49, 0.0  ;;  %v12351_v61 = vpop.f32.mrb[16].mxu1 }
 0x7e8   :  { %v3223_v60 = vadd.f32 %v3222_v58, %v3221_v50  ;;  %v12353_v51 = vpop.f32.mrb[17].mxu1  ;;  %v3220_v52 = vmul.f32 %v12351_v61, %v12306_v1 }
 0x7e9   :  { %v11007_v53 = vpack.c.bf16 %v12351_v61, %v12353_v51  ;;  %v3219_v10 = vmul.f32 %v12353_v51, %v12295_v37  ;;  %v3457_v61 = vld [vmem:[#allocation6 + $0x690] sm:$0xff]  ;;  %v3458_v51 = vld [vmem:[#allocation6 + $0x698] sm:$0xff] }
 0x7ea   :  { %v3226_v22 = vsel %vm2512_vm1, %v3220_v52, 0.0 }
 0x7eb   :  { %v3224_v14 = vsel %vm2512_vm1, %v3219_v10, 0.0 }
 0x7ec   :  { %v3225_v54 = vadd.f32 %v3224_v14, %v3223_v60 }
 0x7ee   :  { %v12363_v56 = vadd.f32 %v3226_v22, %v3225_v54 }
 0x7ef   :  { %v9360_v55 = vpop.f32.mrb[22].mxu0 }
 0x7f0   :  { %v2148_v25 = vpop.f32.mrb[23].mxu0 }
 0x7f1   :  { %9438 = vmatprep.mubr.f32.mxu0 %v2148_v25 }
 0x7f2   :  { %9439 = vmatmul.mubr.f32.vlgmr.msra.gmra.mrb[26].mxu0 %v9360_v55 }
 0x7f3   :  { %v9367_v0 = vpop.f32.mrb[24].mxu0 }
 0x7f4   :  { %v2223_v11 = vpop.f32.mrb[25].mxu0 }
 0x7f5   :  { %9441 = vmatprep.mubr.f32.mxu0 %v2223_v11 }
 0x7f6   :  { %9442 = vmatmul.mubr.f32.gmra.mrb[28].mxu0 %v9367_v0 }
 0x7f7   :  { %9469 = vmatprep.mubr.msk.f32.mxu0 %vm12026_vm2, %v12027_v29 }
 0x8c5   :  { %v9440_v17 = vpop.f32.mrb[26].mxu0 }
 0x8c6   :  { %v2443_v19 = vadd.f32 %v9440_v17, %v2441_v16  ;;  %v2419_v20 = vpop.f32.mrb[27].mxu0 }
 0x8c7   :  { %v2442_v21 = vadd.f32 %v2441_v16, %v2419_v20 }
 0x8c8   :  { %v2447_v23 = vmax.f32 %v2443_v19, 0.0  ;;  %v2491_v19 = vrot.slane %v2267_v15, %v12185_v57 }
 0x8c9   :  { %v2446_v26 = vmax.f32 %v2442_v21, 0.0  ;;  %v9443_v13 = vpop.f32.mrb[28].mxu0 }
 0x8ca   :  { %v2445_v31 = vadd.f32 %v9443_v13, %v2441_v16  ;;  %v2429_v6 = vpop.f32.mrb[29].mxu0  ;;  %v2455_v35 = vmul.f32 %v2453_v24, %v2447_v23  ;;  %v2507_v23 = vrot.slane %v2267_v15, %v12188_v8 }
 0x8cb   :  { %v2444_v62 = vadd.f32 %v2441_v16, %v2429_v6  ;;  %v2454_v28 = vmul.f32 %v2453_v24, %v2446_v26 }
 0x8cc   :  { %v2449_v39 = vmax.f32 %v2445_v31, 0.0  ;;  %v2463_v42 = vadd.f32 %v2461_v38, %v2455_v35 }
 0x8cd   :  { %v2448_v40 = vmax.f32 %v2444_v62, 0.0  ;;  %v2462_v32 = vadd.f32 %v2461_v38, %v2454_v28 }
 0x8ce   :  { %v2457_v4 = vmul.f32 %v2453_v24, %v2449_v39 }
 0x8cf   :  { %v2456_v41 = vmul.f32 %v2453_v24, %v2448_v40 }
 0x8d0   :  { %v2465_v5 = vadd.f32 %v2461_v38, %v2457_v4 }
 0x8d1   :  { %v2464_v43 = vadd.f32 %v2461_v38, %v2456_v41 }
 0x8d2   :  { %v2467_v44 = vadd.f32 %v2465_v5, %v2463_v42 }
 0x8d3   :  { %v2466_v34 = vadd.f32 %v2464_v43, %v2462_v32 }
 0x8d4   :  { %v2469_v45 = vmul.f32 0.5, %v2467_v44 }
 0x8d5   :  { %v2468_v46 = vmul.f32 0.5, %v2466_v34  ;;  %v3459_v34 = vld [vmem:[#allocation6 + $0x6a0] sm:$0xff] }
 0x8d6   :  { %v2475_v48 = vmul.f32 %v2473_v59, %v2469_v45  ;;  %v3460_v45 = vld [vmem:[#allocation6 + $0x6a8] sm:$0xff] }
 0x8d7   :  { %v2474_v49 = vmul.f32 %v2473_v59, %v2468_v46 }
 0x8d8   :  { %v2477_v58 = vsub.f32 %v2463_v42, %v2475_v48  ;;  %v2479_v50 = vsub.f32 %v2465_v5, %v2475_v48  ;;  %v2605_v5 = vpop.trf.xlu1 }
 0x8d9   :  { %v2476_v60 = vsub.f32 %v2462_v32, %v2474_v49  ;;  %v2478_v52 = vsub.f32 %v2464_v43, %v2474_v49  ;;  %v2573_v32 = vpop.trf.xlu0  ;;  %v11019_v43 = vpack.c.bf16 %v3458_v51, %v3457_v61  ;;  %v3444_v51 = vld [vmem:[#allocation6 + $0x630] sm:$0xff] }
 0x8da   :  { %v2481_v10 = vmul.f32 %v2477_v58, %v2477_v58  ;;  %v2483_v14 = vmul.f32 %v2479_v50, %v2479_v50  ;;  %v2493_v20 = vmul.f32 %v2491_v19, %v2477_v58  ;;  %v2495_v21 = vmul.f32 %v2491_v19, %v2479_v50 }
 0x8db   :  { %v2480_v54 = vmul.f32 %v2476_v60, %v2476_v60  ;;  %v2482_v22 = vmul.f32 %v2478_v52, %v2478_v52  ;;  %v2492_v26 = vmul.f32 %v2491_v19, %v2476_v60  ;;  %v2494_v13 = vmul.f32 %v2491_v19, %v2478_v52 }
 0x8dc   :  { %v2485_v55 = vadd.f32 %v2483_v14, %v2481_v10  ;;  %v11023_v50 = vpack.c.bf16 %v3460_v45, %v3459_v34  ;;  %v3447_v34 = vld [vmem:[#allocation6 + $0x648] sm:$0xff] }
 0x8dd   :  { %v2484_v25 = vadd.f32 %v2482_v22, %v2480_v54  ;;  %v3461_v54 = vld [vmem:[#allocation6 + $0x6b0] sm:$0xff]  ;;  %v3462_v22 = vld [vmem:[#allocation6 + $0x6b8] sm:$0xff] }
 0x8de   :  { %v2487_v0 = vmul.f32 0.5, %v2485_v55 }
 0x8df   :  { %v2486_v11 = vmul.f32 0.5, %v2484_v25 }
 0x8e0   :  { %v2497_v16 = vadd.f32 1e-05, %v2487_v0 }
 0x8e1   :  { %v2496_v17 = vadd.f32 1e-05, %v2486_v11 }
 0x8e2   :  { %11858 = vrsqrt.f32 %v2497_v16 }
 0x8e3   :  { %11860 = vrsqrt.f32 %v2496_v17  ;;  %v11027_v17 = vpack.c.bf16 %v3462_v22, %v3461_v54 }
 0x8ec   :  { %v11859_v24 = vpop.eup %11858 }
 0x8ed   :  { %v11861_v31 = vpop.eup %11860  ;;  %v2503_v6 = vmul.f32 %v11859_v24, %v2495_v21  ;;  %v2501_v62 = vmul.f32 %v11859_v24, %v2493_v20  ;;  %v3463_v21 = vld [vmem:[#allocation6 + $0x6c0] sm:$0xff] }
 0x8ee   :  { %v2502_v35 = vmul.f32 %v11861_v31, %v2494_v13  ;;  %v2500_v38 = vmul.f32 %v11861_v31, %v2492_v26  ;;  %v3465_v13 = vld [vmem:[#allocation6 + $0x6d0] sm:$0xff]  ;;  %v3466_v31 = vld [vmem:[#allocation6 + $0x6d8] sm:$0xff] }
 0x8ef   :  { %v2509_v39 = vadd.f32 %v2507_v23, %v2501_v62  ;;  %v2511_v28 = vadd.f32 %v2507_v23, %v2503_v6  ;;  %v11035_v6 = vpack.c.bf16 %v3466_v31, %v3465_v13  ;;  %v3467_v62 = vld [vmem:[#allocation6 + $0x6e0] sm:$0xff] }
 0x8f0   :  { %v2508_v40 = vadd.f32 %v2507_v23, %v2500_v38  ;;  %v2510_v4 = vadd.f32 %v2507_v23, %v2502_v35  ;;  %v3464_v23 = vld [vmem:[#allocation6 + $0x6c8] sm:$0xff] }
 0x8f1   :  { %v11031_v26 = vpack.c.bf16 %v3464_v23, %v3463_v21  ;;  %v3468_v35 = vld [vmem:[#allocation6 + $0x6e8] sm:$0xff] }
 0x8f2   :  { %v10998_v41 = vpack.c.bf16 %v2509_v39, %v2508_v40  ;;  %v11001_v42 = vpack.c.bf16 %v2511_v28, %v2510_v4  ;;  %v11039_v38 = vpack.c.bf16 %v3468_v35, %v3467_v62  ;;  %v3469_v39 = vld [vmem:[#allocation6 + $0x6f0] sm:$0xff]  ;;  %v3470_v28 = vld [vmem:[#allocation6 + $0x6f8] sm:$0xff]  ;;  %v3438_v4 = vld [vmem:[#allocation6 + $0x600] sm:$0xff] }
 0x8f3   :  { %v11043_v40 = vpack.c.bf16 %v3470_v28, %v3469_v39 }
 0x8f4   :  { %10999 = vmatpush3.bf16.msra.mxu1 %v10998_v41  ;;  %11002 = vmatpush3.bf16.msra.mxu0 %v11001_v42  ;;  %v3439_v41 = vld [vmem:[#allocation6 + $0x608] sm:$0xff] }
 0x8f5   :  { %11003 = vmatprep.subr.bf16.mxu1 %v12025_v12  ;;  %11006 = vmatprep.subr.bf16.mxu0 %v12025_v12  ;;  %v11047_v42 = vpack.c.bf16 %v3439_v41, %v3438_v4 }
 0x8f7   :  { %9463 = vmatmul.mubr.msk.f32.vlgmr.msra.gmra.mrb[18].mxu1 %vm70_vm0, %v2573_v32  ;;  %9470 = vmatmul.mubr.msk.f32.vlgmr.msra.gmra.mrb[30].mxu0 %vm70_vm0, %v2605_v5 }
 0x8f8   :  { %11005 = vmatpush3.bf16.msra.mxu1 %v11004_v7  ;;  %11008 = vmatpush3.bf16.msra.mxu0 %v11007_v53 }
 0x8f9   :  { %9476 = vmatprep.mubr.msk.f32.mxu1 %vm12026_vm2, %v12027_v29  ;;  %9483 = vmatprep.mubr.msk.f32.mxu0 %vm12026_vm2, %v12027_v29 }
 0x8fa   :  { %11009 = vmatprep.subr.bf16.mxu1 %v12025_v12  ;;  %11012 = vmatprep.subr.bf16.mxu0 %v12025_v12 }
 0x8fb   :  { %9477 = vmatmul.mubr.msk.f32.vlgmr.msra.gmra.mrb[20].mxu1 %vm70_vm0, %v2573_v32  ;;  %9484 = vmatmul.mubr.msk.f32.vlgmr.msra.gmra.mrb[32].mxu0 %vm70_vm0, %v2605_v5 }
 0x8fc   :  { %11011 = vmatpush3.bf16.msra.mxu1 %v12302_v27  ;;  %11014 = vmatpush3.bf16.msra.mxu0 %v12312_v63  ;;  %v3455_v27 = vld [vmem:[#allocation6 + $0x680] sm:$0xff]  ;;  %v3456_v63 = vld [vmem:[#allocation6 + $0x688] sm:$0xff] }
 0x8fd   :  { %9490 = vmatprep.mubr.msk.f32.mxu1 %vm12026_vm2, %v12027_v29  ;;  %9497 = vmatprep.mubr.msk.f32.mxu0 %vm12026_vm2, %v12027_v29  ;;  %v11015_v47 = vpack.c.bf16 %v3456_v63, %v3455_v27  ;;  %v3442_v63 = vld [vmem:[#allocation6 + $0x620] sm:$0xff] }
 0x8fe   :  { %9500 = vmatprep.subr.mxu1 %v12027_v29  ;;  %9505 = vmatprep.subr.mxu0 %v12027_v29 }
 0x8ff   :  { %9491 = vmatmul.mubr.msk.f32.vlgmr.msra.gmra.mrb[22].mxu1 %vm70_vm0, %v2573_v32  ;;  %9498 = vmatmul.mubr.msk.f32.vlgmr.msra.gmra.mrb[34].mxu0 %vm70_vm0, %v2605_v5  ;;  %v3440_v5 = vld [vmem:[#allocation6 + $0x610] sm:$0xff]  ;;  %v3441_v32 = vld [vmem:[#allocation6 + $0x618] sm:$0xff] }
 0x900   :  { %9502 = vmatprep.mubr.msk.f32.mxu1 %vm12026_vm2, %v12027_v29  ;;  %9507 = vmatprep.mubr.msk.f32.mxu0 %vm12026_vm2, %v12027_v29  ;;  %v11051_v27 = vpack.c.bf16 %v3441_v32, %v3440_v5 }
 0x9ca   :  { %v12409_v2 = vpop.f32.mrb[18].mxu1  ;;  %v12411_v7 = vpop.f32.mrb[30].mxu0 }
 0x9cb   :  { %v9464_v53 = vpop.f32.mrb[19].mxu1  ;;  %v9471_v15 = vpop.f32.mrb[31].mxu0  ;;  %9501 = vmatpush3.msra.mxu1 %v12409_v2  ;;  %9506 = vmatpush3.msra.mxu0 %v12411_v7 }
 0x9cc   :  { %11016 = vmatprep.subr.bf16.mxu1 %v11015_v47  ;;  %9580 = vmatprep.subr.mxu0 %v12027_v29  ;;  %v3445_v53 = vld [vmem:[#allocation6 + $0x638] sm:$0xff] }
 0x9cd   :  { %v11059_v15 = vpack.c.bf16 %v3445_v53, %v3444_v51 }
 0x9ce   :  { %v12416_v44 = vpop.f32.mrb[20].mxu1  ;;  %v12418_v59 = vpop.f32.mrb[32].mxu0 }
 0x9cf   :  { %v9478_v46 = vpop.f32.mrb[21].mxu1  ;;  %v9485_v48 = vpop.f32.mrb[33].mxu0  ;;  %9503 = vmatmul.mubr.msk.f32.vlgmr.msra.gmra.mrb[24].mxu1 %vm2512_vm1, %v12416_v44  ;;  %9508 = vmatmul.mubr.msk.f32.vlgmr.msra.gmra.mrb[36].mxu0 %vm2512_vm1, %v12418_v59  ;;  %v6060_v49 = vmul.f32 %v12416_v44, %v12416_v44  ;;  %v6061_v58 = vmul.f32 %v12418_v59, %v12418_v59 }
 0x9d0   :  { %11018 = vmatpush3.bf16.msra.mxu1 %v11015_v47  ;;  %9542 = vmatprep.mubr.f32.mxu1 %v12409_v2  ;;  %v3443_v47 = vld [vmem:[#allocation6 + $0x628] sm:$0xff]  ;;  %v3448_v46 = vld [vmem:[#allocation6 + $0x650] sm:$0xff]  ;;  %v3449_v48 = vld [vmem:[#allocation6 + $0x658] sm:$0xff] }
 0x9d1   :  { %11020 = vmatprep.subr.bf16.mxu1 %v11019_v43  ;;  %9582 = vmatprep.mubr.msk.f32.mxu0 %vm12026_vm2, %v12027_v29  ;;  %v6062_v60 = vsel %vm2512_vm1, %v6060_v49, 0.0  ;;  %v6063_v52 = vsel %vm2512_vm1, %v6061_v58, 0.0  ;;  %v11055_v61 = vpack.c.bf16 %v3443_v47, %v3442_v63  ;;  %v11067_v49 = vpack.c.bf16 %v3449_v48, %v3448_v46  ;;  %v3450_v58 = vld [vmem:[#allocation6 + $0x660] sm:$0xff]  ;;  %v3831_v48 = vld [vmem:[#allocation6 + $0x788] sm:$0xff] }
 0x9d2   :  { %v3123_v10 = vpop.f32.mrb[22].mxu1  ;;  %v3193_v14 = vpop.f32.mrb[34].mxu0  ;;  %v12433_v55 = vadd.f32 %v6063_v52, %v6062_v60  ;;  %v3452_v52 = vld [vmem:[#allocation6 + $0x670] sm:$0xff]  ;;  %v3830_v46 = vld [vmem:[#allocation6 + $0x780] sm:$0xff] }
 0x9d3   :  { %v3239_v25 = vmul.f32 %v3123_v10, %v3123_v10  ;;  %v3240_v0 = vmul.f32 %v3193_v14, %v3193_v14  ;;  %v9492_v11 = vpop.f32.mrb[23].mxu1  ;;  %v9499_v16 = vpop.f32.mrb[35].mxu0  ;;  %v3453_v10 = vld [vmem:[#allocation6 + $0x678] sm:$0xff] }
 0x9d4   :  { %11022 = vmatpush3.bf16.msra.mxu1 %v11019_v43  ;;  %v3446_v43 = vld [vmem:[#allocation6 + $0x640] sm:$0xff]  ;;  %v11075_v14 = vpack.c.bf16 %v3453_v10, %v3452_v52  ;;  %v3472_v11 = vld [vmem:[#allocation8 + $0x30] sm:$0xff]  ;;  %v3833_v52 = vld [vmem:[#allocation6 + $0x798] sm:$0xff] }
 0x9d5   :  { %11024 = vmatprep.subr.bf16.mxu1 %v11023_v50  ;;  %v3241_v19 = vsel %vm2512_vm1, %v3239_v25, 0.0  ;;  %v3242_v20 = vsel %vm2512_vm1, %v3240_v0, 0.0  ;;  %v11063_v45 = vpack.c.bf16 %v3447_v34, %v3446_v43  ;;  %v3626_v16 = vrot.slane %v3472_v11, %v12173_v3 }
 0x9d6   :  { %v12437_v24 = vadd.f32 %v3242_v20, %v3241_v19  ;;  %v3634_v20 = vrot.slane %v3472_v11, %v12176_v9  ;;  %v3640_v13 = vrot.slane %v3472_v11, %v12179_v18  ;;  %v3648_v28 = vrot.slane %v3472_v11, %v12182_v30 }
 0x9d7   :  { %v3669_v53 = vrot.slane %v3472_v11, %v12188_v8 }
 0x9d8   :  { %11026 = vmatpush3.bf16.msra.mxu1 %v11023_v50  ;;  %v3451_v50 = vld [vmem:[#allocation6 + $0x668] sm:$0xff] }
 0x9d9   :  { %11028 = vmatprep.subr.bf16.mxu1 %v11027_v17  ;;  %v11071_v60 = vpack.c.bf16 %v3451_v50, %v3450_v58  ;;  %v11079_v58 = vpack.c.bf16 %v3831_v48, %v3830_v46  ;;  %v3825_v48 = vld [vmem:[#allocation6 + $0x760] sm:$0xff] }
 0x9dc   :  { %11030 = vmatpush3.bf16.msra.mxu1 %v11027_v17 }
 0x9dd   :  { %11032 = vmatprep.subr.bf16.mxu1 %v11031_v26 }
 0x9e0   :  { %11034 = vmatpush3.bf16.msra.mxu1 %v11031_v26 }
 0x9e1   :  { %11036 = vmatprep.subr.bf16.mxu1 %v11035_v6 }
 0x9e4   :  { %11038 = vmatpush3.bf16.msra.mxu1 %v11035_v6 }
 0x9e5   :  { %11040 = vmatprep.subr.bf16.mxu1 %v11039_v38 }
 0x9e8   :  { %11042 = vmatpush3.bf16.msra.mxu1 %v11039_v38 }
 0x9e9   :  { %11044 = vmatprep.subr.bf16.mxu1 %v11043_v40 }
 0x9ec   :  { %11046 = vmatpush3.bf16.msra.mxu1 %v11043_v40 }
 0x9ed   :  { %11048 = vmatprep.subr.bf16.mxu1 %v11047_v42 }
 0x9ef   :  { %9543 = vmatmul.mubr.f32.vlgmr.msra.gmra.mrb[26].mxu1 %v12411_v7 }
 0x9f0   :  { %11050 = vmatpush3.bf16.msra.mxu1 %v11047_v42 }
 0x9f1   :  { %11052 = vmatprep.subr.bf16.mxu1 %v11051_v27 }
 0x9f4   :  { %11054 = vmatpush3.bf16.msra.mxu1 %v11051_v27 }
 0x9f5   :  { %11056 = vmatprep.subr.bf16.mxu1 %v11055_v61 }
 0x9f8   :  { %11058 = vmatpush3.bf16.msra.mxu1 %v11055_v61  ;;  %v3659_v61 = vrot.slane %v3472_v11, %v12185_v57  ;;  %v3836_v11 = vld [vmem:[#allocation6 + $0x7b0] sm:$0xff] }
 0x9f9   :  { %11060 = vmatprep.subr.bf16.mxu1 %v11059_v15 }
 0x9fc   :  { %11062 = vmatpush3.bf16.msra.mxu1 %v11059_v15 }
 0x9fd   :  { %11064 = vmatprep.subr.bf16.mxu1 %v11063_v45 }
 0xa00   :  { %11066 = vmatpush3.bf16.msra.mxu1 %v11063_v45 }
 0xa01   :  { %11068 = vmatprep.subr.bf16.mxu1 %v11067_v49 }
 0xa04   :  { %11070 = vmatpush3.bf16.msra.mxu1 %v11067_v49 }
 0xa05   :  { %11072 = vmatprep.subr.bf16.mxu1 %v11071_v60 }
 0xa08   :  { %11074 = vmatpush3.bf16.msra.mxu1 %v11071_v60  ;;  %v3832_v60 = vld [vmem:[#allocation6 + $0x790] sm:$0xff] }
 0xa09   :  { %11076 = vmatprep.subr.bf16.mxu1 %v11075_v14  ;;  %v11083_v10 = vpack.c.bf16 %v3833_v52, %v3832_v60  ;;  %v3828_v60 = vld [vmem:[#allocation6 + $0x778] sm:$0xff] }
 0xa0c   :  { %11078 = vmatpush3.bf16.msra.mxu1 %v11075_v14  ;;  %v3834_v14 = vld [vmem:[#allocation6 + $0x7a0] sm:$0xff] }
 0xa0d   :  { %9660 = vmatprep.subr.mxu1 %v12027_v29 }
 0xaa2   :  { %v12441_v54 = vpop.f32.mrb[24].mxu1  ;;  %v12443_v22 = vpop.f32.mrb[36].mxu0 }
 0xaa3   :  { %v9504_v25 = vpop.f32.mrb[25].mxu1  ;;  %v9509_v0 = vpop.f32.mrb[37].mxu0  ;;  %9577 = vmatprep.mubr.f32.mxu1 %v12441_v54 }
 0xaa4   :  { %9578 = vmatmul.mubr.f32.vlgmr.msra.gmra.mrb[26].mxu1 %v12443_v22  ;;  %v3835_v25 = vld [vmem:[#allocation6 + $0x7a8] sm:$0xff] }
 0xaa5   :  { %9662 = vmatprep.mubr.msk.f32.mxu1 %vm12026_vm2, %v12027_v29  ;;  %v11087_v0 = vpack.c.bf16 %v3835_v25, %v3834_v14  ;;  %v4441_v14 = vld [vmem:[#allocation6 + $0x988] sm:$0xff] }
 0xb77   :  { %v9579_v17 = vpop.f32.mrb[26].mxu1 }
 0xb78   :  { %v3628_v19 = vadd.f32 %v9579_v17, %v3626_v16  ;;  %v3614_v21 = vpop.f32.mrb[27].mxu1 }
 0xb79   :  { %v3627_v23 = vadd.f32 %v3626_v16, %v3614_v21  ;;  %v3837_v16 = vld [vmem:[#allocation6 + $0x7b8] sm:$0xff] }
 0xb7a   :  { %v3630_v26 = vmax.f32 %v3628_v19, 0.0  ;;  %v11091_v17 = vpack.c.bf16 %v3837_v16, %v3836_v11  ;;  %v3838_v19 = vld [vmem:[#allocation6 + $0x7c0] sm:$0xff]  ;;  %v4442_v11 = vld [vmem:[#allocation6 + $0x990] sm:$0xff]  ;;  %v4443_v16 = vld [vmem:[#allocation6 + $0x998] sm:$0xff] }
 0xb7b   :  { %v3629_v31 = vmax.f32 %v3627_v23, 0.0  ;;  %v3840_v23 = vld [vmem:[#allocation6 + $0x7d0] sm:$0xff] }
 0xb7c   :  { %v3636_v6 = vmul.f32 %v3634_v20, %v3630_v26  ;;  %v3841_v26 = vld [vmem:[#allocation6 + $0x7d8] sm:$0xff] }
 0xb7d   :  { %v3635_v62 = vmul.f32 %v3634_v20, %v3629_v31  ;;  %v3839_v20 = vld [vmem:[#allocation6 + $0x7c8] sm:$0xff]  ;;  %v3842_v31 = vld [vmem:[#allocation6 + $0x7e0] sm:$0xff] }
 0xb7e   :  { %v3642_v35 = vadd.f32 %v3640_v13, %v3636_v6  ;;  %v11095_v21 = vpack.c.bf16 %v3839_v20, %v3838_v19  ;;  %v3843_v6 = vld [vmem:[#allocation6 + $0x7e8] sm:$0xff]  ;;  %v11211_v19 = vpack.c.bf16 %v4443_v16, %v4442_v11  ;;  %v4438_v11 = vld [vmem:[#allocation6 + $0x978] sm:$0xff] }
 0xb7f   :  { %v3641_v38 = vadd.f32 %v3640_v13, %v3635_v62  ;;  %v11099_v13 = vpack.c.bf16 %v3841_v26, %v3840_v23  ;;  %v11103_v62 = vpack.c.bf16 %v3843_v6, %v3842_v31  ;;  %v4445_v23 = vld [vmem:[#allocation6 + $0x9a8] sm:$0xff]  ;;  %v4446_v31 = vld [vmem:[#allocation6 + $0x9b0] sm:$0xff]  ;;  %v4447_v6 = vld [vmem:[#allocation6 + $0x9b8] sm:$0xff] }
 0xb81   :  { %v3643_v39 = vadd.f32 %v3642_v35, %v3641_v38 }
 0xb83   :  { %v3644_v40 = vmul.f32 0.5, %v3643_v39 }
 0xb85   :  { %v3649_v4 = vmul.f32 %v3648_v28, %v3644_v40  ;;  %v3813_v28 = vld [vmem:[#allocation6 + $0x700] sm:$0xff]  ;;  %v3814_v40 = vld [vmem:[#allocation6 + $0x708] sm:$0xff] }
 0xb87   :  { %v3650_v41 = vsub.f32 %v3641_v38, %v3649_v4  ;;  %v3651_v42 = vsub.f32 %v3642_v35, %v3649_v4  ;;  %v3844_v35 = vld [vmem:[#allocation6 + $0x7f0] sm:$0xff]  ;;  %v3845_v38 = vld [vmem:[#allocation6 + $0x7f8] sm:$0xff]  ;;  %v11111_v4 = vpack.c.bf16 %v3814_v40, %v3813_v28 }
 0xb88   :  { %v11107_v39 = vpack.c.bf16 %v3845_v38, %v3844_v35  ;;  %v4448_v35 = vld [vmem:[#allocation6 + $0x9c0] sm:$0xff]  ;;  %v4449_v38 = vld [vmem:[#allocation6 + $0x9c8] sm:$0xff]  ;;  %v4450_v28 = vld [vmem:[#allocation6 + $0x9d0] sm:$0xff] }
 0xb89   :  { %v3652_v5 = vmul.f32 %v3650_v41, %v3650_v41  ;;  %v3653_v32 = vmul.f32 %v3651_v42, %v3651_v42  ;;  %v3660_v51 = vmul.f32 %v3659_v61, %v3650_v41  ;;  %v3661_v15 = vmul.f32 %v3659_v61, %v3651_v42  ;;  %v3815_v41 = vld [vmem:[#allocation6 + $0x710] sm:$0xff]  ;;  %v3816_v42 = vld [vmem:[#allocation6 + $0x718] sm:$0xff] }
 0xb8a   :  { %v3820_v61 = vld [vmem:[#allocation6 + $0x738] sm:$0xff] }
 0xb8b   :  { %v3654_v27 = vadd.f32 %v3653_v32, %v3652_v5  ;;  %v11115_v5 = vpack.c.bf16 %v3816_v42, %v3815_v41  ;;  %v3817_v32 = vld [vmem:[#allocation6 + $0x720] sm:$0xff]  ;;  %v4451_v40 = vld [vmem:[#allocation6 + $0x9d8] sm:$0xff]  ;;  %v4453_v42 = vld [vmem:[#allocation6 + $0x9e8] sm:$0xff] }
 0xb8c   :  { %v4452_v41 = vld [vmem:[#allocation6 + $0x9e0] sm:$0xff] }
 0xb8d   :  { %v3655_v63 = vmul.f32 0.5, %v3654_v27  ;;  %v3818_v27 = vld [vmem:[#allocation6 + $0x728] sm:$0xff] }
 0xb8f   :  { %v3662_v47 = vadd.f32 1e-05, %v3655_v63  ;;  %v11119_v63 = vpack.c.bf16 %v3818_v27, %v3817_v32  ;;  %v4455_v32 = vld [vmem:[#allocation6 + $0x9f8] sm:$0xff] }
 0xb91   :  { %11862 = vrsqrt.f32 %v3662_v47  ;;  %v3819_v47 = vld [vmem:[#allocation6 + $0x730] sm:$0xff] }
 0xb9b   :  { %v11863_v43 = vpop.eup %11862 }
 0xb9c   :  { %v3664_v34 = vmul.f32 %v11863_v43, %v3660_v51  ;;  %v3665_v45 = vmul.f32 %v11863_v43, %v3661_v15  ;;  %v11123_v51 = vpack.c.bf16 %v3820_v61, %v3819_v47  ;;  %v3822_v15 = vld [vmem:[#allocation6 + $0x748] sm:$0xff] }
 0xb9d   :  { %v4424_v47 = vld [vmem:[#allocation6 + $0x908] sm:$0xff] }
 0xb9e   :  { %v3670_v49 = vadd.f32 %v3669_v53, %v3664_v34  ;;  %v3671_v50 = vadd.f32 %v3669_v53, %v3665_v45  ;;  %v3821_v53 = vld [vmem:[#allocation6 + $0x740] sm:$0xff]  ;;  %v3823_v34 = vld [vmem:[#allocation6 + $0x750] sm:$0xff]  ;;  %v3824_v45 = vld [vmem:[#allocation6 + $0x758] sm:$0xff] }
 0xb9f   :  { %v11127_v43 = vpack.c.bf16 %v3822_v15, %v3821_v53  ;;  %v11131_v46 = vpack.c.bf16 %v3824_v45, %v3823_v34  ;;  %v4426_v53 = vld [vmem:[#allocation6 + $0x918] sm:$0xff]  ;;  %v4428_v34 = vld [vmem:[#allocation6 + $0x928] sm:$0xff] }
 0xba0   :  { %9581 = vmatpush3.msra.mxu0 %v3670_v49 }
 0xba1   :  { %9583 = vmatmul.mubr.msk.f32.vlgmr.msra.gmra.mrb[38].mxu0 %vm2512_vm1, %v12416_v44  ;;  %9585 = vmatprep.subr.mxu0 %v12027_v29 }
 0xba2   :  { %9586 = vmatpush3.msra.mxu0 %v3671_v50  ;;  %9587 = vmatprep.mubr.msk.f32.mxu0 %vm12026_vm2, %v12027_v29 }
 0xba3   :  { %11080 = vmatprep.subr.bf16.mxu0 %v11079_v58 }
 0xba5   :  { %9588 = vmatmul.mubr.msk.f32.vlgmr.msra.gmra.mrb[40].mxu0 %vm2512_vm1, %v12418_v59 }
 0xba6   :  { %11082 = vmatpush3.bf16.msra.mxu0 %v11079_v58  ;;  %9622 = vmatprep.mubr.f32.mxu0 %v3670_v49  ;;  %v3826_v49 = vld [vmem:[#allocation6 + $0x768] sm:$0xff] }
 0xba7   :  { %11084 = vmatprep.subr.bf16.mxu0 %v11083_v10  ;;  %v11135_v58 = vpack.c.bf16 %v3826_v49, %v3825_v48  ;;  %v4430_v48 = vld [vmem:[#allocation6 + $0x938] sm:$0xff] }
 0xbaa   :  { %11086 = vmatpush3.bf16.msra.mxu0 %v11083_v10  ;;  %v4440_v10 = vld [vmem:[#allocation6 + $0x980] sm:$0xff] }
 0xbab   :  { %11088 = vmatprep.subr.bf16.mxu0 %v11087_v0  ;;  %v11207_v25 = vpack.c.bf16 %v4441_v14, %v4440_v10  ;;  %v4434_v10 = vld [vmem:[#allocation6 + $0x958] sm:$0xff]  ;;  %v4435_v14 = vld [vmem:[#allocation6 + $0x960] sm:$0xff] }
 0xbae   :  { %11090 = vmatpush3.bf16.msra.mxu0 %v11087_v0 }
 0xbaf   :  { %11092 = vmatprep.subr.bf16.mxu0 %v11091_v17 }
 0xbb2   :  { %11094 = vmatpush3.bf16.msra.mxu0 %v11091_v17 }
 0xbb3   :  { %11096 = vmatprep.subr.bf16.mxu0 %v11095_v21 }
 0xbb6   :  { %11098 = vmatpush3.bf16.msra.mxu0 %v11095_v21  ;;  %v4444_v21 = vld [vmem:[#allocation6 + $0x9a0] sm:$0xff] }
 0xbb7   :  { %11100 = vmatprep.subr.bf16.mxu0 %v11099_v13 }
 0xbba   :  { %11102 = vmatpush3.bf16.msra.mxu0 %v11099_v13  ;;  %v11215_v13 = vpack.c.bf16 %v4445_v23, %v4444_v21 }
 0xbbb   :  { %11104 = vmatprep.subr.bf16.mxu0 %v11103_v62 }
 0xbbe   :  { %11106 = vmatpush3.bf16.msra.mxu0 %v11103_v62  ;;  %v11219_v62 = vpack.c.bf16 %v4447_v6, %v4446_v31 }
 0xbbf   :  { %11108 = vmatprep.subr.bf16.mxu0 %v11107_v39 }
 0xbc2   :  { %11110 = vmatpush3.bf16.msra.mxu0 %v11107_v39  ;;  %v11223_v39 = vpack.c.bf16 %v4449_v38, %v4448_v35 }
 0xbc3   :  { %11112 = vmatprep.subr.bf16.mxu0 %v11111_v4 }
 0xbc5   :  { %9623 = vmatmul.mubr.f32.vlgmr.msra.gmra.mrb[42].mxu0 %v3671_v50  ;;  %v3827_v50 = vld [vmem:[#allocation6 + $0x770] sm:$0xff] }
 0xbc6   :  { %11114 = vmatpush3.bf16.msra.mxu0 %v11111_v4  ;;  %v11139_v52 = vpack.c.bf16 %v3828_v60, %v3827_v50  ;;  %v11227_v4 = vpack.c.bf16 %v4451_v40, %v4450_v28  ;;  %v4432_v50 = vld [vmem:[#allocation6 + $0x948] sm:$0xff] }
 0xbc7   :  { %11116 = vmatprep.subr.bf16.mxu0 %v11115_v5 }
 0xbca   :  { %11118 = vmatpush3.bf16.msra.mxu0 %v11115_v5  ;;  %v4454_v5 = vld [vmem:[#allocation6 + $0x9f0] sm:$0xff] }
 0xbcb   :  { %11120 = vmatprep.subr.bf16.mxu0 %v11119_v63  ;;  %v11235_v27 = vpack.c.bf16 %v4455_v32, %v4454_v5 }
 0xbce   :  { %11122 = vmatpush3.bf16.msra.mxu0 %v11119_v63  ;;  %v4423_v63 = vld [vmem:[#allocation6 + $0x900] sm:$0xff] }
 0xbcf   :  { %11124 = vmatprep.subr.bf16.mxu0 %v11123_v51  ;;  %v11239_v61 = vpack.c.bf16 %v4424_v47, %v4423_v63 }
 0xbd2   :  { %11126 = vmatpush3.bf16.msra.mxu0 %v11123_v51  ;;  %v4425_v51 = vld [vmem:[#allocation6 + $0x910] sm:$0xff] }
 0xbd3   :  { %11128 = vmatprep.subr.bf16.mxu0 %v11127_v43  ;;  %v11243_v15 = vpack.c.bf16 %v4426_v53, %v4425_v51 }
 0xbd6   :  { %11130 = vmatpush3.bf16.msra.mxu0 %v11127_v43  ;;  %v4427_v43 = vld [vmem:[#allocation6 + $0x920] sm:$0xff] }
 0xbd7   :  { %11132 = vmatprep.subr.bf16.mxu0 %v11131_v46  ;;  %v11247_v45 = vpack.c.bf16 %v4428_v34, %v4427_v43 }
 0xbda   :  { %11134 = vmatpush3.bf16.msra.mxu0 %v11131_v46  ;;  %v4429_v46 = vld [vmem:[#allocation6 + $0x930] sm:$0xff] }
 0xbdb   :  { %11136 = vmatprep.subr.bf16.mxu0 %v11135_v58  ;;  %v11251_v49 = vpack.c.bf16 %v4430_v48, %v4429_v46  ;;  %v4205_v46 = vld [vmem:[#allocation6 + $0x880] sm:$0xff]  ;;  %v4206_v48 = vld [vmem:[#allocation6 + $0x888] sm:$0xff] }
 0xbde   :  { %11138 = vmatpush3.bf16.msra.mxu0 %v11135_v58  ;;  %v4431_v58 = vld [vmem:[#allocation6 + $0x940] sm:$0xff] }
 0xbdf   :  { %11140 = vmatprep.subr.bf16.mxu0 %v11139_v52  ;;  %v11255_v60 = vpack.c.bf16 %v4432_v50, %v4431_v58  ;;  %v11143_v58 = vpack.c.bf16 %v4206_v48, %v4205_v46 }
 0xbe2   :  { %11142 = vmatpush3.bf16.msra.mxu0 %v11139_v52  ;;  %v4433_v52 = vld [vmem:[#allocation6 + $0x950] sm:$0xff] }
 0xbe3   :  { %11208 = vmatprep.subr.bf16.mxu0 %v11207_v25 }
 0xc74   :  { %v3738_v0 = vpop.f32.mrb[38].mxu0 }
 0xc75   :  { %v9584_v17 = vpop.f32.mrb[39].mxu0  ;;  %9657 = vmatprep.mubr.f32.mxu0 %v3738_v0  ;;  %v4437_v0 = vld [vmem:[#allocation6 + $0x970] sm:$0xff] }
 0xc76   :  { %v11267_v16 = vpack.c.bf16 %v4438_v11, %v4437_v0  ;;  %v3847_v17 = vld [vmem:[#allocation8 + $0x38] sm:$0xff] }
 0xc77   :  { %v4009_v23 = vrot.slane %v3847_v17, %v12176_v9  ;;  %v4015_v6 = vrot.slane %v3847_v17, %v12179_v18  ;;  %v4023_v40 = vrot.slane %v3847_v17, %v12182_v30  ;;  %v4044_v53 = vrot.slane %v3847_v17, %v12188_v8  ;;  %v4212_v0 = vld [vmem:[#allocation6 + $0x8b8] sm:$0xff] }
 0xc78   :  { %v3808_v20 = vpop.f32.mrb[40].mxu0 }
 0xc79   :  { %v9589_v26 = vpop.f32.mrb[41].mxu0  ;;  %9658 = vmatmul.mubr.f32.vlgmr.msra.gmra.mrb[42].mxu0 %v3808_v20 }
 0xc7a   :  { %11210 = vmatpush3.bf16.msra.mxu0 %v11207_v25  ;;  %9772 = vmatprep.mubr.f32.mxu0 %v12409_v2  ;;  %v11231_v2 = vpack.c.bf16 %v4453_v42, %v4452_v41  ;;  %v4436_v25 = vld [vmem:[#allocation6 + $0x968] sm:$0xff] }
 0xc7b   :  { %11212 = vmatprep.subr.bf16.mxu0 %v11211_v19 }
 0xc7e   :  { %11214 = vmatpush3.bf16.msra.mxu0 %v11211_v19  ;;  %v4001_v19 = vrot.slane %v3847_v17, %v12173_v3 }
 0xc7f   :  { %11216 = vmatprep.subr.bf16.mxu0 %v11215_v13 }
 0xc82   :  { %11218 = vmatpush3.bf16.msra.mxu0 %v11215_v13 }
 0xc83   :  { %11220 = vmatprep.subr.bf16.mxu0 %v11219_v62 }
 0xc86   :  { %11222 = vmatpush3.bf16.msra.mxu0 %v11219_v62 }
 0xc87   :  { %11224 = vmatprep.subr.bf16.mxu0 %v11223_v39 }
 0xc8a   :  { %11226 = vmatpush3.bf16.msra.mxu0 %v11223_v39 }
 0xc8b   :  { %11228 = vmatprep.subr.bf16.mxu0 %v11227_v4 }
 0xc8e   :  { %11230 = vmatpush3.bf16.msra.mxu0 %v11227_v4 }
 0xc8f   :  { %11232 = vmatprep.subr.bf16.mxu0 %v11231_v2 }
 0xc92   :  { %11234 = vmatpush3.bf16.msra.mxu0 %v11231_v2 }
 0xc93   :  { %11236 = vmatprep.subr.bf16.mxu0 %v11235_v27 }
 0xc96   :  { %11238 = vmatpush3.bf16.msra.mxu0 %v11235_v27 }
 0xc97   :  { %11240 = vmatprep.subr.bf16.mxu0 %v11239_v61 }
 0xc99   :  { %9773 = vmatmul.mubr.f32.vlgmr.msra.gmra.mrb[44].mxu0 %v12411_v7  ;;  %v11259_v7 = vpack.c.bf16 %v4434_v10, %v4433_v52  ;;  %v4208_v52 = vld [vmem:[#allocation6 + $0x898] sm:$0xff] }
 0xc9a   :  { %11242 = vmatpush3.bf16.msra.mxu0 %v11239_v61  ;;  %9807 = vmatprep.mubr.f32.mxu0 %v12441_v54  ;;  %v11263_v54 = vpack.c.bf16 %v4436_v25, %v4435_v14  ;;  %v4034_v61 = vrot.slane %v3847_v17, %v12185_v57  ;;  %v4210_v14 = vld [vmem:[#allocation6 + $0x8a8] sm:$0xff] }
 0xc9b   :  { %11244 = vmatprep.subr.bf16.mxu0 %v11243_v15  ;;  %v4214_v17 = vld [vmem:[#allocation6 + $0x8c8] sm:$0xff] }
 0xc9e   :  { %11246 = vmatpush3.bf16.msra.mxu0 %v11243_v15 }
 0xc9f   :  { %11248 = vmatprep.subr.bf16.mxu0 %v11247_v45 }
 0xca2   :  { %11250 = vmatpush3.bf16.msra.mxu0 %v11247_v45 }
 0xca3   :  { %11252 = vmatprep.subr.bf16.mxu0 %v11251_v49 }
 0xca6   :  { %11254 = vmatpush3.bf16.msra.mxu0 %v11251_v49 }
 0xca7   :  { %11256 = vmatprep.subr.bf16.mxu0 %v11255_v60 }
 0xcaa   :  { %11258 = vmatpush3.bf16.msra.mxu0 %v11255_v60  ;;  %v4207_v60 = vld [vmem:[#allocation6 + $0x890] sm:$0xff] }
 0xcab   :  { %11260 = vmatprep.subr.bf16.mxu0 %v11259_v7  ;;  %v11147_v10 = vpack.c.bf16 %v4208_v52, %v4207_v60 }
 0xcae   :  { %11262 = vmatpush3.bf16.msra.mxu0 %v11259_v7  ;;  %v4209_v7 = vld [vmem:[#allocation6 + $0x8a0] sm:$0xff] }
 0xcaf   :  { %11264 = vmatprep.subr.bf16.mxu0 %v11263_v54  ;;  %v11151_v25 = vpack.c.bf16 %v4210_v14, %v4209_v7 }
 0xcb2   :  { %11266 = vmatpush3.bf16.msra.mxu0 %v11263_v54  ;;  %v4211_v54 = vld [vmem:[#allocation6 + $0x8b0] sm:$0xff] }
 0xcb3   :  { %11268 = vmatprep.subr.bf16.mxu0 %v11267_v16  ;;  %v11155_v11 = vpack.c.bf16 %v4212_v0, %v4211_v54  ;;  %v4195_v54 = vld [vmem:[#allocation6 + $0x838] sm:$0xff] }
 0xcb6   :  { %11270 = vmatpush3.bf16.msra.mxu0 %v11267_v16  ;;  %v4213_v16 = vld [vmem:[#allocation6 + $0x8c0] sm:$0xff] }
 0xcb7   :  { %9815 = vmatprep.subr.mxu0 %v12027_v29 }
 0xcb9   :  { %9808 = vmatmul.mubr.f32.vlgmr.msra.gmra.mrb[44].mxu0 %v12443_v22 }
 0xcba   :  { %9817 = vmatprep.mubr.msk.f32.mxu0 %vm12026_vm2, %v12027_v29 }
 0xd4c   :  { %v9659_v20 = vpop.f32.mrb[42].mxu0 }
 0xd4d   :  { %v4003_v21 = vadd.f32 %v9659_v20, %v4001_v19  ;;  %v3989_v26 = vpop.f32.mrb[43].mxu0  ;;  %v4215_v20 = vld [vmem:[#allocation6 + $0x8d0] sm:$0xff] }
 0xd4e   :  { %v4002_v13 = vadd.f32 %v4001_v19, %v3989_v26  ;;  %v11159_v19 = vpack.c.bf16 %v4214_v17, %v4213_v16 }
 0xd4f   :  { %v4005_v31 = vmax.f32 %v4003_v21, 0.0  ;;  %v4216_v21 = vld [vmem:[#allocation6 + $0x8d8] sm:$0xff] }
 0xd50   :  { %v4004_v62 = vmax.f32 %v4002_v13, 0.0  ;;  %v11163_v26 = vpack.c.bf16 %v4216_v21, %v4215_v20  ;;  %v4196_v20 = vld [vmem:[#allocation6 + $0x840] sm:$0xff]  ;;  %v4197_v21 = vld [vmem:[#allocation6 + $0x848] sm:$0xff] }
 0xd51   :  { %v4011_v35 = vmul.f32 %v4009_v23, %v4005_v31  ;;  %v4217_v31 = vld [vmem:[#allocation6 + $0x8e0] sm:$0xff] }
 0xd52   :  { %v4010_v38 = vmul.f32 %v4009_v23, %v4004_v62  ;;  %v12485_v23 = vld [vmem:[#allocation8 + $0x48] sm:$0xff] }
 0xd53   :  { %v4017_v39 = vadd.f32 %v4015_v6, %v4011_v35  ;;  %v4611_v13 = vrot.slane %v12485_v23, %v12173_v3  ;;  %v4644_v52 = vrot.slane %v12485_v23, %v12185_v57 }
 0xd54   :  { %v4016_v22 = vadd.f32 %v4015_v6, %v4010_v38  ;;  %v4218_v6 = vld [vmem:[#allocation6 + $0x8e8] sm:$0xff] }
 0xd55   :  { %v11167_v35 = vpack.c.bf16 %v4218_v6, %v4217_v31  ;;  %v4198_v31 = vld [vmem:[#allocation6 + $0x850] sm:$0xff]  ;;  %v4199_v6 = vld [vmem:[#allocation6 + $0x858] sm:$0xff] }
 0xd56   :  { %v4018_v28 = vadd.f32 %v4017_v39, %v4016_v22 }
 0xd58   :  { %v4019_v4 = vmul.f32 0.5, %v4018_v28  ;;  %v4219_v28 = vld [vmem:[#allocation6 + $0x8f0] sm:$0xff] }
 0xd5a   :  { %v4024_v41 = vmul.f32 %v4023_v40, %v4019_v4  ;;  %v4220_v40 = vld [vmem:[#allocation6 + $0x8f8] sm:$0xff] }
 0xd5c   :  { %v4025_v42 = vsub.f32 %v4016_v22, %v4024_v41  ;;  %v4026_v2 = vsub.f32 %v4017_v39, %v4024_v41  ;;  %v4619_v39 = vrot.slane %v12485_v23, %v12176_v9 }
 0xd5e   :  { %v4027_v5 = vmul.f32 %v4025_v42, %v4025_v42  ;;  %v4028_v32 = vmul.f32 %v4026_v2, %v4026_v2  ;;  %v4035_v51 = vmul.f32 %v4034_v61, %v4025_v42  ;;  %v4036_v15 = vmul.f32 %v4034_v61, %v4026_v2 }
 0xd5f   :  { %v4625_v42 = vrot.slane %v12485_v23, %v12179_v18 }
 0xd60   :  { %v4029_v27 = vadd.f32 %v4028_v32, %v4027_v5  ;;  %v11171_v5 = vpack.c.bf16 %v4220_v40, %v4219_v28  ;;  %v4654_v28 = vrot.slane %v12485_v23, %v12188_v8 }
 0xd62   :  { %v4030_v63 = vmul.f32 0.5, %v4029_v27  ;;  %v4188_v27 = vld [vmem:[#allocation6 + $0x800] sm:$0xff] }
 0xd64   :  { %v4037_v47 = vadd.f32 1e-05, %v4030_v63  ;;  %v4189_v63 = vld [vmem:[#allocation6 + $0x808] sm:$0xff] }
 0xd66   :  { %11864 = vrsqrt.f32 %v4037_v47 }
 0xd70   :  { %v11865_v43 = vpop.eup %11864 }
 0xd71   :  { %v4039_v34 = vmul.f32 %v11865_v43, %v4035_v51  ;;  %v4040_v45 = vmul.f32 %v11865_v43, %v4036_v15  ;;  %v4190_v15 = vld [vmem:[#allocation6 + $0x810] sm:$0xff]  ;;  %v4191_v43 = vld [vmem:[#allocation6 + $0x818] sm:$0xff] }
 0xd72   :  { %v11179_v48 = vpack.c.bf16 %v4191_v43, %v4190_v15  ;;  %v4817_v15 = vld [vmem:[#allocation6 + $0xa90] sm:$0xff]  ;;  %v4818_v43 = vld [vmem:[#allocation6 + $0xa98] sm:$0xff] }
 0xd73   :  { %v4045_v49 = vadd.f32 %v4044_v53, %v4039_v34  ;;  %v12475_v50 = vadd.f32 %v4044_v53, %v4040_v45  ;;  %v11175_v53 = vpack.c.bf16 %v4189_v63, %v4188_v27  ;;  %v4633_v45 = vrot.slane %v12485_v23, %v12182_v30  ;;  %v4202_v23 = vld [vmem:[#allocation6 + $0x870] sm:$0xff]  ;;  %v4815_v63 = vld [vmem:[#allocation6 + $0xa80] sm:$0xff] }
 0xd75   :  { %9661 = vmatpush3.msra.mxu1 %v4045_v49 }
 0xd76   :  { %9663 = vmatmul.mubr.msk.f32.vlgmr.msra.gmra.mrb[28].mxu1 %vm2512_vm1, %v12416_v44  ;;  %9665 = vmatprep.subr.mxu1 %v12027_v29 }
 0xd77   :  { %9666 = vmatpush3.msra.mxu1 %v12475_v50  ;;  %9667 = vmatprep.mubr.msk.f32.mxu1 %vm12026_vm2, %v12027_v29 }
 0xd78   :  { %11144 = vmatprep.subr.bf16.mxu1 %v11143_v58 }
 0xd7a   :  { %9668 = vmatmul.mubr.msk.f32.vlgmr.msra.gmra.mrb[30].mxu1 %vm2512_vm1, %v12418_v59 }
 0xd7b   :  { %11146 = vmatpush3.bf16.msra.mxu1 %v11143_v58  ;;  %9702 = vmatprep.mubr.f32.mxu1 %v4045_v49  ;;  %v4192_v49 = vld [vmem:[#allocation6 + $0x820] sm:$0xff]  ;;  %v4193_v58 = vld [vmem:[#allocation6 + $0x828] sm:$0xff] }
 0xd7c   :  { %11148 = vmatprep.subr.bf16.mxu1 %v11147_v10  ;;  %v11183_v14 = vpack.c.bf16 %v4193_v58, %v4192_v49  ;;  %v4821_v58 = vld [vmem:[#allocation6 + $0xab0] sm:$0xff] }
 0xd7f   :  { %11150 = vmatpush3.bf16.msra.mxu1 %v11147_v10 }
 0xd80   :  { %11152 = vmatprep.subr.bf16.mxu1 %v11151_v25 }
 0xd83   :  { %11154 = vmatpush3.bf16.msra.mxu1 %v11151_v25  ;;  %v4194_v25 = vld [vmem:[#allocation6 + $0x830] sm:$0xff] }
 0xd84   :  { %11156 = vmatprep.subr.bf16.mxu1 %v11155_v11 }
 0xd87   :  { %11158 = vmatpush3.bf16.msra.mxu1 %v11155_v11 }
 0xd88   :  { %11160 = vmatprep.subr.bf16.mxu1 %v11159_v19 }
 0xd8b   :  { %11162 = vmatpush3.bf16.msra.mxu1 %v11159_v19  ;;  %v11187_v19 = vpack.c.bf16 %v4195_v54, %v4194_v25  ;;  %v4825_v25 = vld [vmem:[#allocation6 + $0xad0] sm:$0xff]  ;;  %v4826_v54 = vld [vmem:[#allocation6 + $0xad8] sm:$0xff] }
 0xd8c   :  { %v9809_v62 = vpop.f32.mrb[44].mxu0  ;;  %11164 = vmatprep.subr.bf16.mxu1 %v11163_v26 }
 0xd8d   :  { %v4613_v38 = vadd.f32 %v9809_v62, %v4611_v13  ;;  %v4599_v22 = vpop.f32.mrb[45].mxu0  ;;  %v11195_v62 = vpack.c.bf16 %v4199_v6, %v4198_v31  ;;  %v4800_v31 = vld [vmem:[#allocation6 + $0xa10] sm:$0xff]  ;;  %v4801_v6 = vld [vmem:[#allocation6 + $0xa18] sm:$0xff] }
 0xd8e   :  { %v4612_v4 = vadd.f32 %v4611_v13, %v4599_v22 }
 0xd8f   :  { %v4615_v41 = vmax.f32 %v4613_v38, 0.0  ;;  %11166 = vmatpush3.bf16.msra.mxu1 %v11163_v26  ;;  %v4201_v38 = vld [vmem:[#allocation6 + $0x868] sm:$0xff] }
 0xd90   :  { %v4614_v2 = vmax.f32 %v4612_v4, 0.0  ;;  %11168 = vmatprep.subr.bf16.mxu1 %v11167_v35 }
 0xd91   :  { %v4621_v32 = vmul.f32 %v4619_v39, %v4615_v41 }
 0xd92   :  { %v4620_v47 = vmul.f32 %v4619_v39, %v4614_v2 }
 0xd93   :  { %v4627_v61 = vadd.f32 %v4625_v42, %v4621_v32  ;;  %11170 = vmatpush3.bf16.msra.mxu1 %v11167_v35  ;;  %v4200_v35 = vld [vmem:[#allocation6 + $0x860] sm:$0xff] }
 0xd94   :  { %v4626_v51 = vadd.f32 %v4625_v42, %v4620_v47  ;;  %11172 = vmatprep.subr.bf16.mxu1 %v11171_v5  ;;  %v11199_v39 = vpack.c.bf16 %v4201_v38, %v4200_v35  ;;  %v4816_v47 = vld [vmem:[#allocation6 + $0xa88] sm:$0xff]  ;;  %v4802_v35 = vld [vmem:[#allocation6 + $0xa20] sm:$0xff] }
 0xd95   :  { %v4803_v38 = vld [vmem:[#allocation6 + $0xa28] sm:$0xff] }
 0xd96   :  { %v4628_v34 = vadd.f32 %v4627_v61, %v4626_v51 }
 0xd97   :  { %11174 = vmatpush3.bf16.msra.mxu1 %v11171_v5  ;;  %v4203_v5 = vld [vmem:[#allocation6 + $0x878] sm:$0xff] }
 0xd98   :  { %v4629_v46 = vmul.f32 0.5, %v4628_v34  ;;  %11176 = vmatprep.subr.bf16.mxu1 %v11175_v53  ;;  %v11203_v32 = vpack.c.bf16 %v4203_v5, %v4202_v23  ;;  %v4808_v23 = vld [vmem:[#allocation6 + $0xa50] sm:$0xff]  ;;  %v4809_v5 = vld [vmem:[#allocation6 + $0xa58] sm:$0xff] }
 0xd9a   :  { %v4634_v60 = vmul.f32 %v4633_v45, %v4629_v46  ;;  %9703 = vmatmul.mubr.f32.vlgmr.msra.gmra.mrb[32].mxu1 %v12475_v50  ;;  %v11191_v50 = vpack.c.bf16 %v4197_v21, %v4196_v20  ;;  %v11275_v45 = vpack.c.bf16 %v4818_v43, %v4817_v15  ;;  %v4819_v46 = vld [vmem:[#allocation6 + $0xaa0] sm:$0xff]  ;;  %v4830_v20 = vld [vmem:[#allocation6 + $0xaf8] sm:$0xff] }
 0xd9b   :  { %11178 = vmatpush3.bf16.msra.mxu1 %v11175_v53  ;;  %v4222_v43 = vld [vmem:[#allocation8 + $0x40] sm:$0xff] }
 0xd9c   :  { %v4635_v10 = vsub.f32 %v4626_v51, %v4634_v60  ;;  %v4636_v7 = vsub.f32 %v4627_v61, %v4634_v60  ;;  %11180 = vmatprep.subr.bf16.mxu1 %v11179_v48  ;;  %v11271_v51 = vpack.c.bf16 %v4816_v47, %v4815_v63  ;;  %v4822_v60 = vld [vmem:[#allocation6 + $0xab8] sm:$0xff] }
 0xd9e   :  { %v4637_v0 = vmul.f32 %v4635_v10, %v4635_v10  ;;  %v4638_v11 = vmul.f32 %v4636_v7, %v4636_v7  ;;  %v4645_v16 = vmul.f32 %v4644_v52, %v4635_v10  ;;  %v4646_v22 = vmul.f32 %v4644_v52, %v4636_v7  ;;  %v4823_v10 = vld [vmem:[#allocation6 + $0xac0] sm:$0xff]  ;;  %v4824_v7 = vld [vmem:[#allocation6 + $0xac8] sm:$0xff] }
 0xd9f   :  { %11182 = vmatpush3.bf16.msra.mxu1 %v11179_v48  ;;  %v4820_v48 = vld [vmem:[#allocation6 + $0xaa8] sm:$0xff]  ;;  %v11283_v52 = vpack.c.bf16 %v4822_v60, %v4821_v58 }
 0xda0   :  { %v4639_v17 = vadd.f32 %v4638_v11, %v4637_v0  ;;  %11184 = vmatprep.subr.bf16.mxu1 %v11183_v14  ;;  %v11279_v49 = vpack.c.bf16 %v4820_v48, %v4819_v46  ;;  %v11291_v0 = vpack.c.bf16 %v4826_v54, %v4825_v25  ;;  %v4827_v11 = vld [vmem:[#allocation6 + $0xae0] sm:$0xff]  ;;  %v4384_v48 = vrot.slane %v4222_v43, %v12176_v9 }
 0xda2   :  { %v4640_v26 = vmul.f32 0.5, %v4639_v17 }
 0xda3   :  { %11186 = vmatpush3.bf16.msra.mxu1 %v11183_v14  ;;  %v11287_v14 = vpack.c.bf16 %v4824_v7, %v4823_v10 }
 0xda4   :  { %v4647_v13 = vadd.f32 1e-05, %v4640_v26  ;;  %11188 = vmatprep.subr.bf16.mxu1 %v11187_v19  ;;  %v4798_v26 = vld [vmem:[#allocation6 + $0xa00] sm:$0xff] }
 0xda6   :  { %11866 = vrsqrt.f32 %v4647_v13  ;;  %v4799_v13 = vld [vmem:[#allocation6 + $0xa08] sm:$0xff] }
 0xda7   :  { %11190 = vmatpush3.bf16.msra.mxu1 %v11187_v19  ;;  %v4829_v19 = vld [vmem:[#allocation6 + $0xaf0] sm:$0xff] }
 0xda8   :  { %11192 = vmatprep.subr.bf16.mxu1 %v11191_v50  ;;  %v11299_v21 = vpack.c.bf16 %v4830_v20, %v4829_v19 }
 0xdab   :  { %11194 = vmatpush3.bf16.msra.mxu1 %v11191_v50  ;;  %v11303_v50 = vpack.c.bf16 %v4799_v13, %v4798_v26 }
 0xdac   :  { %11196 = vmatprep.subr.bf16.mxu1 %v11195_v62 }
 0xdaf   :  { %11198 = vmatpush3.bf16.msra.mxu1 %v11195_v62  ;;  %v11307_v62 = vpack.c.bf16 %v4801_v6, %v4800_v31 }
 0xdb0   :  { %v11867_v40 = vpop.eup %11866  ;;  %11200 = vmatprep.subr.bf16.mxu1 %v11199_v39 }
 0xdb1   :  { %v4650_v4 = vmul.f32 %v11867_v40, %v4646_v22  ;;  %v4649_v41 = vmul.f32 %v11867_v40, %v4645_v16  ;;  %v4828_v16 = vld [vmem:[#allocation6 + $0xae8] sm:$0xff]  ;;  %v4804_v22 = vld [vmem:[#allocation6 + $0xa30] sm:$0xff] }
 0xdb2   :  { %v11295_v17 = vpack.c.bf16 %v4828_v16, %v4827_v11 }
 0xdb3   :  { %v12500_v42 = vadd.f32 %v4654_v28, %v4650_v4  ;;  %11202 = vmatpush3.bf16.msra.mxu1 %v11199_v39  ;;  %v4655_v2 = vadd.f32 %v4654_v28, %v4649_v41  ;;  %v11311_v39 = vpack.c.bf16 %v4803_v38, %v4802_v35  ;;  %v4805_v28 = vld [vmem:[#allocation6 + $0xa38] sm:$0xff]  ;;  %v4806_v4 = vld [vmem:[#allocation6 + $0xa40] sm:$0xff]  ;;  %v4807_v41 = vld [vmem:[#allocation6 + $0xa48] sm:$0xff]  ;;  %v4409_v35 = vrot.slane %v4222_v43, %v12185_v57 }
 0xdb4   :  { %11204 = vmatprep.subr.bf16.mxu1 %v11203_v32  ;;  %v11315_v40 = vpack.c.bf16 %v4805_v28, %v4804_v22 }
 0xdb5   :  { %9816 = vmatpush3.msra.mxu0 %v12500_v42 }
 0xdb6   :  { %9818 = vmatmul.mubr.msk.f32.vlgmr.msra.gmra.mrb[46].mxu0 %vm2512_vm1, %v12418_v59  ;;  %9890 = vmatprep.subr.mxu0 %v12027_v29 }
 0xdb7   :  { %9892 = vmatprep.mubr.msk.f32.mxu0 %vm12026_vm2, %v12027_v29  ;;  %11206 = vmatpush3.bf16.msra.mxu1 %v11203_v32  ;;  %v11323_v32 = vpack.c.bf16 %v4809_v5, %v4808_v23 }
 0xdb8   :  { %9810 = vmatprep.subr.mxu1 %v12027_v29 }
 0xe49   :  { %v4113_v27 = vpop.f32.mrb[28].mxu1 }
 0xe4a   :  { %v9664_v61 = vpop.f32.mrb[29].mxu1  ;;  %9737 = vmatprep.mubr.f32.mxu1 %v4113_v27  ;;  %v4810_v27 = vld [vmem:[#allocation6 + $0xa60] sm:$0xff] }
 0xe4d   :  { %v4183_v53 = vpop.f32.mrb[30].mxu1 }
 0xe4e   :  { %v9669_v34 = vpop.f32.mrb[31].mxu1  ;;  %9738 = vmatmul.mubr.f32.vlgmr.msra.gmra.mrb[32].mxu1 %v4183_v53  ;;  %v4813_v53 = vld [vmem:[#allocation6 + $0xa78] sm:$0xff] }
 0xe4f   :  { %9811 = vmatpush3.msra.mxu1 %v4655_v2  ;;  %9812 = vmatprep.mubr.msk.f32.mxu1 %vm12026_vm2, %v12027_v29  ;;  %v4376_v34 = vrot.slane %v4222_v43, %v12173_v3 }
 0xe50   :  { %11272 = vmatprep.subr.bf16.mxu1 %v11271_v51 }
 0xe52   :  { %9813 = vmatmul.mubr.msk.f32.vlgmr.msra.gmra.mrb[34].mxu1 %vm2512_vm1, %v12416_v44 }
 0xe53   :  { %11274 = vmatpush3.bf16.msra.mxu1 %v11271_v51  ;;  %9852 = vmatprep.mubr.f32.mxu1 %v4655_v2  ;;  %v11319_v2 = vpack.c.bf16 %v4807_v41, %v4806_v4  ;;  %v4812_v51 = vld [vmem:[#allocation6 + $0xa70] sm:$0xff] }
 0xe54   :  { %11276 = vmatprep.subr.bf16.mxu1 %v11275_v45  ;;  %v11331_v15 = vpack.c.bf16 %v4813_v53, %v4812_v51 }
 0xe57   :  { %11278 = vmatpush3.bf16.msra.mxu1 %v11275_v45 }
 0xe58   :  { %11280 = vmatprep.subr.bf16.mxu1 %v11279_v49 }
 0xe5b   :  { %11282 = vmatpush3.bf16.msra.mxu1 %v11279_v49 }
 0xe5c   :  { %11284 = vmatprep.subr.bf16.mxu1 %v11283_v52 }
 0xe5f   :  { %11286 = vmatpush3.bf16.msra.mxu1 %v11283_v52  ;;  %v4390_v52 = vrot.slane %v4222_v43, %v12179_v18 }
 0xe60   :  { %11288 = vmatprep.subr.bf16.mxu1 %v11287_v14 }
 0xe63   :  { %11290 = vmatpush3.bf16.msra.mxu1 %v11287_v14 }
 0xe64   :  { %11292 = vmatprep.subr.bf16.mxu1 %v11291_v0 }
 0xe67   :  { %11294 = vmatpush3.bf16.msra.mxu1 %v11291_v0 }
 0xe68   :  { %11296 = vmatprep.subr.bf16.mxu1 %v11295_v17 }
 0xe6b   :  { %11298 = vmatpush3.bf16.msra.mxu1 %v11295_v17  ;;  %v4398_v17 = vrot.slane %v4222_v43, %v12182_v30 }
 0xe6c   :  { %11300 = vmatprep.subr.bf16.mxu1 %v11299_v21 }
 0xe6f   :  { %11302 = vmatpush3.bf16.msra.mxu1 %v11299_v21 }
 0xe70   :  { %11304 = vmatprep.subr.bf16.mxu1 %v11303_v50 }
 0xe72   :  { %9853 = vmatmul.mubr.f32.vlgmr.msra.gmra.mrb[36].mxu1 %v12500_v42  ;;  %v4811_v42 = vld [vmem:[#allocation6 + $0xa68] sm:$0xff] }
 0xe73   :  { %11306 = vmatpush3.bf16.msra.mxu1 %v11303_v50  ;;  %v11327_v63 = vpack.c.bf16 %v4811_v42, %v4810_v27 }
 0xe74   :  { %11308 = vmatprep.subr.bf16.mxu1 %v11307_v62 }
 0xe77   :  { %11310 = vmatpush3.bf16.msra.mxu1 %v11307_v62 }
 0xe78   :  { %11312 = vmatprep.subr.bf16.mxu1 %v11311_v39 }
 0xe7b   :  { %11314 = vmatpush3.bf16.msra.mxu1 %v11311_v39  ;;  %v4419_v39 = vrot.slane %v4222_v43, %v12188_v8 }
 0xe7c   :  { %11316 = vmatprep.subr.bf16.mxu1 %v11315_v40 }
 0xe7f   :  { %11318 = vmatpush3.bf16.msra.mxu1 %v11315_v40 }
 0xe80   :  { %11320 = vmatprep.subr.bf16.mxu1 %v11319_v2 }
 0xe83   :  { %11322 = vmatpush3.bf16.msra.mxu1 %v11319_v2 }
 0xe84   :  { %11324 = vmatprep.subr.bf16.mxu1 %v11323_v32 }
 0xe87   :  { %11326 = vmatpush3.bf16.msra.mxu1 %v11323_v32 }
 0xe88   :  { %11328 = vmatprep.subr.bf16.mxu1 %v11327_v63 }
 0xe89   :  { %v4793_v47 = vpop.f32.mrb[46].mxu0 }
 0xe8a   :  { %v9819_v61 = vpop.f32.mrb[47].mxu0 }
 0xe8b   :  { %11330 = vmatpush3.bf16.msra.mxu1 %v11327_v63 }
 0xe8c   :  { %11332 = vmatprep.subr.bf16.mxu1 %v11331_v15 }
 0xe8f   :  { %11334 = vmatpush3.bf16.msra.mxu1 %v11331_v15 }
 0xe90   :  { %9970 = vmatprep.subr.mxu1 %v12027_v29 }
 0xf21   :  { %v9739_v45 = vpop.f32.mrb[32].mxu1 }
 0xf22   :  { %v4378_v46 = vadd.f32 %v9739_v45, %v4376_v34  ;;  %v4364_v49 = vpop.f32.mrb[33].mxu1 }
 0xf23   :  { %v4377_v58 = vadd.f32 %v4376_v34, %v4364_v49  ;;  %v4832_v34 = vld [vmem:[#allocation8 + $0x50] sm:$0xff] }
 0xf24   :  { %v4380_v60 = vmax.f32 %v4378_v46, 0.0  ;;  %v4986_v45 = vrot.slane %v4832_v34, %v12173_v3  ;;  %v4994_v49 = vrot.slane %v4832_v34, %v12176_v9 }
 0xf25   :  { %v4379_v10 = vmax.f32 %v4377_v58, 0.0  ;;  %v4723_v7 = vpop.f32.mrb[34].mxu1 }
 0xf26   :  { %v4386_v14 = vmul.f32 %v4384_v48, %v4380_v60  ;;  %v9814_v25 = vpop.f32.mrb[35].mxu1  ;;  %9887 = vmatprep.mubr.f32.mxu1 %v4723_v7 }
 0xf27   :  { %v4385_v54 = vmul.f32 %v4384_v48, %v4379_v10  ;;  %9888 = vmatmul.mubr.f32.vlgmr.msra.gmra.mrb[36].mxu1 %v4793_v47  ;;  %v5000_v10 = vrot.slane %v4832_v34, %v12179_v18 }
 0xf28   :  { %v4392_v0 = vadd.f32 %v4390_v52, %v4386_v14  ;;  %9972 = vmatprep.mubr.msk.f32.mxu1 %vm12026_vm2, %v12027_v29 }
 0xf29   :  { %v4391_v11 = vadd.f32 %v4390_v52, %v4385_v54 }
 0xf2b   :  { %v4393_v16 = vadd.f32 %v4392_v0, %v4391_v11 }
 0xf2d   :  { %v4394_v19 = vmul.f32 0.5, %v4393_v16  ;;  %v5008_v16 = vrot.slane %v4832_v34, %v12182_v30 }
 0xf2f   :  { %v4399_v20 = vmul.f32 %v4398_v17, %v4394_v19 }
 0xf31   :  { %v4400_v21 = vsub.f32 %v4391_v11, %v4399_v20  ;;  %v4401_v26 = vsub.f32 %v4392_v0, %v4399_v20 }
 0xf33   :  { %v4402_v13 = vmul.f32 %v4400_v21, %v4400_v21  ;;  %v4403_v50 = vmul.f32 %v4401_v26, %v4401_v26  ;;  %v4411_v38 = vmul.f32 %v4409_v35, %v4401_v26  ;;  %v4410_v22 = vmul.f32 %v4409_v35, %v4400_v21 }
 0xf35   :  { %v4404_v31 = vadd.f32 %v4403_v50, %v4402_v13 }
 0xf37   :  { %v4405_v6 = vmul.f32 0.5, %v4404_v31 }
 0xf39   :  { %v4412_v62 = vadd.f32 1e-05, %v4405_v6 }
 0xf3b   :  { %11868 = vrsqrt.f32 %v4412_v62  ;;  %v5019_v62 = vrot.slane %v4832_v34, %v12185_v57 }
 0xf45   :  { %v11869_v28 = vpop.eup %11868 }
 0xf46   :  { %v4415_v40 = vmul.f32 %v11869_v28, %v4411_v38  ;;  %v4414_v4 = vmul.f32 %v11869_v28, %v4410_v22  ;;  %v5029_v38 = vrot.slane %v4832_v34, %v12188_v8 }
 0xf48   :  { %v4421_v41 = vadd.f32 %v4419_v39, %v4415_v40  ;;  %v4420_v2 = vadd.f32 %v4419_v39, %v4414_v4  ;;  %v5190_v4 = vld [vmem:[#allocation6 + $0xb80] sm:$0xff] }
 0xf4a   :  { %v5411_v23 = vsel %vm5407_vm3, %v4421_v41, -inf  ;;  %v5408_v5 = vsel %vm5407_vm3, %v4420_v2, -inf }
 0xf4b   :  { %5412 = vmax.xlane.f32.xlu1 %v5411_v23  ;;  %5409 = vmax.xlane.f32.xlu0 %v5408_v5 }
 0xfd8   :  { %v5413_v32 = vpop.xlane.xlu1 %5412  ;;  %v5410_v27 = vpop.xlane.xlu0 %5409 }
 0xfd9   :  { %v5415_v42 = vsub.f32 %v4421_v41, %v5413_v32  ;;  %v5414_v63 = vsub.f32 %v4420_v2, %v5410_v27  ;;  %v5191_v41 = vld [vmem:[#allocation6 + $0xb88] sm:$0xff]  ;;  %v5192_v32 = vld [vmem:[#allocation6 + $0xb90] sm:$0xff]  ;;  %v5193_v27 = vld [vmem:[#allocation6 + $0xb98] sm:$0xff] }
 0xfda   :  { %v11335_v23 = vpack.c.bf16 %v5191_v41, %v5190_v4  ;;  %v5186_v4 = vld [vmem:[#allocation6 + $0xb68] sm:$0xff] }
 0xfdb   :  { %v5418_v47 = vmul.f32 1.442695, %v5415_v42  ;;  %v5416_v61 = vmul.f32 1.442695, %v5414_v63  ;;  %v11339_v42 = vpack.c.bf16 %v5193_v27, %v5192_v32  ;;  %v5194_v63 = vld [vmem:[#allocation6 + $0xba0] sm:$0xff]  ;;  %v5188_v32 = vld [vmem:[#allocation6 + $0xb78] sm:$0xff] }
 0xfdd   :  { %11870 = vpow2.f32 %v5418_v47  ;;  %v5195_v47 = vld [vmem:[#allocation6 + $0xba8] sm:$0xff] }
 0xfde   :  { %11872 = vpow2.f32 %v5416_v61  ;;  %v11343_v61 = vpack.c.bf16 %v5195_v47, %v5194_v63 }
 0xfe7   :  { %v12525_v51 = vpop.eup %11870 }
 0xfe8   :  { %v12527_v53 = vpop.eup %11872  ;;  %v5423_v15 = vsel %vm5407_vm3, %v12525_v51, 0.0 }
 0xfe9   :  { %5424 = vadd.xlane.f32.xlu1 %v5423_v15  ;;  %v5420_v43 = vsel %vm5407_vm3, %v12527_v53, 0.0  ;;  %v5196_v15 = vld [vmem:[#allocation6 + $0xbb0] sm:$0xff] }
 0xfea   :  { %5421 = vadd.xlane.f32.xlu0 %v5420_v43  ;;  %v5197_v43 = vld [vmem:[#allocation6 + $0xbb8] sm:$0xff] }
 0xfeb   :  { %v11347_v34 = vpack.c.bf16 %v5197_v43, %v5196_v15  ;;  %v11909_v15 = vld [vmem:[#allocation2 + $0x8] sm:$0xff] }
 0xfec   :  { %v3198_v43 = vmul.f32 %v11909_v15, %v11909_v15 }
 0xffa   :  { %v9889_v46 = vpop.f32.mrb[36].mxu1 }
 0xffb   :  { %v4988_v48 = vadd.f32 %v9889_v46, %v4986_v45  ;;  %v4974_v58 = vpop.f32.mrb[37].mxu1  ;;  %v5199_v46 = vld [vmem:[#allocation6 + $0xbc8] sm:$0xff] }
 0xffc   :  { %v4987_v60 = vadd.f32 %v4986_v45, %v4974_v58  ;;  %v5198_v45 = vld [vmem:[#allocation6 + $0xbc0] sm:$0xff]  ;;  %v5201_v58 = vld [vmem:[#allocation6 + $0xbd8] sm:$0xff] }
 0xffd   :  { %v4990_v52 = vmax.f32 %v4988_v48, 0.0  ;;  %v11351_v48 = vpack.c.bf16 %v5199_v46, %v5198_v45  ;;  %v3202_v46 = vsel %vm70_vm0, %v3198_v43, 0.0 }
 0xffe   :  { %v4989_v7 = vmax.f32 %v4987_v60, 0.0 }
 0xfff   :  { %v4996_v14 = vmul.f32 %v4994_v49, %v4990_v52  ;;  %v5202_v52 = vld [vmem:[#allocation6 + $0xbe0] sm:$0xff] }
0x1000   :  { %v4995_v25 = vmul.f32 %v4994_v49, %v4989_v7  ;;  %v5200_v49 = vld [vmem:[#allocation6 + $0xbd0] sm:$0xff] }
0x1001   :  { %v5002_v54 = vadd.f32 %v5000_v10, %v4996_v14  ;;  %v11355_v60 = vpack.c.bf16 %v5201_v58, %v5200_v49  ;;  %v5204_v14 = vld [vmem:[#allocation6 + $0xbf0] sm:$0xff]  ;;  %v11911_v49 = vld [vmem:[#allocation2 + $0x18] sm:$0xff] }
0x1002   :  { %v5001_v0 = vadd.f32 %v5000_v10, %v4995_v25  ;;  %v5203_v10 = vld [vmem:[#allocation6 + $0xbe8] sm:$0xff]  ;;  %v5205_v25 = vld [vmem:[#allocation6 + $0xbf8] sm:$0xff]  ;;  %v3200_v58 = vmul.f32 %v11911_v49, %v11911_v49 }
0x1003   :  { %v11359_v7 = vpack.c.bf16 %v5203_v10, %v5202_v52 }
0x1004   :  { %v5003_v11 = vadd.f32 %v5002_v54, %v5001_v0 }
0x1006   :  { %v5004_v17 = vmul.f32 0.5, %v5003_v11  ;;  %v5174_v11 = vld [vmem:[#allocation6 + $0xb08] sm:$0xff] }
0x1008   :  { %v5009_v19 = vmul.f32 %v5008_v16, %v5004_v17  ;;  %v5175_v17 = vld [vmem:[#allocation6 + $0xb10] sm:$0xff] }
0x100a   :  { %v5010_v20 = vsub.f32 %v5001_v0, %v5009_v19  ;;  %v5011_v21 = vsub.f32 %v5002_v54, %v5009_v19  ;;  %v11363_v54 = vpack.c.bf16 %v5205_v25, %v5204_v14  ;;  %v5173_v0 = vld [vmem:[#allocation6 + $0xb00] sm:$0xff]  ;;  %v5176_v19 = vld [vmem:[#allocation6 + $0xb18] sm:$0xff] }
0x100b   :  { %v11367_v16 = vpack.c.bf16 %v5174_v11, %v5173_v0 }
0x100c   :  { %v5012_v26 = vmul.f32 %v5010_v20, %v5010_v20  ;;  %v5013_v13 = vmul.f32 %v5011_v21, %v5011_v21  ;;  %v5020_v35 = vmul.f32 %v5019_v62, %v5010_v20  ;;  %v5021_v39 = vmul.f32 %v5019_v62, %v5011_v21  ;;  %v5177_v21 = vld [vmem:[#allocation6 + $0xb20] sm:$0xff] }
0x100d   :  { %v11371_v20 = vpack.c.bf16 %v5176_v19, %v5175_v17  ;;  %v5181_v62 = vld [vmem:[#allocation6 + $0xb40] sm:$0xff] }
0x100e   :  { %v5014_v50 = vadd.f32 %v5013_v13, %v5012_v26  ;;  %v5178_v26 = vld [vmem:[#allocation6 + $0xb28] sm:$0xff] }
0x100f   :  { %v11375_v13 = vpack.c.bf16 %v5178_v26, %v5177_v21  ;;  %v5207_v26 = vld [vmem:[#allocation8 + $0x58] sm:$0xff] }
0x1010   :  { %v5015_v31 = vmul.f32 0.5, %v5014_v50  ;;  %v5179_v50 = vld [vmem:[#allocation6 + $0xb30] sm:$0xff] }
0x1012   :  { %v5022_v6 = vadd.f32 1e-05, %v5015_v31  ;;  %v5180_v31 = vld [vmem:[#allocation6 + $0xb38] sm:$0xff] }
0x1014   :  { %11874 = vrsqrt.f32 %v5022_v6  ;;  %v11379_v6 = vpack.c.bf16 %v5180_v31, %v5179_v50 }
0x101e   :  { %v11875_v22 = vpop.eup %11874 }
0x101f   :  { %v5024_v28 = vmul.f32 %v11875_v22, %v5020_v35  ;;  %v5025_v40 = vmul.f32 %v11875_v22, %v5021_v39  ;;  %v5182_v35 = vld [vmem:[#allocation6 + $0xb48] sm:$0xff]  ;;  %v5183_v39 = vld [vmem:[#allocation6 + $0xb50] sm:$0xff]  ;;  %v5184_v22 = vld [vmem:[#allocation6 + $0xb58] sm:$0xff] }
0x1021   :  { %v5030_v2 = vadd.f32 %v5029_v38, %v5024_v28  ;;  %v5031_v5 = vadd.f32 %v5029_v38, %v5025_v40  ;;  %v11383_v38 = vpack.c.bf16 %v5182_v35, %v5181_v62  ;;  %v11387_v28 = vpack.c.bf16 %v5184_v22, %v5183_v39  ;;  %v5185_v40 = vld [vmem:[#allocation6 + $0xb60] sm:$0xff] }
0x1022   :  { %v11391_v41 = vpack.c.bf16 %v5186_v4, %v5185_v40  ;;  %v5375_v39 = vrot.slane %v5207_v26, %v12179_v18 }
0x1023   :  { %9891 = vmatpush3.msra.mxu0 %v5030_v2 }
0x1024   :  { %9893 = vmatmul.mubr.msk.f32.vlgmr.msra.gmra.mrb[48].mxu0 %vm2512_vm1, %v12416_v44  ;;  %9895 = vmatprep.subr.mxu0 %v12027_v29 }
0x1025   :  { %9896 = vmatpush3.msra.mxu0 %v5031_v5  ;;  %9897 = vmatprep.mubr.msk.f32.mxu0 %vm12026_vm2, %v12027_v29 }
0x1026   :  { %11336 = vmatprep.subr.bf16.mxu0 %v11335_v23 }
0x1028   :  { %9898 = vmatmul.mubr.msk.f32.vlgmr.msra.gmra.mrb[50].mxu0 %vm2512_vm1, %v12418_v59 }
0x1029   :  { %11338 = vmatpush3.bf16.msra.mxu0 %v11335_v23  ;;  %9932 = vmatprep.mubr.f32.mxu0 %v5030_v2 }
0x102a   :  { %11340 = vmatprep.subr.bf16.mxu0 %v11339_v42 }
0x102d   :  { %11342 = vmatpush3.bf16.msra.mxu0 %v11339_v42 }
0x102e   :  { %11344 = vmatprep.subr.bf16.mxu0 %v11343_v61 }
0x1031   :  { %11346 = vmatpush3.bf16.msra.mxu0 %v11343_v61 }
0x1032   :  { %11348 = vmatprep.subr.bf16.mxu0 %v11347_v34 }
0x1035   :  { %11350 = vmatpush3.bf16.msra.mxu0 %v11347_v34 }
0x1036   :  { %11352 = vmatprep.subr.bf16.mxu0 %v11351_v48 }
0x1039   :  { %11354 = vmatpush3.bf16.msra.mxu0 %v11351_v48 }
0x103a   :  { %11356 = vmatprep.subr.bf16.mxu0 %v11355_v60 }
0x103d   :  { %11358 = vmatpush3.bf16.msra.mxu0 %v11355_v60 }
0x103e   :  { %11360 = vmatprep.subr.bf16.mxu0 %v11359_v7 }
0x1041   :  { %11362 = vmatpush3.bf16.msra.mxu0 %v11359_v7 }
0x1042   :  { %11364 = vmatprep.subr.bf16.mxu0 %v11363_v54 }
0x1045   :  { %11366 = vmatpush3.bf16.msra.mxu0 %v11363_v54 }
0x1046   :  { %11368 = vmatprep.subr.bf16.mxu0 %v11367_v16 }
0x1048   :  { %9933 = vmatmul.mubr.f32.vlgmr.msra.gmra.mrb[52].mxu0 %v5031_v5  ;;  %v5187_v5 = vld [vmem:[#allocation6 + $0xb70] sm:$0xff] }
0x1049   :  { %11370 = vmatpush3.bf16.msra.mxu0 %v11367_v16  ;;  %v11395_v27 = vpack.c.bf16 %v5188_v32, %v5187_v5 }
0x104a   :  { %11372 = vmatprep.subr.bf16.mxu0 %v11371_v20 }
0x104d   :  { %11374 = vmatpush3.bf16.msra.mxu0 %v11371_v20 }
0x104e   :  { %11376 = vmatprep.subr.bf16.mxu0 %v11375_v13 }
0x1051   :  { %11378 = vmatpush3.bf16.msra.mxu0 %v11375_v13  ;;  %v5361_v13 = vrot.slane %v5207_v26, %v12173_v3 }
0x1052   :  { %11380 = vmatprep.subr.bf16.mxu0 %v11379_v6 }
0x1055   :  { %11382 = vmatpush3.bf16.msra.mxu0 %v11379_v6  ;;  %v5369_v6 = vrot.slane %v5207_v26, %v12176_v9 }
0x1056   :  { %11384 = vmatprep.subr.bf16.mxu0 %v11383_v38 }
0x1059   :  { %11386 = vmatpush3.bf16.msra.mxu0 %v11383_v38 }
0x105a   :  { %11388 = vmatprep.subr.bf16.mxu0 %v11387_v28 }
0x105d   :  { %11390 = vmatpush3.bf16.msra.mxu0 %v11387_v28 }
0x105e   :  { %11392 = vmatprep.subr.bf16.mxu0 %v11391_v41 }
0x1061   :  { %11394 = vmatpush3.bf16.msra.mxu0 %v11391_v41 }
0x1062   :  { %11396 = vmatprep.subr.bf16.mxu0 %v11395_v27 }
0x1065   :  { %11398 = vmatpush3.bf16.msra.mxu0 %v11395_v27 }
0x1066   :  { %9985 = vmatprep.subr.mxu0 %v12027_v29 }
0x1076   :  { %v5425_v2 = vpop.xlane.xlu1 %5424 }
0x1077   :  { %11876 = vrcp.f32 %v5425_v2  ;;  %v5422_v23 = vpop.xlane.xlu0 %5421 }
0x1078   :  { %11878 = vrcp.f32 %v5422_v23  ;;  %v5383_v23 = vrot.slane %v5207_v26, %v12182_v30 }
0x1081   :  { %v11877_v42 = vpop.eup %11876 }
0x1082   :  { %v11879_v63 = vpop.eup %11878  ;;  %v12548_v47 = vmul.f32 %v11877_v42, %v12525_v51  ;;  %v11908_v51 = vld [vmem:[#allocation2] sm:$0xff] }
0x1083   :  { %v12551_v61 = vmul.f32 %v11879_v63, %v12527_v53  ;;  %v3197_v53 = vmul.f32 %v11908_v51, %v11908_v51 }
0x1084   :  { %5462 = vxpose.xlu1.b32.start.end [1/1] (short) (narrow) %v12548_v47, 8 }
0x1085   :  { %5430 = vxpose.xlu0.b32.start.end [1/1] (short) (narrow) %v12551_v61, 8  ;;  %9971 = vmatpush3.msra.mxu1 %v12551_v61  ;;  %v3201_v45 = vsel %vm70_vm0, %v3197_v53, 0.0 }
0x1086   :  { %9973 = vmatmul.mubr.msk.f32.vlgmr.msra.gmra.mrb[38].mxu1 %vm2512_vm1, %v12416_v44  ;;  %9975 = vmatprep.subr.mxu1 %v12027_v29  ;;  %v11910_v44 = vld [vmem:[#allocation2 + $0x10] sm:$0xff]  ;;  %v3203_v48 = vadd.f32 %v3202_v46, %v3201_v45  ;;  %v5404_v46 = vrot.slane %v5207_v26, %v12188_v8 }
0x1087   :  { %9976 = vmatpush3.msra.mxu1 %v12548_v47  ;;  %9977 = vmatprep.mubr.msk.f32.mxu1 %vm12026_vm2, %v12027_v29  ;;  %v3199_v34 = vmul.f32 %v11910_v44, %v11910_v44  ;;  %v5394_v44 = vrot.slane %v5207_v26, %v12185_v57 }
0x1088   :  { %9980 = vmatprep.subr.mxu1 %v12027_v29 }
0x1089   :  { %v3204_v60 = vsel %vm70_vm0, %v3199_v34, 0.0 }
0x108a   :  { %9978 = vmatmul.mubr.msk.f32.vlgmr.msra.gmra.mrb[40].mxu1 %vm2512_vm1, %v12418_v59  ;;  %v3205_v52 = vadd.f32 %v3204_v60, %v3203_v48  ;;  %v3206_v59 = vsel %vm70_vm0, %v3200_v58, 0.0 }
0x108b   :  { %9982 = vmatprep.mubr.msk.f32.mxu1 %vm12026_vm2, %v12027_v29 }
0x108c   :  { %v3207_v10 = vadd.f32 %v3206_v59, %v3205_v52 }
0x10ab   :  { %3208 = vadd.xlane.f32.xlu1 %v3207_v10 }
0x10af   :  { %3244 = vadd.xlane.f32.xlu1 %v12437_v24 }
0x10b3   :  { %6065 = vadd.xlane.f32.xlu1 %v12433_v55 }
0x10f7   :  { %v5098_v7 = vpop.f32.mrb[48].mxu0 }
0x10f8   :  { %v9894_v14 = vpop.f32.mrb[49].mxu0  ;;  %9967 = vmatprep.mubr.f32.mxu0 %v5098_v7 }
0x10fb   :  { %v5168_v25 = vpop.f32.mrb[50].mxu0 }
0x10fc   :  { %v9899_v54 = vpop.f32.mrb[51].mxu0  ;;  %9968 = vmatmul.mubr.f32.vlgmr.msra.gmra.mrb[52].mxu0 %v5168_v25  ;;  %v6300_v25 = vld [vmem:[#allocation6 + $0xc80] sm:$0xff] }
0x10fd   :  { %9987 = vmatprep.mubr.msk.f32.mxu0 %vm12026_vm2, %v12027_v29  ;;  %v6301_v54 = vld [vmem:[#allocation6 + $0xc88] sm:$0xff] }
0x1104   :  { %v5478_v10 = vpop.trf.xlu1 }
0x1105   :  { %v5446_v52 = vpop.trf.xlu0 }
0x1159   :  { %v5560_v0 = vpop.f32.mrb[38].mxu1 }
0x115a   :  { %v9974_v11 = vpop.f32.mrb[39].mxu1  ;;  %v6074_v16 = vmul.f32 %v5560_v0, %v12551_v61 }
0x115c   :  { %v6076_v24 = vsel %vm5407_vm3, %v6074_v16, 0.0  ;;  %v11400_v16 = vpack.c.bf16 %v6301_v54, %v6300_v25  ;;  %v6288_v25 = vld [vmem:[#allocation6 + $0xc28] sm:$0xff]  ;;  %v6290_v54 = vld [vmem:[#allocation6 + $0xc38] sm:$0xff] }
0x115d   :  { %v5630_v17 = vpop.f32.mrb[40].mxu1 }
0x115e   :  { %v6075_v19 = vmul.f32 %v5630_v17, %v12548_v47  ;;  %v9979_v20 = vpop.f32.mrb[41].mxu1 }
0x1160   :  { %v6077_v55 = vsel %vm5407_vm3, %v6075_v19, 0.0  ;;  %v6303_v19 = vld [vmem:[#allocation6 + $0xc98] sm:$0xff] }
0x1161   :  { %v12579_v21 = vadd.f32 %v6077_v55, %v6076_v24 }
0x11cf   :  { %v9969_v50 = vpop.f32.mrb[52].mxu0 }
0x11d0   :  { %v5363_v31 = vadd.f32 %v9969_v50, %v5361_v13  ;;  %v5349_v62 = vpop.f32.mrb[53].mxu0  ;;  %v6304_v50 = vld [vmem:[#allocation6 + $0xca0] sm:$0xff] }
0x11d1   :  { %v5362_v35 = vadd.f32 %v5361_v13, %v5349_v62 }
0x11d2   :  { %v5365_v38 = vmax.f32 %v5363_v31, 0.0  ;;  %v6305_v31 = vld [vmem:[#allocation6 + $0xca8] sm:$0xff] }
0x11d3   :  { %v5364_v22 = vmax.f32 %v5362_v35, 0.0 }
0x11d4   :  { %v5371_v28 = vmul.f32 %v5369_v6, %v5365_v38 }
0x11d5   :  { %v5370_v40 = vmul.f32 %v5369_v6, %v5364_v22 }
0x11d6   :  { %v5377_v4 = vadd.f32 %v5375_v39, %v5371_v28  ;;  %v11406_v28 = vpack.c.bf16 %v6305_v31, %v6304_v50  ;;  %v6296_v50 = vld [vmem:[#allocation6 + $0xc68] sm:$0xff] }
0x11d7   :  { %v5376_v41 = vadd.f32 %v5375_v39, %v5370_v40 }
0x11d9   :  { %v5378_v2 = vadd.f32 %v5377_v4, %v5376_v41 }
0x11db   :  { %v5379_v5 = vmul.f32 0.5, %v5378_v2  ;;  %v6307_v2 = vld [vmem:[#allocation6 + $0xcb8] sm:$0xff] }
0x11dd   :  { %v5384_v32 = vmul.f32 %v5383_v23, %v5379_v5 }
0x11df   :  { %v5385_v27 = vsub.f32 %v5376_v41, %v5384_v32  ;;  %v5386_v42 = vsub.f32 %v5377_v4, %v5384_v32  ;;  %v6306_v41 = vld [vmem:[#allocation6 + $0xcb0] sm:$0xff]  ;;  %v6308_v32 = vld [vmem:[#allocation6 + $0xcc0] sm:$0xff] }
0x11e0   :  { %v11409_v5 = vpack.c.bf16 %v6307_v2, %v6306_v41 }
0x11e1   :  { %v5387_v63 = vmul.f32 %v5385_v27, %v5385_v27  ;;  %v5388_v51 = vmul.f32 %v5386_v42, %v5386_v42  ;;  %v5395_v34 = vmul.f32 %v5394_v44, %v5385_v27  ;;  %v5396_v45 = vmul.f32 %v5394_v44, %v5386_v42  ;;  %v6309_v27 = vld [vmem:[#allocation6 + $0xcc8] sm:$0xff] }
0x11e2   :  { %v11412_v42 = vpack.c.bf16 %v6309_v27, %v6308_v32 }
0x11e3   :  { %v5389_v53 = vadd.f32 %v5388_v51, %v5387_v63  ;;  %v6310_v63 = vld [vmem:[#allocation6 + $0xcd0] sm:$0xff]  ;;  %v6311_v51 = vld [vmem:[#allocation6 + $0xcd8] sm:$0xff] }
0x11e5   :  { %v5390_v15 = vmul.f32 0.5, %v5389_v53  ;;  %v11415_v53 = vpack.c.bf16 %v6311_v51, %v6310_v63 }
0x11e7   :  { %v5397_v43 = vadd.f32 1e-05, %v5390_v15  ;;  %v6312_v15 = vld [vmem:[#allocation6 + $0xce0] sm:$0xff] }
0x11e9   :  { %11880 = vrsqrt.f32 %v5397_v43  ;;  %v6313_v43 = vld [vmem:[#allocation6 + $0xce8] sm:$0xff] }
0x11ea   :  { %v11418_v44 = vpack.c.bf16 %v6313_v43, %v6312_v15 }
0x11f3   :  { %v11881_v48 = vpop.eup %11880 }
0x11f4   :  { %v5400_v49 = vmul.f32 %v11881_v48, %v5396_v45  ;;  %v5399_v58 = vmul.f32 %v11881_v48, %v5395_v34  ;;  %v6314_v34 = vld [vmem:[#allocation6 + $0xcf0] sm:$0xff]  ;;  %v6315_v45 = vld [vmem:[#allocation6 + $0xcf8] sm:$0xff]  ;;  %v6283_v48 = vld [vmem:[#allocation6 + $0xc00] sm:$0xff] }
0x11f6   :  { %v5406_v60 = vadd.f32 %v5404_v46, %v5400_v49  ;;  %v5405_v59 = vadd.f32 %v5404_v46, %v5399_v58  ;;  %v11421_v46 = vpack.c.bf16 %v6315_v45, %v6314_v34  ;;  %v6284_v49 = vld [vmem:[#allocation6 + $0xc08] sm:$0xff] }
0x11f7   :  { %v11448_v58 = vpack.c.bf16 %v6284_v49, %v6283_v48 }
0x11f8   :  { %9986 = vmatpush3.msra.mxu0 %v5406_v60  ;;  %9981 = vmatpush3.msra.mxu1 %v5405_v59  ;;  %v6285_v60 = vld [vmem:[#allocation6 + $0xc10] sm:$0xff] }
0x11f9   :  { %9983 = vmatmul.mubr.msk.f32.vlgmr.msra.gmra.mrb[42].mxu1 %vm2512_vm1, %v5446_v52  ;;  %9988 = vmatmul.mubr.msk.f32.vlgmr.msra.gmra.mrb[54].mxu0 %vm2512_vm1, %v5478_v10 }
0x11fa   :  { %9990 = vmatprep.subr.mxu1 %v12027_v29  ;;  %9995 = vmatprep.subr.mxu0 %v12027_v29 }
0x11fb   :  { %9991 = vmatpush3.msra.mxu1 %v5560_v0  ;;  %9996 = vmatpush3.msra.mxu0 %v5630_v17  ;;  %v6302_v17 = vld [vmem:[#allocation6 + $0xc90] sm:$0xff] }
0x11fc   :  { %9992 = vmatprep.mubr.msk.f32.mxu1 %vm12026_vm2, %v12027_v29  ;;  %9997 = vmatprep.mubr.msk.f32.mxu0 %vm12026_vm2, %v12027_v29  ;;  %v11403_v13 = vpack.c.bf16 %v6303_v19, %v6302_v17  ;;  %v6293_v19 = vld [vmem:[#allocation6 + $0xc50] sm:$0xff] }
0x11fd   :  { %10000 = vmatprep.subr.mxu1 %v12027_v29  ;;  %10005 = vmatprep.subr.mxu0 %v12027_v29 }
0x11fe   :  { %9993 = vmatmul.mubr.msk.f32.vlgmr.msra.gmra.mrb[44].mxu1 %vm2512_vm1, %v5446_v52  ;;  %9998 = vmatmul.mubr.msk.f32.vlgmr.msra.gmra.mrb[56].mxu0 %vm2512_vm1, %v5478_v10 }
0x11ff   :  { %10001 = vmatpush3.msra.mxu1 %v12551_v61  ;;  %10006 = vmatpush3.msra.mxu0 %v12548_v47 }
0x1200   :  { %10002 = vmatprep.mubr.msk.f32.mxu1 %vm12026_vm2, %v12027_v29  ;;  %10007 = vmatprep.mubr.msk.f32.mxu0 %vm12026_vm2, %v12027_v29 }
0x1201   :  { %10010 = vmatprep.subr.mxu1 %v12027_v29  ;;  %10015 = vmatprep.subr.mxu0 %v12027_v29 }
0x1202   :  { %10003 = vmatmul.mubr.msk.f32.vlgmr.msra.gmra.mrb[46].mxu1 %vm2512_vm1, %v5446_v52  ;;  %10008 = vmatmul.mubr.msk.f32.vlgmr.msra.gmra.mrb[58].mxu0 %vm2512_vm1, %v5478_v10  ;;  %v6286_v52 = vld [vmem:[#allocation6 + $0xc18] sm:$0xff]  ;;  %v6287_v10 = vld [vmem:[#allocation6 + $0xc20] sm:$0xff] }
0x1203   :  { %10012 = vmatprep.mubr.msk.f32.mxu1 %vm12026_vm2, %v12027_v29  ;;  %10017 = vmatprep.mubr.msk.f32.mxu0 %vm12026_vm2, %v12027_v29  ;;  %v11451_v59 = vpack.c.bf16 %v6286_v52, %v6285_v60 }
0x12cc   :  { %v12613_v7 = vpop.f32.mrb[42].mxu1  ;;  %v12615_v14 = vpop.f32.mrb[54].mxu0 }
0x12cd   :  { %v9984_v0 = vpop.f32.mrb[43].mxu1  ;;  %v9989_v11 = vpop.f32.mrb[55].mxu0  ;;  %10011 = vmatpush3.msk.msra.mxu1 %vm6132_vm4, %v12613_v7  ;;  %10016 = vmatpush3.msk.msra.mxu0 %vm6132_vm4, %v12615_v14 }
0x12ce   :  { %11399 = vmatprep.subr.bf16.mxu1 %v12025_v12  ;;  %11423 = vmatprep.subr.bf16.mxu0 %v12025_v12  ;;  %v6291_v11 = vld [vmem:[#allocation6 + $0xc40] sm:$0xff] }
0x12d1   :  { %v12623_v20 = vpop.f32.mrb[44].mxu1  ;;  %v12625_v24 = vpop.f32.mrb[56].mxu0 }
0x12d2   :  { %v9994_v55 = vpop.f32.mrb[45].mxu1  ;;  %v9999_v26 = vpop.f32.mrb[57].mxu0  ;;  %10013 = vmatmul.mubr.msk.f32.vlgmr.msra.gmra.mrb[48].mxu1 %vm5407_vm3, %v12623_v20  ;;  %10018 = vmatmul.mubr.msk.f32.vlgmr.msra.gmra.mrb[60].mxu0 %vm5407_vm3, %v12625_v24 }
0x12d3   :  { %11401 = vmatpush3.bf16.msra.mxu1 %v11400_v16  ;;  %11425 = vmatpush3.bf16.msra.mxu0 %v11400_v16  ;;  %v6292_v16 = vld [vmem:[#allocation6 + $0xc48] sm:$0xff]  ;;  %v6294_v55 = vld [vmem:[#allocation6 + $0xc58] sm:$0xff] }
0x12d4   :  { %11402 = vmatprep.subr.bf16.mxu1 %v12025_v12  ;;  %11426 = vmatprep.subr.bf16.mxu0 %v12025_v12  ;;  %v11460_v17 = vpack.c.bf16 %v6292_v16, %v6291_v11  ;;  %v11463_v26 = vpack.c.bf16 %v6294_v55, %v6293_v19 }
0x12d5   :  { %v5986_v6 = vpop.f32.mrb[46].mxu1  ;;  %v6056_v62 = vpop.f32.mrb[58].mxu0  ;;  %10052 = vmatprep.mubr.msk.f32.mxu1 %vm12026_vm2, %v12027_v29  ;;  %10087 = vmatprep.mubr.msk.f32.mxu0 %vm12026_vm2, %v12027_v29 }
0x12d6   :  { %v6090_v35 = vmul.f32 %v5986_v6, %v5986_v6  ;;  %v6091_v38 = vmul.f32 %v6056_v62, %v6056_v62  ;;  %v10004_v39 = vpop.f32.mrb[47].mxu1  ;;  %v10009_v22 = vpop.f32.mrb[59].mxu0  ;;  %v6297_v6 = vld [vmem:[#allocation6 + $0xc70] sm:$0xff]  ;;  %v6298_v62 = vld [vmem:[#allocation6 + $0xc78] sm:$0xff] }
0x12d7   :  { %11404 = vmatpush3.bf16.msra.mxu1 %v11403_v13  ;;  %11428 = vmatpush3.bf16.msra.mxu0 %v11403_v13  ;;  %v6295_v13 = vld [vmem:[#allocation6 + $0xc60] sm:$0xff] }
0x12d8   :  { %11405 = vmatprep.subr.bf16.mxu1 %v12025_v12  ;;  %11429 = vmatprep.subr.bf16.mxu0 %v12025_v12  ;;  %v6093_v40 = vsel %vm6092_vm5, %v6090_v35, 0.0  ;;  %v6094_v4 = vsel %vm6092_vm5, %v6091_v38, 0.0  ;;  %v11466_v31 = vpack.c.bf16 %v6296_v50, %v6295_v13  ;;  %v11469_v35 = vpack.c.bf16 %v6298_v62, %v6297_v6 }
0x12d9   :  { %v6095_v23 = vadd.f32 %v6094_v4, %v6093_v40 }
0x12db   :  { %11407 = vmatpush3.bf16.msra.mxu1 %v11406_v28  ;;  %11431 = vmatpush3.bf16.msra.mxu0 %v11406_v28 }
0x12dc   :  { %6096 = vadd.xlane.f32.xlu1 %v6095_v23  ;;  %11408 = vmatprep.subr.bf16.mxu1 %v12025_v12  ;;  %v6317_v23 = vld [vmem:[#allocation8 + $0x60] sm:$0xff] }
0x12dd   :  { %11432 = vmatprep.subr.bf16.mxu0 %v12025_v12  ;;  %v6609_v43 = vrot.slane %v6317_v23, %v12176_v9  ;;  %v6615_v45 = vrot.slane %v6317_v23, %v12179_v18  ;;  %v6638_v50 = vrot.slane %v6317_v23, %v12185_v57  ;;  %v6648_v62 = vrot.slane %v6317_v23, %v12188_v8 }
0x12df   :  { %11410 = vmatpush3.bf16.msra.mxu1 %v11409_v5  ;;  %11434 = vmatpush3.bf16.msra.mxu0 %v11409_v5  ;;  %v6601_v5 = vrot.slane %v6317_v23, %v12173_v3 }
0x12e0   :  { %11411 = vmatprep.subr.bf16.mxu1 %v12025_v12  ;;  %11435 = vmatprep.subr.bf16.mxu0 %v12025_v12 }
0x12e3   :  { %11413 = vmatpush3.bf16.msra.mxu1 %v11412_v42  ;;  %11437 = vmatpush3.bf16.msra.mxu0 %v11412_v42 }
0x12e4   :  { %11414 = vmatprep.subr.bf16.mxu1 %v12025_v12  ;;  %11438 = vmatprep.subr.bf16.mxu0 %v12025_v12 }
0x12e7   :  { %11416 = vmatpush3.bf16.msra.mxu1 %v11415_v53  ;;  %11440 = vmatpush3.bf16.msra.mxu0 %v11415_v53 }
0x12e8   :  { %11417 = vmatprep.subr.bf16.mxu1 %v12025_v12  ;;  %11441 = vmatprep.subr.bf16.mxu0 %v12025_v12 }
0x12eb   :  { %11419 = vmatpush3.bf16.msra.mxu1 %v11418_v44  ;;  %11443 = vmatpush3.bf16.msra.mxu0 %v11418_v44 }
0x12ec   :  { %11420 = vmatprep.subr.bf16.mxu1 %v12025_v12  ;;  %11444 = vmatprep.subr.bf16.mxu0 %v12025_v12 }
0x12ef   :  { %11422 = vmatpush3.bf16.msra.mxu1 %v11421_v46  ;;  %11446 = vmatpush3.bf16.msra.mxu0 %v11421_v46 }
0x12f0   :  { %11447 = vmatprep.subr.bf16.mxu1 %v12025_v12  ;;  %11471 = vmatprep.subr.bf16.mxu0 %v12025_v12 }
0x12f2   :  { %10053 = vmatmul.mubr.f32.vlgmr.msra.gmra.mrb[50].mxu1 %v12613_v7  ;;  %10088 = vmatmul.mubr.f32.vlgmr.msra.gmra.mrb[62].mxu0 %v12615_v14  ;;  %v11454_v7 = vpack.c.bf16 %v6288_v25, %v6287_v10  ;;  %v6289_v14 = vld [vmem:[#allocation6 + $0xc30] sm:$0xff]  ;;  %v6625_v25 = vrot.slane %v6317_v23, %v12182_v30 }
0x12f3   :  { %11449 = vmatpush3.bf16.msra.mxu1 %v11448_v58  ;;  %11473 = vmatpush3.bf16.msra.mxu0 %v11448_v58  ;;  %v11457_v0 = vpack.c.bf16 %v6290_v54, %v6289_v14 }
0x12f4   :  { %11450 = vmatprep.subr.bf16.mxu1 %v12025_v12  ;;  %11474 = vmatprep.subr.bf16.mxu0 %v12025_v12 }
0x12f5   :  { %10122 = vmatprep.mubr.msk.f32.mxu1 %vm12026_vm2, %v12027_v29  ;;  %10157 = vmatprep.mubr.msk.f32.mxu0 %vm12026_vm2, %v12027_v29 }
0x12f7   :  { %11452 = vmatpush3.bf16.msra.mxu1 %v11451_v59  ;;  %11476 = vmatpush3.bf16.msra.mxu0 %v11451_v59 }
0x12f8   :  { %11453 = vmatprep.subr.bf16.mxu1 %v12025_v12  ;;  %11477 = vmatprep.subr.bf16.mxu0 %v12025_v12 }
0x12fb   :  { %11455 = vmatpush3.bf16.msra.mxu1 %v11454_v7  ;;  %11479 = vmatpush3.bf16.msra.mxu0 %v11454_v7 }
0x12fc   :  { %11456 = vmatprep.subr.bf16.mxu1 %v12025_v12  ;;  %11480 = vmatprep.subr.bf16.mxu0 %v12025_v12 }
0x12ff   :  { %11458 = vmatpush3.bf16.msra.mxu1 %v11457_v0  ;;  %11482 = vmatpush3.bf16.msra.mxu0 %v11457_v0 }
0x1300   :  { %11459 = vmatprep.subr.bf16.mxu1 %v12025_v12  ;;  %11483 = vmatprep.subr.bf16.mxu0 %v12025_v12 }
0x1303   :  { %11461 = vmatpush3.bf16.msra.mxu1 %v11460_v17  ;;  %11485 = vmatpush3.bf16.msra.mxu0 %v11460_v17 }
0x1304   :  { %11462 = vmatprep.subr.bf16.mxu1 %v12025_v12  ;;  %11486 = vmatprep.subr.bf16.mxu0 %v12025_v12 }
0x1307   :  { %11464 = vmatpush3.bf16.msra.mxu1 %v11463_v26  ;;  %11488 = vmatpush3.bf16.msra.mxu0 %v11463_v26 }
0x1308   :  { %11465 = vmatprep.subr.bf16.mxu1 %v12025_v12  ;;  %11489 = vmatprep.subr.bf16.mxu0 %v12025_v12 }
0x130b   :  { %11467 = vmatpush3.bf16.msra.mxu1 %v11466_v31  ;;  %11491 = vmatpush3.bf16.msra.mxu0 %v11466_v31 }
0x130c   :  { %11468 = vmatprep.subr.bf16.mxu1 %v12025_v12  ;;  %11492 = vmatprep.subr.bf16.mxu0 %v12025_v12 }
0x130f   :  { %11470 = vmatpush3.bf16.msra.mxu1 %v11469_v35  ;;  %11494 = vmatpush3.bf16.msra.mxu0 %v11469_v35 }
0x1310   :  { %10160 = vmatprep.subr.mxu1 %v12027_v29  ;;  %10165 = vmatprep.subr.mxu0 %v12027_v29 }
0x13a5   :  { %v6202_v38 = vpop.f32.mrb[48].mxu1  ;;  %v6278_v39 = vpop.f32.mrb[60].mxu0 }
0x13a6   :  { %v10014_v22 = vpop.f32.mrb[49].mxu1  ;;  %v10019_v28 = vpop.f32.mrb[61].mxu0  ;;  %10123 = vmatmul.mubr.f32.vlgmr.msra.gmra.mrb[52].mxu1 %v6202_v38  ;;  %10158 = vmatmul.mubr.f32.vlgmr.msra.gmra.mrb[64].mxu0 %v6278_v39 }
0x13a7   :  { %10162 = vmatprep.mubr.msk.f32.mxu1 %vm12026_vm2, %v12027_v29  ;;  %10167 = vmatprep.mubr.msk.f32.mxu0 %vm12026_vm2, %v12027_v29  ;;  %v6815_v22 = vld [vmem:[#allocation6 + $0xd80] sm:$0xff]  ;;  %v6816_v28 = vld [vmem:[#allocation6 + $0xd88] sm:$0xff] }
0x13c5   :  { %v6384_v40 = vpop.f32.mrb[50].mxu1  ;;  %v6454_v4 = vpop.f32.mrb[62].mxu0 }
0x13c6   :  { %v10054_v41 = vpop.f32.mrb[51].mxu1  ;;  %v10089_v2 = vpop.f32.mrb[63].mxu0 }
0x13c7   :  { %v11496_v41 = vpack.c.bf16 %v6816_v28, %v6815_v22  ;;  %v6817_v2 = vld [vmem:[#allocation6 + $0xd90] sm:$0xff] }
0x13c8   :  { %v6812_v28 = vld [vmem:[#allocation6 + $0xd70] sm:$0xff] }
0x1479   :  { %v6524_v32 = vpop.f32.mrb[52].mxu1  ;;  %v6594_v27 = vpop.f32.mrb[64].mxu0 }
0x147a   :  { %v6525_v42 = vadd.f32 %v6524_v32, %v6384_v40  ;;  %v6595_v63 = vadd.f32 %v6594_v27, %v6454_v4  ;;  %v10124_v51 = vpop.f32.mrb[53].mxu1  ;;  %v10159_v53 = vpop.f32.mrb[65].mxu0  ;;  %v6819_v32 = vld [vmem:[#allocation6 + $0xda0] sm:$0xff]  ;;  %v6820_v27 = vld [vmem:[#allocation6 + $0xda8] sm:$0xff] }
0x147b   :  { %v6822_v51 = vld [vmem:[#allocation6 + $0xdb8] sm:$0xff] }
0x147c   :  { %v6602_v15 = vadd.f32 %v6601_v5, %v6525_v42  ;;  %v6603_v44 = vadd.f32 %v6601_v5, %v6595_v63  ;;  %v6818_v5 = vld [vmem:[#allocation6 + $0xd98] sm:$0xff]  ;;  %v11502_v42 = vpack.c.bf16 %v6820_v27, %v6819_v32  ;;  %v6821_v63 = vld [vmem:[#allocation6 + $0xdb0] sm:$0xff] }
0x147d   :  { %v11499_v23 = vpack.c.bf16 %v6818_v5, %v6817_v2  ;;  %v11505_v53 = vpack.c.bf16 %v6822_v51, %v6821_v63  ;;  %v6832_v51 = vld [vmem:[#allocation8 + $0x68] sm:$0xff] }
0x147e   :  { %v6604_v34 = vmax.f32 %v6602_v15, 0.0  ;;  %v6605_v46 = vmax.f32 %v6603_v44, 0.0  ;;  %v6823_v15 = vld [vmem:[#allocation6 + $0xdc0] sm:$0xff] }
0x1480   :  { %v6610_v48 = vmul.f32 %v6609_v43, %v6604_v34  ;;  %v6611_v49 = vmul.f32 %v6609_v43, %v6605_v46  ;;  %v6824_v43 = vld [vmem:[#allocation6 + $0xdc8] sm:$0xff]  ;;  %v6825_v34 = vld [vmem:[#allocation6 + $0xdd0] sm:$0xff] }
0x1481   :  { %v11508_v44 = vpack.c.bf16 %v6824_v43, %v6823_v15 }
0x1482   :  { %v6616_v58 = vadd.f32 %v6615_v45, %v6610_v48  ;;  %v6617_v60 = vadd.f32 %v6615_v45, %v6611_v49  ;;  %v6826_v45 = vld [vmem:[#allocation6 + $0xdd8] sm:$0xff]  ;;  %v6827_v48 = vld [vmem:[#allocation6 + $0xde0] sm:$0xff]  ;;  %v6828_v49 = vld [vmem:[#allocation6 + $0xde8] sm:$0xff] }
0x1483   :  { %v11511_v46 = vpack.c.bf16 %v6826_v45, %v6825_v34 }
0x1484   :  { %v6618_v52 = vsel %vm6132_vm4, %v6616_v58, 0.0  ;;  %v6619_v59 = vsel %vm6132_vm4, %v6617_v60, 0.0 }
0x1485   :  { %v6620_v10 = vadd.f32 %v6619_v59, %v6618_v52  ;;  %v6830_v52 = vld [vmem:[#allocation6 + $0xdf8] sm:$0xff] }
0x1487   :  { %v6621_v7 = vmul.f32 0.5, %v6620_v10  ;;  %v6798_v10 = vld [vmem:[#allocation6 + $0xd00] sm:$0xff] }
0x1489   :  { %v6626_v14 = vmul.f32 %v6625_v25, %v6621_v7  ;;  %v6799_v25 = vld [vmem:[#allocation6 + $0xd08] sm:$0xff] }
0x148a   :  { %v11544_v7 = vpack.c.bf16 %v6799_v25, %v6798_v10 }
0x148b   :  { %v6627_v54 = vsub.f32 %v6616_v58, %v6626_v14  ;;  %v6628_v0 = vsub.f32 %v6617_v60, %v6626_v14  ;;  %v11514_v58 = vpack.c.bf16 %v6828_v49, %v6827_v48  ;;  %v6829_v60 = vld [vmem:[#allocation6 + $0xdf0] sm:$0xff]  ;;  %v7124_v49 = vrot.slane %v6832_v51, %v12176_v9 }
0x148c   :  { %v11517_v59 = vpack.c.bf16 %v6830_v52, %v6829_v60  ;;  %v6800_v14 = vld [vmem:[#allocation6 + $0xd10] sm:$0xff]  ;;  %v7130_v52 = vrot.slane %v6832_v51, %v12179_v18 }
0x148d   :  { %v6629_v11 = vmul.f32 %v6627_v54, %v6627_v54  ;;  %v6630_v16 = vmul.f32 %v6628_v0, %v6628_v0  ;;  %v6639_v31 = vmul.f32 %v6638_v50, %v6627_v54  ;;  %v6640_v6 = vmul.f32 %v6638_v50, %v6628_v0  ;;  %v6801_v54 = vld [vmem:[#allocation6 + $0xd18] sm:$0xff]  ;;  %v6807_v50 = vld [vmem:[#allocation6 + $0xd48] sm:$0xff] }
0x148e   :  { %v11547_v0 = vpack.c.bf16 %v6801_v54, %v6800_v14 }
0x148f   :  { %v6631_v17 = vsel %vm6132_vm4, %v6629_v11, 0.0  ;;  %v6632_v19 = vsel %vm6132_vm4, %v6630_v16, 0.0  ;;  %v6802_v11 = vld [vmem:[#allocation6 + $0xd20] sm:$0xff]  ;;  %v6803_v16 = vld [vmem:[#allocation6 + $0xd28] sm:$0xff] }
0x1490   :  { %v6633_v55 = vadd.f32 %v6632_v19, %v6631_v17  ;;  %v11550_v17 = vpack.c.bf16 %v6803_v16, %v6802_v11  ;;  %v6804_v19 = vld [vmem:[#allocation6 + $0xd30] sm:$0xff]  ;;  %v7140_v16 = vrot.slane %v6832_v51, %v12182_v30 }
0x1492   :  { %v6634_v26 = vmul.f32 0.5, %v6633_v55  ;;  %v6805_v55 = vld [vmem:[#allocation6 + $0xd38] sm:$0xff] }
0x1494   :  { %v6641_v13 = vadd.f32 1e-05, %v6634_v26  ;;  %v11553_v26 = vpack.c.bf16 %v6805_v55, %v6804_v19 }
0x1496   :  { %11882 = vrsqrt.f32 %v6641_v13  ;;  %v6806_v13 = vld [vmem:[#allocation6 + $0xd40] sm:$0xff] }
0x14a0   :  { %v11883_v35 = vpop.eup %11882 }
0x14a1   :  { %v6644_v38 = vmul.f32 %v11883_v35, %v6640_v6  ;;  %v6643_v39 = vmul.f32 %v11883_v35, %v6639_v31  ;;  %v11556_v31 = vpack.c.bf16 %v6807_v50, %v6806_v13  ;;  %v6808_v6 = vld [vmem:[#allocation6 + $0xd50] sm:$0xff] }
0x14a3   :  { %v12687_v40 = vadd.f32 %v6648_v62, %v6643_v39  ;;  %v12689_v4 = vadd.f32 %v6648_v62, %v6644_v38  ;;  %v6809_v62 = vld [vmem:[#allocation6 + $0xd58] sm:$0xff]  ;;  %v6810_v38 = vld [vmem:[#allocation6 + $0xd60] sm:$0xff]  ;;  %v6811_v39 = vld [vmem:[#allocation6 + $0xd68] sm:$0xff] }
0x14a4   :  { %v11559_v35 = vpack.c.bf16 %v6809_v62, %v6808_v6  ;;  %v11562_v22 = vpack.c.bf16 %v6811_v39, %v6810_v38  ;;  %v7153_v39 = vrot.slane %v6832_v51, %v12185_v57 }
0x14a5   :  { %10161 = vmatpush3.msk.msra.mxu1 %vm6132_vm4, %v12687_v40  ;;  %10166 = vmatpush3.msk.msra.mxu0 %vm6132_vm4, %v12689_v4 }
0x14a6   :  { %10163 = vmatmul.mubr.msk.f32.vlgmr.msra.gmra.mrb[54].mxu1 %vm5407_vm3, %v12623_v20  ;;  %10168 = vmatmul.mubr.msk.f32.vlgmr.msra.gmra.mrb[66].mxu0 %vm5407_vm3, %v12625_v24 }
0x14a7   :  { %11495 = vmatprep.subr.bf16.mxu1 %v12025_v12  ;;  %11519 = vmatprep.subr.bf16.mxu0 %v12025_v12 }
0x14a8   :  { %11497 = vmatpush3.bf16.msra.mxu1 %v11496_v41  ;;  %11521 = vmatpush3.bf16.msra.mxu0 %v11496_v41 }
0x14a9   :  { %11498 = vmatprep.subr.bf16.mxu1 %v12025_v12  ;;  %11522 = vmatprep.subr.bf16.mxu0 %v12025_v12 }
0x14aa   :  { %10202 = vmatprep.mubr.msk.f32.mxu1 %vm12026_vm2, %v12027_v29  ;;  %10237 = vmatprep.mubr.msk.f32.mxu0 %vm12026_vm2, %v12027_v29 }
0x14ac   :  { %11500 = vmatpush3.bf16.msra.mxu1 %v11499_v23  ;;  %11524 = vmatpush3.bf16.msra.mxu0 %v11499_v23 }
0x14ad   :  { %11501 = vmatprep.subr.bf16.mxu1 %v12025_v12  ;;  %11525 = vmatprep.subr.bf16.mxu0 %v12025_v12 }
0x14b0   :  { %11503 = vmatpush3.bf16.msra.mxu1 %v11502_v42  ;;  %11527 = vmatpush3.bf16.msra.mxu0 %v11502_v42 }
0x14b1   :  { %11504 = vmatprep.subr.bf16.mxu1 %v12025_v12  ;;  %11528 = vmatprep.subr.bf16.mxu0 %v12025_v12 }
0x14b4   :  { %11506 = vmatpush3.bf16.msra.mxu1 %v11505_v53  ;;  %11530 = vmatpush3.bf16.msra.mxu0 %v11505_v53  ;;  %v7116_v53 = vrot.slane %v6832_v51, %v12173_v3 }
0x14b5   :  { %11507 = vmatprep.subr.bf16.mxu1 %v12025_v12  ;;  %11531 = vmatprep.subr.bf16.mxu0 %v12025_v12 }
0x14b8   :  { %11509 = vmatpush3.bf16.msra.mxu1 %v11508_v44  ;;  %11533 = vmatpush3.bf16.msra.mxu0 %v11508_v44 }
0x14b9   :  { %11510 = vmatprep.subr.bf16.mxu1 %v12025_v12  ;;  %11534 = vmatprep.subr.bf16.mxu0 %v12025_v12 }
0x14bc   :  { %11512 = vmatpush3.bf16.msra.mxu1 %v11511_v46  ;;  %11536 = vmatpush3.bf16.msra.mxu0 %v11511_v46 }
0x14bd   :  { %11513 = vmatprep.subr.bf16.mxu1 %v12025_v12  ;;  %11537 = vmatprep.subr.bf16.mxu0 %v12025_v12 }
0x14c0   :  { %11515 = vmatpush3.bf16.msra.mxu1 %v11514_v58  ;;  %11539 = vmatpush3.bf16.msra.mxu0 %v11514_v58 }
0x14c1   :  { %11516 = vmatprep.subr.bf16.mxu1 %v12025_v12  ;;  %11540 = vmatprep.subr.bf16.mxu0 %v12025_v12 }
0x14c4   :  { %11518 = vmatpush3.bf16.msra.mxu1 %v11517_v59  ;;  %11542 = vmatpush3.bf16.msra.mxu0 %v11517_v59 }
0x14c5   :  { %11543 = vmatprep.subr.bf16.mxu1 %v12025_v12  ;;  %11567 = vmatprep.subr.bf16.mxu0 %v12025_v12 }
0x14c7   :  { %10203 = vmatmul.mubr.f32.vlgmr.msra.gmra.mrb[56].mxu1 %v12687_v40  ;;  %10238 = vmatmul.mubr.f32.vlgmr.msra.gmra.mrb[68].mxu0 %v12689_v4  ;;  %v6813_v40 = vld [vmem:[#allocation6 + $0xd78] sm:$0xff] }
0x14c8   :  { %11545 = vmatpush3.bf16.msra.mxu1 %v11544_v7  ;;  %11569 = vmatpush3.bf16.msra.mxu0 %v11544_v7  ;;  %v11565_v4 = vpack.c.bf16 %v6813_v40, %v6812_v28  ;;  %v7163_v40 = vrot.slane %v6832_v51, %v12188_v8 }
0x14c9   :  { %11546 = vmatprep.subr.bf16.mxu1 %v12025_v12  ;;  %11570 = vmatprep.subr.bf16.mxu0 %v12025_v12 }
0x14ca   :  { %10272 = vmatprep.mubr.msk.f32.mxu1 %vm12026_vm2, %v12027_v29  ;;  %10307 = vmatprep.mubr.msk.f32.mxu0 %vm12026_vm2, %v12027_v29 }
0x14cc   :  { %11548 = vmatpush3.bf16.msra.mxu1 %v11547_v0  ;;  %11572 = vmatpush3.bf16.msra.mxu0 %v11547_v0 }
0x14cd   :  { %11549 = vmatprep.subr.bf16.mxu1 %v12025_v12  ;;  %11573 = vmatprep.subr.bf16.mxu0 %v12025_v12 }
0x14d0   :  { %11551 = vmatpush3.bf16.msra.mxu1 %v11550_v17  ;;  %11575 = vmatpush3.bf16.msra.mxu0 %v11550_v17 }
0x14d1   :  { %11552 = vmatprep.subr.bf16.mxu1 %v12025_v12  ;;  %11576 = vmatprep.subr.bf16.mxu0 %v12025_v12 }
0x14d4   :  { %11554 = vmatpush3.bf16.msra.mxu1 %v11553_v26  ;;  %11578 = vmatpush3.bf16.msra.mxu0 %v11553_v26 }
0x14d5   :  { %11555 = vmatprep.subr.bf16.mxu1 %v12025_v12  ;;  %11579 = vmatprep.subr.bf16.mxu0 %v12025_v12 }
0x14d8   :  { %11557 = vmatpush3.bf16.msra.mxu1 %v11556_v31  ;;  %11581 = vmatpush3.bf16.msra.mxu0 %v11556_v31 }
0x14d9   :  { %11558 = vmatprep.subr.bf16.mxu1 %v12025_v12  ;;  %11582 = vmatprep.subr.bf16.mxu0 %v12025_v12 }
0x14dc   :  { %11560 = vmatpush3.bf16.msra.mxu1 %v11559_v35  ;;  %11584 = vmatpush3.bf16.msra.mxu0 %v11559_v35 }
0x14dd   :  { %11561 = vmatprep.subr.bf16.mxu1 %v12025_v12  ;;  %11585 = vmatprep.subr.bf16.mxu0 %v12025_v12 }
0x14e0   :  { %11563 = vmatpush3.bf16.msra.mxu1 %v11562_v22  ;;  %11587 = vmatpush3.bf16.msra.mxu0 %v11562_v22 }
0x14e1   :  { %11564 = vmatprep.subr.bf16.mxu1 %v12025_v12  ;;  %11588 = vmatprep.subr.bf16.mxu0 %v12025_v12 }
0x14e4   :  { %11566 = vmatpush3.bf16.msra.mxu1 %v11565_v4  ;;  %11590 = vmatpush3.bf16.msra.mxu0 %v11565_v4 }
0x14e5   :  { %10310 = vmatprep.subr.mxu1 %v12027_v29  ;;  %10315 = vmatprep.subr.mxu0 %v12027_v29 }
0x1579   :  { %v6720_v41 = vpop.f32.mrb[54].mxu1  ;;  %v6793_v2 = vpop.f32.mrb[66].mxu0 }
0x157a   :  { %v10164_v5 = vpop.f32.mrb[55].mxu1  ;;  %v10169_v23 = vpop.f32.mrb[67].mxu0  ;;  %10273 = vmatmul.mubr.f32.vlgmr.msra.gmra.mrb[58].mxu1 %v6720_v41  ;;  %10308 = vmatmul.mubr.f32.vlgmr.msra.gmra.mrb[70].mxu0 %v6793_v2 }
0x157b   :  { %10312 = vmatprep.mubr.msk.f32.mxu1 %vm12026_vm2, %v12027_v29  ;;  %10317 = vmatprep.mubr.msk.f32.mxu0 %vm12026_vm2, %v12027_v29  ;;  %v7330_v5 = vld [vmem:[#allocation6 + $0xe80] sm:$0xff]  ;;  %v7331_v23 = vld [vmem:[#allocation6 + $0xe88] sm:$0xff] }
0x159a   :  { %v6899_v32 = vpop.f32.mrb[56].mxu1  ;;  %v6969_v27 = vpop.f32.mrb[68].mxu0 }
0x159b   :  { %v10204_v42 = vpop.f32.mrb[57].mxu1  ;;  %v10239_v63 = vpop.f32.mrb[69].mxu0 }
0x159c   :  { %v11592_v42 = vpack.c.bf16 %v7331_v23, %v7330_v5  ;;  %v7332_v63 = vld [vmem:[#allocation6 + $0xe90] sm:$0xff]  ;;  %v7328_v5 = vld [vmem:[#allocation6 + $0xe78] sm:$0xff] }
0x164d   :  { %v7039_v15 = vpop.f32.mrb[58].mxu1  ;;  %v7109_v43 = vpop.f32.mrb[70].mxu0 }
0x164e   :  { %v7040_v44 = vadd.f32 %v7039_v15, %v6899_v32  ;;  %v7110_v34 = vadd.f32 %v7109_v43, %v6969_v27  ;;  %v10274_v45 = vpop.f32.mrb[59].mxu1  ;;  %v10309_v46 = vpop.f32.mrb[71].mxu0  ;;  %v7334_v15 = vld [vmem:[#allocation6 + $0xea0] sm:$0xff]  ;;  %v7335_v43 = vld [vmem:[#allocation6 + $0xea8] sm:$0xff] }
0x164f   :  { %v7338_v45 = vld [vmem:[#allocation6 + $0xec0] sm:$0xff]  ;;  %v7339_v46 = vld [vmem:[#allocation6 + $0xec8] sm:$0xff] }
0x1650   :  { %v7117_v48 = vadd.f32 %v7116_v53, %v7040_v44  ;;  %v7118_v58 = vadd.f32 %v7116_v53, %v7110_v34  ;;  %v7333_v53 = vld [vmem:[#allocation6 + $0xe98] sm:$0xff] }
0x1651   :  { %v11595_v51 = vpack.c.bf16 %v7333_v53, %v7332_v63  ;;  %v7337_v44 = vld [vmem:[#allocation6 + $0xeb8] sm:$0xff] }
0x1652   :  { %v7119_v60 = vmax.f32 %v7117_v48, 0.0  ;;  %v7120_v59 = vmax.f32 %v7118_v58, 0.0  ;;  %v11604_v48 = vpack.c.bf16 %v7339_v46, %v7338_v45  ;;  %v7341_v58 = vld [vmem:[#allocation6 + $0xed8] sm:$0xff] }
0x1653   :  { %v7704_v45 = vld [vmem:[#allocation6 + $0xf18] sm:$0xff] }
0x1654   :  { %v7125_v10 = vmul.f32 %v7124_v49, %v7119_v60  ;;  %v7126_v25 = vmul.f32 %v7124_v49, %v7120_v59  ;;  %v7340_v49 = vld [vmem:[#allocation6 + $0xed0] sm:$0xff]  ;;  %v7343_v59 = vld [vmem:[#allocation6 + $0xee8] sm:$0xff] }
0x1655   :  { %v11607_v60 = vpack.c.bf16 %v7341_v58, %v7340_v49  ;;  %v7706_v49 = vld [vmem:[#allocation6 + $0xf28] sm:$0xff] }
0x1656   :  { %v7131_v7 = vadd.f32 %v7130_v52, %v7125_v10  ;;  %v7132_v14 = vadd.f32 %v7130_v52, %v7126_v25  ;;  %v7342_v52 = vld [vmem:[#allocation6 + $0xee0] sm:$0xff]  ;;  %v7344_v25 = vld [vmem:[#allocation6 + $0xef0] sm:$0xff] }
0x1657   :  { %v11610_v10 = vpack.c.bf16 %v7343_v59, %v7342_v52  ;;  %v7708_v52 = vld [vmem:[#allocation6 + $0xf38] sm:$0xff] }
0x1658   :  { %v7133_v54 = vsel %vm6132_vm4, %v7131_v7, 0.0  ;;  %v7134_v0 = vsel %vm6132_vm4, %v7132_v14, 0.0 }
0x1659   :  { %v7135_v11 = vadd.f32 %v7134_v0, %v7133_v54  ;;  %v7313_v54 = vld [vmem:[#allocation6 + $0xe00] sm:$0xff]  ;;  %v7314_v0 = vld [vmem:[#allocation6 + $0xe08] sm:$0xff] }
0x165b   :  { %v7136_v17 = vmul.f32 0.5, %v7135_v11  ;;  %v11640_v11 = vpack.c.bf16 %v7314_v0, %v7313_v54  ;;  %v7712_v54 = vld [vmem:[#allocation6 + $0xf58] sm:$0xff] }
0x165d   :  { %v7141_v19 = vmul.f32 %v7140_v16, %v7136_v17  ;;  %v7315_v16 = vld [vmem:[#allocation6 + $0xe10] sm:$0xff]  ;;  %v7316_v17 = vld [vmem:[#allocation6 + $0xe18] sm:$0xff] }
0x165f   :  { %v7142_v55 = vsub.f32 %v7131_v7, %v7141_v19  ;;  %v7143_v26 = vsub.f32 %v7132_v14, %v7141_v19  ;;  %v7345_v7 = vld [vmem:[#allocation6 + $0xef8] sm:$0xff]  ;;  %v11643_v19 = vpack.c.bf16 %v7316_v17, %v7315_v16  ;;  %v7714_v16 = vld [vmem:[#allocation6 + $0xf68] sm:$0xff] }
0x1660   :  { %v11613_v14 = vpack.c.bf16 %v7345_v7, %v7344_v25  ;;  %v7710_v25 = vld [vmem:[#allocation6 + $0xf48] sm:$0xff] }
0x1661   :  { %v7144_v13 = vmul.f32 %v7142_v55, %v7142_v55  ;;  %v7145_v50 = vmul.f32 %v7143_v26, %v7143_v26  ;;  %v7154_v22 = vmul.f32 %v7153_v39, %v7142_v55  ;;  %v7155_v28 = vmul.f32 %v7153_v39, %v7143_v26  ;;  %v7317_v55 = vld [vmem:[#allocation6 + $0xe20] sm:$0xff]  ;;  %v7318_v26 = vld [vmem:[#allocation6 + $0xe28] sm:$0xff]  ;;  %v7323_v39 = vld [vmem:[#allocation6 + $0xe50] sm:$0xff] }
0x1663   :  { %v7146_v31 = vsel %vm6132_vm4, %v7144_v13, 0.0  ;;  %v7147_v6 = vsel %vm6132_vm4, %v7145_v50, 0.0  ;;  %v11646_v13 = vpack.c.bf16 %v7318_v26, %v7317_v55  ;;  %v7319_v50 = vld [vmem:[#allocation6 + $0xe30] sm:$0xff]  ;;  %v7716_v55 = vld [vmem:[#allocation6 + $0xf78] sm:$0xff] }
0x1664   :  { %v7148_v62 = vadd.f32 %v7147_v6, %v7146_v31  ;;  %v7320_v31 = vld [vmem:[#allocation6 + $0xe38] sm:$0xff] }
0x1665   :  { %v11649_v6 = vpack.c.bf16 %v7320_v31, %v7319_v50  ;;  %v7799_v50 = vld [vmem:[#allocation6 + $0xf88] sm:$0xff]  ;;  %v7800_v31 = vld [vmem:[#allocation6 + $0xf90] sm:$0xff] }
0x1666   :  { %v7149_v35 = vmul.f32 0.5, %v7148_v62  ;;  %v7321_v62 = vld [vmem:[#allocation6 + $0xe40] sm:$0xff] }
0x1668   :  { %v7156_v38 = vadd.f32 1e-05, %v7149_v35  ;;  %v7322_v35 = vld [vmem:[#allocation6 + $0xe48] sm:$0xff] }
0x166a   :  { %11884 = vrsqrt.f32 %v7156_v38  ;;  %v11652_v38 = vpack.c.bf16 %v7322_v35, %v7321_v62  ;;  %v7801_v62 = vld [vmem:[#allocation6 + $0xf98] sm:$0xff] }
0x166b   :  { %v11715_v35 = vpack.c.bf16 %v7801_v62, %v7800_v31 }
0x1674   :  { %v11885_v4 = vpop.eup %11884 }
0x1675   :  { %v7159_v41 = vmul.f32 %v11885_v4, %v7155_v28  ;;  %v7158_v2 = vmul.f32 %v11885_v4, %v7154_v22  ;;  %v7324_v22 = vld [vmem:[#allocation6 + $0xe58] sm:$0xff]  ;;  %v7326_v4 = vld [vmem:[#allocation6 + $0xe68] sm:$0xff] }
0x1676   :  { %v11655_v28 = vpack.c.bf16 %v7324_v22, %v7323_v39  ;;  %v7803_v39 = vld [vmem:[#allocation6 + $0xfa8] sm:$0xff] }
0x1677   :  { %v12757_v32 = vadd.f32 %v7163_v40, %v7158_v2  ;;  %v12759_v27 = vadd.f32 %v7163_v40, %v7159_v41  ;;  %v7325_v40 = vld [vmem:[#allocation6 + $0xe60] sm:$0xff]  ;;  %v7327_v2 = vld [vmem:[#allocation6 + $0xe70] sm:$0xff] }
0x1678   :  { %v11658_v41 = vpack.c.bf16 %v7326_v4, %v7325_v40  ;;  %v11661_v23 = vpack.c.bf16 %v7328_v5, %v7327_v2  ;;  %v7805_v40 = vld [vmem:[#allocation6 + $0xfb8] sm:$0xff]  ;;  %v7807_v2 = vld [vmem:[#allocation6 + $0xfc8] sm:$0xff] }
0x1679   :  { %10311 = vmatpush3.msk.msra.mxu1 %vm6132_vm4, %v12757_v32  ;;  %10316 = vmatpush3.msk.msra.mxu0 %vm6132_vm4, %v12759_v27 }
0x167a   :  { %10313 = vmatmul.mubr.msk.f32.vlgmr.msra.gmra.mrb[60].mxu1 %vm5407_vm3, %v12623_v20  ;;  %10318 = vmatmul.mubr.msk.f32.vlgmr.msra.gmra.mrb[72].mxu0 %vm5407_vm3, %v12625_v24  ;;  %v11598_v20 = vpack.c.bf16 %v7335_v43, %v7334_v15  ;;  %v7336_v24 = vld [vmem:[#allocation6 + $0xeb0] sm:$0xff] }
0x167b   :  { %11591 = vmatprep.subr.bf16.mxu1 %v12025_v12  ;;  %11615 = vmatprep.subr.bf16.mxu0 %v12025_v12  ;;  %v11601_v34 = vpack.c.bf16 %v7337_v44, %v7336_v24  ;;  %v7702_v24 = vld [vmem:[#allocation6 + $0xf08] sm:$0xff] }
0x167c   :  { %11593 = vmatpush3.bf16.msra.mxu1 %v11592_v42  ;;  %11617 = vmatpush3.bf16.msra.mxu0 %v11592_v42 }
0x167d   :  { %11594 = vmatprep.subr.bf16.mxu1 %v12025_v12  ;;  %11618 = vmatprep.subr.bf16.mxu0 %v12025_v12 }
0x167e   :  { %10352 = vmatprep.mubr.msk.f32.mxu1 %vm12026_vm2, %v12027_v29  ;;  %10387 = vmatprep.mubr.msk.f32.mxu0 %vm12026_vm2, %v12027_v29 }
0x1680   :  { %11596 = vmatpush3.bf16.msra.mxu1 %v11595_v51  ;;  %11620 = vmatpush3.bf16.msra.mxu0 %v11595_v51 }
0x1681   :  { %11597 = vmatprep.subr.bf16.mxu1 %v12025_v12  ;;  %11621 = vmatprep.subr.bf16.mxu0 %v12025_v12 }
0x1684   :  { %11599 = vmatpush3.bf16.msra.mxu1 %v11598_v20  ;;  %11623 = vmatpush3.bf16.msra.mxu0 %v11598_v20  ;;  %v7701_v20 = vld [vmem:[#allocation6 + $0xf00] sm:$0xff] }
0x1685   :  { %11600 = vmatprep.subr.bf16.mxu1 %v12025_v12  ;;  %11624 = vmatprep.subr.bf16.mxu0 %v12025_v12  ;;  %v11688_v44 = vpack.c.bf16 %v7702_v24, %v7701_v20 }
0x1688   :  { %11602 = vmatpush3.bf16.msra.mxu1 %v11601_v34  ;;  %11626 = vmatpush3.bf16.msra.mxu0 %v11601_v34  ;;  %v7703_v34 = vld [vmem:[#allocation6 + $0xf10] sm:$0xff] }
0x1689   :  { %11603 = vmatprep.subr.bf16.mxu1 %v12025_v12  ;;  %11627 = vmatprep.subr.bf16.mxu0 %v12025_v12  ;;  %v11691_v46 = vpack.c.bf16 %v7704_v45, %v7703_v34 }
0x168c   :  { %11605 = vmatpush3.bf16.msra.mxu1 %v11604_v48  ;;  %11629 = vmatpush3.bf16.msra.mxu0 %v11604_v48  ;;  %v7705_v48 = vld [vmem:[#allocation6 + $0xf20] sm:$0xff] }
0x168d   :  { %11606 = vmatprep.subr.bf16.mxu1 %v12025_v12  ;;  %11630 = vmatprep.subr.bf16.mxu0 %v12025_v12  ;;  %v11694_v58 = vpack.c.bf16 %v7706_v49, %v7705_v48 }
0x1690   :  { %11608 = vmatpush3.bf16.msra.mxu1 %v11607_v60  ;;  %11632 = vmatpush3.bf16.msra.mxu0 %v11607_v60  ;;  %v7707_v60 = vld [vmem:[#allocation6 + $0xf30] sm:$0xff] }
0x1691   :  { %11609 = vmatprep.subr.bf16.mxu1 %v12025_v12  ;;  %11633 = vmatprep.subr.bf16.mxu0 %v12025_v12  ;;  %v11697_v59 = vpack.c.bf16 %v7708_v52, %v7707_v60 }
0x1694   :  { %11611 = vmatpush3.bf16.msra.mxu1 %v11610_v10  ;;  %11635 = vmatpush3.bf16.msra.mxu0 %v11610_v10  ;;  %v7709_v10 = vld [vmem:[#allocation6 + $0xf40] sm:$0xff] }
0x1695   :  { %11612 = vmatprep.subr.bf16.mxu1 %v12025_v12  ;;  %11636 = vmatprep.subr.bf16.mxu0 %v12025_v12  ;;  %v11700_v7 = vpack.c.bf16 %v7710_v25, %v7709_v10 }
0x1698   :  { %11614 = vmatpush3.bf16.msra.mxu1 %v11613_v14  ;;  %11638 = vmatpush3.bf16.msra.mxu0 %v11613_v14  ;;  %v7711_v14 = vld [vmem:[#allocation6 + $0xf50] sm:$0xff] }
0x1699   :  { %11639 = vmatprep.subr.bf16.mxu1 %v12025_v12  ;;  %11663 = vmatprep.subr.bf16.mxu0 %v12025_v12  ;;  %v11703_v0 = vpack.c.bf16 %v7712_v54, %v7711_v14 }
0x169b   :  { %10353 = vmatmul.mubr.f32.vlgmr.msra.gmra.mrb[62].mxu1 %v12757_v32  ;;  %10388 = vmatmul.mubr.f32.vlgmr.msra.gmra.mrb[74].mxu0 %v12759_v27 }
0x169c   :  { %11641 = vmatpush3.bf16.msra.mxu1 %v11640_v11  ;;  %11665 = vmatpush3.bf16.msra.mxu0 %v11640_v11  ;;  %v7713_v11 = vld [vmem:[#allocation6 + $0xf60] sm:$0xff] }
0x169d   :  { %11642 = vmatprep.subr.bf16.mxu1 %v12025_v12  ;;  %11666 = vmatprep.subr.bf16.mxu0 %v12025_v12  ;;  %v11706_v17 = vpack.c.bf16 %v7714_v16, %v7713_v11 }
0x169e   :  { %10422 = vmatprep.mubr.msk.f32.mxu1 %vm12026_vm2, %v12027_v29  ;;  %10457 = vmatprep.mubr.msk.f32.mxu0 %vm12026_vm2, %v12027_v29 }
0x16a0   :  { %11644 = vmatpush3.bf16.msra.mxu1 %v11643_v19  ;;  %11668 = vmatpush3.bf16.msra.mxu0 %v11643_v19  ;;  %v7715_v19 = vld [vmem:[#allocation6 + $0xf70] sm:$0xff] }
0x16a1   :  { %11645 = vmatprep.subr.bf16.mxu1 %v12025_v12  ;;  %11669 = vmatprep.subr.bf16.mxu0 %v12025_v12  ;;  %v11709_v26 = vpack.c.bf16 %v7716_v55, %v7715_v19 }
0x16a4   :  { %11647 = vmatpush3.bf16.msra.mxu1 %v11646_v13  ;;  %11671 = vmatpush3.bf16.msra.mxu0 %v11646_v13  ;;  %v7798_v13 = vld [vmem:[#allocation6 + $0xf80] sm:$0xff] }
0x16a5   :  { %11648 = vmatprep.subr.bf16.mxu1 %v12025_v12  ;;  %11672 = vmatprep.subr.bf16.mxu0 %v12025_v12 }
0x16a8   :  { %11650 = vmatpush3.bf16.msra.mxu1 %v11649_v6  ;;  %11674 = vmatpush3.bf16.msra.mxu0 %v11649_v6  ;;  %v11712_v6 = vpack.c.bf16 %v7799_v50, %v7798_v13 }
0x16a9   :  { %11651 = vmatprep.subr.bf16.mxu1 %v12025_v12  ;;  %11675 = vmatprep.subr.bf16.mxu0 %v12025_v12 }
0x16ac   :  { %11653 = vmatpush3.bf16.msra.mxu1 %v11652_v38  ;;  %11677 = vmatpush3.bf16.msra.mxu0 %v11652_v38  ;;  %v7802_v38 = vld [vmem:[#allocation6 + $0xfa0] sm:$0xff] }
0x16ad   :  { %11654 = vmatprep.subr.bf16.mxu1 %v12025_v12  ;;  %11678 = vmatprep.subr.bf16.mxu0 %v12025_v12  ;;  %v11718_v22 = vpack.c.bf16 %v7803_v39, %v7802_v38 }
0x16b0   :  { %11656 = vmatpush3.bf16.msra.mxu1 %v11655_v28  ;;  %11680 = vmatpush3.bf16.msra.mxu0 %v11655_v28  ;;  %v7804_v28 = vld [vmem:[#allocation6 + $0xfb0] sm:$0xff] }
0x16b1   :  { %11657 = vmatprep.subr.bf16.mxu1 %v12025_v12  ;;  %11681 = vmatprep.subr.bf16.mxu0 %v12025_v12  ;;  %v11721_v4 = vpack.c.bf16 %v7805_v40, %v7804_v28 }
0x16b4   :  { %11659 = vmatpush3.bf16.msra.mxu1 %v11658_v41  ;;  %11683 = vmatpush3.bf16.msra.mxu0 %v11658_v41  ;;  %v7806_v41 = vld [vmem:[#allocation6 + $0xfc0] sm:$0xff] }
0x16b5   :  { %11660 = vmatprep.subr.bf16.mxu1 %v12025_v12  ;;  %11684 = vmatprep.subr.bf16.mxu0 %v12025_v12  ;;  %v11724_v5 = vpack.c.bf16 %v7807_v2, %v7806_v41 }
0x16b8   :  { %11662 = vmatpush3.bf16.msra.mxu1 %v11661_v23  ;;  %11686 = vmatpush3.bf16.msra.mxu0 %v11661_v23  ;;  %v7808_v23 = vld [vmem:[#allocation6 + $0xfd0] sm:$0xff] }
0x16b9   :  { %11687 = vmatprep.subr.bf16.mxu1 %v12025_v12  ;;  %11711 = vmatprep.subr.bf16.mxu0 %v12025_v12 }
0x174d   :  { %v7235_v32 = vpop.f32.mrb[60].mxu1  ;;  %v7308_v27 = vpop.f32.mrb[72].mxu0 }
0x174e   :  { %v10314_v42 = vpop.f32.mrb[61].mxu1  ;;  %v10319_v63 = vpop.f32.mrb[73].mxu0  ;;  %10423 = vmatmul.mubr.f32.vlgmr.msra.gmra.mrb[64].mxu1 %v7235_v32  ;;  %10458 = vmatmul.mubr.f32.vlgmr.msra.gmra.mrb[76].mxu0 %v7308_v27  ;;  %v7809_v32 = vld [vmem:[#allocation6 + $0xfd8] sm:$0xff] }
0x174f   :  { %10492 = vmatprep.mubr.msk.f32.mxu1 %vm12026_vm2, %v12027_v29  ;;  %10527 = vmatprep.mubr.msk.f32.mxu0 %vm12026_vm2, %v12027_v29  ;;  %v11727_v27 = vpack.c.bf16 %v7809_v32, %v7808_v23  ;;  %v7810_v42 = vld [vmem:[#allocation6 + $0xfe0] sm:$0xff]  ;;  %v7811_v63 = vld [vmem:[#allocation6 + $0xfe8] sm:$0xff] }
0x1750   :  { %11689 = vmatpush3.bf16.msra.mxu1 %v11688_v44  ;;  %11713 = vmatpush3.bf16.msra.mxu0 %v11712_v6 }
0x1751   :  { %11690 = vmatprep.subr.bf16.mxu1 %v12025_v12  ;;  %11714 = vmatprep.subr.bf16.mxu0 %v12025_v12 }
0x1754   :  { %11692 = vmatpush3.bf16.msra.mxu1 %v11691_v46  ;;  %11716 = vmatpush3.bf16.msra.mxu0 %v11715_v35 }
0x1755   :  { %11693 = vmatprep.subr.bf16.mxu1 %v12025_v12  ;;  %11717 = vmatprep.subr.bf16.mxu0 %v12025_v12 }
0x1758   :  { %11695 = vmatpush3.bf16.msra.mxu1 %v11694_v58  ;;  %11719 = vmatpush3.bf16.msra.mxu0 %v11718_v22 }
0x1759   :  { %11696 = vmatprep.subr.bf16.mxu1 %v12025_v12  ;;  %11720 = vmatprep.subr.bf16.mxu0 %v12025_v12 }
0x175c   :  { %11698 = vmatpush3.bf16.msra.mxu1 %v11697_v59  ;;  %11722 = vmatpush3.bf16.msra.mxu0 %v11721_v4 }
0x175d   :  { %11699 = vmatprep.subr.bf16.mxu1 %v12025_v12  ;;  %11723 = vmatprep.subr.bf16.mxu0 %v12025_v12 }
0x1760   :  { %11701 = vmatpush3.bf16.msra.mxu1 %v11700_v7  ;;  %11725 = vmatpush3.bf16.msra.mxu0 %v11724_v5 }
0x1761   :  { %11702 = vmatprep.subr.bf16.mxu1 %v12025_v12  ;;  %11726 = vmatprep.subr.bf16.mxu0 %v12025_v12 }
0x1764   :  { %11704 = vmatpush3.bf16.msra.mxu1 %v11703_v0  ;;  %11728 = vmatpush3.bf16.msra.mxu0 %v11727_v27 }
0x1765   :  { %11705 = vmatprep.subr.bf16.mxu1 %v12025_v12  ;;  %11729 = vmatprep.subr.bf16.mxu0 %v12025_v12 }
0x1768   :  { %11707 = vmatpush3.bf16.msra.mxu1 %v11706_v17 }
0x1769   :  { %11708 = vmatprep.subr.bf16.mxu1 %v12025_v12 }
0x176c   :  { %11710 = vmatpush3.bf16.msra.mxu1 %v11709_v26 }
0x176d   :  { %11735 = vmatprep.subr.bf16.mxu1 %v12025_v12 }
0x176e   :  { %v12817_v53 = vpop.f32.mrb[62].mxu1  ;;  %v12819_v51 = vpop.f32.mrb[74].mxu0 }
0x176f   :  { %v10354_v15 = vpop.f32.mrb[63].mxu1  ;;  %v10389_v43 = vpop.f32.mrb[75].mxu0 }
0x1770   :  { %v11730_v15 = vpack.c.bf16 %v7811_v63, %v7810_v42  ;;  %v7347_v43 = vld [vmem:[#allocation8 + $0x70] sm:$0xff] }
0x1771   :  { %v7631_v20 = vrot.slane %v7347_v43, %v12173_v3  ;;  %v7639_v58 = vrot.slane %v7347_v43, %v12176_v9  ;;  %v7645_v59 = vrot.slane %v7347_v43, %v12179_v18  ;;  %v7668_v38 = vrot.slane %v7347_v43, %v12185_v57 }
0x1772   :  { %11731 = vmatpush3.bf16.msra.mxu0 %v11730_v15 }
0x1773   :  { %11732 = vmatprep.subr.bf16.mxu0 %v12025_v12 }
0x1821   :  { %v7554_v24 = vpop.f32.mrb[64].mxu1  ;;  %v7624_v44 = vpop.f32.mrb[76].mxu0 }
0x1822   :  { %v7555_v34 = vadd.f32 %v7554_v24, %v12817_v53  ;;  %v7625_v45 = vadd.f32 %v7624_v44, %v12819_v51  ;;  %v10424_v46 = vpop.f32.mrb[65].mxu1  ;;  %v10459_v48 = vpop.f32.mrb[77].mxu0  ;;  %v7655_v51 = vrot.slane %v7347_v43, %v12182_v30  ;;  %v7678_v30 = vrot.slane %v7347_v43, %v12188_v8 }
0x1824   :  { %v7632_v49 = vadd.f32 %v7631_v20, %v7555_v34  ;;  %v7633_v60 = vadd.f32 %v7631_v20, %v7625_v45 }
0x1826   :  { %v7634_v52 = vmax.f32 %v7632_v49, 0.0  ;;  %v7635_v10 = vmax.f32 %v7633_v60, 0.0  ;;  %v7812_v49 = vld [vmem:[#allocation6 + $0xff0] sm:$0xff] }
0x1828   :  { %v7640_v25 = vmul.f32 %v7639_v58, %v7634_v52  ;;  %v7641_v7 = vmul.f32 %v7639_v58, %v7635_v10  ;;  %v7813_v58 = vld [vmem:[#allocation6 + $0xff8] sm:$0xff]  ;;  %v7890_v52 = vld [vmem:[#allocation6 + $0x1000] sm:$0xff]  ;;  %v7892_v10 = vld [vmem:[#allocation6 + $0x1010] sm:$0xff] }
0x1829   :  { %v11733_v60 = vpack.c.bf16 %v7813_v58, %v7812_v49  ;;  %v3257_v58 = vsub.f32 0.0, %v12295_v37 }
0x182a   :  { %v7646_v14 = vadd.f32 %v7645_v59, %v7640_v25  ;;  %v7647_v54 = vadd.f32 %v7645_v59, %v7641_v7  ;;  %v7891_v59 = vld [vmem:[#allocation6 + $0x1008] sm:$0xff]  ;;  %v7893_v7 = vld [vmem:[#allocation6 + $0x1018] sm:$0xff] }
0x182b   :  { %11734 = vmatpush3.bf16.msra.mxu0 %v11733_v60  ;;  %v11736_v25 = vpack.c.bf16 %v7891_v59, %v7890_v52 }
0x182c   :  { %v7648_v0 = vsel %vm6132_vm4, %v7646_v14, 0.0  ;;  %v7649_v53 = vsel %vm6132_vm4, %v7647_v54, 0.0 }
0x182d   :  { %v7650_v11 = vadd.f32 %v7649_v53, %v7648_v0  ;;  %v7895_v0 = vld [vmem:[#allocation6 + $0x1028] sm:$0xff] }
0x182f   :  { %v7651_v16 = vmul.f32 0.5, %v7650_v11  ;;  %v7897_v11 = vld [vmem:[#allocation6 + $0x1038] sm:$0xff] }
0x1831   :  { %v7656_v17 = vmul.f32 %v7655_v51, %v7651_v16  ;;  %v7898_v16 = vld [vmem:[#allocation6 + $0x1040] sm:$0xff] }
0x1833   :  { %v7657_v19 = vsub.f32 %v7646_v14, %v7656_v17  ;;  %v7658_v55 = vsub.f32 %v7647_v54, %v7656_v17  ;;  %v11739_v14 = vpack.c.bf16 %v7893_v7, %v7892_v10  ;;  %v7894_v54 = vld [vmem:[#allocation6 + $0x1020] sm:$0xff]  ;;  %v7899_v17 = vld [vmem:[#allocation6 + $0x1048] sm:$0xff] }
0x1834   :  { %v11742_v53 = vpack.c.bf16 %v7895_v0, %v7894_v54 }
0x1835   :  { %v7659_v26 = vmul.f32 %v7657_v19, %v7657_v19  ;;  %v7660_v13 = vmul.f32 %v7658_v55, %v7658_v55  ;;  %v7669_v39 = vmul.f32 %v7668_v38, %v7657_v19  ;;  %v7670_v22 = vmul.f32 %v7668_v38, %v7658_v55  ;;  %v7900_v55 = vld [vmem:[#allocation6 + $0x1050] sm:$0xff] }
0x1836   :  { %v11748_v19 = vpack.c.bf16 %v7899_v17, %v7898_v16  ;;  %v6108_v17 = vsub.f32 0.0, %v12548_v47 }
0x1837   :  { %v7661_v50 = vsel %vm6132_vm4, %v7659_v26, 0.0  ;;  %v7662_v31 = vsel %vm6132_vm4, %v7660_v13, 0.0  ;;  %v7901_v26 = vld [vmem:[#allocation6 + $0x1058] sm:$0xff] }
0x1838   :  { %v7663_v6 = vadd.f32 %v7662_v31, %v7661_v50  ;;  %v11751_v13 = vpack.c.bf16 %v7901_v26, %v7900_v55  ;;  %v7902_v50 = vld [vmem:[#allocation6 + $0x1060] sm:$0xff]  ;;  %v7903_v31 = vld [vmem:[#allocation6 + $0x1068] sm:$0xff] }
0x183a   :  { %v7664_v62 = vmul.f32 0.5, %v7663_v6  ;;  %v11754_v6 = vpack.c.bf16 %v7903_v31, %v7902_v50  ;;  %v3209_v31 = vpop.xlane.xlu1 %3208 }
0x183c   :  { %v7671_v35 = vadd.f32 1e-05, %v7664_v62  ;;  %v7682_v62 = vld [vmem:[#allocation8 + $0x78] sm:$0xff] }
0x183e   :  { %11886 = vrsqrt.f32 %v7671_v35  ;;  %v7720_v35 = vrot.slane %v7682_v62, %v12173_v3  ;;  %v3259_v3 = vadd.f32 1e-15, %v12288_v33 }
0x1848   :  { %v11887_v28 = vpop.eup %11886 }
0x1849   :  { %v7673_v40 = vmul.f32 %v11887_v28, %v7669_v39  ;;  %v7674_v4 = vmul.f32 %v11887_v28, %v7670_v22  ;;  %v7904_v28 = vld [vmem:[#allocation6 + $0x1070] sm:$0xff] }
0x184b   :  { %v7680_v41 = vadd.f32 %v7678_v30, %v7674_v4  ;;  %v7679_v2 = vadd.f32 %v7678_v30, %v7673_v40  ;;  %v7905_v40 = vld [vmem:[#allocation6 + $0x1078] sm:$0xff] }
0x184c   :  { %v11757_v4 = vpack.c.bf16 %v7905_v40, %v7904_v28 }
0x184d   :  { %v7683_v5 = vsel %vm6132_vm4, %v7679_v2, 0.0  ;;  %v7690_v23 = vsel %vm6132_vm4, %v7680_v41, 0.0  ;;  %v7817_v41 = vrot.slane %v7682_v62, %v12176_v9  ;;  %v6110_v9 = vadd.f32 1e-15, %v12548_v47  ;;  %v3245_v47 = vpop.xlane.xlu1 %3244 }
0x184e   :  { %v7684_v32 = vrot.slane %v7683_v5, 4  ;;  %v7691_v27 = vrot.slane %v7690_v23, 4 }
0x1850   :  { %v7685_v42 = vadd.f32 %v7684_v32, %v7683_v5  ;;  %v7692_v63 = vadd.f32 %v7691_v27, %v7690_v23  ;;  %v3261_v27 = vadd.f32 1e-15, %v12295_v37 }
0x1852   :  { %v7686_v15 = vrot.slane %v7685_v42, 2  ;;  %v7693_v20 = vrot.slane %v7692_v63, 2 }
0x1854   :  { %v7687_v57 = vadd.f32 %v7686_v15, %v7685_v42  ;;  %v7694_v24 = vadd.f32 %v7693_v20, %v7692_v63  ;;  %v3262_v42 = vadd.f32 1e-15, %v12306_v1  ;;  %v6109_v20 = vadd.f32 1e-15, %v12551_v61 }
0x1856   :  { %v7688_v44 = vrot.slane %v7687_v57, 1  ;;  %v7695_v34 = vrot.slane %v7694_v24, 1 }
0x1858   :  { %v7689_v8 = vadd.f32 %v7688_v44, %v7687_v57  ;;  %v7696_v43 = vadd.f32 %v7695_v34, %v7694_v24  ;;  %v3256_v24 = vsub.f32 0.0, %v12292_v36 }
0x185a   :  { %v7698_v45 = vmul.f32 0.25, %v7689_v8  ;;  %v7699_v46 = vmul.f32 0.25, %v7696_v43  ;;  %v3255_v8 = vsub.f32 0.0, %v12288_v33 }
0x185c   :  { %v7724_v48 = vsel %vm7723_vm6, %v7699_v46, %v7698_v45  ;;  %v7909_v46 = vrot.slane %v7682_v62, %v12179_v18 }
0x185d   :  { %10493 = vmatmul.mubr.f32.vlgmr.msra.gmra.mrb[66].mxu1 %v7724_v48 }
0x185e   :  { %10562 = vmatprep.mubr.msk.f32.mxu1 %vm12026_vm2, %v12027_v29  ;;  %11737 = vmatpush3.bf16.msra.mxu1 %v11736_v25  ;;  %v7896_v29 = vld [vmem:[#allocation6 + $0x1030] sm:$0xff]  ;;  %v3258_v25 = vsub.f32 0.0, %v12306_v1  ;;  %v6107_v1 = vsub.f32 0.0, %v12551_v61 }
0x185f   :  { %11738 = vmatprep.subr.bf16.mxu1 %v12025_v12  ;;  %v11745_v51 = vpack.c.bf16 %v7897_v11, %v7896_v29 }
0x1862   :  { %11740 = vmatpush3.bf16.msra.mxu1 %v11739_v14 }
0x1863   :  { %11741 = vmatprep.subr.bf16.mxu1 %v12025_v12 }
0x1866   :  { %11743 = vmatpush3.bf16.msra.mxu1 %v11742_v53 }
0x1867   :  { %11744 = vmatprep.subr.bf16.mxu1 %v12025_v12 }
0x186a   :  { %11746 = vmatpush3.bf16.msra.mxu1 %v11745_v51 }
0x186b   :  { %11747 = vmatprep.subr.bf16.mxu1 %v12025_v12 }
0x186e   :  { %11749 = vmatpush3.bf16.msra.mxu1 %v11748_v19 }
0x186f   :  { %11750 = vmatprep.subr.bf16.mxu1 %v12025_v12 }
0x1872   :  { %11752 = vmatpush3.bf16.msra.mxu1 %v11751_v13 }
0x1873   :  { %11753 = vmatprep.subr.bf16.mxu1 %v12025_v12 }
0x1876   :  { %11755 = vmatpush3.bf16.msra.mxu1 %v11754_v6  ;;  %v3210_v6 = vrot.slane %v3209_v31, 4 }
0x1877   :  { %11756 = vmatprep.subr.bf16.mxu1 %v12025_v12  ;;  %v3260_v12 = vadd.f32 1e-15, %v12292_v36 }
0x1879   :  { %11888 = vlog2.f32 %v3260_v12 }
0x187a   :  { %11758 = vmatpush3.bf16.msra.mxu1 %v11757_v4  ;;  %11890 = vlog2.f32 %v3259_v3 }
0x187b   :  { %11892 = vlog2.f32 %v3261_v27 }
0x187c   :  { %11894 = vlog2.f32 %v3262_v42 }
0x187d   :  { %11896 = vlog2.f32 %v6110_v9 }
0x187e   :  { %11898 = vlog2.f32 %v6109_v20 }
0x1883   :  { %v11889_v63 = vpop.eup %11888 }
0x1884   :  { %v11891_v15 = vpop.eup %11890  ;;  %v3266_v57 = vmul.f32 0.6931472, %v11889_v63 }
0x1885   :  { %v3264_v44 = vmul.f32 0.6931472, %v11891_v15  ;;  %v11893_v34 = vpop.eup %11892 }
0x1886   :  { %v3272_v43 = vmul.f32 %v3266_v57, %v3256_v24  ;;  %v11895_v45 = vpop.eup %11894  ;;  %v3268_v48 = vmul.f32 0.6931472, %v11893_v34 }
0x1887   :  { %v3271_v49 = vmul.f32 %v3264_v44, %v3255_v8  ;;  %v3270_v60 = vmul.f32 0.6931472, %v11895_v45  ;;  %v11897_v54 = vpop.eup %11896 }
0x1888   :  { %v3276_v52 = vsel %vm2512_vm1, %v3272_v43, 0.0  ;;  %v3273_v7 = vmul.f32 %v3268_v48, %v3257_v58  ;;  %v11899_v53 = vpop.eup %11898  ;;  %v6114_v16 = vmul.f32 0.6931472, %v11897_v54 }
0x1889   :  { %v3275_v33 = vsel %vm2512_vm1, %v3271_v49, 0.0  ;;  %v3274_v0 = vmul.f32 %v3270_v60, %v3258_v25  ;;  %v6112_v51 = vmul.f32 0.6931472, %v11899_v53 }
0x188a   :  { %v3277_v14 = vadd.f32 %v3276_v52, %v3275_v33  ;;  %v3278_v37 = vsel %vm2512_vm1, %v3273_v7, 0.0  ;;  %v6116_v26 = vmul.f32 %v6114_v16, %v6108_v17 }
0x188b   :  { %v3280_v11 = vsel %vm2512_vm1, %v3274_v0, 0.0  ;;  %v6115_v55 = vmul.f32 %v6112_v51, %v6107_v1 }
0x188c   :  { %v3279_v29 = vadd.f32 %v3278_v37, %v3277_v14  ;;  %v6118_v50 = vsel %vm5407_vm3, %v6116_v26, 0.0 }
0x188d   :  { %v6117_v13 = vsel %vm5407_vm3, %v6115_v55, 0.0 }
0x188e   :  { %v3281_v19 = vadd.f32 %v3280_v11, %v3279_v29  ;;  %v6119_v62 = vadd.f32 %v6118_v50, %v6117_v13 }
0x1930   :  { %v7792_v38 = vpop.f32.mrb[66].mxu1 }
0x1931   :  { %v7793_v39 = vadd.f32 %v7792_v38, %v7720_v35  ;;  %v10494_v22 = vpop.f32.mrb[67].mxu1  ;;  %v3211_v35 = vadd.f32 %v3210_v6, %v3209_v31 }
0x1932   :  { %v3246_v22 = vrot.slane %v3245_v47, 4 }
0x1933   :  { %v7796_v30 = vmax.f32 %v7793_v39, 0.0 }
0x1934   :  { %v3247_v28 = vadd.f32 %v3246_v22, %v3245_v47 }
0x1935   :  { %10528 = vmatmul.mubr.f32.vlgmr.msra.gmra.mrb[78].mxu0 %v7796_v30  ;;  %v6066_v30 = vpop.xlane.xlu1 %6065 }
0x1936   :  { %v6067_v40 = vrot.slane %v6066_v30, 4 }
0x1a08   :  { %v7884_v2 = vpop.f32.mrb[78].mxu0 }
0x1a09   :  { %v7885_v5 = vadd.f32 %v7884_v2, %v7817_v41  ;;  %v10529_v23 = vpop.f32.mrb[79].mxu0  ;;  %v6097_v41 = vpop.xlane.xlu1 %6096 }
0x1a0a   :  { %v6068_v23 = vadd.f32 %v6067_v40, %v6066_v30 }
0x1a0b   :  { %v7888_v32 = vmax.f32 %v7885_v5, 0.0  ;;  %v3248_v5 = vrot.slane %v3247_v28, 2 }
0x1a0c   :  { %v6069_v42 = vrot.slane %v6068_v23, 2 }
0x1a0d   :  { %10563 = vmatmul.mubr.f32.vlgmr.msra.gmra.mrb[68].mxu1 %v7888_v32  ;;  %v6098_v32 = vrot.slane %v6097_v41, 4  ;;  %v3249_v15 = vadd.f32 %v3248_v5, %v3247_v28 }
0x1a0e   :  { %v6070_v45 = vadd.f32 %v6069_v42, %v6068_v23 }
0x1a0f   :  { %v6099_v63 = vadd.f32 %v6098_v32, %v6097_v41  ;;  %v3250_v43 = vrot.slane %v3249_v15, 1 }
0x1a10   :  { %v6071_v7 = vrot.slane %v6070_v45, 1 }
0x1a11   :  { %v6100_v34 = vrot.slane %v6099_v63, 2  ;;  %v3251_v25 = vadd.f32 %v3250_v43, %v3249_v15 }
0x1a12   :  { %v6072_v29 = vadd.f32 %v6071_v7, %v6070_v45 }
0x1a13   :  { %v6101_v33 = vadd.f32 %v6100_v34, %v6099_v63 }
0x1a15   :  { %v6102_v11 = vrot.slane %v6101_v33, 1 }
0x1ae0   :  { %v7976_v59 = vpop.f32.mrb[68].mxu1 }
0x1ae1   :  { %v7977_v36 = vadd.f32 %v7976_v59, %v7909_v46  ;;  %v10564_v10 = vpop.f32.mrb[69].mxu1 }
0x1ae3   :  { %v7981_v18 = vsel %vm7980_vm7, %v7977_v36, -inf }
0x1ae4   :  { %7982 = vmax.xlane.f32.xlu0 %v7981_v18 }
0x1ae8   :  { %3228 = vadd.xlane.f32.xlu0 %v12363_v56  ;;  %v3212_v56 = vrot.slane %v3211_v35, 2 }
0x1aea   :  { %v3213_v38 = vadd.f32 %v3212_v56, %v3211_v35 }
0x1aec   :  { %3282 = vadd.xlane.f32.xlu0 %v3281_v19  ;;  %v3214_v61 = vrot.slane %v3213_v38, 1  ;;  %v6103_v19 = vadd.f32 %v6102_v11, %v6101_v33 }
0x1aee   :  { %v3215_v39 = vadd.f32 %v3214_v61, %v3213_v38 }
0x1af0   :  { %6079 = vadd.xlane.f32.xlu0 %v12579_v21  ;;  %11795 = vpush %v3215_v39 }
0x1af4   :  { %6120 = vadd.xlane.f32.xlu0 %v6119_v62 }
0x1b21   :  { %s11796_s0 = spop %11795 }
0x1b71   :  { %v7983_v4 = vpop.xlane.xlu0 %7982 }
0x1b72   :  { %v12883_v2 = vsub.f32 %v7977_v36, %v7983_v4 }
0x1b74   :  { %v7985_v21 = vmul.f32 1.442695, %v12883_v2 }
0x1b75   :  { %v3229_v12 = vpop.xlane.xlu0 %3228 }
0x1b76   :  { %11900 = vpow2.f32 %v7985_v21  ;;  %v3230_v3 = vrot.slane %v3229_v12, 4 }
0x1b78   :  { %v3231_v27 = vadd.f32 %v3230_v3, %v3229_v12 }
0x1b79   :  { %v3283_v9 = vpop.xlane.xlu0 %3282 }
0x1b7a   :  { %v3232_v20 = vrot.slane %v3231_v27, 2  ;;  %v3284_v57 = vrot.slane %v3283_v9, 4 }
0x1b7c   :  { %v3285_v24 = vadd.f32 %v3284_v57, %v3283_v9  ;;  %v3233_v44 = vadd.f32 %v3232_v20, %v3231_v27 }
0x1b7d   :  { %v6080_v8 = vpop.xlane.xlu0 %6079 }
0x1b7e   :  { %v3286_v46 = vrot.slane %v3285_v24, 2  ;;  %v6081_v48 = vrot.slane %v6080_v8, 4  ;;  %v3234_v49 = vrot.slane %v3233_v44, 1 }
0x1b80   :  { %v11901_v58 = vpop.eup %11900  ;;  %v6082_v60 = vadd.f32 %v6081_v48, %v6080_v8  ;;  %v3235_v52 = vadd.f32 %v3234_v49, %v3233_v44  ;;  %v3287_v59 = vadd.f32 %v3286_v46, %v3285_v24 }
0x1b81   :  { %v6121_v36 = vpop.xlane.xlu0 %6120  ;;  %v7987_v10 = vsel %vm7980_vm7, %v11901_v58, 0.0 }
0x1b82   :  { %v6083_v14 = vrot.slane %v6082_v60, 2  ;;  %v6122_v54 = vrot.slane %v6121_v36, 4  ;;  %7988 = vadd.xlane.f32.xlu1 %v7987_v10  ;;  %11797 = vpush %v3235_v52  ;;  %v3288_v18 = vrot.slane %v3287_v59, 1 }
0x1b83   :  { %11799 = vpush %v3251_v25 }
0x1b84   :  { %v6123_v0 = vadd.f32 %v6122_v54, %v6121_v36  ;;  %v3289_v53 = vadd.f32 %v3288_v18, %v3287_v59  ;;  %v6084_v37 = vadd.f32 %v6083_v14, %v6082_v60 }
0x1b86   :  { %v6124_v51 = vrot.slane %v6123_v0, 2  ;;  %11801 = vpush %v3289_v53  ;;  %v6085_v16 = vrot.slane %v6084_v37, 1 }
0x1b87   :  { %11803 = vpush %v6072_v29 }
0x1b88   :  { %v6125_v1 = vadd.f32 %v6124_v51, %v6123_v0  ;;  %v6086_v17 = vadd.f32 %v6085_v16, %v6084_v37 }
0x1b8a   :  { %11805 = vpush %v6086_v17  ;;  %v6126_v55 = vrot.slane %v6125_v1, 1 }
0x1b8b   :  { %11807 = vpush %v6103_v19 }
0x1b8c   :  { %v6127_v26 = vadd.f32 %v6126_v55, %v6125_v1 }
0x1b8e   :  { %11809 = vpush %v6127_v26 }
0x1bb3   :  { %s11798_s11 = spop %11797 }
0x1bb4   :  { %s3237_s12 = smul.f32 2.0, %s11798_s11  ;;  %s11800_s14 = spop %11799 }
0x1bb6   :  { %s3238_s13 = ssub.f32 %s11796_s0, %s3237_s12 }
0x1bb7   :  { %s11802_s15 = spop %11801 }
0x1bb8   :  { %s3253_s16 = sadd.f32 %s11800_s14, %s3238_s13  ;;  %s11804_s18 = spop %11803 }
0x1bb9   :  { %7997 = sst [smem:[#allocation10 + $0x1]] %s11802_s15 }
0x1bba   :  { %s3254_s17 = smax.f32 %s12028_s2, %s3253_s16 }
0x1bbb   :  { %7995 = sst [smem:[#allocation10]] %s3254_s17  ;;  %s11806_s19 = spop %11805 }
0x1bbc   :  { %s6088_s20 = smul.f32 2.0, %s11806_s19  ;;  %s11808_s26 = spop %11807 }
0x1bbe   :  { %s6089_s25 = ssub.f32 %s11804_s18, %s6088_s20 }
0x1bbf   :  { %s11810_s27 = spop %11809 }
0x1bc0   :  { %s6105_s28 = sadd.f32 %s11808_s26, %s6089_s25 }
0x1bc1   :  { %8001 = sst [smem:[#allocation10 + $0x3]] %s11810_s27 }
0x1bc2   :  { %s6106_s1 = smax.f32 %s12028_s2, %s6105_s28 }
0x1bc3   :  { %7999 = sst [smem:[#allocation10 + $0x2]] %s6106_s1 }
0x1bc4   :  { %11989 = shalt.err (!%p11986_p0)
}
0x1bc5   :  { %s12029_s29 = smov [#allocation10]   ;;  %s12030_s5 = smov [#allocation9]  }
0x1bc6   :  { %8021 = dma.smem_to_vmem %s12029_s29, 16, %s8019_s24, [#allocation5]  }
0x1bc7   :  { %s8008_s7 = sshll.u32 %s12030_s5, 4  ;;  %s8009_s7 = int_to_ptr.vmem [resolvable:$true] %s8008_s7 }
0x1bc8   :  { %s11990_s8 = scalar_lea.vmem %s8009_s7, 32  ;;  %p11995_p2 = scmp.lt.s32.totalorder %s8009_s7, %s8009_s7 }
0x1bc9   :  { %p11991_p1 = scmp.ne.s32.totalorder %s8009_s7, %s11990_s8  ;;  %p11996_p3 = scmp.lt.s32.totalorder %s11990_s8, %s11990_s8 }
0x1bcb   :  { %p11997_p4 = por %p11996_p3, %p11995_p2 }
0x1bcd   :  { %p11998_p5 = pnand %p11997_p4, %p11991_p1 }
0x1c0f   :  { %v7989_v13 = vpop.xlane.xlu1 %7988 }
0x1c10   :  { %11902 = vlog2.f32 %v7989_v13 }
0x1c1a   :  { %v11903_v50 = vpop.eup %11902 }
0x1c1b   :  { %v7991_v31 = vmul.f32 0.6931472, %v11903_v50 }
0x1c1d   :  { %v7992_v6 = vsub.f32 %v12883_v2, %v7991_v31 }
0x1c1f   :  { %7993 = vst [vmem:[#allocation9] sm:$0x3] %v7992_v6 }
0x1c20   :  { %12001 = shalt.err (!%p11998_p5)
}
0x1c21   :  { %s12002_s30 = scalar_lea.hbm %s12907_s4, 32 }
0x1c22   :  { %p12003_p6 = scmp.ne.s32.totalorder %s12907_s4, %s12002_s30  ;;  %p12006_p7 = scmp.lt.u32.totalorder %s12002_s30, %s12907_s4 }
0x1c24   :  { %p12008_p8 = pnand %p12006_p7, %p12003_p6 }
0x1c26   :  { %12011 = shalt.err (!%p12008_p8)
}
0x1c27   :  { %8011 = dma.vmem_to_hbm [thread:$0]  %s8009_s7, 32, %s12907_s4, [#allocation4]  }
0x1c28   :  { %12016 = dma.done.wait [#allocation4], 32  }
0x1c29   :  { %12017 = vsyncadd [#allocation4], 4294967264 }
0x1c2a   :  { %12018 = dma.done.wait [#allocation5], 16  }
0x1c2b   :  { %12019 = vsyncadd [#allocation5], 4294967280 }
0x1c2c   :  { %8028 = sfence }
0x1c2d   :  { %8029 = vsyncpa [#allocation3], 1 }
0x1c2e   :  { %8030 = vsyncpa [#allocation7], 1 }
0x1c2f   :  { %8031 = vsyncpa [#allocation4], 1 }
0x1c30   :  { %8032 = vsyncpa [#allocation5], 1 }

</bundles_post_ra>
